<compile_context>
chip_gen: v5e
topology: v5e:2x2
jax: 0.10.0
libtpu: 0.0.40
codegen_flags: <defaults>
</compile_context>

<pallas_src>
import functools

import jax
import jax.numpy as jnp
from jax.experimental import pallas as pl
from jax.experimental.pallas import tpu as pltpu


# --------------------------------------------------------------------------
# Kernel 1: streaming masked-sum pooling over (batch, seq) tiles.
# --------------------------------------------------------------------------
def masked_sum_kernel(sent_emb_ref, doc_emb_ref, sent_mask_ref, doc_mask_ref,
                      sent_out_ref, doc_out_ref, sent_acc, doc_acc):
    j = pl.program_id(1)                       # seq (reduction) step

    @pl.when(j == 0)
    def _init():
        sent_acc[...] = jnp.zeros_like(sent_acc)
        doc_acc[...] = jnp.zeros_like(doc_acc)

    # bf16 HBM stream -> f32 VPU math (portable to v5e) -> f32 accumulators.
    se = sent_emb_ref[...].astype(jnp.float32)          # [TB, TS, H]
    de = doc_emb_ref[...].astype(jnp.float32)           # [TB, TS, H]
    sm = sent_mask_ref[...].astype(jnp.float32)         # [TB, TS, 1]
    dm = doc_mask_ref[...].astype(jnp.float32)          # [TB, TS, 1]

    sent_acc[...] += jnp.sum(se * sm, axis=1)           # [TB, H]
    doc_acc[...] += jnp.sum(de * dm, axis=1)            # [TB, H]

    @pl.when(j == pl.num_programs(1) - 1)
    def _finalize():
        sent_out_ref[...] = sent_acc[...]
        doc_out_ref[...] = doc_acc[...]


def masked_sum_pool(sent_emb, doc_emb, sent_mask3, doc_mask3,
                    *, tile_b, tile_s, vmem_limit_bytes):
    B, S, H = sent_emb.shape
    assert B % tile_b == 0 and S % tile_s == 0, "demo shapes must tile evenly"
    assert tile_b % 8 == 0 and tile_s % 8 == 0
    grid = (B // tile_b, S // tile_s)

    emb_spec = pl.BlockSpec((tile_b, tile_s, H), lambda i, j: (i, j, 0))
    mask_spec = pl.BlockSpec((tile_b, tile_s, 1), lambda i, j: (i, j, 0))
    out_spec = pl.BlockSpec((tile_b, H), lambda i, j: (i, 0))

    return pl.pallas_call(
        masked_sum_kernel,
        out_shape=(jax.ShapeDtypeStruct((B, H), jnp.float32),
                   jax.ShapeDtypeStruct((B, H), jnp.float32)),
        grid_spec=pltpu.PrefetchScalarGridSpec(
            num_scalar_prefetch=0,
            grid=grid,
            in_specs=[emb_spec, emb_spec, mask_spec, mask_spec],
            out_specs=[out_spec, out_spec],
            scratch_shapes=[
                pltpu.VMEM((tile_b, H), jnp.float32),    # sentence masked sum
                pltpu.VMEM((tile_b, H), jnp.float32),    # doc masked sum
            ]),
        compiler_params=pltpu.CompilerParams(
            # batch tiles independent -> megacore "parallel" on v7x;
            # seq is the reduction axis -> "arbitrary", kept innermost.
            dimension_semantics=("parallel", "arbitrary"),
            # <= ~48 MiB keeps the same config legal on v7x's 64 MiB VMEM;
            # raise toward 64-100 MiB on v5e/v6e if tile_s is grown further.
            vmem_limit_bytes=vmem_limit_bytes),
    )(sent_emb, doc_emb, sent_mask3, doc_mask3)


# --------------------------------------------------------------------------
# Kernel 2: mean-pool finalize + classifier head over pooled features (M = B).
# --------------------------------------------------------------------------
def head_kernel(sent_sum_ref, doc_sum_ref, sent_cnt_ref, doc_cnt_ref,
                w1_ref, b1_ref, w2_ref, b2_ref, out_ref, *, hidden):
    H = hidden
    # mean_pooling: sum / clamp(count, 1e-9) — matches the torch helper.
    s = sent_sum_ref[...] / jnp.maximum(sent_cnt_ref[...], 1e-9)     # [B, H]
    d = doc_sum_ref[...] / jnp.maximum(doc_cnt_ref[...], 1e-9)       # [B, H]
    c = s * d                                                        # combined

    # concat([s, d, c]) @ W1 + b1, expressed as three accumulated MXU dots
    # against static slices of W1 (avoids materializing a [B, 3H] concat).
    wdt = w1_ref.dtype
    pooler = (
        jnp.dot(s.astype(wdt), w1_ref[0:H, :],
                preferred_element_type=jnp.float32)
        + jnp.dot(d.astype(wdt), w1_ref[H:2 * H, :],
                  preferred_element_type=jnp.float32)
        + jnp.dot(c.astype(wdt), w1_ref[2 * H:3 * H, :],
                  preferred_element_type=jnp.float32)
        + b1_ref[...])
    pooler = jnp.maximum(pooler, 0.0)                    # ReLU
    # Dropout(p=0.3): inference-mode identity (no-op).
    # classifier out_features == 1 -> VPU multiply + lane reduce (no N=1 MXU).
    logits = jnp.sum(pooler * w2_ref[...], axis=-1, keepdims=True) + b2_ref[...]
    # Sigmoid (exp overflow for very negative logits collapses to 0.0, benign).
    out_ref[...] = 1.0 / (1.0 + jnp.exp(-logits))


def classifier_head(sent_sum, doc_sum, sent_cnt, doc_cnt, w1, b1, w2, b2):
    B, H = sent_sum.shape
    P = w1.shape[-1]

    vec_spec = pl.BlockSpec((B, H), lambda i: (0, 0))
    cnt_spec = pl.BlockSpec((B, 1), lambda i: (0, 0))
    w1_spec = pl.BlockSpec((3 * H, P), lambda i: (0, 0))
    b1_spec = pl.BlockSpec((1, P), lambda i: (0, 0))
    w2_spec = pl.BlockSpec((1, P), lambda i: (0, 0))
    b2_spec = pl.BlockSpec((1, 1), lambda i: (0, 0))
    out_spec = pl.BlockSpec((B, 1), lambda i: (0, 0))

    return pl.pallas_call(
        functools.partial(head_kernel, hidden=H),
        out_shape=jax.ShapeDtypeStruct((B, 1), jnp.float32),
        grid_spec=pltpu.PrefetchScalarGridSpec(
            num_scalar_prefetch=0,
            grid=(1,),
            in_specs=[vec_spec, vec_spec, cnt_spec, cnt_spec,
                      w1_spec, b1_spec, w2_spec, b2_spec],
            out_specs=out_spec),
        compiler_params=pltpu.CompilerParams(
            dimension_semantics=("arbitrary",),
            vmem_limit_bytes=32 * 1024 * 1024),
    )(sent_sum, doc_sum, sent_cnt, doc_cnt, w1, b1, w2, b2)


# --------------------------------------------------------------------------
# Model wrapper.
# --------------------------------------------------------------------------
def synthetic_encoder(token_ids, emb_table):
    # TODO(synk): the pretrained MiniLM transformer (self.l1 / AutoModel) has
    # no clean in-script equivalent; a deterministic embedding lookup stands in
    # for its last_hidden_state [B, S, H].  With a real encoder these
    # activations already live in HBM, which is exactly what kernel 1 streams.
    return jnp.take(emb_table, token_ids, axis=0)


def sentence_bert_forward(params, sent_ids, doc_ids, sent_mask, doc_mask,
                          *, tile_b=8, tile_s=128):
    # Stream token embeddings / masks as bf16 (halves HBM bytes of the
    # memory-bound pooling kernel); accumulation stays f32 in-kernel.
    sent_emb = synthetic_encoder(sent_ids, params["emb_table"]).astype(jnp.bfloat16)
    doc_emb = synthetic_encoder(doc_ids, params["emb_table"]).astype(jnp.bfloat16)
    sent_mask3 = sent_mask.astype(jnp.bfloat16)[:, :, None]        # [B, S, 1]
    doc_mask3 = doc_mask.astype(jnp.bfloat16)[:, :, None]          # [B, S, 1]

    # Mask counts are a trivial [B, 1] reduction — precompute outside the
    # kernel instead of accumulating them per seq tile.
    sent_cnt = jnp.sum(sent_mask, axis=1, keepdims=True).astype(jnp.float32)
    doc_cnt = jnp.sum(doc_mask, axis=1, keepdims=True).astype(jnp.float32)

    sent_sum, doc_sum = masked_sum_pool(
        sent_emb, doc_emb, sent_mask3, doc_mask3,
        tile_b=tile_b, tile_s=tile_s,
        vmem_limit_bytes=48 * 1024 * 1024)

    return classifier_head(sent_sum, doc_sum, sent_cnt, doc_cnt,
                           params["w1"], params["b1"],
                           params["w2"], params["b2"])


def reference_forward(params, sent_ids, doc_ids, sent_mask, doc_mask):
    """Pure-JAX reference mirroring the PyTorch forward (eval mode) with the
    same bf16 rounding points as the kernels (so the check stays tight)."""
    def enc(ids):
        e = synthetic_encoder(ids, params["emb_table"])
        return e.astype(jnp.bfloat16).astype(jnp.float32)

    def mean_pooling(tok, mask):
        m = mask.astype(jnp.float32)[:, :, None]
        return jnp.sum(tok * m, axis=1) / jnp.maximum(jnp.sum(m, axis=1), 1e-9)

    s = mean_pooling(enc(sent_ids), sent_mask)
    d = mean_pooling(enc(doc_ids), doc_mask)
    concat = jnp.concatenate([s, d, s * d], axis=1)
    concat = concat.astype(jnp.bfloat16).astype(jnp.float32)
    w1 = params["w1"].astype(jnp.float32)
    pooler = jnp.maximum(concat @ w1 + params["b1"], 0.0)
    logits = jnp.sum(pooler * params["w2"], axis=-1, keepdims=True) + params["b2"]
    return jax.nn.sigmoid(logits)


if __name__ == "__main__":
    # Real head sizes from the module (in_features=384, pre_classifier 1152->768)
    # with a small batch / sequence.  H=384 keeps the embedding blocks
    # lane-dense (3 x 128 lanes); tile_b=8 gives 2 "parallel" batch tiles.
    B, S, H, P, VOCAB = 16, 512, 384, 768, 128
    TB, TS = 8, 128                      # grid = (2 batch tiles, 4 seq tiles)

    key = jax.random.PRNGKey(0)
    (k_emb, k_w1, k_b1, k_w2, k_b2,
     k_sid, k_did, k_sm, k_dm) = jax.random.split(key, 9)

    params = {
        "emb_table": jax.random.normal(k_emb, (VOCAB, H), jnp.float32) * 0.1,
        # pre_classifier stored [in=3H, out=P] (torch weight pre-transposed),
        # kept bf16 for the MXU / VMEM residency.
        "w1": (jax.random.normal(k_w1, (3 * H, P), jnp.float32) * 0.05
               ).astype(jnp.bfloat16),
        "b1": jax.random.normal(k_b1, (1, P), jnp.float32) * 0.01,
        # classifier kept in torch layout [out=1, in=P]
        "w2": jax.random.normal(k_w2, (1, P), jnp.float32) * 0.05,
        "b2": jax.random.normal(k_b2, (1, 1), jnp.float32) * 0.01,
    }

    sent_ids = jax.random.randint(k_sid, (B, S), 0, VOCAB, jnp.int32)
    doc_ids = jax.random.randint(k_did, (B, S), 0, VOCAB, jnp.int32)
    sent_mask = (jax.random.uniform(k_sm, (B, S)) > 0.25).astype(jnp.int32)
    doc_mask = (jax.random.uniform(k_dm, (B, S)) > 0.25).astype(jnp.int32)

    out = sentence_bert_forward(params, sent_ids, doc_ids, sent_mask, doc_mask,
                                tile_b=TB, tile_s=TS)
    out = jax.block_until_ready(out)

    ref = reference_forward(params, sent_ids, doc_ids, sent_mask, doc_mask)
    assert out.shape == (B, 1)
    assert jnp.allclose(out, ref, atol=1e-3, rtol=1e-3), (out, ref)

    print("KERNEL_OK")
</pallas_src>

<mosaic_0001>
module attributes {stable_mosaic.version = 11 : i64} {
  func.func @masked_sum_kernel(%arg0: i32, %arg1: i32, %arg2: memref<8x128x384xbf16, #tpu.memory_space<vmem>>, %arg3: memref<8x128x384xbf16, #tpu.memory_space<vmem>>, %arg4: memref<8x128x1xbf16, #tpu.memory_space<vmem>>, %arg5: memref<8x128x1xbf16, #tpu.memory_space<vmem>>, %arg6: memref<8x384xf32, #tpu.memory_space<vmem>>, %arg7: memref<8x384xf32, #tpu.memory_space<vmem>>, %arg8: memref<8x384xf32, #tpu.memory_space<vmem>>, %arg9: memref<8x384xf32, #tpu.memory_space<vmem>>) attributes {dimension_semantics = [#tpu.dimension_semantics<parallel>, #tpu.dimension_semantics<arbitrary>], iteration_bounds = array<i64: 2, 4>, scalar_prefetch = 0 : i64, scratch_operands = 2 : i64, tpu.core_type = #tpu.core_type<tc>, window_params = [{transform_indices = @transform_0, window_bounds = array<i64: 8, 128, 384>}, {transform_indices = @transform_1, window_bounds = array<i64: 8, 128, 384>}, {transform_indices = @transform_2, window_bounds = array<i64: 8, 128, 1>}, {transform_indices = @transform_3, window_bounds = array<i64: 8, 128, 1>}, {transform_indices = @transform_4, window_bounds = array<i64: 8, 384>}, {transform_indices = @transform_5, window_bounds = array<i64: 8, 384>}]} {
    %c0_i32 = arith.constant 0 : i32
    %0 = arith.cmpi eq, %arg1, %c0_i32 : i32
    %1 = arith.extui %0 : i1 to i32
    %c0_i32_0 = arith.constant 0 : i32
    %2 = arith.cmpi ne, %1, %c0_i32_0 : i32
    scf.if %2 {
      %cst_22 = arith.constant 0.000000e+00 : f32
      %26 = vector.broadcast %cst_22 : f32 to vector<8x384xf32>
      %c0_23 = arith.constant 0 : index
      %c0_24 = arith.constant 0 : index
      %27 = vector.load %arg8[%c0_23, %c0_24] : memref<8x384xf32, #tpu.memory_space<vmem>>, vector<8x384xf32>
      tpu.vector_store %arg8[%c0_23, %c0_24], %26 {strides = array<i32>} : memref<8x384xf32, #tpu.memory_space<vmem>>, vector<8x384xf32>,
      %cst_25 = arith.constant 0.000000e+00 : f32
      %28 = vector.broadcast %cst_25 : f32 to vector<8x384xf32>
      %c0_26 = arith.constant 0 : index
      %c0_27 = arith.constant 0 : index
      %29 = vector.load %arg9[%c0_26, %c0_27] : memref<8x384xf32, #tpu.memory_space<vmem>>, vector<8x384xf32>
      tpu.vector_store %arg9[%c0_26, %c0_27], %28 {strides = array<i32>} : memref<8x384xf32, #tpu.memory_space<vmem>>, vector<8x384xf32>,
    } else {
    }
    %c0 = arith.constant 0 : index
    %c0_1 = arith.constant 0 : index
    %c0_2 = arith.constant 0 : index
    %3 = vector.load %arg2[%c0, %c0_1, %c0_2] : memref<8x128x384xbf16, #tpu.memory_space<vmem>>, vector<8x128x384xbf16>
    %4 = arith.extf %3 : vector<8x128x384xbf16> to vector<8x128x384xf32>
    %c0_3 = arith.constant 0 : index
    %c0_4 = arith.constant 0 : index
    %c0_5 = arith.constant 0 : index
    %5 = vector.load %arg3[%c0_3, %c0_4, %c0_5] : memref<8x128x384xbf16, #tpu.memory_space<vmem>>, vector<8x128x384xbf16>
    %6 = arith.extf %5 : vector<8x128x384xbf16> to vector<8x128x384xf32>
    %c0_6 = arith.constant 0 : index
    %c0_7 = arith.constant 0 : index
    %c0_8 = arith.constant 0 : index
    %7 = vector.load %arg4[%c0_6, %c0_7, %c0_8] : memref<8x128x1xbf16, #tpu.memory_space<vmem>>, vector<8x128x1xbf16>
    %8 = arith.extf %7 : vector<8x128x1xbf16> to vector<8x128x1xf32>
    %c0_9 = arith.constant 0 : index
    %c0_10 = arith.constant 0 : index
    %c0_11 = arith.constant 0 : index
    %9 = vector.load %arg5[%c0_9, %c0_10, %c0_11] : memref<8x128x1xbf16, #tpu.memory_space<vmem>>, vector<8x128x1xbf16>
    %10 = arith.extf %9 : vector<8x128x1xbf16> to vector<8x128x1xf32>
    %c0_12 = arith.constant 0 : index
    %c0_13 = arith.constant 0 : index
    %11 = vector.load %arg8[%c0_12, %c0_13] : memref<8x384xf32, #tpu.memory_space<vmem>>, vector<8x384xf32>
    %12 = vector.broadcast %8 : vector<8x128x1xf32> to vector<8x128x384xf32>
    %13 = arith.mulf %4, %12 : vector<8x128x384xf32>
    %cst = arith.constant dense<0.000000e+00> : vector<8x384xf32>
    %14 = vector.multi_reduction <add>, %13, %cst [1] : vector<8x128x384xf32> to vector<8x384xf32>
    %15 = arith.addf %11, %14 : vector<8x384xf32>
    %c0_14 = arith.constant 0 : index
    %c0_15 = arith.constant 0 : index
    %16 = vector.load %arg8[%c0_14, %c0_15] : memref<8x384xf32, #tpu.memory_space<vmem>>, vector<8x384xf32>
    tpu.vector_store %arg8[%c0_14, %c0_15], %15 {strides = array<i32>} : memref<8x384xf32, #tpu.memory_space<vmem>>, vector<8x384xf32>,
    %c0_16 = arith.constant 0 : index
    %c0_17 = arith.constant 0 : index
    %17 = vector.load %arg9[%c0_16, %c0_17] : memref<8x384xf32, #tpu.memory_space<vmem>>, vector<8x384xf32>
    %18 = vector.broadcast %10 : vector<8x128x1xf32> to vector<8x128x384xf32>
    %19 = arith.mulf %6, %18 : vector<8x128x384xf32>
    %cst_18 = arith.constant dense<0.000000e+00> : vector<8x384xf32>
    %20 = vector.multi_reduction <add>, %19, %cst_18 [1] : vector<8x128x384xf32> to vector<8x384xf32>
    %21 = arith.addf %17, %20 : vector<8x384xf32>
    %c0_19 = arith.constant 0 : index
    %c0_20 = arith.constant 0 : index
    %22 = vector.load %arg9[%c0_19, %c0_20] : memref<8x384xf32, #tpu.memory_space<vmem>>, vector<8x384xf32>
    tpu.vector_store %arg9[%c0_19, %c0_20], %21 {strides = array<i32>} : memref<8x384xf32, #tpu.memory_space<vmem>>, vector<8x384xf32>,
    %c3_i32 = arith.constant 3 : i32
    %23 = arith.cmpi eq, %arg1, %c3_i32 : i32
    %24 = arith.extui %23 : i1 to i32
    %c0_i32_21 = arith.constant 0 : i32
    %25 = arith.cmpi ne, %24, %c0_i32_21 : i32
    scf.if %25 {
      %c0_22 = arith.constant 0 : index
      %c0_23 = arith.constant 0 : index
      %26 = vector.load %arg8[%c0_22, %c0_23] : memref<8x384xf32, #tpu.memory_space<vmem>>, vector<8x384xf32>
      %c0_24 = arith.constant 0 : index
      %c0_25 = arith.constant 0 : index
      %27 = vector.load %arg6[%c0_24, %c0_25] : memref<8x384xf32, #tpu.memory_space<vmem>>, vector<8x384xf32>
      tpu.vector_store %arg6[%c0_24, %c0_25], %26 {strides = array<i32>} : memref<8x384xf32, #tpu.memory_space<vmem>>, vector<8x384xf32>,
      %c0_26 = arith.constant 0 : index
      %c0_27 = arith.constant 0 : index
      %28 = vector.load %arg9[%c0_26, %c0_27] : memref<8x384xf32, #tpu.memory_space<vmem>>, vector<8x384xf32>
      %c0_28 = arith.constant 0 : index
      %c0_29 = arith.constant 0 : index
      %29 = vector.load %arg7[%c0_28, %c0_29] : memref<8x384xf32, #tpu.memory_space<vmem>>, vector<8x384xf32>
      tpu.vector_store %arg7[%c0_28, %c0_29], %28 {strides = array<i32>} : memref<8x384xf32, #tpu.memory_space<vmem>>, vector<8x384xf32>,
    } else {
    }
    return
  }
  func.func @transform_0(%arg0: i32, %arg1: i32) -> (i32, i32, i32) {
    %c0_i32 = arith.constant 0 : i32
    %c0_i32_0 = arith.constant 0 : i32
    return %arg0, %arg1, %c0_i32 : i32, i32, i32
  }
  func.func @transform_1(%arg0: i32, %arg1: i32) -> (i32, i32, i32) {
    %c0_i32 = arith.constant 0 : i32
    %c0_i32_0 = arith.constant 0 : i32
    return %arg0, %arg1, %c0_i32 : i32, i32, i32
  }
  func.func @transform_2(%arg0: i32, %arg1: i32) -> (i32, i32, i32) {
    %c0_i32 = arith.constant 0 : i32
    %c0_i32_0 = arith.constant 0 : i32
    return %arg0, %arg1, %c0_i32 : i32, i32, i32
  }
  func.func @transform_3(%arg0: i32, %arg1: i32) -> (i32, i32, i32) {
    %c0_i32 = arith.constant 0 : i32
    %c0_i32_0 = arith.constant 0 : i32
    return %arg0, %arg1, %c0_i32 : i32, i32, i32
  }
  func.func @transform_4(%arg0: i32, %arg1: i32) -> (i32, i32) {
    %c0_i32 = arith.constant 0 : i32
    %c0_i32_0 = arith.constant 0 : i32
    return %arg0, %c0_i32 : i32, i32
  }
  func.func @transform_5(%arg0: i32, %arg1: i32) -> (i32, i32) {
    %c0_i32 = arith.constant 0 : i32
    %c0_i32_0 = arith.constant 0 : i32
    return %arg0, %c0_i32 : i32, i32
  }
}

</mosaic_0001>

<bundles_post_ra>
// kernel: tpu_custom_call.1
= control target key start
LH: loop header
LB: loop body
LE: loop exit
PB: predicated region body
PF: predicated region fallthrough
CT: control target
= control target key end

     0   :  { %11 = vsyncpa [#allocation5], 0  ;;  %s12268_s0 = inlined_call_operand.hbm [shape: bf16[16,512,384], index: 0, kind: input, shape index: {}]   ;;  %s12269_s1 = inlined_call_operand.hbm [shape: bf16[16,512,384], index: 1, kind: input, shape index: {}]   ;;  %s12270_s2 = inlined_call_operand.vmem [shape: bf16[16,512,1], index: 2, kind: input, shape index: {}]   ;;  %s12271_s3 = inlined_call_operand.vmem [shape: bf16[16,512,1], index: 3, kind: input, shape index: {}]   ;;  %s12272_s4 = inlined_call_operand.hbm [shape: f32[16,384], index: 4, kind: output, shape index: {0}]   ;;  %s12273_s5 = inlined_call_operand.hbm [shape: f32[16,384], index: 5, kind: output, shape index: {1}]  }
   0x1   :  { %13 = vsyncpa [#allocation5 + $0x1], 0 }
   0x2   :  { %14 = vsyncpa [#allocation8], 0 }
   0x3   :  { %16 = vsyncpa [#allocation8 + $0x1], 0 }
   0x4   :  { %17 = vsyncpa [#allocation6], 0 }
   0x5   :  { %19 = vsyncpa [#allocation6 + $0x1], 0 }
   0x6   :  { %20 = vsyncpa [#allocation13], 0 }
   0x7   :  { %22 = vsyncpa [#allocation13 + $0x1], 0  ;;  %s8417_s18 = smov 0   ;;  %s8419_s19 = smov 0  }
   0x8   :  { %s8421_s20 = smov 0   ;;  %s8423_s21 = smov 0  }
   0x9   :  { %s8425_s22 = smov 0   ;;  %s8427_s23 = smov 0  }
   0xa   :  { %s8429_s24 = smov 0   ;;  %s8431_s25 = smov 0  }
   0xb   :  { %s8433_s26 = smov 0   ;;  %s8435_s27 = smov 0  }
   0xc   :  { %s8437_s28 = smov 0  }
   0xd LB: > { %12297 = sst [smem:[#allocation24_spill]] %s8331_s18  ;;  %s6751_s29 = sadd.s32 4294967295, %s8371_s28   ;;  %s8371_s28 = sphi %s8437_s28, %s28_s28   ;;  %s8367_s27 = sphi %s8435_s27, %s12475_s27   ;;  %s8363_s26 = sphi %s8433_s26, %s12474_s26   ;;  %s8359_s25 = sphi %s8431_s25, %s12473_s25   ;;  %s8355_s24 = sphi %s8429_s24, %s12472_s24   ;;  %s8351_s23 = sphi %s8427_s23, %s12465_s23   ;;  %s8347_s22 = sphi %s8425_s22, %s12471_s22   ;;  %s8343_s21 = sphi %s8423_s21, %s12470_s21   ;;  %s8339_s20 = sphi %s8421_s20, %s12463_s20   ;;  %s8335_s19 = sphi %s8419_s19, %s12469_s19   ;;  %s8331_s18 = sphi %s8417_s18, %s12468_s18  }
   0xe   : > { %12298 = sst [smem:[#allocation25_spill]] %s8339_s20  ;;  %s6752_s30 = sadd.s32 4294967294, %s8371_s28  }
   0xf   : > { %12299 = sst [smem:[#allocation26_spill]] %s8351_s23  ;;  %s37_s6 = sadd.s32 1, %s8363_s26 }
  0x10   : > { %s40_s7 = sadd.s32 1, %s8367_s27  ;;  %p38_p0 = scmp.ge.s32.totalorder %s37_s6, 4 }
  0x11   : > { %s49_s8 = sadd.s32 1, %s8351_s23  ;;  %p56_p1 = scmp.ne.s32.totalorder %s8351_s23, %s8347_s22 }
  0x12   : > { %p57_p2 = scmp.eq.s32.totalorder %s8371_s28, 0  ;;  %s12477_s6 = smov (%p38_p0, %s37_s6), 0 }
  0x13   : > { %12300 = sst [smem:[#allocation27_spill]] %s12477_s6  ;;  %s12479_s7 = smov (!%p38_p0, %s40_s7), %s8367_s27 }
  0x14   : > { %s45_s9 = ssub.s32 %s8363_s26, %s12477_s6  ;;  %p8483_p3 = por %p57_p2, %p56_p1 }
  0x15   : > { %p42_p4 = scmp.ge.s32.totalorder %s12479_s7, 2  ;;  %p62_p5 = scmp.ne.s32.totalorder %s8347_s22, %s8343_s21 }
  0x16   : > { %p63_p6 = scmp.eq.s32.totalorder %s6751_s29, 0  ;;  %s159_s11 = sadd.s32 1, %s8339_s20 }
  0x17   : > { %s12481_s7 = smov (%p42_p4, %s12479_s7), 0  ;;  %p169_p8 = scmp.ne.s32.totalorder %s8339_s20, %s8335_s19 }
  0x18   : > { %12302 = sst [smem:[#allocation28_spill]] %s12481_s7  ;;  %p8491_p7 = por %p63_p6, %p62_p5 }
  0x19   : > { %s44_s13 = ssub.s32 %s8367_s27, %s12481_s7  ;;  %p170_p9 = scmp.eq.s32.totalorder %s6751_s29, 7 }
  0x1a   : > { %s46_s14 = sor.u32 %s45_s9, %s44_s13  ;;  %p157_p10 = scmp.eq.s32.totalorder %s44_s13, 0 }
  0x1b   : > { %p47_p11 = scmp.eq.s32.totalorder %s46_s14, 0  ;;  %p8499_p12 = por %p170_p9, %p169_p8 }
  0x1c   : > { %s8504_s16 = scalar_select %p157_p10, %s8339_s20, %s159_s11  }
  0x1d   : > { %s8507_s17 = scalar_select %p47_p11, %s8351_s23, %s49_s8  }
  0x1e   : > { %12305 = sst [smem:[#allocation29_spill]] %s8504_s16  ;;  %p175_p13 = scmp.ne.s32.totalorder %s8335_s19, %s8331_s18 }
  0x1f   : > { %12306 = sst [smem:[#allocation30_spill]] %s8507_s17  ;;  %p176_p0 = scmp.eq.s32.totalorder %s6752_s30, 7 }
  0x20   : > { %p6754_p2 = scmp.ge.s32.totalorder %s8371_s28, 8 }
  0x21   : > { %p8511_p1 = por %p176_p0, %p175_p13 }
  0x22   : > { %218 = sbr.rel (%p6754_p2) target bundleno = 208 (0xd0), region = 16 }
  0x23   : > { %s12307_s21 = scalar_select %p8511_p1, 1, 0 }
  0x25   : > { %12308 = sst [smem:[#allocation31_spill]] %s12307_s21 }
  0x27   : > { %s8517_s29 = sand.u32 1, %s8351_s23   ;;  %s7429_s8 = smul.u32 48, %s8363_s26 }
  0x28   : > { %s7428_s30 = smul.u32 1536, %s8517_s29  ;;  %s8373_s11 = smov 12288  }
  0x29   : > { %s7430_s9 = smul.u32 1536, %s8367_s27  ;;  %7439 = sst [smem:[#allocation15]] (%p8483_p3), %s8373_s11 }
  0x2a   : > { %s7438_s23 = scalar_select %p8483_p3, [#allocation0], [#allocation18] }
  0x2b   : > { %s233_s13 = sadd.s32 %s7430_s9, %s7429_s8  ;;  %s226_s16 = scalar_lea.vmem [#allocation4], %s7428_s30 }
  0x2c   : > { %s6759_s14 = sshll.u32 %s233_s13, 2  ;;  %s250_s20 = sshll.u32 %s226_s16, 4  ;;  %s251_s20 = int_to_ptr.vmem [resolvable:$true] %s250_s20 }
  0x2d   : > { %s235_s17 = scalar_lea.hbm %s12268_s0, %s6759_s14  ;;  %s8374_s21 = smov 3072  }
  0x2e   : > { %7440 = sst [smem:[#allocation15 + $0x1]] (%p8483_p3), %s8374_s21  ;;  %s248_s11 = sshll.u32 %s235_s17, 4  ;;  %s249_s11 = int_to_ptr.hbm [resolvable:$true] %s248_s11 }
  0x2f   : > { %s240_s18 = sld [smem:[%s7438_s23]]   ;;  %s8375_s8 = smov 16  }
  0x30   : > { %7441 = sst [smem:[#allocation15 + $0x2]] (%p8483_p3), %s8375_s8  ;;  %s8376_s9 = smov 192  }
  0x31   : > { %7442 = sst [smem:[#allocation15 + $0x3]] (%p8483_p3), %s8376_s9  ;;  %s8377_s6 = smov 12  }
  0x32   : > { %7443 = sst [smem:[#allocation15 + $0x4]] (%p8483_p3), %s8376_s9  ;;  %s223_s13 = scalar_lea.sflag [#allocation5], %s8517_s29 }
  0x33   : > { %7444 = sst [smem:[#allocation15 + $0x5]] (%p8483_p3), %s8377_s6  ;;  %s8378_s21 = smov [#allocation14]  }
  0x35   : > { %s6760_s7 = sshll.u32 %s240_s18, 26 }
  0x36   : > { %s6761_s16 = sadd.s32 134217728, %s6760_s7 }
  0x37   : > { %7445 = dma.general (%p8483_p3), %s249_s11, 24576, %s251_s20, %s223_s13, %s8378_s21, [#allocation15], %s6761_s16, 0  }
  0x38   : > { %s286_s8 = scalar_lea.hbm %s12269_s1, %s6759_s14  ;;  %s277_s9 = scalar_lea.vmem [#allocation7], %s7428_s30 }
  0x39   : > { %s301_s6 = sshll.u32 %s277_s9, 4  ;;  %s299_s7 = sshll.u32 %s286_s8, 4  ;;  %s302_s6 = int_to_ptr.vmem [resolvable:$true] %s301_s6  ;;  %s300_s7 = int_to_ptr.hbm [resolvable:$true] %s299_s7 }
  0x3a   : > { %s7446_s18 = scalar_select %p8483_p3, [#allocation0], [#allocation19] }
  0x3b   : > { %s8379_s11 = smov 12288   ;;  %s8380_s16 = smov 3072  }
  0x3c   : > { %s291_s20 = sld [smem:[%s7446_s18]]   ;;  %s8381_s14 = smov 16  }
  0x3d   : > { %7447 = sst [smem:[#allocation17]] (%p8483_p3), %s8379_s11  ;;  %s8382_s30 = smov 192  }
  0x3e   : > { %7448 = sst [smem:[#allocation17 + $0x1]] (%p8483_p3), %s8380_s16  ;;  %s8383_s23 = smov 12  }
  0x3f   : > { %7449 = sst [smem:[#allocation17 + $0x2]] (%p8483_p3), %s8381_s14  ;;  %s274_s17 = scalar_lea.sflag [#allocation8], %s8517_s29 }
  0x40   : > { %7450 = sst [smem:[#allocation17 + $0x3]] (%p8483_p3), %s8382_s30  ;;  %s8384_s8 = smov [#allocation16]  }
  0x41   : > { %7451 = sst [smem:[#allocation17 + $0x4]] (%p8483_p3), %s8382_s30  ;;  %323 = sbr.rel (!%p8483_p3) target bundleno = 138 (0x8a), region = 28 }
  0x42   : > { %s6767_s13 = sshll.u32 %s291_s20, 26  ;;  %7452 = sst [smem:[#allocation17 + $0x5]] (%p8483_p3), %s8383_s23 }
  0x43   : > { %s6768_s21 = sadd.s32 134217728, %s6767_s13  ;;  %s6769_s9 = sshll.u32 (%p8483_p3), %s8517_s29, 9 }
  0x44   : > { %7453 = dma.general (%p8483_p3), %s300_s7, 24576, %s302_s6, %s274_s17, %s8384_s8, [#allocation17], %s6768_s21, 0  }
  0x45   : > { %s6771_s18 = sshll.u32 (%p8483_p3), %s8363_s26, 4  ;;  %s6788_s11 = sshll.u32 (%p8483_p3), %s8367_s27, 9 }
  0x46   : > { %s331_s20 = sadd.s32 %s6788_s11, %s6771_s18  ;;  %s8579_s6 = scalar_lea.vmem [#allocation9], %s6769_s9 }
  0x47   : > { %s6773_s16 = sshll.u32 %s331_s20, 2 }
  0x48   : > { %s8574_s13 = scalar_lea.vmem %s12270_s2, %s6773_s16 }
  0x49   : > { %v350_v0 = vld [vmem:[%s8574_s13] sm:$0xff]   ;;  %v354_v1 = vld [vmem:[%s8574_s13 + $0x8] sm:$0xff]   ;;  %v358_v2 = vld [vmem:[%s8574_s13 + $0x10] sm:$0xff]  }
  0x4a   : > { %351 = vst [vmem:[%s8579_s6] sm:$0xff] %v350_v0   ;;  %v362_v3 = vld [vmem:[%s8574_s13 + $0x18] sm:$0xff]   ;;  %v366_v4 = vld [vmem:[%s8574_s13 + $0x20] sm:$0xff]   ;;  %v370_v5 = vld [vmem:[%s8574_s13 + $0x28] sm:$0xff]  }
  0x4b   : > { %355 = vst [vmem:[%s8579_s6 + $0x8] sm:$0xff] %v354_v1   ;;  %v374_v6 = vld [vmem:[%s8574_s13 + $0x30] sm:$0xff]   ;;  %v378_v7 = vld [vmem:[%s8574_s13 + $0x38] sm:$0xff]   ;;  %v382_v8 = vld [vmem:[%s8574_s13 + $0x100] sm:$0xff]  }
  0x4c   : > { %359 = vst [vmem:[%s8579_s6 + $0x10] sm:$0xff] %v358_v2   ;;  %v386_v9 = vld [vmem:[%s8574_s13 + $0x108] sm:$0xff]   ;;  %v390_v10 = vld [vmem:[%s8574_s13 + $0x110] sm:$0xff]   ;;  %v394_v11 = vld [vmem:[%s8574_s13 + $0x118] sm:$0xff]  }
  0x4d   : > { %363 = vst [vmem:[%s8579_s6 + $0x18] sm:$0xff] %v362_v3   ;;  %v398_v12 = vld [vmem:[%s8574_s13 + $0x120] sm:$0xff]   ;;  %v402_v13 = vld [vmem:[%s8574_s13 + $0x128] sm:$0xff]   ;;  %v406_v14 = vld [vmem:[%s8574_s13 + $0x130] sm:$0xff]  }
  0x4e   : > { %367 = vst [vmem:[%s8579_s6 + $0x20] sm:$0xff] %v366_v4   ;;  %v410_v15 = vld [vmem:[%s8574_s13 + $0x138] sm:$0xff]   ;;  %v414_v16 = vld [vmem:[%s8574_s13 + $0x200] sm:$0xff]   ;;  %v418_v17 = vld [vmem:[%s8574_s13 + $0x208] sm:$0xff]  }
  0x4f   : > { %371 = vst [vmem:[%s8579_s6 + $0x28] sm:$0xff] %v370_v5   ;;  %v422_v18 = vld [vmem:[%s8574_s13 + $0x210] sm:$0xff]   ;;  %v426_v19 = vld [vmem:[%s8574_s13 + $0x218] sm:$0xff]   ;;  %v430_v20 = vld [vmem:[%s8574_s13 + $0x220] sm:$0xff]  }
  0x50   : > { %375 = vst [vmem:[%s8579_s6 + $0x30] sm:$0xff] %v374_v6   ;;  %v434_v21 = vld [vmem:[%s8574_s13 + $0x228] sm:$0xff]   ;;  %v438_v22 = vld [vmem:[%s8574_s13 + $0x230] sm:$0xff]   ;;  %v442_v23 = vld [vmem:[%s8574_s13 + $0x238] sm:$0xff]  }
  0x51   : > { %379 = vst [vmem:[%s8579_s6 + $0x38] sm:$0xff] %v378_v7   ;;  %v446_v24 = vld [vmem:[%s8574_s13 + $0x300] sm:$0xff]   ;;  %v450_v25 = vld [vmem:[%s8574_s13 + $0x308] sm:$0xff]   ;;  %v454_v26 = vld [vmem:[%s8574_s13 + $0x310] sm:$0xff]  }
  0x52   : > { %383 = vst [vmem:[%s8579_s6 + $0x40] sm:$0xff] %v382_v8   ;;  %v458_v27 = vld [vmem:[%s8574_s13 + $0x318] sm:$0xff]   ;;  %v462_v28 = vld [vmem:[%s8574_s13 + $0x320] sm:$0xff]   ;;  %v466_v29 = vld [vmem:[%s8574_s13 + $0x328] sm:$0xff]  }
  0x53   : > { %387 = vst [vmem:[%s8579_s6 + $0x48] sm:$0xff] %v386_v9   ;;  %v470_v30 = vld [vmem:[%s8574_s13 + $0x330] sm:$0xff]   ;;  %v474_v31 = vld [vmem:[%s8574_s13 + $0x338] sm:$0xff]   ;;  %v478_v32 = vld [vmem:[%s8574_s13 + $0x400] sm:$0xff]  }
  0x54   : > { %391 = vst [vmem:[%s8579_s6 + $0x50] sm:$0xff] %v390_v10   ;;  %v482_v33 = vld [vmem:[%s8574_s13 + $0x408] sm:$0xff]   ;;  %v486_v34 = vld [vmem:[%s8574_s13 + $0x410] sm:$0xff]   ;;  %v490_v35 = vld [vmem:[%s8574_s13 + $0x418] sm:$0xff]  }
  0x55   : > { %395 = vst [vmem:[%s8579_s6 + $0x58] sm:$0xff] %v394_v11   ;;  %v494_v36 = vld [vmem:[%s8574_s13 + $0x420] sm:$0xff]   ;;  %v498_v37 = vld [vmem:[%s8574_s13 + $0x428] sm:$0xff]   ;;  %v502_v38 = vld [vmem:[%s8574_s13 + $0x430] sm:$0xff]  }
  0x56   : > { %399 = vst [vmem:[%s8579_s6 + $0x60] sm:$0xff] %v398_v12   ;;  %v506_v39 = vld [vmem:[%s8574_s13 + $0x438] sm:$0xff]   ;;  %v510_v40 = vld [vmem:[%s8574_s13 + $0x500] sm:$0xff]   ;;  %v514_v41 = vld [vmem:[%s8574_s13 + $0x508] sm:$0xff]  }
  0x57   : > { %403 = vst [vmem:[%s8579_s6 + $0x68] sm:$0xff] %v402_v13   ;;  %v518_v42 = vld [vmem:[%s8574_s13 + $0x510] sm:$0xff]   ;;  %v522_v43 = vld [vmem:[%s8574_s13 + $0x518] sm:$0xff]   ;;  %v526_v44 = vld [vmem:[%s8574_s13 + $0x520] sm:$0xff]  }
  0x58   : > { %407 = vst [vmem:[%s8579_s6 + $0x70] sm:$0xff] %v406_v14   ;;  %v530_v45 = vld [vmem:[%s8574_s13 + $0x528] sm:$0xff]   ;;  %v534_v46 = vld [vmem:[%s8574_s13 + $0x530] sm:$0xff]   ;;  %v538_v47 = vld [vmem:[%s8574_s13 + $0x538] sm:$0xff]  }
  0x59   : > { %411 = vst [vmem:[%s8579_s6 + $0x78] sm:$0xff] %v410_v15   ;;  %v542_v48 = vld [vmem:[%s8574_s13 + $0x600] sm:$0xff]   ;;  %v546_v49 = vld [vmem:[%s8574_s13 + $0x608] sm:$0xff]   ;;  %v550_v50 = vld [vmem:[%s8574_s13 + $0x610] sm:$0xff]  }
  0x5a   : > { %415 = vst [vmem:[%s8579_s6 + $0x80] sm:$0xff] %v414_v16   ;;  %v554_v51 = vld [vmem:[%s8574_s13 + $0x618] sm:$0xff]   ;;  %v558_v52 = vld [vmem:[%s8574_s13 + $0x620] sm:$0xff]   ;;  %v562_v53 = vld [vmem:[%s8574_s13 + $0x628] sm:$0xff]  }
  0x5b   : > { %419 = vst [vmem:[%s8579_s6 + $0x88] sm:$0xff] %v418_v17   ;;  %v566_v54 = vld [vmem:[%s8574_s13 + $0x630] sm:$0xff]   ;;  %v570_v55 = vld [vmem:[%s8574_s13 + $0x638] sm:$0xff]   ;;  %v574_v56 = vld [vmem:[%s8574_s13 + $0x700] sm:$0xff]  }
  0x5c   : > { %423 = vst [vmem:[%s8579_s6 + $0x90] sm:$0xff] %v422_v18   ;;  %v578_v57 = vld [vmem:[%s8574_s13 + $0x708] sm:$0xff]   ;;  %v582_v58 = vld [vmem:[%s8574_s13 + $0x710] sm:$0xff]   ;;  %v586_v59 = vld [vmem:[%s8574_s13 + $0x718] sm:$0xff]  }
  0x5d   : > { %427 = vst [vmem:[%s8579_s6 + $0x98] sm:$0xff] %v426_v19   ;;  %v590_v60 = vld [vmem:[%s8574_s13 + $0x720] sm:$0xff]   ;;  %v594_v61 = vld [vmem:[%s8574_s13 + $0x728] sm:$0xff]   ;;  %v598_v62 = vld [vmem:[%s8574_s13 + $0x730] sm:$0xff]  }
  0x5e   : > { %431 = vst [vmem:[%s8579_s6 + $0xa0] sm:$0xff] %v430_v20   ;;  %v602_v63 = vld [vmem:[%s8574_s13 + $0x738] sm:$0xff]  }
  0x5f   : > { %435 = vst [vmem:[%s8579_s6 + $0xa8] sm:$0xff] %v434_v21  }
  0x60   : > { %439 = vst [vmem:[%s8579_s6 + $0xb0] sm:$0xff] %v438_v22  }
  0x61   : > { %443 = vst [vmem:[%s8579_s6 + $0xb8] sm:$0xff] %v442_v23  }
  0x62   : > { %447 = vst [vmem:[%s8579_s6 + $0xc0] sm:$0xff] %v446_v24  }
  0x63   : > { %451 = vst [vmem:[%s8579_s6 + $0xc8] sm:$0xff] %v450_v25  }
  0x64   : > { %455 = vst [vmem:[%s8579_s6 + $0xd0] sm:$0xff] %v454_v26  }
  0x65   : > { %459 = vst [vmem:[%s8579_s6 + $0xd8] sm:$0xff] %v458_v27  }
  0x66   : > { %463 = vst [vmem:[%s8579_s6 + $0xe0] sm:$0xff] %v462_v28  }
  0x67   : > { %467 = vst [vmem:[%s8579_s6 + $0xe8] sm:$0xff] %v466_v29  }
  0x68   : > { %471 = vst [vmem:[%s8579_s6 + $0xf0] sm:$0xff] %v470_v30  }
  0x69   : > { %475 = vst [vmem:[%s8579_s6 + $0xf8] sm:$0xff] %v474_v31  }
  0x6a   : > { %479 = vst [vmem:[%s8579_s6 + $0x100] sm:$0xff] %v478_v32  }
  0x6b   : > { %483 = vst [vmem:[%s8579_s6 + $0x108] sm:$0xff] %v482_v33  }
  0x6c   : > { %487 = vst [vmem:[%s8579_s6 + $0x110] sm:$0xff] %v486_v34  }
  0x6d   : > { %491 = vst [vmem:[%s8579_s6 + $0x118] sm:$0xff] %v490_v35  }
  0x6e   : > { %495 = vst [vmem:[%s8579_s6 + $0x120] sm:$0xff] %v494_v36  }
  0x6f   : > { %499 = vst [vmem:[%s8579_s6 + $0x128] sm:$0xff] %v498_v37  }
  0x70   : > { %503 = vst [vmem:[%s8579_s6 + $0x130] sm:$0xff] %v502_v38  }
  0x71   : > { %507 = vst [vmem:[%s8579_s6 + $0x138] sm:$0xff] %v506_v39  }
  0x72   : > { %511 = vst [vmem:[%s8579_s6 + $0x140] sm:$0xff] %v510_v40  }
  0x73   : > { %515 = vst [vmem:[%s8579_s6 + $0x148] sm:$0xff] %v514_v41  }
  0x74   : > { %519 = vst [vmem:[%s8579_s6 + $0x150] sm:$0xff] %v518_v42  }
  0x75   : > { %523 = vst [vmem:[%s8579_s6 + $0x158] sm:$0xff] %v522_v43  }
  0x76   : > { %527 = vst [vmem:[%s8579_s6 + $0x160] sm:$0xff] %v526_v44  }
  0x77   : > { %531 = vst [vmem:[%s8579_s6 + $0x168] sm:$0xff] %v530_v45  }
  0x78   : > { %535 = vst [vmem:[%s8579_s6 + $0x170] sm:$0xff] %v534_v46  }
  0x79   : > { %539 = vst [vmem:[%s8579_s6 + $0x178] sm:$0xff] %v538_v47  }
  0x7a   : > { %543 = vst [vmem:[%s8579_s6 + $0x180] sm:$0xff] %v542_v48  }
  0x7b   : > { %547 = vst [vmem:[%s8579_s6 + $0x188] sm:$0xff] %v546_v49  }
  0x7c   : > { %551 = vst [vmem:[%s8579_s6 + $0x190] sm:$0xff] %v550_v50  }
  0x7d   : > { %555 = vst [vmem:[%s8579_s6 + $0x198] sm:$0xff] %v554_v51  }
  0x7e   : > { %559 = vst [vmem:[%s8579_s6 + $0x1a0] sm:$0xff] %v558_v52  }
  0x7f   : > { %563 = vst [vmem:[%s8579_s6 + $0x1a8] sm:$0xff] %v562_v53  }
  0x80   : > { %567 = vst [vmem:[%s8579_s6 + $0x1b0] sm:$0xff] %v566_v54  }
  0x81   : > { %571 = vst [vmem:[%s8579_s6 + $0x1b8] sm:$0xff] %v570_v55  }
  0x82   : > { %575 = vst [vmem:[%s8579_s6 + $0x1c0] sm:$0xff] %v574_v56  }
  0x83   : > { %579 = vst [vmem:[%s8579_s6 + $0x1c8] sm:$0xff] %v578_v57  }
  0x84   : > { %583 = vst [vmem:[%s8579_s6 + $0x1d0] sm:$0xff] %v582_v58  }
  0x85   : > { %587 = vst [vmem:[%s8579_s6 + $0x1d8] sm:$0xff] %v586_v59  }
  0x86   : > { %591 = vst [vmem:[%s8579_s6 + $0x1e0] sm:$0xff] %v590_v60  }
  0x87   : > { %595 = vst [vmem:[%s8579_s6 + $0x1e8] sm:$0xff] %v594_v61  }
  0x88   : > { %599 = vst [vmem:[%s8579_s6 + $0x1f0] sm:$0xff] %v598_v62  }
  0x89   : > { %603 = vst [vmem:[%s8579_s6 + $0x1f8] sm:$0xff] %v602_v63  }
  0x8a PF: > { %885 = sbr.rel (!%p8483_p3) target bundleno = 208 (0xd0), region = 69  ;;  %s6774_s7 = sshll.u32 (%p8483_p3), %s8517_s29, 9 }
  0x8b   : > { %s6776_s21 = sshll.u32 (%p8483_p3), %s8363_s26, 4  ;;  %s6789_s23 = sshll.u32 (%p8483_p3), %s8367_s27, 9 }
  0x8c   : > { %s893_s17 = sadd.s32 (%p8483_p3), %s6789_s23, %s6776_s21  ;;  %s8719_s10 = scalar_lea.vmem (%p8483_p3), [#allocation10], %s6774_s7 }
  0x8d   : > { %s6778_s8 = sshll.u32 (%p8483_p3), %s893_s17, 2 }
  0x8e   : > { %s8714_s11 = scalar_lea.vmem (%p8483_p3), %s12271_s3, %s6778_s8 }
  0x8f   : > { %v912_v0 = vld [vmem:[%s8714_s11] sm:$0xff]   ;;  %v916_v1 = vld [vmem:[%s8714_s11 + $0x8] sm:$0xff]   ;;  %v920_v2 = vld [vmem:[%s8714_s11 + $0x10] sm:$0xff]  }
  0x90   : > { %913 = vst [vmem:[%s8719_s10] sm:$0xff] %v912_v0   ;;  %v924_v3 = vld [vmem:[%s8714_s11 + $0x18] sm:$0xff]   ;;  %v928_v4 = vld [vmem:[%s8714_s11 + $0x20] sm:$0xff]   ;;  %v932_v5 = vld [vmem:[%s8714_s11 + $0x28] sm:$0xff]  }
  0x91   : > { %917 = vst [vmem:[%s8719_s10 + $0x8] sm:$0xff] %v916_v1   ;;  %v936_v6 = vld [vmem:[%s8714_s11 + $0x30] sm:$0xff]   ;;  %v940_v7 = vld [vmem:[%s8714_s11 + $0x38] sm:$0xff]   ;;  %v944_v8 = vld [vmem:[%s8714_s11 + $0x100] sm:$0xff]  }
  0x92   : > { %921 = vst [vmem:[%s8719_s10 + $0x10] sm:$0xff] %v920_v2   ;;  %v948_v9 = vld [vmem:[%s8714_s11 + $0x108] sm:$0xff]   ;;  %v952_v10 = vld [vmem:[%s8714_s11 + $0x110] sm:$0xff]   ;;  %v956_v11 = vld [vmem:[%s8714_s11 + $0x118] sm:$0xff]  }
  0x93   : > { %925 = vst [vmem:[%s8719_s10 + $0x18] sm:$0xff] %v924_v3   ;;  %v960_v12 = vld [vmem:[%s8714_s11 + $0x120] sm:$0xff]   ;;  %v964_v13 = vld [vmem:[%s8714_s11 + $0x128] sm:$0xff]   ;;  %v968_v14 = vld [vmem:[%s8714_s11 + $0x130] sm:$0xff]  }
  0x94   : > { %929 = vst [vmem:[%s8719_s10 + $0x20] sm:$0xff] %v928_v4   ;;  %v972_v15 = vld [vmem:[%s8714_s11 + $0x138] sm:$0xff]   ;;  %v976_v16 = vld [vmem:[%s8714_s11 + $0x200] sm:$0xff]   ;;  %v980_v17 = vld [vmem:[%s8714_s11 + $0x208] sm:$0xff]  }
  0x95   : > { %933 = vst [vmem:[%s8719_s10 + $0x28] sm:$0xff] %v932_v5   ;;  %v984_v18 = vld [vmem:[%s8714_s11 + $0x210] sm:$0xff]   ;;  %v988_v19 = vld [vmem:[%s8714_s11 + $0x218] sm:$0xff]   ;;  %v992_v20 = vld [vmem:[%s8714_s11 + $0x220] sm:$0xff]  }
  0x96   : > { %937 = vst [vmem:[%s8719_s10 + $0x30] sm:$0xff] %v936_v6   ;;  %v996_v21 = vld [vmem:[%s8714_s11 + $0x228] sm:$0xff]   ;;  %v1000_v22 = vld [vmem:[%s8714_s11 + $0x230] sm:$0xff]   ;;  %v1004_v23 = vld [vmem:[%s8714_s11 + $0x238] sm:$0xff]  }
  0x97   : > { %941 = vst [vmem:[%s8719_s10 + $0x38] sm:$0xff] %v940_v7   ;;  %v1008_v24 = vld [vmem:[%s8714_s11 + $0x300] sm:$0xff]   ;;  %v1012_v25 = vld [vmem:[%s8714_s11 + $0x308] sm:$0xff]   ;;  %v1016_v26 = vld [vmem:[%s8714_s11 + $0x310] sm:$0xff]  }
  0x98   : > { %945 = vst [vmem:[%s8719_s10 + $0x40] sm:$0xff] %v944_v8   ;;  %v1020_v27 = vld [vmem:[%s8714_s11 + $0x318] sm:$0xff]   ;;  %v1024_v28 = vld [vmem:[%s8714_s11 + $0x320] sm:$0xff]   ;;  %v1028_v29 = vld [vmem:[%s8714_s11 + $0x328] sm:$0xff]  }
  0x99   : > { %949 = vst [vmem:[%s8719_s10 + $0x48] sm:$0xff] %v948_v9   ;;  %v1032_v30 = vld [vmem:[%s8714_s11 + $0x330] sm:$0xff]   ;;  %v1036_v31 = vld [vmem:[%s8714_s11 + $0x338] sm:$0xff]   ;;  %v1040_v32 = vld [vmem:[%s8714_s11 + $0x400] sm:$0xff]  }
  0x9a   : > { %953 = vst [vmem:[%s8719_s10 + $0x50] sm:$0xff] %v952_v10   ;;  %v1044_v33 = vld [vmem:[%s8714_s11 + $0x408] sm:$0xff]   ;;  %v1048_v34 = vld [vmem:[%s8714_s11 + $0x410] sm:$0xff]   ;;  %v1052_v35 = vld [vmem:[%s8714_s11 + $0x418] sm:$0xff]  }
  0x9b   : > { %957 = vst [vmem:[%s8719_s10 + $0x58] sm:$0xff] %v956_v11   ;;  %v1056_v36 = vld [vmem:[%s8714_s11 + $0x420] sm:$0xff]   ;;  %v1060_v37 = vld [vmem:[%s8714_s11 + $0x428] sm:$0xff]   ;;  %v1064_v38 = vld [vmem:[%s8714_s11 + $0x430] sm:$0xff]  }
  0x9c   : > { %961 = vst [vmem:[%s8719_s10 + $0x60] sm:$0xff] %v960_v12   ;;  %v1068_v39 = vld [vmem:[%s8714_s11 + $0x438] sm:$0xff]   ;;  %v1072_v40 = vld [vmem:[%s8714_s11 + $0x500] sm:$0xff]   ;;  %v1076_v41 = vld [vmem:[%s8714_s11 + $0x508] sm:$0xff]  }
  0x9d   : > { %965 = vst [vmem:[%s8719_s10 + $0x68] sm:$0xff] %v964_v13   ;;  %v1080_v42 = vld [vmem:[%s8714_s11 + $0x510] sm:$0xff]   ;;  %v1084_v43 = vld [vmem:[%s8714_s11 + $0x518] sm:$0xff]   ;;  %v1088_v44 = vld [vmem:[%s8714_s11 + $0x520] sm:$0xff]  }
  0x9e   : > { %969 = vst [vmem:[%s8719_s10 + $0x70] sm:$0xff] %v968_v14   ;;  %v1092_v45 = vld [vmem:[%s8714_s11 + $0x528] sm:$0xff]   ;;  %v1096_v46 = vld [vmem:[%s8714_s11 + $0x530] sm:$0xff]   ;;  %v1100_v47 = vld [vmem:[%s8714_s11 + $0x538] sm:$0xff]  }
  0x9f   : > { %973 = vst [vmem:[%s8719_s10 + $0x78] sm:$0xff] %v972_v15   ;;  %v1104_v48 = vld [vmem:[%s8714_s11 + $0x600] sm:$0xff]   ;;  %v1108_v49 = vld [vmem:[%s8714_s11 + $0x608] sm:$0xff]   ;;  %v1112_v50 = vld [vmem:[%s8714_s11 + $0x610] sm:$0xff]  }
  0xa0   : > { %977 = vst [vmem:[%s8719_s10 + $0x80] sm:$0xff] %v976_v16   ;;  %v1116_v51 = vld [vmem:[%s8714_s11 + $0x618] sm:$0xff]   ;;  %v1120_v52 = vld [vmem:[%s8714_s11 + $0x620] sm:$0xff]   ;;  %v1124_v53 = vld [vmem:[%s8714_s11 + $0x628] sm:$0xff]  }
  0xa1   : > { %981 = vst [vmem:[%s8719_s10 + $0x88] sm:$0xff] %v980_v17   ;;  %v1128_v54 = vld [vmem:[%s8714_s11 + $0x630] sm:$0xff]   ;;  %v1132_v55 = vld [vmem:[%s8714_s11 + $0x638] sm:$0xff]   ;;  %v1136_v56 = vld [vmem:[%s8714_s11 + $0x700] sm:$0xff]  }
  0xa2   : > { %985 = vst [vmem:[%s8719_s10 + $0x90] sm:$0xff] %v984_v18   ;;  %v1140_v57 = vld [vmem:[%s8714_s11 + $0x708] sm:$0xff]   ;;  %v1144_v58 = vld [vmem:[%s8714_s11 + $0x710] sm:$0xff]   ;;  %v1148_v59 = vld [vmem:[%s8714_s11 + $0x718] sm:$0xff]  }
  0xa3   : > { %989 = vst [vmem:[%s8719_s10 + $0x98] sm:$0xff] %v988_v19   ;;  %v1152_v60 = vld [vmem:[%s8714_s11 + $0x720] sm:$0xff]   ;;  %v1156_v61 = vld [vmem:[%s8714_s11 + $0x728] sm:$0xff]   ;;  %v1160_v62 = vld [vmem:[%s8714_s11 + $0x730] sm:$0xff]  }
  0xa4   : > { %993 = vst [vmem:[%s8719_s10 + $0xa0] sm:$0xff] %v992_v20   ;;  %v1164_v63 = vld [vmem:[%s8714_s11 + $0x738] sm:$0xff]  }
  0xa5   : > { %997 = vst [vmem:[%s8719_s10 + $0xa8] sm:$0xff] %v996_v21  }
  0xa6   : > { %1001 = vst [vmem:[%s8719_s10 + $0xb0] sm:$0xff] %v1000_v22  }
  0xa7   : > { %1005 = vst [vmem:[%s8719_s10 + $0xb8] sm:$0xff] %v1004_v23  }
  0xa8   : > { %1009 = vst [vmem:[%s8719_s10 + $0xc0] sm:$0xff] %v1008_v24  }
  0xa9   : > { %1013 = vst [vmem:[%s8719_s10 + $0xc8] sm:$0xff] %v1012_v25  }
  0xaa   : > { %1017 = vst [vmem:[%s8719_s10 + $0xd0] sm:$0xff] %v1016_v26  }
  0xab   : > { %1021 = vst [vmem:[%s8719_s10 + $0xd8] sm:$0xff] %v1020_v27  }
  0xac   : > { %1025 = vst [vmem:[%s8719_s10 + $0xe0] sm:$0xff] %v1024_v28  }
  0xad   : > { %1029 = vst [vmem:[%s8719_s10 + $0xe8] sm:$0xff] %v1028_v29  }
  0xae   : > { %1033 = vst [vmem:[%s8719_s10 + $0xf0] sm:$0xff] %v1032_v30  }
  0xaf   : > { %1037 = vst [vmem:[%s8719_s10 + $0xf8] sm:$0xff] %v1036_v31  }
  0xb0   : > { %1041 = vst [vmem:[%s8719_s10 + $0x100] sm:$0xff] %v1040_v32  }
  0xb1   : > { %1045 = vst [vmem:[%s8719_s10 + $0x108] sm:$0xff] %v1044_v33  }
  0xb2   : > { %1049 = vst [vmem:[%s8719_s10 + $0x110] sm:$0xff] %v1048_v34  }
  0xb3   : > { %1053 = vst [vmem:[%s8719_s10 + $0x118] sm:$0xff] %v1052_v35  }
  0xb4   : > { %1057 = vst [vmem:[%s8719_s10 + $0x120] sm:$0xff] %v1056_v36  }
  0xb5   : > { %1061 = vst [vmem:[%s8719_s10 + $0x128] sm:$0xff] %v1060_v37  }
  0xb6   : > { %1065 = vst [vmem:[%s8719_s10 + $0x130] sm:$0xff] %v1064_v38  }
  0xb7   : > { %1069 = vst [vmem:[%s8719_s10 + $0x138] sm:$0xff] %v1068_v39  }
  0xb8   : > { %1073 = vst [vmem:[%s8719_s10 + $0x140] sm:$0xff] %v1072_v40  }
  0xb9   : > { %1077 = vst [vmem:[%s8719_s10 + $0x148] sm:$0xff] %v1076_v41  }
  0xba   : > { %1081 = vst [vmem:[%s8719_s10 + $0x150] sm:$0xff] %v1080_v42  }
  0xbb   : > { %1085 = vst [vmem:[%s8719_s10 + $0x158] sm:$0xff] %v1084_v43  }
  0xbc   : > { %1089 = vst [vmem:[%s8719_s10 + $0x160] sm:$0xff] %v1088_v44  }
  0xbd   : > { %1093 = vst [vmem:[%s8719_s10 + $0x168] sm:$0xff] %v1092_v45  }
  0xbe   : > { %1097 = vst [vmem:[%s8719_s10 + $0x170] sm:$0xff] %v1096_v46  }
  0xbf   : > { %1101 = vst [vmem:[%s8719_s10 + $0x178] sm:$0xff] %v1100_v47  }
  0xc0   : > { %1105 = vst [vmem:[%s8719_s10 + $0x180] sm:$0xff] %v1104_v48  }
  0xc1   : > { %1109 = vst [vmem:[%s8719_s10 + $0x188] sm:$0xff] %v1108_v49  }
  0xc2   : > { %1113 = vst [vmem:[%s8719_s10 + $0x190] sm:$0xff] %v1112_v50  }
  0xc3   : > { %1117 = vst [vmem:[%s8719_s10 + $0x198] sm:$0xff] %v1116_v51  }
  0xc4   : > { %1121 = vst [vmem:[%s8719_s10 + $0x1a0] sm:$0xff] %v1120_v52  }
  0xc5   : > { %1125 = vst [vmem:[%s8719_s10 + $0x1a8] sm:$0xff] %v1124_v53  }
  0xc6   : > { %1129 = vst [vmem:[%s8719_s10 + $0x1b0] sm:$0xff] %v1128_v54  }
  0xc7   : > { %1133 = vst [vmem:[%s8719_s10 + $0x1b8] sm:$0xff] %v1132_v55  }
  0xc8   : > { %1137 = vst [vmem:[%s8719_s10 + $0x1c0] sm:$0xff] %v1136_v56  }
  0xc9   : > { %1141 = vst [vmem:[%s8719_s10 + $0x1c8] sm:$0xff] %v1140_v57  }
  0xca   : > { %1145 = vst [vmem:[%s8719_s10 + $0x1d0] sm:$0xff] %v1144_v58  }
  0xcb   : > { %1149 = vst [vmem:[%s8719_s10 + $0x1d8] sm:$0xff] %v1148_v59  }
  0xcc   : > { %1153 = vst [vmem:[%s8719_s10 + $0x1e0] sm:$0xff] %v1152_v60  }
  0xcd   : > { %1157 = vst [vmem:[%s8719_s10 + $0x1e8] sm:$0xff] %v1156_v61  }
  0xce   : > { %1161 = vst [vmem:[%s8719_s10 + $0x1f0] sm:$0xff] %v1160_v62  }
  0xcf   : > { %1165 = vst [vmem:[%s8719_s10 + $0x1f8] sm:$0xff] %v1164_v63  }
  0xd0 PF: > { %p6779_p3 = scmp.ge.s32.totalorder %s8371_s28, 1  ;;  %p1446_p4 = scmp.lt.s32.totalorder %s8371_s28, 9 }
  0xd2   : > { %p1447_p5 = pnand %p6779_p3, %p1446_p4 }
  0xd4   : > { %1450 = sbr.rel (%p1447_p5) target bundleno = 1164 (0x48c), region = 110 }
  0xd9   : > { %s1452_s29 = sand.u32 1, %s8347_s22  }
  0xda   : > { %s7434_s20 = smul.u32 1536, %s1452_s29  ;;  %s1453_s16 = scalar_lea.sflag [#allocation5], %s1452_s29 }
  0xdc   : > { %s8849_s14 = scalar_lea.vmem [#allocation4], %s7434_s20 }
  0xdd   : > { %8314 = dma.done.wait (%p8491_p7), %s1453_s16, 24576  }
  0xde   : > { %8316 = vsyncadd (%p8491_p7), %s1453_s16, 4294942720  ;;  %s1463_s30 = scalar_lea.sflag [#allocation8], %s1452_s29  ;;  %s8855_s13 = scalar_lea.vmem [#allocation7], %s7434_s20 }
  0xdf   : > { %8318 = dma.done.wait (%p8491_p7), %s1463_s30, 24576  }
  0xe0   : > { %8320 = vsyncadd (%p8491_p7), %s1463_s30, 4294942720  ;;  %s6780_s6 = sshll.u32 %s1452_s29, 9  ;;  %s8862_s7 = sand.u32 1, %s8335_s19  }
  0xe1   : > { %s7435_s21 = smul.u32 24, %s8862_s7  ;;  %s8865_s23 = scalar_lea.vmem [#allocation9], %s6780_s6 }
  0xe2   : > { %s8867_s17 = scalar_lea.vmem [#allocation10], %s6780_s6  ;;  %p6782_p6 = scmp.ne.s32.totalorder %s8355_s24, 0 }
  0xe3   : > { %s8869_s8 = scalar_lea.vmem [#allocation11], %s7435_s21  ;;  %s8871_s9 = scalar_lea.vmem [#allocation12], %s7435_s21 }
  0xe4   : > { %1537 = sbr.rel (%p6782_p6) target bundleno = 240 (0xf0), region = 130 }
  0xe9   : > { %v8385_v0 = vmov 0.0  }
  0xea   : > { %1538 = vst [vmem:[#allocation2 + $0x10] sm:$0xff] %v8385_v0 }
  0xeb   : > { %1539 = vst [vmem:[#allocation2] sm:$0xff] %v8385_v0 }
  0xec   : > { %1540 = vst [vmem:[#allocation2 + $0x8] sm:$0xff] %v8385_v0 }
  0xed   : > { %1541 = vst [vmem:[#allocation3 + $0x8] sm:$0xff] %v8385_v0 }
  0xee   : > { %1542 = vst [vmem:[#allocation3] sm:$0xff] %v8385_v0 }
  0xef   : > { %1543 = vst [vmem:[#allocation3 + $0x10] sm:$0xff] %v8385_v0 }
  0xf0 PF: > { %v7305_v1 = vld [vmem:[%s8865_s23 + $0x20] sm:$0xff]   ;;  %v7303_v2 = vld [vmem:[%s8865_s23 + $0x10] sm:$0xff]   ;;  %v8386_v4 = vmov 0   ;;  %v7306_v11 = vld [vmem:[%s8865_s23 + $0x28] sm:$0xff]   ;;  %vm4891_vm0 = vcmask 1041409   ;;  %vm4893_vm1 = vcmask 1042434  }
  0xf1   : > { %v6791_v3 = vld [vmem:[%s8865_s23] sm:$0xff]   ;;  %7592 = vset.pattern.permute.xlu2 %v8386_v4  ;;  %7581 = vset.pattern.permute.xlu1 %v8386_v4  ;;  %v6808_v5 = vunpack.c.l.bf16 %v7305_v1  ;;  %v6809_v6 = vunpack.c.h.bf16 %v7305_v1  ;;  %v6800_v7 = vunpack.c.l.bf16 %v7303_v2  ;;  %v6801_v8 = vunpack.c.h.bf16 %v7303_v2  ;;  %v7304_v12 = vld [vmem:[%s8865_s23 + $0x18] sm:$0xff]   ;;  %v7302_v15 = vld [vmem:[%s8865_s23 + $0x8] sm:$0xff]   ;;  %p6783_p7 = scmp.ne.s32.totalorder %s8355_s24, 3 }
  0xf2   : > { %7570 = vset.pattern.permute.xlu0 %v8386_v4  ;;  %v6792_v9 = vunpack.c.l.bf16 %v6791_v3  ;;  %v6793_v10 = vunpack.c.h.bf16 %v6791_v3  ;;  %v6812_v17 = vunpack.c.l.bf16 %v7306_v11  ;;  %v6813_v18 = vunpack.c.h.bf16 %v7306_v11  ;;  %v7309_v26 = vld [vmem:[%s8865_s23 + $0x40] sm:$0xff]   ;;  %v7308_v27 = vld [vmem:[%s8865_s23 + $0x38] sm:$0xff]   ;;  %v7307_v28 = vld [vmem:[%s8865_s23 + $0x30] sm:$0xff]  }
  0xf3   : > { %v7593_v13 = vpack.i.bf16 %v6809_v6, %v6808_v5  ;;  %v7582_v14 = vpack.i.bf16 %v6801_v8, %v6800_v7  ;;  %v6804_v19 = vunpack.c.l.bf16 %v7304_v12  ;;  %v6805_v20 = vunpack.c.h.bf16 %v7304_v12  ;;  %v7312_v38 = vld [vmem:[%s8865_s23 + $0x58] sm:$0xff]   ;;  %v7311_v39 = vld [vmem:[%s8865_s23 + $0x50] sm:$0xff]   ;;  %v7310_v40 = vld [vmem:[%s8865_s23 + $0x48] sm:$0xff]  }
  0xf4   : > { %v7571_v16 = vpack.i.bf16 %v6793_v10, %v6792_v9  ;;  %v6796_v21 = vunpack.c.l.bf16 %v7302_v15  ;;  %v6797_v22 = vunpack.c.h.bf16 %v7302_v15  ;;  %v7598_v23 = vpack.i.bf16 %v6813_v18, %v6812_v17  ;;  %v7315_v50 = vld [vmem:[%s8865_s23 + $0x70] sm:$0xff]   ;;  %v7314_v51 = vld [vmem:[%s8865_s23 + $0x68] sm:$0xff]   ;;  %v7313_v52 = vld [vmem:[%s8865_s23 + $0x60] sm:$0xff]  }
  0xf5   : > { %7594 = vperm.xlu2 %7592, %v7593_v13   ;;  %7583 = vperm.xlu1 %7581, %v7582_v14   ;;  %v7587_v24 = vpack.i.bf16 %v6805_v20, %v6804_v19  ;;  %v6824_v29 = vunpack.c.l.bf16 %v7309_v26  ;;  %v6825_v30 = vunpack.c.h.bf16 %v7309_v26  ;;  %v6820_v31 = vunpack.c.l.bf16 %v7308_v27  ;;  %v7318_v62 = vld [vmem:[%s8865_s23 + $0x88] sm:$0xff]   ;;  %v7317_v63 = vld [vmem:[%s8865_s23 + $0x80] sm:$0xff]   ;;  %v7316_v0 = vld [vmem:[%s8865_s23 + $0x78] sm:$0xff]  }
  0xf6   : > { %7572 = vperm.xlu0 %7570, %v7571_v16   ;;  %v7576_v25 = vpack.i.bf16 %v6797_v22, %v6796_v21  ;;  %v6821_v32 = vunpack.c.h.bf16 %v7308_v27  ;;  %v6816_v33 = vunpack.c.l.bf16 %v7307_v28  ;;  %v6817_v34 = vunpack.c.h.bf16 %v7307_v28  ;;  %v7321_v10 = vld [vmem:[%s8865_s23 + $0xa0] sm:$0xff]   ;;  %v7320_v11 = vld [vmem:[%s8865_s23 + $0x98] sm:$0xff]   ;;  %v7319_v12 = vld [vmem:[%s8865_s23 + $0x90] sm:$0xff]  }
  0xf7   : > { %v7613_v35 = vpack.i.bf16 %v6825_v30, %v6824_v29  ;;  %v6836_v41 = vunpack.c.l.bf16 %v7312_v38  ;;  %v6837_v42 = vunpack.c.h.bf16 %v7312_v38  ;;  %v6832_v43 = vunpack.c.l.bf16 %v7311_v39  ;;  %v7324_v22 = vld [vmem:[%s8865_s23 + $0xb8] sm:$0xff]  }
  0xf8   : > { %v7608_v36 = vpack.i.bf16 %v6821_v32, %v6820_v31  ;;  %v7603_v37 = vpack.i.bf16 %v6817_v34, %v6816_v33  ;;  %v6833_v44 = vunpack.c.h.bf16 %v7311_v39  ;;  %v6828_v45 = vunpack.c.l.bf16 %v7310_v40  ;;  %v7327_v34 = vld [vmem:[%s8865_s23 + $0xd0] sm:$0xff]  }
  0xf9   : > { %v6829_v46 = vunpack.c.h.bf16 %v7310_v40  ;;  %v7628_v47 = vpack.i.bf16 %v6837_v42, %v6836_v41  ;;  %v6848_v53 = vunpack.c.l.bf16 %v7315_v50  ;;  %v6849_v54 = vunpack.c.h.bf16 %v7315_v50 }
  0xfa   : > { %v7623_v48 = vpack.i.bf16 %v6833_v44, %v6832_v43  ;;  %v6844_v55 = vunpack.c.l.bf16 %v7314_v51  ;;  %v6845_v56 = vunpack.c.h.bf16 %v7314_v51  ;;  %v6840_v57 = vunpack.c.l.bf16 %v7313_v52 }
  0xfb   : > { %v7618_v49 = vpack.i.bf16 %v6829_v46, %v6828_v45  ;;  %v6841_v58 = vunpack.c.h.bf16 %v7313_v52  ;;  %v7643_v59 = vpack.i.bf16 %v6849_v54, %v6848_v53  ;;  %v6860_v1 = vunpack.c.l.bf16 %v7318_v62  ;;  %v7330_v46 = vld [vmem:[%s8865_s23 + $0xe8] sm:$0xff]  }
  0xfc   : > { %v7638_v60 = vpack.i.bf16 %v6845_v56, %v6844_v55  ;;  %v6861_v2 = vunpack.c.h.bf16 %v7318_v62  ;;  %v6856_v3 = vunpack.c.l.bf16 %v7317_v63  ;;  %v6857_v4 = vunpack.c.h.bf16 %v7317_v63 }
  0xfd   : > { %7599 = vperm.xlu2 %7592, %v7598_v23   ;;  %7588 = vperm.xlu1 %7581, %v7587_v24   ;;  %v7633_v61 = vpack.i.bf16 %v6841_v58, %v6840_v57  ;;  %v6852_v5 = vunpack.c.l.bf16 %v7316_v0  ;;  %v6853_v6 = vunpack.c.h.bf16 %v7316_v0  ;;  %v6872_v13 = vunpack.c.l.bf16 %v7321_v10  ;;  %v7323_v23 = vld [vmem:[%s8865_s23 + $0xb0] sm:$0xff]   ;;  %v7322_v24 = vld [vmem:[%s8865_s23 + $0xa8] sm:$0xff]   ;;  %v7333_v58 = vld [vmem:[%s8865_s23 + $0x100] sm:$0xff]  }
  0xfe   : > { %7577 = vperm.xlu0 %7570, %v7576_v25   ;;  %v7658_v7 = vpack.i.bf16 %v6861_v2, %v6860_v1  ;;  %v7653_v8 = vpack.i.bf16 %v6857_v4, %v6856_v3  ;;  %v6873_v14 = vunpack.c.h.bf16 %v7321_v10  ;;  %v6868_v15 = vunpack.c.l.bf16 %v7320_v11 }
  0xff   : > { %v7648_v9 = vpack.i.bf16 %v6853_v6, %v6852_v5  ;;  %v6869_v16 = vunpack.c.h.bf16 %v7320_v11  ;;  %v6864_v17 = vunpack.c.l.bf16 %v7319_v12  ;;  %v6865_v18 = vunpack.c.h.bf16 %v7319_v12  ;;  %v7336_v5 = vld [vmem:[%s8865_s23 + $0x118] sm:$0xff]   ;;  %v7335_v6 = vld [vmem:[%s8865_s23 + $0x110] sm:$0xff]  }
 0x100   : > { %v7673_v19 = vpack.i.bf16 %v6873_v14, %v6872_v13  ;;  %v6884_v25 = vunpack.c.l.bf16 %v7324_v22  ;;  %v6885_v26 = vunpack.c.h.bf16 %v7324_v22  ;;  %v6880_v27 = vunpack.c.l.bf16 %v7323_v23  ;;  %v8920_v22 = vld [vmem:[%s8849_s14 + $0x6c] sm:$0xff] }
 0x101   : > { %v7668_v20 = vpack.i.bf16 %v6869_v16, %v6868_v15  ;;  %v7663_v21 = vpack.i.bf16 %v6865_v18, %v6864_v17  ;;  %v6881_v28 = vunpack.c.h.bf16 %v7323_v23  ;;  %v6876_v29 = vunpack.c.l.bf16 %v7322_v24  ;;  %v7339_v15 = vld [vmem:[%s8865_s23 + $0x130] sm:$0xff]   ;;  %v7338_v16 = vld [vmem:[%s8865_s23 + $0x128] sm:$0xff]   ;;  %v7337_v17 = vld [vmem:[%s8865_s23 + $0x120] sm:$0xff]  }
 0x102   : > { %v6877_v30 = vunpack.c.h.bf16 %v7322_v24  ;;  %v7688_v31 = vpack.i.bf16 %v6885_v26, %v6884_v25  ;;  %v6897_v38 = vunpack.c.h.bf16 %v7327_v34  ;;  %v6909_v50 = vunpack.c.h.bf16 %v7330_v46 }
 0x103   : > { %v7683_v32 = vpack.i.bf16 %v6881_v28, %v6880_v27  ;;  %v6921_v62 = vunpack.c.h.bf16 %v7333_v58  ;;  %v6933_v10 = vunpack.c.h.bf16 %v7336_v5  ;;  %v6928_v11 = vunpack.c.l.bf16 %v7335_v6  ;;  %v8923_v28 = vld [vmem:[%s8849_s14 + $0x74] sm:$0xf] }
 0x104   : > { %v7678_v33 = vpack.i.bf16 %v6877_v30, %v6876_v29  ;;  %v6929_v12 = vunpack.c.h.bf16 %v7335_v6  ;;  %v6944_v23 = vunpack.c.l.bf16 %v7339_v15  ;;  %v6945_v24 = vunpack.c.h.bf16 %v7339_v15  ;;  %v8977_v15 = vld [vmem:[%s8849_s14 + $0x110] sm:$0xf] }
 0x105   : > { %7614 = vperm.xlu2 %7592, %v7613_v35   ;;  %7609 = vperm.xlu1 %7581, %v7608_v36   ;;  %v7326_v35 = vld [vmem:[%s8865_s23 + $0xc8] sm:$0xff]   ;;  %v7325_v36 = vld [vmem:[%s8865_s23 + $0xc0] sm:$0xff]   ;;  %v6940_v25 = vunpack.c.l.bf16 %v7338_v16  ;;  %v6941_v26 = vunpack.c.h.bf16 %v7338_v16  ;;  %v6936_v29 = vunpack.c.l.bf16 %v7337_v17  ;;  %v6937_v30 = vunpack.c.h.bf16 %v7337_v17  ;;  %12310 = vst [vmem:[#allocation33_spill] sm:$0xff] %v8977_v15  ;;  %v8980_v16 = vld [vmem:[%s8849_s14 + $0x114] sm:$0xff] }
 0x106   : > { %7604 = vperm.xlu0 %7570, %v7603_v37   ;;  %v6896_v37 = vunpack.c.l.bf16 %v7327_v34  ;;  %v6892_v39 = vunpack.c.l.bf16 %v7326_v35  ;;  %v6893_v40 = vunpack.c.h.bf16 %v7326_v35  ;;  %v6888_v41 = vunpack.c.l.bf16 %v7325_v36  ;;  %12311 = vst [vmem:[#allocation34_spill] sm:$0xff] %v8980_v16 }
 0x107   : > { %v6889_v42 = vunpack.c.h.bf16 %v7325_v36  ;;  %v1827_v36 = vunpack.c.l.bf16 %v8920_v22  ;;  %vm4895_vm2 = vcmask 1043459   ;;  %vm4897_vm3 = vcmask 1044484  }
 0x108   : > { %v7703_v43 = vpack.i.bf16 %v6897_v38, %v6896_v37  ;;  %v7698_v44 = vpack.i.bf16 %v6893_v40, %v6892_v39  ;;  %v7341_v37 = vld [vmem:[%s8865_s23 + $0x140] sm:$0xff]   ;;  %v7340_v38 = vld [vmem:[%s8865_s23 + $0x138] sm:$0xff]   ;;  %v1828_v39 = vunpack.c.h.bf16 %v8920_v22  ;;  %v1829_v40 = vunpack.c.l.bf16 %v8923_v28 }
 0x109   : > { %v7693_v45 = vpack.i.bf16 %v6889_v42, %v6888_v41  ;;  %v7763_v41 = vpack.i.bf16 %v6945_v24, %v6944_v23  ;;  %v7758_v42 = vpack.i.bf16 %v6941_v26, %v6940_v25  ;;  %v8987_v24 = vld [vmem:[%s8849_s14 + $0x11c] sm:$0xf]  ;;  %v8990_v25 = vld [vmem:[%s8849_s14] sm:$0xff]  ;;  %vm4899_vm4 = vcmask 1045509  }
 0x10a   : > { %12312 = vst [vmem:[#allocation35_spill] sm:$0xff] %v8987_v24  ;;  %v7348_v26 = vld [vmem:[%s8865_s23 + $0x178] sm:$0xff]   ;;  %v7349_v28 = vld [vmem:[%s8865_s23 + $0x180] sm:$0xff]   ;;  %vm4901_vm5 = vcmask 1046534   ;;  %vm4903_vm6 = vcmask 1047559  }
 0x10d   : > { %7629 = vperm.xlu2 %7592, %v7628_v47   ;;  %7624 = vperm.xlu1 %7581, %v7623_v48   ;;  %v7329_v47 = vld [vmem:[%s8865_s23 + $0xe0] sm:$0xff]   ;;  %v7328_v48 = vld [vmem:[%s8865_s23 + $0xd8] sm:$0xff]  }
 0x10e   : > { %7619 = vperm.xlu0 %7570, %v7618_v49   ;;  %v6908_v49 = vunpack.c.l.bf16 %v7330_v46  ;;  %v6904_v51 = vunpack.c.l.bf16 %v7329_v47  ;;  %v6905_v52 = vunpack.c.h.bf16 %v7329_v47  ;;  %v6900_v53 = vunpack.c.l.bf16 %v7328_v48 }
 0x10f   : > { %v6901_v54 = vunpack.c.h.bf16 %v7328_v48 }
 0x110   : > { %v7718_v55 = vpack.i.bf16 %v6909_v50, %v6908_v49  ;;  %v7713_v56 = vpack.i.bf16 %v6905_v52, %v6904_v51  ;;  %v7344_v49 = vld [vmem:[%s8865_s23 + $0x158] sm:$0xff]   ;;  %v7343_v50 = vld [vmem:[%s8865_s23 + $0x150] sm:$0xff]   ;;  %v8945_v51 = vld [vmem:[%s8849_s14 + $0x84] sm:$0xff] }
 0x111   : > { %v7708_v57 = vpack.i.bf16 %v6901_v54, %v6900_v53  ;;  %v8948_v52 = vld [vmem:[%s8849_s14 + $0x8c] sm:$0xf]  ;;  %v6952_v53 = vunpack.c.l.bf16 %v7341_v37  ;;  %v6953_v54 = vunpack.c.h.bf16 %v7341_v37  ;;  %v1833_v6 = vunpack.c.l.bf16 %v8945_v51  ;;  %v7347_v37 = vld [vmem:[%s8865_s23 + $0x170] sm:$0xff]  }
 0x115   : > { %7644 = vperm.xlu2 %7592, %v7643_v59   ;;  %7639 = vperm.xlu1 %7581, %v7638_v60   ;;  %v7332_v59 = vld [vmem:[%s8865_s23 + $0xf8] sm:$0xff]   ;;  %v7331_v60 = vld [vmem:[%s8865_s23 + $0xf0] sm:$0xff]  }
 0x116   : > { %7634 = vperm.xlu0 %7570, %v7633_v61   ;;  %v6920_v61 = vunpack.c.l.bf16 %v7333_v58  ;;  %v6916_v63 = vunpack.c.l.bf16 %v7332_v59  ;;  %v6917_v0 = vunpack.c.h.bf16 %v7332_v59  ;;  %v6912_v1 = vunpack.c.l.bf16 %v7331_v60  ;;  %v8953_v59 = vld [vmem:[%s8849_s14 + $0xc0] sm:$0xff] }
 0x117   : > { %v6913_v2 = vunpack.c.h.bf16 %v7331_v60 }
 0x118   : > { %v7733_v3 = vpack.i.bf16 %v6921_v62, %v6920_v61  ;;  %v7728_v4 = vpack.i.bf16 %v6917_v0, %v6916_v63  ;;  %v8956_v62 = vld [vmem:[%s8849_s14 + $0xc8] sm:$0xf]  ;;  %v8959_v63 = vld [vmem:[%s8849_s14 + $0xcc] sm:$0xff]  ;;  %v8962_v0 = vld [vmem:[%s8849_s14 + $0xd4] sm:$0xf] }
 0x11d   : > { %7659 = vperm.xlu2 %7592, %v7658_v7   ;;  %7654 = vperm.xlu1 %7581, %v7653_v8   ;;  %v7723_v7 = vpack.i.bf16 %v6913_v2, %v6912_v1  ;;  %v7334_v8 = vld [vmem:[%s8865_s23 + $0x108] sm:$0xff]   ;;  %v6964_v1 = vunpack.c.l.bf16 %v7344_v49  ;;  %v6965_v2 = vunpack.c.h.bf16 %v7344_v49  ;;  %v9010_v49 = vld [vmem:[%s8849_s14 + $0x38] sm:$0xf] }
 0x11e   : > { %7649 = vperm.xlu0 %7570, %v7648_v9   ;;  %v6932_v9 = vunpack.c.l.bf16 %v7336_v5  ;;  %v6924_v13 = vunpack.c.l.bf16 %v7334_v8  ;;  %v6925_v14 = vunpack.c.h.bf16 %v7334_v8  ;;  %v6984_v8 = vunpack.c.l.bf16 %v7349_v28 }
 0x120   : > { %v7748_v18 = vpack.i.bf16 %v6933_v10, %v6932_v9  ;;  %v7738_v27 = vpack.i.bf16 %v6925_v14, %v6924_v13  ;;  %v8970_v10 = vld [vmem:[%s8849_s14 + $0x108] sm:$0xff]  ;;  %v9131_v14 = vld [vmem:[%s8849_s14 + $0x198] sm:$0xff] }
 0x121   : > { %12309 = vst [vmem:[#allocation32_spill] sm:$0xff] %v8970_v10  ;;  %v9121_v13 = vld [vmem:[%s8849_s14 + $0x2c] sm:$0xf]  ;;  %v12327_v10 = vunpack.c.l.bf16 %v8959_v63 }
 0x122   : > { %12317 = vst [vmem:[#allocation40_spill] sm:$0xff] %v9131_v14 }
 0x125   : > { %7674 = vperm.xlu2 %7592, %v7673_v19   ;;  %7669 = vperm.xlu1 %7581, %v7668_v20   ;;  %v7743_v19 = vpack.i.bf16 %v6929_v12, %v6928_v11  ;;  %v8914_v20 = vld [vmem:[%s8849_s14 + $0x60] sm:$0xff]  ;;  %v7773_v11 = vpack.i.bf16 %v6953_v54, %v6952_v53 }
 0x126   : > { %7664 = vperm.xlu0 %7570, %v7663_v21   ;;  %v8917_v21 = vld [vmem:[%s8849_s14 + $0x68] sm:$0xf]  ;;  %v1825_v34 = vunpack.c.h.bf16 %v8914_v20  ;;  %v9014_v53 = vld [vmem:[%s8849_s14 + $0x3c] sm:$0xff] }
 0x127   : > { %v1826_v35 = vunpack.c.l.bf16 %v8917_v21 }
 0x12d   : > { %7689 = vperm.xlu2 %7592, %v7688_v31   ;;  %7684 = vperm.xlu1 %7581, %v7683_v32   ;;  %v8926_v31 = vld [vmem:[%s8849_s14 + $0x78] sm:$0xff]  ;;  %v7342_v32 = vld [vmem:[%s8865_s23 + $0x148] sm:$0xff]  }
 0x12e   : > { %7679 = vperm.xlu0 %7570, %v7678_v33   ;;  %v1824_v33 = vunpack.c.l.bf16 %v8914_v20  ;;  %v1830_v46 = vunpack.c.l.bf16 %v8926_v31  ;;  %v6956_v47 = vunpack.c.l.bf16 %v7342_v32  ;;  %v6957_v48 = vunpack.c.h.bf16 %v7342_v32 }
 0x130   : > { %v8967_v9 = vpack.i.bf16 %v6957_v48, %v6956_v47  ;;  %v9007_v48 = vld [vmem:[%s8849_s14 + $0x30] sm:$0xff]  ;;  %v9056_v47 = vld [vmem:[%s8849_s14 + $0x164] sm:$0xf] }
 0x131   : > { %12316 = vst [vmem:[#allocation39_spill] sm:$0xff] %v9056_v47 }
 0x135   : > { %7704 = vperm.xlu2 %7592, %v7703_v43   ;;  %7699 = vperm.xlu1 %7581, %v7698_v44   ;;  %v8938_v43 = vld [vmem:[%s8849_s14 + $0x80] sm:$0xf] }
 0x136   : > { %7694 = vperm.xlu0 %7570, %v7693_v45   ;;  %v7345_v44 = vld [vmem:[%s8865_s23 + $0x160] sm:$0xff]   ;;  %v7753_v45 = vpack.i.bf16 %v6937_v30, %v6936_v29  ;;  %v1832_v58 = vunpack.c.l.bf16 %v8938_v43  ;;  %v8995_v29 = vpack.i.bf16 %v6965_v2, %v6964_v1  ;;  %v6976_v1 = vunpack.c.l.bf16 %v7347_v37  ;;  %v9176_v43 = vld [vmem:[%s8849_s14 + $0x90] sm:$0xff] }
 0x137   : > { %v6968_v60 = vunpack.c.l.bf16 %v7345_v44  ;;  %v6969_v61 = vunpack.c.h.bf16 %v7345_v44  ;;  %v6977_v2 = vunpack.c.h.bf16 %v7347_v37  ;;  %v9036_v37 = vld [vmem:[%s8849_s14 + $0x150] sm:$0xff] }
 0x138   : > { %12313 = vst [vmem:[#allocation36_spill] sm:$0xff] %v9036_v37 }
 0x13d   : > { %7719 = vperm.xlu2 %7592, %v7718_v55   ;;  %7714 = vperm.xlu1 %7581, %v7713_v56   ;;  %v6948_v55 = vunpack.c.l.bf16 %v7340_v38  ;;  %v6949_v56 = vunpack.c.h.bf16 %v7340_v38  ;;  %v7346_v38 = vld [vmem:[%s8865_s23 + $0x168] sm:$0xff]  }
 0x13e   : > { %7709 = vperm.xlu0 %7570, %v7708_v57   ;;  %v1831_v57 = vunpack.c.h.bf16 %v8926_v31 }
 0x13f   : > { %v8972_v12 = vpack.i.bf16 %v6949_v56, %v6948_v55  ;;  %v6981_v55 = vunpack.c.h.bf16 %v7348_v26  ;;  %v9018_v56 = vld [vmem:[%s8849_s14 + $0x44] sm:$0xf] }
 0x145   : > { %7734 = vperm.xlu2 %7592, %v7733_v3   ;;  %7729 = vperm.xlu1 %7581, %v7728_v4   ;;  %v6960_v3 = vunpack.c.l.bf16 %v7343_v50  ;;  %v6961_v4 = vunpack.c.h.bf16 %v7343_v50  ;;  %v9042_v50 = vld [vmem:[%s8849_s14 + $0x15c] sm:$0xff] }
 0x146   : > { %7724 = vperm.xlu0 %7570, %v7723_v7   ;;  %12315 = vst [vmem:[#allocation38_spill] sm:$0xff] %v9042_v50  ;;  %v6985_v7 = vunpack.c.h.bf16 %v7349_v28  ;;  %v12325_v50 = vunpack.c.l.bf16 %v8953_v59 }
 0x147   : > { %v8997_v30 = vpack.i.bf16 %v6961_v4, %v6960_v3  ;;  %v6972_v3 = vunpack.c.l.bf16 %v7346_v38  ;;  %v6973_v4 = vunpack.c.h.bf16 %v7346_v38  ;;  %v9039_v38 = vld [vmem:[%s8849_s14 + $0x158] sm:$0xf] }
 0x148   : > { %12314 = vst [vmem:[#allocation37_spill] sm:$0xff] %v9039_v38 }
 0x14d   : > { %7749 = vperm.xlu2 %7592, %v7748_v18   ;;  %7744 = vperm.xlu1 %7581, %v7743_v19   ;;  %v9051_v19 = vpack.i.bf16 %v6977_v2, %v6976_v1  ;;  %v9053_v18 = vpack.i.bf16 %v6973_v4, %v6972_v3  ;;  %v7351_v1 = vld [vmem:[%s8865_s23 + $0x190] sm:$0xff]  }
 0x14e   : > { %7739 = vperm.xlu0 %7570, %v7738_v27   ;;  %v8993_v27 = vpack.i.bf16 %v6969_v61, %v6968_v60  ;;  %v9021_v60 = vld [vmem:[%s8849_s14 + $0x8] sm:$0xf]  ;;  %v9024_v61 = vld [vmem:[%s8849_s14 + $0xc] sm:$0xff]  ;;  %v6993_v54 = vunpack.c.h.bf16 %v7351_v1 }
 0x14f   : > { %v7595_v5 = vpop.permute.xlu2 %7594  ;;  %v9085_v4 = vld [vmem:[%s8849_s14 + $0x50] sm:$0xf] }
 0x150   : > { %v7597_v44 = vunpack.i.h.bf16 %v7595_v5  ;;  %v7596_v32 = vunpack.i.l.bf16 %v7595_v5 }
 0x152   : > { %v9069_v2 = vmul.f32 %v7596_v32, %v1824_v33  ;;  %v9081_v3 = vmul.f32 %v7597_v44, %v1827_v36  ;;  %v7350_v33 = vld [vmem:[%s8865_s23 + $0x188] sm:$0xff]   ;;  %v9090_v20 = vmul.f32 %v7597_v44, %v1828_v39  ;;  %v9094_v21 = vmul.f32 %v7597_v44, %v1829_v40  ;;  %v9099_v36 = vld [vmem:[%s8849_s14 + $0x54] sm:$0xff] }
 0x153   : > { %v6992_v39 = vunpack.c.l.bf16 %v7351_v1  ;;  %v6988_v5 = vunpack.c.l.bf16 %v7350_v33 }
 0x155   : > { %7764 = vperm.xlu2 %7592, %v7763_v41   ;;  %7759 = vperm.xlu1 %7581, %v7758_v42   ;;  %v6989_v42 = vunpack.c.h.bf16 %v7350_v33  ;;  %v9128_v22 = vpack.i.bf16 %v6993_v54, %v6992_v39  ;;  %v9147_v39 = vld [vmem:[%s8849_s14 + $0xa8] sm:$0xff]  ;;  %v9198_v33 = vld [vmem:[%s8849_s14 + $0xa4] sm:$0xf] }
 0x156   : > { %7754 = vperm.xlu0 %7570, %v7753_v45   ;;  %v6980_v45 = vunpack.c.l.bf16 %v7348_v26  ;;  %v9030_v26 = vld [vmem:[%s8849_s14 + $0x14] sm:$0xf] }
 0x157   : > { %v7600_v17 = vpop.permute.xlu2 %7599  ;;  %v9144_v54 = vpack.i.bf16 %v6989_v42, %v6988_v5  ;;  %v12323_v42 = vunpack.c.l.bf16 %v8948_v52  ;;  %v7354_v52 = vld [vmem:[%s8865_s23 + $0x1a8] sm:$0xff]  }
 0x158   : > { %v9049_v23 = vpack.i.bf16 %v6981_v55, %v6980_v45  ;;  %v9064_v55 = vld [vmem:[%s8849_s14 + $0x48] sm:$0xff]  ;;  %v9107_v45 = vld [vmem:[%s8849_s14 + $0x18] sm:$0xff]  ;;  %v7601_v40 = vunpack.i.l.bf16 %v7600_v17  ;;  %v7602_v41 = vunpack.i.h.bf16 %v7600_v17  ;;  %v7005_v24 = vunpack.c.h.bf16 %v7354_v52 }
 0x159   : > { %v9173_v17 = vld [vmem:[%s8849_s14 + $0xbc] sm:$0xf] }
 0x15a   : > { %v9135_v1 = vmul.f32 %v7601_v40, %v1830_v46  ;;  %v9139_v44 = vmul.f32 %v7601_v40, %v1831_v57  ;;  %v9153_v46 = vld [vmem:[%s8849_s14 + $0xb4] sm:$0xff]  ;;  %v9157_v31 = vmul.f32 %v7601_v40, %v1832_v58  ;;  %v9161_v57 = vmul.f32 %v7602_v41, %v1833_v6 }
 0x15b   : > { %v9169_v5 = vmul.f32 %v7602_v41, %v12323_v42 }
 0x15c   : > { %12318 = vst [vmem:[#allocation41_spill] sm:$0xff] %v9139_v44 }
 0x15d   : > { %7779 = vperm.xlu2 %7592, %v8967_v9   ;;  %7774 = vperm.xlu1 %7581, %v7773_v11   ;;  %v9073_v9 = vmul.f32 %v7596_v32, %v1825_v34  ;;  %v9077_v11 = vmul.f32 %v7596_v32, %v1826_v35  ;;  %v9112_v34 = vld [vmem:[%s8849_s14 + $0x20] sm:$0xf]  ;;  %v9115_v35 = vld [vmem:[%s8849_s14 + $0x24] sm:$0xff]  ;;  %v9150_v32 = vld [vmem:[%s8849_s14 + $0xb0] sm:$0xf]  ;;  %12319 = vst [vmem:[#allocation42_spill] sm:$0xff] %v9157_v31 }
 0x15e   : > { %7769 = vperm.xlu0 %7570, %v8972_v12   ;;  %v9102_v12 = vld [vmem:[%s8849_s14 + $0x5c] sm:$0xf]  ;;  %12320 = vst [vmem:[#allocation43_spill] sm:$0xff] %v9161_v57 }
 0x15f   : > { %12324 = vst [vmem:[#allocation45_spill] sm:$0xff] %v9169_v5  ;;  %v7615_v28 = vpop.permute.xlu2 %7614  ;;  %v12328_v5 = vunpack.c.h.bf16 %v8959_v63 }
 0x160   : > { %v7617_v58 = vunpack.i.h.bf16 %v7615_v28  ;;  %v7616_v6 = vunpack.i.l.bf16 %v7615_v28  ;;  %v12326_v28 = vunpack.c.h.bf16 %v8953_v59 }
 0x162   : > { %v4027_v15 = vmul.f32 %v7616_v6, %v12325_v50  ;;  %v4028_v38 = vmul.f32 %v7616_v6, %v12326_v28  ;;  %v4030_v14 = vmul.f32 %v7617_v58, %v12327_v10  ;;  %v12330_v50 = vunpack.c.l.bf16 %v8962_v0 }
 0x164   : > { %v4032_v59 = vmul.f32 %v7617_v58, %v12330_v50  ;;  %v9224_v0 = vadd.f32 %v4030_v14, %v4027_v15  ;;  %v9229_v50 = vld [vmem:[%s8849_s14 + $0xf0] sm:$0xff] }
 0x165   : > { %7794 = vperm.xlu2 %7592, %v8993_v27   ;;  %7789 = vperm.xlu1 %7581, %v8995_v29   ;;  %v12321_v27 = vunpack.c.h.bf16 %v8945_v51  ;;  %v9178_v51 = vpack.i.bf16 %v6985_v7, %v6984_v8  ;;  %v9190_v7 = vld [vmem:[%s8849_s14 + $0x98] sm:$0xf]  ;;  %v9193_v8 = vld [vmem:[%s8849_s14 + $0x9c] sm:$0xff] }
 0x166   : > { %7784 = vperm.xlu0 %7570, %v8997_v30   ;;  %v7004_v30 = vunpack.c.l.bf16 %v7354_v52  ;;  %v12339_v52 = vunpack.c.h.bf16 %v9007_v48 }
 0x167   : > { %v9165_v29 = vmul.f32 %v7602_v41, %v12321_v27  ;;  %v7584_v40 = vpop.permute.xlu1 %7583  ;;  %v7353_v41 = vld [vmem:[%s8865_s23 + $0x1a0] sm:$0xff]   ;;  %v4031_v27 = vmul.f32 %v7617_v58, %v12328_v5 }
 0x168   : > { %v7573_v42 = vpop.permute.xlu0 %7572  ;;  %v7000_v47 = vunpack.c.l.bf16 %v7353_v41  ;;  %v7001_v16 = vunpack.c.h.bf16 %v7353_v41  ;;  %v12329_v41 = vunpack.c.l.bf16 %v8956_v62  ;;  %v9220_v5 = vpack.i.bf16 %v7005_v24, %v7004_v30 }
 0x169   : > { %12322 = vst [vmem:[#allocation44_spill] sm:$0xff] %v9165_v29  ;;  %v7352_v29 = vld [vmem:[%s8865_s23 + $0x198] sm:$0xff]   ;;  %v7575_v37 = vunpack.i.h.bf16 %v7573_v42  ;;  %v7574_v57 = vunpack.i.l.bf16 %v7573_v42  ;;  %v9226_v58 = vadd.f32 %v4031_v27, %v4028_v38  ;;  %v7585_v28 = vunpack.i.l.bf16 %v7584_v40 }
 0x16a   : > { %v4029_v44 = vmul.f32 %v7616_v6, %v12329_v41  ;;  %v9222_v42 = vpack.i.bf16 %v7001_v16, %v7000_v47  ;;  %v6996_v62 = vunpack.c.l.bf16 %v7352_v29  ;;  %v6997_v6 = vunpack.c.h.bf16 %v7352_v29  ;;  %v9240_v38 = vld [vmem:[%s8849_s14 + $0xf8] sm:$0xf] }
 0x16b   : > { %v12333_v16 = vunpack.c.l.bf16 %v9024_v61  ;;  %v12334_v29 = vunpack.c.h.bf16 %v9024_v61  ;;  %v12336_v30 = vunpack.c.l.bf16 %v9021_v60  ;;  %v12344_v60 = vunpack.c.l.bf16 %v9112_v34 }
 0x16c   : > { %v9242_v27 = vadd.f32 %v4032_v59, %v4029_v44  ;;  %v7828_v61 = vpack.i.bf16 %v6997_v6, %v6996_v62  ;;  %v12338_v44 = vunpack.c.l.bf16 %v9007_v48  ;;  %v12343_v48 = vunpack.c.h.bf16 %v9107_v45 }
 0x16d   : > { %7809 = vperm.xlu2 %7592, %v9049_v23   ;;  %7804 = vperm.xlu1 %7581, %v9051_v19   ;;  %v7586_v23 = vunpack.i.h.bf16 %v7584_v40  ;;  %v12331_v19 = vunpack.c.l.bf16 %v8990_v25  ;;  %v3982_v47 = vmul.f32 %v7575_v37, %v12333_v16  ;;  %v3983_v14 = vmul.f32 %v7575_v37, %v12334_v29  ;;  %v9244_v40 = vpop.permute.xlu2 %7629 }
 0x16e   : > { %7799 = vperm.xlu0 %7570, %v9053_v18   ;;  %v12332_v18 = vunpack.c.h.bf16 %v8990_v25  ;;  %12335 = vst [vmem:[#allocation46_spill] sm:$0xff] %v9242_v27  ;;  %v3981_v31 = vmul.f32 %v7574_v57, %v12336_v30  ;;  %v9251_v10 = vunpack.i.l.bf16 %v9244_v40  ;;  %v3991_v59 = vmul.f32 %v7585_v28, %v12338_v44 }
 0x16f   : > { %v7589_v41 = vpop.permute.xlu1 %7588  ;;  %v3979_v63 = vmul.f32 %v7574_v57, %v12331_v19  ;;  %v12337_v19 = vunpack.c.l.bf16 %v9030_v26  ;;  %v3992_v27 = vmul.f32 %v7585_v28, %v12339_v52  ;;  %v12341_v30 = vunpack.c.l.bf16 %v9014_v53 }
 0x170   : > { %v3980_v24 = vmul.f32 %v7574_v57, %v12332_v18  ;;  %v7578_v15 = vpop.permute.xlu0 %7577  ;;  %v12342_v29 = vunpack.c.l.bf16 %v9107_v45  ;;  %v9283_v45 = vld [vmem:[%s8849_s14 + $0x104] sm:$0xf]  ;;  %v12348_v34 = vunpack.c.l.bf16 %v9121_v13 }
 0x171   : > { %v3984_v25 = vmul.f32 %v7575_v37, %v12337_v19  ;;  %v7579_v18 = vunpack.i.l.bf16 %v7578_v15  ;;  %v7580_v16 = vunpack.i.h.bf16 %v7578_v15  ;;  %v12340_v37 = vunpack.c.l.bf16 %v9010_v49  ;;  %v9272_v49 = vld [vmem:[%s8849_s14 + $0xfc] sm:$0xff] }
 0x172   : > { %v3994_v15 = vmul.f32 %v7586_v23, %v12341_v30  ;;  %v4363_v62 = vadd.f32 %v3982_v47, %v3979_v63  ;;  %v4384_v6 = vadd.f32 %v3983_v14, %v3980_v24  ;;  %v7590_v63 = vunpack.i.l.bf16 %v7589_v41 }
 0x173   : > { %v3993_v57 = vmul.f32 %v7585_v28, %v12340_v37  ;;  %v4405_v19 = vadd.f32 %v3984_v25, %v3981_v31  ;;  %v3985_v44 = vmul.f32 %v7579_v18, %v12342_v29  ;;  %v3986_v52 = vmul.f32 %v7579_v18, %v12343_v48 }
 0x174   : > { %v3987_v26 = vmul.f32 %v7579_v18, %v12344_v60  ;;  %v12345_v28 = vunpack.c.h.bf16 %v9014_v53  ;;  %v12346_v31 = vunpack.c.l.bf16 %v9115_v35  ;;  %v12347_v47 = vunpack.c.h.bf16 %v9115_v35  ;;  %v9288_v60 = vld [vmem:[%s8849_s14 + $0xd8] sm:$0xff] }
 0x175   : > { %7824 = vperm.xlu2 %7592, %v9128_v22   ;;  %7819 = vperm.xlu1 %7581, %v9144_v54   ;;  %v3990_v22 = vmul.f32 %v7580_v16, %v12348_v34  ;;  %v4364_v25 = vadd.f32 %v4363_v62, %v3985_v44  ;;  %v4385_v18 = vadd.f32 %v4384_v6, %v3986_v52  ;;  %v12349_v30 = vunpack.c.l.bf16 %v9018_v56 }
 0x176   : > { %v3995_v37 = vmul.f32 %v7586_v23, %v12345_v28  ;;  %v3988_v24 = vmul.f32 %v7580_v16, %v12346_v31  ;;  %v3989_v14 = vmul.f32 %v7580_v16, %v12347_v47  ;;  %7814 = vperm.xlu0 %7570, %v9178_v51   ;;  %v4406_v53 = vadd.f32 %v4405_v19, %v3987_v26 }
 0x177   : > { %v7610_v29 = vpop.permute.xlu1 %7609  ;;  %v3996_v48 = vmul.f32 %v7586_v23, %v12349_v30  ;;  %v7591_v35 = vunpack.i.h.bf16 %v7589_v41  ;;  %v1863_v54 = vunpack.c.l.bf16 %v9272_v49  ;;  %v1864_v51 = vunpack.c.h.bf16 %v9272_v49  ;;  %v9302_v30 = vld [vmem:[%s8849_s14 + $0xe0] sm:$0xf] }
 0x178   : > { %v7605_v28 = vpop.permute.xlu0 %7604  ;;  %v4365_v31 = vadd.f32 %v4364_v25, %v3988_v24  ;;  %v4386_v13 = vadd.f32 %v4385_v18, %v3989_v14  ;;  %v4407_v16 = vadd.f32 %v4406_v53, %v3990_v22  ;;  %v1865_v62 = vunpack.c.l.bf16 %v9283_v45  ;;  %v9305_v24 = vld [vmem:[%s8849_s14 + $0xe4] sm:$0xff] }
 0x179   : > { %v12350_v26 = vunpack.c.l.bf16 %v9064_v55  ;;  %v12351_v19 = vunpack.c.h.bf16 %v9064_v55  ;;  %v1854_v23 = vunpack.c.l.bf16 %v9288_v60  ;;  %v1855_v41 = vunpack.c.h.bf16 %v9288_v60 }
 0x17a   : > { %v4366_v44 = vadd.f32 %v4365_v31, %v3991_v59  ;;  %v4387_v52 = vadd.f32 %v4386_v13, %v3992_v27  ;;  %v4408_v47 = vadd.f32 %v4407_v16, %v3993_v57  ;;  %v7611_v34 = vunpack.i.l.bf16 %v7610_v29 }
 0x17b   : > { %v3997_v6 = vmul.f32 %v7590_v63, %v12350_v26  ;;  %v3998_v56 = vmul.f32 %v7590_v63, %v12351_v19  ;;  %v12352_v14 = vunpack.c.l.bf16 %v9085_v4  ;;  %v12353_v25 = vunpack.c.l.bf16 %v9099_v36 }
 0x17c   : > { %v12354_v55 = vunpack.c.h.bf16 %v9099_v36  ;;  %v7612_v26 = vunpack.i.h.bf16 %v7610_v29  ;;  %v12355_v19 = vunpack.c.l.bf16 %v9102_v12  ;;  %v4367_v27 = vadd.f32 %v4366_v44, %v3994_v15 }
 0x17d   : > { %v3999_v22 = vmul.f32 %v7590_v63, %v12352_v14  ;;  %v4000_v18 = vmul.f32 %v7591_v35, %v12353_v25  ;;  %v4388_v57 = vadd.f32 %v4387_v52, %v3995_v37  ;;  %v4409_v31 = vadd.f32 %v4408_v47, %v3996_v48  ;;  %7839 = vperm.xlu2 %7592, %v9220_v5  }
 0x17e   : > { %v4001_v53 = vmul.f32 %v7591_v35, %v12354_v55  ;;  %v4002_v59 = vmul.f32 %v7591_v35, %v12355_v19  ;;  %v7607_v13 = vunpack.i.h.bf16 %v7605_v28  ;;  %7834 = vperm.xlu1 %7581, %v9222_v42   ;;  %7829 = vperm.xlu0 %7570, %v7828_v61   ;;  %v1856_v4 = vunpack.c.l.bf16 %v9302_v30 }
 0x17f   : > { %v1857_v63 = vunpack.c.l.bf16 %v9305_v24  ;;  %v1858_v36 = vunpack.c.h.bf16 %v9305_v24  ;;  %v4368_v16 = vadd.f32 %v4367_v27, %v3997_v6  ;;  %v4389_v29 = vadd.f32 %v4388_v57, %v3998_v56  ;;  %v7625_v37 = vpop.permute.xlu1 %7624  ;;  %v9351_v27 = vpop.permute.xlu2 %7644 }
 0x180   : > { %v4410_v14 = vadd.f32 %v4409_v31, %v3999_v22  ;;  %v12356_v12 = vunpack.c.l.bf16 %v9147_v39  ;;  %v12357_v5 = vunpack.c.h.bf16 %v9147_v39  ;;  %v12358_v42 = vunpack.c.l.bf16 %v9150_v32  ;;  %v7620_v22 = vpop.permute.xlu0 %7619 }
 0x181   : > { %v12359_v35 = vunpack.c.l.bf16 %v9153_v46  ;;  %v7606_v6 = vunpack.i.l.bf16 %v7605_v28  ;;  %v4369_v56 = vadd.f32 %v4368_v16, %v4000_v18  ;;  %v4390_v52 = vadd.f32 %v4389_v29, %v4001_v53 }
 0x182   : > { %v9322_v15 = vmul.f32 %v7611_v34, %v12356_v12  ;;  %v9326_v48 = vmul.f32 %v7611_v34, %v12357_v5  ;;  %v9330_v61 = vmul.f32 %v7611_v34, %v12358_v42  ;;  %v4411_v47 = vadd.f32 %v4410_v14, %v4002_v59 }
 0x183   : > { %v9334_v44 = vmul.f32 %v7612_v26, %v12359_v35  ;;  %v12360_v30 = vunpack.c.h.bf16 %v9153_v46  ;;  %v12361_v39 = vunpack.c.l.bf16 %v9173_v17  ;;  %v12362_v32 = vunpack.c.l.bf16 %v9193_v8 }
 0x184   : > { %v7627_v55 = vunpack.i.h.bf16 %v7625_v37  ;;  %v7626_v19 = vunpack.i.l.bf16 %v7625_v37  ;;  %v12363_v28 = vunpack.c.h.bf16 %v9193_v8  ;;  %v4370_v53 = vadd.f32 %v4369_v56, %v9069_v2  ;;  %v1583_v37 = vld [vmem:[%s8849_s14 + $0xec] sm:$0xf] }
 0x185   : > { %v9338_v24 = vmul.f32 %v7612_v26, %v12360_v30  ;;  %v9342_v25 = vmul.f32 %v7612_v26, %v12361_v39  ;;  %v4018_v34 = vmul.f32 %v7607_v13, %v12362_v32  ;;  %v4391_v46 = vadd.f32 %v4390_v52, %v9073_v9  ;;  %v7357_v39 = vld [vmem:[%s8865_s23 + $0x1c0] sm:$0xff]   ;;  %v12373_v32 = vld [vmem:[#allocation43_spill] sm:$0xff] }
 0x186   : > { %v4019_v18 = vmul.f32 %v7607_v13, %v12363_v28  ;;  %v4412_v59 = vadd.f32 %v4411_v47, %v9077_v11  ;;  %v12364_v17 = vunpack.c.l.bf16 %v9176_v43  ;;  %v12365_v57 = vunpack.c.h.bf16 %v9176_v43 }
 0x187   : > { %v12366_v16 = vunpack.c.l.bf16 %v9190_v7  ;;  %v7622_v14 = vunpack.i.h.bf16 %v7620_v22  ;;  %v12367_v8 = vunpack.c.l.bf16 %v9198_v33  ;;  %v4371_v2 = vadd.f32 %v4370_v53, %v9081_v3 }
 0x188   : > { %v4015_v26 = vmul.f32 %v7606_v6, %v12364_v17  ;;  %v4016_v31 = vmul.f32 %v7606_v6, %v12365_v57  ;;  %v4392_v9 = vadd.f32 %v4391_v46, %v9090_v20  ;;  %v4413_v11 = vadd.f32 %v4412_v59, %v9094_v21  ;;  %v12372_v20 = vld [vmem:[#allocation42_spill] sm:$0xff] }
 0x189   : > { %v4017_v29 = vmul.f32 %v7606_v6, %v12366_v16  ;;  %v4020_v12 = vmul.f32 %v7607_v13, %v12367_v8  ;;  %v12368_v5 = vunpack.c.l.bf16 %v9229_v50  ;;  %v12369_v43 = vunpack.c.h.bf16 %v9229_v50  ;;  %v12371_v13 = vld [vmem:[#allocation41_spill] sm:$0xff]  ;;  %v12376_v8 = vld [vmem:[#allocation46_spill] sm:$0xff] }
 0x18a   : > { %v12370_v7 = vunpack.c.l.bf16 %v9240_v38  ;;  %v4042_v33 = vmul.f32 %v7627_v55, %v1863_v54  ;;  %v4372_v3 = vadd.f32 %v4371_v2, %v9135_v1  ;;  %v4393_v56 = vadd.f32 %v4392_v9, %v12371_v13  ;;  %v12374_v54 = vld [vmem:[#allocation44_spill] sm:$0xff]  ;;  %v12375_v1 = vld [vmem:[#allocation45_spill] sm:$0xff] }
 0x18b   : > { %v4039_v42 = vmul.f32 %v7626_v19, %v12368_v5  ;;  %v4040_v35 = vmul.f32 %v7626_v19, %v12369_v43  ;;  %v4414_v21 = vadd.f32 %v4413_v11, %v12372_v20  ;;  %v4043_v52 = vmul.f32 %v7627_v55, %v1864_v51  ;;  %v9399_v13 = vld [vmem:[%s8849_s14 + $0x1ac] sm:$0xf]  ;;  %v9407_v20 = vld [vmem:[%s8849_s14 + $0x1e0] sm:$0xff] }
 0x18c   : > { %v4041_v6 = vmul.f32 %v7626_v19, %v12370_v7  ;;  %v4044_v50 = vmul.f32 %v7627_v55, %v1865_v62  ;;  %v7621_v47 = vunpack.i.l.bf16 %v7620_v22  ;;  %v1859_v30 = vunpack.c.l.bf16 %v1583_v37  ;;  %v7356_v62 = vld [vmem:[%s8865_s23 + $0x1b8] sm:$0xff]  }
 0x18d   : > { %v4036_v38 = vmul.f32 %v7622_v14, %v1857_v63  ;;  %v4373_v19 = vadd.f32 %v4372_v3, %v12373_v32  ;;  %v4394_v28 = vadd.f32 %v4393_v56, %v12374_v54  ;;  %v4415_v53 = vadd.f32 %v4414_v21, %v12375_v1  ;;  %v9410_v21 = vld [vmem:[%s8849_s14 + $0x1e8] sm:$0xf]  ;;  %v12378_v1 = vld [vmem:[#allocation32_spill] sm:$0xff] }
 0x18e   : > { %v4037_v46 = vmul.f32 %v7622_v14, %v1858_v36  ;;  %v4033_v59 = vmul.f32 %v7621_v47, %v1854_v23  ;;  %v4034_v49 = vmul.f32 %v7621_v47, %v1855_v41  ;;  %v4035_v45 = vmul.f32 %v7621_v47, %v1856_v4  ;;  %v7355_v4 = vld [vmem:[%s8865_s23 + $0x1b0] sm:$0xff]  }
 0x18f   : > { %v4038_v51 = vmul.f32 %v7622_v14, %v1859_v30  ;;  %v4374_v22 = vadd.f32 %v4373_v19, %v4015_v26  ;;  %v4395_v63 = vadd.f32 %v4394_v28, %v4016_v31  ;;  %v4416_v55 = vadd.f32 %v4415_v53, %v4017_v29  ;;  %v7660_v14 = vpop.permute.xlu2 %7659 }
 0x190   : > { %v7016_v17 = vunpack.c.l.bf16 %v7357_v39  ;;  %v4427_v57 = vadd.f32 %v9224_v0, %v4033_v59  ;;  %v4448_v16 = vadd.f32 %v9226_v58, %v4034_v49  ;;  %v4469_v36 = vadd.f32 %v12376_v8, %v4035_v45  ;;  %v7359_v45 = vld [vmem:[%s8865_s23 + $0x1d0] sm:$0xff]  }
 0x191   : > { %v7017_v2 = vunpack.c.h.bf16 %v7357_v39  ;;  %v4375_v23 = vadd.f32 %v4374_v22, %v4018_v34  ;;  %v4396_v60 = vadd.f32 %v4395_v63, %v4019_v18  ;;  %v4417_v41 = vadd.f32 %v4416_v55, %v4020_v12  ;;  %v1613_v34 = vld [vmem:[%s8849_s14 + $0x1a0] sm:$0xf]  ;;  %v1614_v18 = vld [vmem:[%s8849_s14 + $0x1a4] sm:$0xff]  ;;  %v12383_v55 = vld [vmem:[#allocation34_spill] sm:$0xff] }
 0x192   : > { %v7012_v9 = vunpack.c.l.bf16 %v7356_v62  ;;  %v4428_v26 = vadd.f32 %v4427_v57, %v4036_v38  ;;  %v4449_v31 = vadd.f32 %v4448_v16, %v4037_v46  ;;  %v4470_v29 = vadd.f32 %v4469_v36, %v4038_v51  ;;  %v12381_v22 = vld [vmem:[#allocation33_spill] sm:$0xff] }
 0x193   : > { %v7853_v11 = vpack.i.bf16 %v7017_v2, %v7016_v17  ;;  %v4376_v0 = vadd.f32 %v4375_v23, %v9322_v15  ;;  %v4397_v58 = vadd.f32 %v4396_v60, %v9326_v48  ;;  %v4418_v37 = vadd.f32 %v4417_v41, %v9330_v61  ;;  %v12386_v2 = vld [vmem:[#allocation35_spill] sm:$0xff] }
 0x194   : > { %v7013_v5 = vunpack.c.h.bf16 %v7356_v62  ;;  %v4429_v12 = vadd.f32 %v4428_v26, %v4039_v42  ;;  %v4450_v43 = vadd.f32 %v4449_v31, %v4040_v35  ;;  %v4471_v7 = vadd.f32 %v4470_v29, %v4041_v6  ;;  %v12388_v26 = vld [vmem:[#allocation36_spill] sm:$0xff] }
 0x195   : > { %7854 = vperm.xlu2 %7592, %v7853_v11   ;;  %v7008_v3 = vunpack.c.l.bf16 %v7355_v4  ;;  %v4377_v56 = vadd.f32 %v4376_v0, %v9334_v44  ;;  %v4398_v15 = vadd.f32 %v4397_v58, %v9338_v24  ;;  %v9404_v48 = vadd.f32 %v4418_v37, %v9342_v25  ;;  %v12377_v44 = vld [vmem:[#allocation40_spill] sm:$0xff]  ;;  %v9421_v25 = vld [vmem:[%s8849_s14 + $0x1ec] sm:$0xff] }
 0x196   : > { %v7848_v61 = vpack.i.bf16 %v7013_v5, %v7012_v9  ;;  %v9412_v42 = vadd.f32 %v4429_v12, %v4042_v33  ;;  %v9414_v35 = vadd.f32 %v4450_v43, %v4043_v52  ;;  %v9416_v6 = vadd.f32 %v4471_v7, %v4044_v50  ;;  %v12391_v11 = vld [vmem:[#allocation37_spill] sm:$0xff]  ;;  %v12393_v37 = vld [vmem:[#allocation38_spill] sm:$0xff]  ;;  %v12396_v43 = vld [vmem:[#allocation39_spill] sm:$0xff] }
 0x197   : > { %v7009_v47 = vunpack.c.h.bf16 %v7355_v4  ;;  %v7632_v30 = vunpack.i.h.bf16 %v9244_v40  ;;  %v1903_v38 = vunpack.c.h.bf16 %v12377_v44  ;;  %v1904_v24 = vunpack.c.l.bf16 %v1613_v34  ;;  %v7675_v4 = vpop.permute.xlu2 %7674  ;;  %v7358_v40 = vld [vmem:[%s8865_s23 + $0x1c8] sm:$0xff]  }
 0x198   : > { %v1905_v39 = vunpack.c.l.bf16 %v1614_v18  ;;  %7849 = vperm.xlu1 %7581, %v7848_v61   ;;  %v1906_v32 = vunpack.c.h.bf16 %v1614_v18  ;;  %v7647_v52 = vunpack.i.h.bf16 %v9351_v27  ;;  %v7646_v50 = vunpack.i.l.bf16 %v9351_v27 }
 0x199   : > { %v7843_v54 = vpack.i.bf16 %v7009_v47, %v7008_v3  ;;  %v12379_v53 = vunpack.c.l.bf16 %v12378_v1  ;;  %v7661_v59 = vunpack.i.l.bf16 %v7660_v14  ;;  %v12380_v51 = vunpack.c.h.bf16 %v12378_v1 }
 0x19a   : > { %v12382_v27 = vunpack.c.l.bf16 %v12381_v22  ;;  %v12384_v17 = vunpack.c.l.bf16 %v12383_v55  ;;  %v9442_v16 = vunpack.i.h.bf16 %v7660_v14  ;;  %v12385_v8 = vunpack.c.h.bf16 %v12383_v55  ;;  %v9495_v22 = vld [vmem:[%s8849_s14 + $0x144] sm:$0xff] }
 0x19b   : > { %v4045_v46 = vmul.f32 %v9251_v10, %v12379_v53  ;;  %7844 = vperm.xlu0 %7570, %v7843_v54   ;;  %v4046_v62 = vmul.f32 %v9251_v10, %v12380_v51  ;;  %v12387_v23 = vunpack.c.l.bf16 %v12386_v2  ;;  %v4378_v41 = vrot.slane %v4377_v56, 4  ;;  %v7640_v54 = vpop.permute.xlu1 %7639  ;;  %v9509_v2 = vld [vmem:[%s8849_s14 + $0x14c] sm:$0xf] }
 0x19c   : > { %v4047_v63 = vmul.f32 %v9251_v10, %v12382_v27  ;;  %v4048_v57 = vmul.f32 %v7632_v30, %v12384_v17  ;;  %v4049_v36 = vmul.f32 %v7632_v30, %v12385_v8  ;;  %v4399_v9 = vrot.slane %v4398_v15, 4 }
 0x19d   : > { %v9448_v60 = vmul.f32 %v7632_v30, %v12387_v23  ;;  %v12389_v31 = vunpack.c.l.bf16 %v12388_v26  ;;  %v12390_v29 = vunpack.c.h.bf16 %v12388_v26  ;;  %v12392_v0 = vunpack.c.l.bf16 %v12391_v11 }
 0x19e   : > { %v12394_v5 = vunpack.c.l.bf16 %v12393_v37  ;;  %v12395_v18 = vunpack.c.h.bf16 %v12393_v37  ;;  %v12397_v7 = vunpack.c.l.bf16 %v12396_v43  ;;  %v12398_v61 = vunpack.c.l.bf16 %v12377_v44  ;;  %v9492_v44 = vld [vmem:[%s8849_s14 + $0x140] sm:$0xf] }
 0x19f   : > { %v9452_v10 = vmul.f32 %v7646_v50, %v12389_v31  ;;  %v9456_v14 = vmul.f32 %v7646_v50, %v12390_v29  ;;  %v9460_v58 = vmul.f32 %v7646_v50, %v12392_v0  ;;  %v9478_v30 = vmul.f32 %v7661_v59, %v1903_v38  ;;  %v1596_v50 = vld [vmem:[%s8849_s14 + $0x138] sm:$0xff]  ;;  %v7635_v38 = vpop.permute.xlu0 %7634  ;;  %v1594_v31 = vld [vmem:[%s8849_s14 + $0x12c] sm:$0xff] }
 0x1a0   : > { %v9464_v34 = vmul.f32 %v7647_v52, %v12394_v5  ;;  %v9468_v12 = vmul.f32 %v7647_v52, %v12395_v18  ;;  %v9472_v3 = vmul.f32 %v7647_v52, %v12397_v7  ;;  %v9476_v47 = vmul.f32 %v7661_v59, %v12398_v61  ;;  %v7360_v61 = vld [vmem:[%s8865_s23 + $0x1d8] sm:$0xff]  }
 0x1a1   : > { %v9481_v1 = vmul.f32 %v7661_v59, %v1904_v24  ;;  %v9484_v53 = vmul.f32 %v9442_v16, %v1905_v39  ;;  %v9487_v51 = vmul.f32 %v9442_v16, %v1906_v32  ;;  %v9489_v52 = vunpack.i.h.bf16 %v7675_v4  ;;  %v1592_v59 = vld [vmem:[%s8849_s14 + $0x120] sm:$0xff]  ;;  %v1593_v32 = vld [vmem:[%s8849_s14 + $0x128] sm:$0xf] }
 0x1a2   : > { %v9497_v27 = vadd.f32 %v4378_v41, %v4377_v56  ;;  %v9499_v55 = vadd.f32 %v4399_v9, %v4398_v15  ;;  %v4420_v24 = vrot.slane %v9404_v48, 4  ;;  %v9502_v39 = vunpack.i.l.bf16 %v7675_v4  ;;  %v1595_v4 = vld [vmem:[%s8849_s14 + $0x134] sm:$0xf] }
 0x1a3   : > { %12399 = vst [vmem:[#allocation41_spill] sm:$0xff] %v9484_v53  ;;  %v9506_v17 = vunpack.i.h.bf16 %v7640_v54  ;;  %v7641_v8 = vunpack.i.l.bf16 %v7640_v54  ;;  %v1878_v23 = vunpack.c.l.bf16 %v1596_v50  ;;  %v1879_v26 = vunpack.c.h.bf16 %v1596_v50 }
 0x1a4   : > { %12400 = vst [vmem:[#allocation42_spill] sm:$0xff] %v9487_v51  ;;  %v1880_v56 = vunpack.c.l.bf16 %v9492_v44  ;;  %v1881_v15 = vunpack.c.l.bf16 %v9495_v22  ;;  %v1882_v41 = vunpack.c.h.bf16 %v9495_v22  ;;  %v7637_v9 = vunpack.i.h.bf16 %v7635_v38 }
 0x1a5   : > { %v7636_v29 = vunpack.i.l.bf16 %v7635_v38  ;;  %v1872_v11 = vunpack.c.l.bf16 %v1592_v59  ;;  %v1873_v0 = vunpack.c.h.bf16 %v1592_v59  ;;  %v1874_v37 = vunpack.c.l.bf16 %v1593_v32 }
 0x1a6   : > { %v1883_v5 = vunpack.c.l.bf16 %v9509_v2  ;;  %v1875_v18 = vunpack.c.l.bf16 %v1594_v31  ;;  %v1876_v43 = vunpack.c.h.bf16 %v1594_v31  ;;  %v4431_v7 = vadd.f32 %v9412_v42, %v4045_v46 }
 0x1a7   : > { %v1877_v54 = vunpack.c.l.bf16 %v1595_v4  ;;  %v4051_v50 = vmul.f32 %v7636_v29, %v1872_v11  ;;  %v4052_v44 = vmul.f32 %v7636_v29, %v1873_v0  ;;  %v4452_v22 = vadd.f32 %v9414_v35, %v4046_v62 }
 0x1a8   : > { %v4053_v28 = vmul.f32 %v7636_v29, %v1874_v37  ;;  %v4054_v49 = vmul.f32 %v7637_v9, %v1875_v18  ;;  %v4055_v38 = vmul.f32 %v7637_v9, %v1876_v43  ;;  %v4432_v33 = vadd.f32 %v4431_v7, %v4048_v57 }
 0x1a9   : > { %v4453_v59 = vadd.f32 %v4452_v22, %v4049_v36  ;;  %v4473_v32 = vadd.f32 %v9416_v6, %v4047_v63  ;;  %v7028_v2 = vunpack.c.l.bf16 %v7360_v61  ;;  %v7029_v19 = vunpack.c.h.bf16 %v7360_v61  ;;  %v1611_v61 = vld [vmem:[%s8849_s14 + $0x194] sm:$0xf] }
 0x1aa   : > { %v4433_v31 = vadd.f32 %v4432_v33, %v4051_v50  ;;  %v7024_v51 = vunpack.c.l.bf16 %v7359_v45  ;;  %v7025_v42 = vunpack.c.h.bf16 %v7359_v45  ;;  %v7020_v46 = vunpack.c.l.bf16 %v7358_v40 }
 0x1ab   : > { %v4454_v4 = vadd.f32 %v4453_v59, %v4052_v44  ;;  %v4474_v11 = vadd.f32 %v4473_v32, %v9448_v60  ;;  %v7868_v0 = vpack.i.bf16 %v7029_v19, %v7028_v2  ;;  %v7021_v35 = vunpack.c.h.bf16 %v7358_v40 }
 0x1ac   : > { %v4057_v62 = vmul.f32 %v7641_v8, %v1878_v23  ;;  %v4058_v53 = vmul.f32 %v7641_v8, %v1879_v26  ;;  %v4434_v29 = vadd.f32 %v4433_v31, %v4054_v49  ;;  %v7863_v37 = vpack.i.bf16 %v7025_v42, %v7024_v51  ;;  %v7655_v23 = vpop.permute.xlu1 %7654  ;;  %v1604_v42 = vld [vmem:[%s8849_s14 + $0x168] sm:$0xff] }
 0x1ad   : > { %v4056_v18 = vmul.f32 %v7637_v9, %v1877_v54  ;;  %v4455_v57 = vadd.f32 %v4454_v4, %v4055_v38  ;;  %v4475_v36 = vadd.f32 %v4474_v11, %v4053_v28  ;;  %7869 = vperm.xlu2 %7592, %v7868_v0   ;;  %v7858_v6 = vpack.i.bf16 %v7021_v35, %v7020_v46  ;;  %v7650_v38 = vpop.permute.xlu0 %7649  ;;  %v1605_v11 = vld [vmem:[%s8849_s14 + $0x170] sm:$0xf]  ;;  %v1606_v0 = vld [vmem:[%s8849_s14 + $0x174] sm:$0xff] }
 0x1ae   : > { %v12401_v33 = vunpack.c.l.bf16 %v9399_v13  ;;  %v4421_v63 = vadd.f32 %v4420_v24, %v9404_v48  ;;  %v4060_v19 = vmul.f32 %v9506_v17, %v1881_v15  ;;  %v4435_v40 = vadd.f32 %v4434_v29, %v4057_v62  ;;  %7864 = vperm.xlu1 %7581, %v7863_v37   ;;  %v1608_v13 = vld [vmem:[%s8849_s14 + $0x180] sm:$0xff] }
 0x1af   : > { %v4059_v49 = vmul.f32 %v7641_v8, %v1880_v56  ;;  %v4061_v60 = vmul.f32 %v9506_v17, %v1882_v41  ;;  %v4456_v28 = vadd.f32 %v4455_v57, %v4058_v53  ;;  %v4476_v51 = vadd.f32 %v4475_v36, %v4056_v18  ;;  %7859 = vperm.xlu0 %7570, %v7858_v6   ;;  %v1609_v56 = vld [vmem:[%s8849_s14 + $0x188] sm:$0xf]  ;;  %v1610_v53 = vld [vmem:[%s8849_s14 + $0x18c] sm:$0xff]  ;;  %v1607_v6 = vld [vmem:[%s8849_s14 + $0x17c] sm:$0xf] }
 0x1b0   : > { %v9527_v45 = vmul.f32 %v9442_v16, %v12401_v33  ;;  %v4380_v16 = vrot.slane %v9497_v27, 2  ;;  %v12402_v26 = vunpack.c.l.bf16 %v9407_v20  ;;  %v12403_v24 = vunpack.c.l.bf16 %v9421_v25 }
 0x1b1   : > { %v4436_v8 = vadd.f32 %v4435_v40, %v4060_v19  ;;  %v4401_v41 = vrot.slane %v9499_v55, 2  ;;  %v4062_v9 = vmul.f32 %v9506_v17, %v1883_v5  ;;  %v4457_v43 = vadd.f32 %v4456_v28, %v4061_v60 }
 0x1b2   : > { %v9537_v48 = vmul.f32 %v9502_v39, %v12402_v26  ;;  %v9542_v15 = vmul.f32 %v9489_v52, %v12403_v24  ;;  %v4477_v7 = vadd.f32 %v4476_v51, %v4059_v49  ;;  %v4422_v54 = vrot.slane %v4421_v63, 2 }
 0x1b3   : > { %v7657_v50 = vunpack.i.h.bf16 %v7655_v23  ;;  %v7656_v44 = vunpack.i.l.bf16 %v7655_v23  ;;  %v1896_v22 = vunpack.c.l.bf16 %v1608_v13  ;;  %v1897_v32 = vunpack.c.h.bf16 %v1608_v13 }
 0x1b4   : > { %v4478_v59 = vadd.f32 %v4477_v7, %v4062_v9  ;;  %v1898_v2 = vunpack.c.l.bf16 %v1609_v56  ;;  %v1899_v31 = vunpack.c.l.bf16 %v1610_v53  ;;  %v9551_v46 = vadd.f32 %v4380_v16, %v9497_v27  ;;  %v7363_v56 = vld [vmem:[%s8865_s23 + $0x1f0] sm:$0xff]  }
 0x1b5   : > { %v1900_v17 = vunpack.c.h.bf16 %v1610_v53  ;;  %v1901_v5 = vunpack.c.l.bf16 %v1611_v61  ;;  %v4075_v4 = vmul.f32 %v7656_v44, %v1896_v22  ;;  %v4076_v35 = vmul.f32 %v7656_v44, %v1897_v32  ;;  %v7362_v53 = vld [vmem:[%s8865_s23 + $0x1e8] sm:$0xff]  }
 0x1b6   : > { %v4077_v62 = vmul.f32 %v7656_v44, %v1898_v2  ;;  %v4078_v29 = vmul.f32 %v7657_v50, %v1899_v31  ;;  %v7652_v37 = vunpack.i.h.bf16 %v7650_v38  ;;  %v7651_v36 = vunpack.i.l.bf16 %v7650_v38  ;;  %v9577_v2 = vld [vmem:[%s8849_s14 + $0x1f4] sm:$0xf] }
 0x1b7   : > { %v4079_v18 = vmul.f32 %v7657_v50, %v1900_v17  ;;  %v4080_v57 = vmul.f32 %v7657_v50, %v1901_v5  ;;  %v1890_v33 = vunpack.c.l.bf16 %v1604_v42  ;;  %v1891_v40 = vunpack.c.h.bf16 %v1604_v42 }
 0x1b8   : > { %v4489_v19 = vadd.f32 %v4078_v29, %v4075_v4  ;;  %v1892_v27 = vunpack.c.l.bf16 %v1605_v11  ;;  %v1893_v49 = vunpack.c.l.bf16 %v1606_v0  ;;  %v9557_v60 = vadd.f32 %v4401_v41, %v9499_v55  ;;  %v7361_v41 = vld [vmem:[%s8865_s23 + $0x1e0] sm:$0xff]  }
 0x1b9   : > { %v9559_v28 = vadd.f32 %v4422_v54, %v4421_v63  ;;  %v4510_v51 = vadd.f32 %v4079_v18, %v4076_v35  ;;  %v4531_v23 = vadd.f32 %v4080_v57, %v4077_v62  ;;  %v1894_v16 = vunpack.c.h.bf16 %v1606_v0  ;;  %v9594_v35 = vld [vmem:[%s8849_s14 + $0x228] sm:$0xff]  ;;  %v9601_v18 = vld [vmem:[%s8849_s14 + $0x234] sm:$0xff] }
 0x1ba   : > { %v9562_v13 = vadd.f32 %v4489_v19, %v9476_v47  ;;  %v1895_v26 = vunpack.c.l.bf16 %v1607_v6  ;;  %v4069_v24 = vmul.f32 %v7651_v36, %v1890_v33  ;;  %v4070_v55 = vmul.f32 %v7651_v36, %v1891_v40 }
 0x1bb   : > { %v9567_v9 = vadd.f32 %v4510_v51, %v9478_v30  ;;  %v9570_v7 = vadd.f32 %v4531_v23, %v9481_v1  ;;  %v4071_v63 = vmul.f32 %v7651_v36, %v1892_v27  ;;  %v4072_v61 = vmul.f32 %v7652_v37, %v1893_v49  ;;  %v7670_v51 = vpop.permute.xlu1 %7669  ;;  %v9611_v23 = vld [vmem:[%s8849_s14 + $0x1c8] sm:$0xff] }
 0x1bc   : > { %v4437_v54 = vadd.f32 %v4436_v8, %v9452_v10  ;;  %v4458_v47 = vadd.f32 %v4457_v43, %v9456_v14  ;;  %v4479_v50 = vadd.f32 %v4478_v59, %v9460_v58  ;;  %v7040_v44 = vunpack.c.l.bf16 %v7363_v56  ;;  %v7690_v8 = vpop.permute.xlu2 %7689 }
 0x1bd   : > { %v7041_v22 = vunpack.c.h.bf16 %v7363_v56  ;;  %v7036_v38 = vunpack.c.l.bf16 %v7362_v53  ;;  %v7037_v32 = vunpack.c.h.bf16 %v7362_v53  ;;  %v7032_v42 = vunpack.c.l.bf16 %v7361_v41 }
 0x1be   : > { %v4438_v30 = vadd.f32 %v4437_v54, %v9464_v34  ;;  %v4459_v1 = vadd.f32 %v4458_v47, %v9468_v12  ;;  %v4480_v31 = vadd.f32 %v4479_v50, %v9472_v3  ;;  %v4073_v17 = vmul.f32 %v7652_v37, %v1894_v16  ;;  %v9622_v54 = vld [vmem:[%s8849_s14 + $0x1d4] sm:$0xff] }
 0x1bf   : > { %v7883_v10 = vpack.i.bf16 %v7041_v22, %v7040_v44  ;;  %v7878_v14 = vpack.i.bf16 %v7037_v32, %v7036_v38  ;;  %v7033_v58 = vunpack.c.h.bf16 %v7361_v41  ;;  %v4074_v43 = vmul.f32 %v7652_v37, %v1895_v26  ;;  %v9598_v37 = vld [vmem:[%s8849_s14 + $0x230] sm:$0xf] }
 0x1c0   : > { %v4439_v59 = vadd.f32 %v4438_v30, %v4069_v24  ;;  %v4460_v5 = vadd.f32 %v4459_v1, %v4070_v55  ;;  %v4481_v4 = vadd.f32 %v4480_v31, %v4071_v63  ;;  %v1925_v11 = vunpack.c.l.bf16 %v9577_v2  ;;  %v9630_v30 = vld [vmem:[%s8849_s14 + $0x1dc] sm:$0xf]  ;;  %v7665_v1 = vpop.permute.xlu0 %7664  ;;  %v9686_v2 = vld [vmem:[%s8849_s14 + $0x210] sm:$0xff] }
 0x1c1   : > { %v12404_v34 = vunpack.c.h.bf16 %v9407_v20  ;;  %v12405_v3 = vunpack.c.l.bf16 %v9410_v21  ;;  %7884 = vperm.xlu2 %7592, %v7883_v10   ;;  %7879 = vperm.xlu1 %7581, %v7878_v14   ;;  %v7873_v62 = vpack.i.bf16 %v7033_v58, %v7032_v42  ;;  %v4382_v29 = vrot.slane %v9551_v46, 1 }
 0x1c2   : > { %v4440_v20 = vadd.f32 %v4439_v59, %v4072_v61  ;;  %v4461_v57 = vadd.f32 %v4460_v5, %v4073_v17  ;;  %v4482_v36 = vadd.f32 %v4481_v4, %v4074_v43  ;;  %v4403_v21 = vrot.slane %v9557_v60, 1  ;;  %v9619_v61 = vld [vmem:[%s8849_s14 + $0x1d0] sm:$0xf]  ;;  %v1617_v43 = vld [vmem:[%s8849_s14 + $0x1b8] sm:$0xf]  ;;  %v1618_v59 = vld [vmem:[%s8849_s14 + $0x1bc] sm:$0xff] }
 0x1c3   : > { %v9586_v12 = vmul.f32 %v9502_v39, %v12404_v34  ;;  %v9591_v0 = vmul.f32 %v9502_v39, %v12405_v3  ;;  %v4424_v39 = vrot.slane %v9559_v28, 1  ;;  %v9605_v6 = vunpack.i.h.bf16 %v7690_v8  ;;  %7874 = vperm.xlu0 %7570, %v7873_v62   ;;  %v1616_v17 = vld [vmem:[%s8849_s14 + $0x1b0] sm:$0xff]  ;;  %v1619_v62 = vld [vmem:[%s8849_s14 + $0x1c4] sm:$0xf] }
 0x1c4   : > { %v9607_v33 = vunpack.i.l.bf16 %v7690_v8  ;;  %v1938_v19 = vunpack.c.l.bf16 %v9594_v35  ;;  %v4441_v40 = vrot.slane %v4440_v20, 4  ;;  %v4462_v27 = vrot.slane %v4461_v57, 4 }
 0x1c5   : > { %v4483_v49 = vrot.slane %v4482_v36, 4  ;;  %v1939_v16 = vunpack.c.h.bf16 %v9594_v35  ;;  %v1940_v26 = vunpack.c.l.bf16 %v9598_v37  ;;  %v1941_v24 = vunpack.c.l.bf16 %v9601_v18 }
 0x1c6   : > { %v1942_v56 = vunpack.c.h.bf16 %v9601_v18  ;;  %v4383_v53 = vadd.f32 %v4382_v29, %v9551_v46  ;;  %v4442_v55 = vadd.f32 %v4441_v40, %v4440_v20  ;;  %v4463_v63 = vadd.f32 %v4462_v27, %v4461_v57 }
 0x1c7   : > { %v4484_v41 = vadd.f32 %v4483_v49, %v4482_v36  ;;  %v4404_v47 = vadd.f32 %v4403_v21, %v9557_v60  ;;  %v4425_v50 = vadd.f32 %v4424_v39, %v9559_v28  ;;  %v9626_v44 = vunpack.i.l.bf16 %v7670_v51 }
 0x1c8   : > { %v1914_v22 = vunpack.c.l.bf16 %v9611_v23  ;;  %v4443_v46 = vrot.slane %v4442_v55, 2  ;;  %v4464_v38 = vrot.slane %v4463_v63, 2  ;;  %v9632_v31 = vunpack.i.h.bf16 %v7670_v51 }
 0x1c9   : > { %v4485_v32 = vrot.slane %v4484_v41, 2  ;;  %v1915_v60 = vunpack.c.h.bf16 %v9611_v23  ;;  %v1916_v28 = vunpack.c.l.bf16 %v9619_v61  ;;  %v1917_v42 = vunpack.c.l.bf16 %v9622_v54 }
 0x1ca   : > { %v4444_v10 = vadd.f32 %v4443_v46, %v4442_v55  ;;  %v4465_v14 = vadd.f32 %v4464_v38, %v4463_v63  ;;  %v1918_v8 = vunpack.c.h.bf16 %v9622_v54  ;;  %v1919_v5 = vunpack.c.l.bf16 %v9630_v30  ;;  %v7047_v46 = vld [vmem:[%s8867_s17] sm:$0xff]  }
 0x1cb   : > { %v4486_v58 = vadd.f32 %v4485_v32, %v4484_v41  ;;  %v4093_v4 = vmul.f32 %v9626_v44, %v1914_v22  ;;  %v7667_v34 = vunpack.i.h.bf16 %v7665_v1  ;;  %v7666_v3 = vunpack.i.l.bf16 %v7665_v1  ;;  %v7365_v22 = vld [vmem:[%s8867_s17 + $0x8] sm:$0xff]  }
 0x1cc   : > { %v4445_v29 = vrot.slane %v4444_v10, 1  ;;  %v4466_v20 = vrot.slane %v4465_v14, 1  ;;  %v1908_v36 = vunpack.c.l.bf16 %v1616_v17  ;;  %v1909_v21 = vunpack.c.h.bf16 %v1616_v17  ;;  %v7364_v17 = vld [vmem:[%s8865_s23 + $0x1f8] sm:$0xff]  }
 0x1cd   : > { %v4487_v57 = vrot.slane %v4486_v58, 1  ;;  %v1910_v39 = vunpack.c.l.bf16 %v1617_v43  ;;  %v1911_v40 = vunpack.c.l.bf16 %v1618_v59  ;;  %v1912_v27 = vunpack.c.h.bf16 %v1618_v59  ;;  %v12407_v43 = vld [vmem:[#allocation42_spill] sm:$0xff] }
 0x1ce   : > { %v4446_v49 = vadd.f32 %v4445_v29, %v4444_v10  ;;  %v4467_v51 = vadd.f32 %v4466_v20, %v4465_v14  ;;  %v1913_v55 = vunpack.c.l.bf16 %v1619_v62  ;;  %v4087_v63 = vmul.f32 %v7666_v3, %v1908_v36  ;;  %v12406_v14 = vld [vmem:[#allocation41_spill] sm:$0xff]  ;;  %v1639_v20 = vld [vmem:[%s8849_s14 + $0x23c] sm:$0xf] }
 0x1cf   : > { %v4488_v23 = vadd.f32 %v4487_v57, %v4486_v58  ;;  %v4088_v41 = vmul.f32 %v7666_v3, %v1909_v21  ;;  %v4089_v61 = vmul.f32 %v7666_v3, %v1910_v39  ;;  %v4090_v54 = vmul.f32 %v7667_v34, %v1911_v40 }
 0x1d0   : > { %v9647_v38 = vsel %vm4891_vm0, %v4446_v49, %v4383_v53  ;;  %v9650_v32 = vsel %vm4891_vm0, %v4467_v51, %v4404_v47  ;;  %v4091_v1 = vmul.f32 %v7667_v34, %v1912_v27  ;;  %v4092_v10 = vmul.f32 %v7667_v34, %v1913_v55  ;;  %v7705_v27 = vpop.permute.xlu2 %7704 }
 0x1d1   : > { %v9653_v30 = vsel %vm4891_vm0, %v4488_v23, %v4425_v50  ;;  %v4491_v58 = vadd.f32 %v9562_v13, %v12406_v14  ;;  %v4512_v59 = vadd.f32 %v9567_v9, %v12407_v43  ;;  %v4533_v53 = vadd.f32 %v9570_v7, %v9527_v45  ;;  %v1648_v9 = vld [vmem:[%s8849_s14 + $0x270] sm:$0xff]  ;;  %v7369_v43 = vld [vmem:[%s8867_s17 + $0x28] sm:$0xff]  }
 0x1d2   : > { %v7052_v3 = vunpack.c.l.bf16 %v7365_v22  ;;  %v7053_v62 = vunpack.c.h.bf16 %v7365_v22  ;;  %v7048_v47 = vunpack.c.l.bf16 %v7047_v46  ;;  %v7049_v29 = vunpack.c.h.bf16 %v7047_v46 }
 0x1d3   : > { %v4492_v50 = vadd.f32 %v4491_v58, %v4087_v63  ;;  %v4513_v57 = vadd.f32 %v4512_v59, %v4088_v41  ;;  %v4534_v36 = vadd.f32 %v4533_v53, %v4089_v61  ;;  %v7044_v21 = vunpack.c.l.bf16 %v7364_v17  ;;  %v9728_v59 = vld [vmem:[%s8849_s14 + $0x224] sm:$0xf]  ;;  %v1628_v53 = vld [vmem:[%s8849_s14 + $0x1f8] sm:$0xff] }
 0x1d4   : > { %v4094_v34 = vmul.f32 %v9626_v44, %v1915_v60  ;;  %v7898_v39 = vpack.i.bf16 %v7053_v62, %v7052_v3  ;;  %v7893_v13 = vpack.i.bf16 %v7049_v29, %v7048_v47  ;;  %v7045_v40 = vunpack.c.h.bf16 %v7364_v17 }
 0x1d5   : > { %v4095_v49 = vmul.f32 %v9626_v44, %v1916_v28  ;;  %v4493_v51 = vadd.f32 %v4492_v50, %v4090_v54  ;;  %v4514_v45 = vadd.f32 %v4513_v57, %v4091_v1  ;;  %v4535_v7 = vadd.f32 %v4534_v36, %v4092_v10  ;;  %v7685_v10 = vpop.permute.xlu1 %7684  ;;  %v1630_v50 = vld [vmem:[%s8849_s14 + $0x204] sm:$0xff] }
 0x1d6   : > { %v1943_v23 = vunpack.c.l.bf16 %v1639_v20  ;;  %v4096_v55 = vmul.f32 %v9632_v31, %v1917_v42  ;;  %v4097_v63 = vmul.f32 %v9632_v31, %v1918_v8  ;;  %7899 = vperm.xlu2 %7592, %v7898_v39   ;;  %7894 = vperm.xlu1 %7581, %v7893_v13   ;;  %v7888_v60 = vpack.i.bf16 %v7045_v40, %v7044_v21  ;;  %v9680_v8 = vld [vmem:[%s8849_s14 + $0x278] sm:$0xf]  ;;  %v1629_v20 = vld [vmem:[%s8849_s14 + $0x200] sm:$0xf]  ;;  %v1631_v39 = vld [vmem:[%s8849_s14 + $0x20c] sm:$0xf] }
 0x1d7   : > { %v4098_v41 = vmul.f32 %v9632_v31, %v1919_v5  ;;  %v4494_v61 = vadd.f32 %v4493_v51, %v4093_v4  ;;  %v4515_v22 = vadd.f32 %v4514_v45, %v4094_v34  ;;  %v4536_v46 = vadd.f32 %v4535_v7, %v4095_v49  ;;  %v9683_v31 = vld [vmem:[%s8849_s14 + $0x27c] sm:$0xff] }
 0x1d8   : > { %v12408_v44 = vunpack.c.h.bf16 %v9421_v25  ;;  %v9675_v54 = vmul.f32 %v9489_v52, %v1925_v11  ;;  %v9677_v42 = vunpack.i.l.bf16 %v7705_v27  ;;  %v1956_v1 = vunpack.c.l.bf16 %v1648_v9  ;;  %7889 = vperm.xlu0 %7570, %v7888_v60   ;;  %v7720_v13 = vpop.permute.xlu2 %7719 }
 0x1d9   : > { %v1957_v5 = vunpack.c.h.bf16 %v1648_v9  ;;  %v4495_v4 = vadd.f32 %v4494_v61, %v4096_v55  ;;  %v4516_v25 = vadd.f32 %v4515_v22, %v4097_v63  ;;  %v4537_v17 = vadd.f32 %v4536_v46, %v4098_v41  ;;  %v7368_v55 = vld [vmem:[%s8867_s17 + $0x20] sm:$0xff]   ;;  %v7367_v22 = vld [vmem:[%s8867_s17 + $0x18] sm:$0xff]   ;;  %v7366_v46 = vld [vmem:[%s8867_s17 + $0x10] sm:$0xff]  }
 0x1da   : > { %v4103_v28 = vmul.f32 %v9489_v52, %v12408_v44  ;;  %v9691_v52 = vmul.f32 %v9607_v33, %v1938_v19  ;;  %v9696_v11 = vmul.f32 %v9607_v33, %v1939_v16  ;;  %v9701_v14 = vmul.f32 %v9607_v33, %v1940_v26  ;;  %v9720_v33 = vld [vmem:[%s8849_s14 + $0x218] sm:$0xf]  ;;  %v9723_v26 = vld [vmem:[%s8849_s14 + $0x21c] sm:$0xff] }
 0x1db   : > { %v9706_v58 = vmul.f32 %v9605_v6, %v1941_v24  ;;  %v9711_v19 = vmul.f32 %v9605_v6, %v1942_v56  ;;  %v9714_v35 = vmul.f32 %v9605_v6, %v1943_v23  ;;  %v9716_v16 = vunpack.i.h.bf16 %v7705_v27  ;;  %v7680_v24 = vpop.permute.xlu0 %7679 }
 0x1dc   : > { %v1958_v37 = vunpack.c.l.bf16 %v9680_v8  ;;  %v7686_v56 = vunpack.i.l.bf16 %v7685_v10  ;;  %v1932_v6 = vunpack.c.l.bf16 %v9686_v2  ;;  %v9733_v3 = vmul.f32 %v9677_v42, %v1956_v1 }
 0x1dd   : > { %v9736_v62 = vmul.f32 %v9677_v42, %v1957_v5  ;;  %v9738_v47 = vunpack.i.h.bf16 %v7685_v10  ;;  %v1933_v29 = vunpack.c.h.bf16 %v9686_v2  ;;  %v1934_v57 = vunpack.c.l.bf16 %v9720_v33 }
 0x1de   : > { %v1935_v36 = vunpack.c.l.bf16 %v9723_v26  ;;  %v7682_v21 = vunpack.i.h.bf16 %v7680_v24  ;;  %v7681_v34 = vunpack.i.l.bf16 %v7680_v24  ;;  %v1936_v40 = vunpack.c.h.bf16 %v9723_v26 }
 0x1df   : > { %v1937_v27 = vunpack.c.l.bf16 %v9728_v59  ;;  %v1926_v9 = vunpack.c.l.bf16 %v1628_v53  ;;  %v1927_v49 = vunpack.c.h.bf16 %v1628_v53  ;;  %v4111_v51 = vmul.f32 %v7686_v56, %v1932_v6 }
 0x1e0   : > { %v1928_v45 = vunpack.c.l.bf16 %v1629_v20  ;;  %v1929_v7 = vunpack.c.l.bf16 %v1630_v50  ;;  %v1930_v23 = vunpack.c.h.bf16 %v1630_v50  ;;  %v1931_v63 = vunpack.c.l.bf16 %v1631_v39 }
 0x1e1   : > { %v4105_v60 = vmul.f32 %v7681_v34, %v1926_v9  ;;  %v4496_v41 = vadd.f32 %v4495_v4, %v9537_v48  ;;  %v4517_v61 = vadd.f32 %v4516_v25, %v9586_v12  ;;  %v4106_v44 = vmul.f32 %v7681_v34, %v1927_v49  ;;  %v9756_v4 = vld [vmem:[%s8849_s14 + $0x284] sm:$0xf]  ;;  %v9760_v9 = vld [vmem:[%s8849_s14 + $0x2b8] sm:$0xff] }
 0x1e2   : > { %v4107_v1 = vmul.f32 %v7681_v34, %v1928_v45  ;;  %v4108_v5 = vmul.f32 %v7682_v21, %v1929_v7  ;;  %v4109_v10 = vmul.f32 %v7682_v21, %v1930_v23  ;;  %v4538_v26 = vadd.f32 %v4537_v17, %v9591_v0 }
 0x1e3   : > { %v4497_v2 = vadd.f32 %v4496_v41, %v9542_v15  ;;  %v4518_v33 = vadd.f32 %v4517_v61, %v4103_v28  ;;  %v7064_v24 = vunpack.c.l.bf16 %v7368_v55  ;;  %v7065_v59 = vunpack.c.h.bf16 %v7368_v55  ;;  %v7735_v55 = vpop.permute.xlu2 %7734 }
 0x1e4   : > { %v7060_v6 = vunpack.c.l.bf16 %v7367_v22  ;;  %v7061_v53 = vunpack.c.h.bf16 %v7367_v22  ;;  %v7056_v48 = vunpack.c.l.bf16 %v7366_v46  ;;  %v4539_v20 = vadd.f32 %v4538_v26, %v9675_v54  ;;  %v9784_v22 = vld [vmem:[%s8849_s14 + $0x2cc] sm:$0xf] }
 0x1e5   : > { %v4498_v12 = vadd.f32 %v4497_v2, %v4105_v60  ;;  %v4519_v25 = vadd.f32 %v4518_v33, %v4106_v44  ;;  %v7057_v50 = vunpack.c.h.bf16 %v7366_v46  ;;  %v4112_v34 = vmul.f32 %v7686_v56, %v1933_v29  ;;  %v9787_v46 = vld [vmem:[%s8849_s14 + $0x308] sm:$0xf] }
 0x1e6   : > { %v4110_v39 = vmul.f32 %v7682_v21, %v1931_v63  ;;  %v7913_v15 = vpack.i.bf16 %v7065_v59, %v7064_v24  ;;  %v7908_v28 = vpack.i.bf16 %v7061_v53, %v7060_v6  ;;  %v4540_v49 = vadd.f32 %v4539_v20, %v4107_v1  ;;  %v9770_v21 = vld [vmem:[%s8849_s14 + $0x2c0] sm:$0xf]  ;;  %v9798_v24 = vld [vmem:[%s8849_s14 + $0x314] sm:$0xf]  ;;  %v1644_v20 = vld [vmem:[%s8849_s14 + $0x258] sm:$0xff] }
 0x1e7   : > { %v4499_v0 = vadd.f32 %v4498_v12, %v4108_v5  ;;  %v4520_v17 = vadd.f32 %v4519_v25, %v4109_v10  ;;  %v7903_v45 = vpack.i.bf16 %v7057_v50, %v7056_v48  ;;  %v9766_v54 = vmul.f32 %v9677_v42, %v1958_v37  ;;  %v1672_v63 = vld [vmem:[%s8849_s14 + $0x300] sm:$0xff]  ;;  %v9794_v10 = vld [vmem:[%s8849_s14 + $0x30c] sm:$0xff]  ;;  %v7700_v25 = vpop.permute.xlu1 %7699  ;;  %v7371_v6 = vld [vmem:[%s8867_s17 + $0x38] sm:$0xff]  }
 0x1e8   : > { %v4113_v23 = vmul.f32 %v7686_v56, %v1934_v57  ;;  %v4114_v29 = vmul.f32 %v9738_v47, %v1935_v36  ;;  %7914 = vperm.xlu2 %7592, %v7913_v15   ;;  %7909 = vperm.xlu1 %7581, %v7908_v28   ;;  %v4115_v60 = vmul.f32 %v9738_v47, %v1936_v40  ;;  %v9774_v42 = vunpack.i.h.bf16 %v7720_v13  ;;  %v9779_v56 = vld [vmem:[%s8849_s14 + $0x2c4] sm:$0xff] }
 0x1e9   : > { %v4500_v41 = vadd.f32 %v4499_v0, %v4111_v51  ;;  %v4521_v61 = vadd.f32 %v4520_v17, %v4112_v34  ;;  %v4541_v8 = vadd.f32 %v4540_v49, %v4110_v39  ;;  %7904 = vperm.xlu0 %7570, %v7903_v45   ;;  %v9776_v37 = vunpack.i.l.bf16 %v7720_v13  ;;  %v7695_v39 = vpop.permute.xlu0 %7694  ;;  %v1640_v15 = vld [vmem:[%s8849_s14 + $0x240] sm:$0xff] }
 0x1ea   : > { %v4116_v40 = vmul.f32 %v9738_v47, %v1937_v27  ;;  %v9791_v5 = vunpack.i.l.bf16 %v7735_v55  ;;  %v1992_v2 = vunpack.c.l.bf16 %v1672_v63  ;;  %v1993_v33 = vunpack.c.h.bf16 %v1672_v63  ;;  %v1646_v45 = vld [vmem:[%s8849_s14 + $0x264] sm:$0xff]  ;;  %v1642_v63 = vld [vmem:[%s8849_s14 + $0x24c] sm:$0xff] }
 0x1eb   : > { %v4501_v51 = vadd.f32 %v4500_v41, %v4114_v29  ;;  %v4522_v44 = vadd.f32 %v4521_v61, %v4115_v60  ;;  %v4542_v1 = vadd.f32 %v4541_v8, %v4113_v23  ;;  %v9804_v48 = vunpack.i.h.bf16 %v7735_v55  ;;  %v1641_v55 = vld [vmem:[%s8849_s14 + $0x248] sm:$0xf]  ;;  %v1643_v60 = vld [vmem:[%s8849_s14 + $0x254] sm:$0xf]  ;;  %v1647_v41 = vld [vmem:[%s8849_s14 + $0x26c] sm:$0xf] }
 0x1ec   : > { %v1994_v12 = vunpack.c.l.bf16 %v9787_v46  ;;  %v1995_v50 = vunpack.c.l.bf16 %v9794_v10  ;;  %v1996_v28 = vunpack.c.h.bf16 %v9794_v10  ;;  %v1997_v0 = vunpack.c.l.bf16 %v9798_v24 }
 0x1ed   : > { %v4502_v59 = vadd.f32 %v4501_v51, %v9691_v52  ;;  %v4523_v47 = vadd.f32 %v4522_v44, %v9696_v11  ;;  %v4543_v27 = vadd.f32 %v4542_v1, %v4116_v40  ;;  %v9818_v17 = vmul.f32 %v9791_v5, %v1992_v2 }
 0x1ee   : > { %v9821_v49 = vmul.f32 %v9791_v5, %v1993_v33  ;;  %v7702_v23 = vunpack.i.h.bf16 %v7700_v25  ;;  %v1950_v29 = vunpack.c.l.bf16 %v1644_v20  ;;  %v1951_v61 = vunpack.c.h.bf16 %v1644_v20 }
 0x1ef   : > { %v4503_v52 = vadd.f32 %v4502_v59, %v9706_v58  ;;  %v9811_v11 = vadd.f32 %v4523_v47, %v9711_v19  ;;  %v4544_v34 = vadd.f32 %v4543_v27, %v9701_v14  ;;  %v1645_v58 = vld [vmem:[%s8849_s14 + $0x260] sm:$0xf]  ;;  %v7701_v14 = vunpack.i.l.bf16 %v7700_v25 }
 0x1f0   : > { %v7697_v8 = vunpack.i.h.bf16 %v7695_v39  ;;  %v7696_v46 = vunpack.i.l.bf16 %v7695_v39  ;;  %v1944_v40 = vunpack.c.l.bf16 %v1640_v15  ;;  %v1952_v51 = vunpack.c.l.bf16 %v1645_v58 }
 0x1f1   : > { %v9826_v19 = vadd.f32 %v4544_v34, %v9714_v35  ;;  %v1953_v44 = vunpack.c.l.bf16 %v1646_v45  ;;  %v1954_v1 = vunpack.c.h.bf16 %v1646_v45  ;;  %v1945_v2 = vunpack.c.h.bf16 %v1640_v15  ;;  %v7370_v15 = vld [vmem:[%s8867_s17 + $0x30] sm:$0xff]  }
 0x1f2   : > { %v1946_v33 = vunpack.c.l.bf16 %v1641_v55  ;;  %v1947_v59 = vunpack.c.l.bf16 %v1642_v63  ;;  %v1948_v35 = vunpack.c.h.bf16 %v1642_v63  ;;  %v1949_v47 = vunpack.c.l.bf16 %v1643_v60 }
 0x1f3   : > { %v4504_v27 = vrot.slane %v4503_v52, 4  ;;  %v1955_v25 = vunpack.c.l.bf16 %v1647_v41  ;;  %v4129_v34 = vmul.f32 %v7701_v14, %v1950_v29  ;;  %v4123_v53 = vmul.f32 %v7696_v46, %v1944_v40 }
 0x1f4   : > { %v4124_v26 = vmul.f32 %v7696_v46, %v1945_v2  ;;  %v4125_v20 = vmul.f32 %v7696_v46, %v1946_v33  ;;  %v4126_v13 = vmul.f32 %v7697_v8, %v1947_v59  ;;  %v4127_v39 = vmul.f32 %v7697_v8, %v1948_v35 }
 0x1f5   : > { %v4130_v36 = vmul.f32 %v7701_v14, %v1951_v61  ;;  %v4131_v58 = vmul.f32 %v7701_v14, %v1952_v51  ;;  %v4132_v57 = vmul.f32 %v7702_v23, %v1953_v44  ;;  %v4128_v45 = vmul.f32 %v7697_v8, %v1949_v47 }
 0x1f6   : > { %v4552_v55 = vadd.f32 %v4126_v13, %v4123_v53  ;;  %v4573_v7 = vadd.f32 %v4127_v39, %v4124_v26  ;;  %v7076_v18 = vunpack.c.l.bf16 %v7371_v6  ;;  %v7077_v63 = vunpack.c.h.bf16 %v7371_v6  ;;  %v1657_v39 = vld [vmem:[%s8849_s14 + $0x2a8] sm:$0xf] }
 0x1f7   : > { %v4505_v60 = vadd.f32 %v4504_v27, %v4503_v52  ;;  %v4525_v41 = vrot.slane %v9811_v11, 4  ;;  %v4133_v29 = vmul.f32 %v7702_v23, %v1954_v1  ;;  %v4594_v40 = vadd.f32 %v4128_v45, %v4125_v20 }
 0x1f8   : > { %v4553_v2 = vadd.f32 %v4552_v55, %v4129_v34  ;;  %v4574_v46 = vadd.f32 %v4573_v7, %v4130_v36  ;;  %v7928_v33 = vpack.i.bf16 %v7077_v63, %v7076_v18  ;;  %v7072_v59 = vunpack.c.l.bf16 %v7370_v15  ;;  %v9911_v55 = vld [vmem:[%s8849_s14 + $0x2b4] sm:$0xf] }
 0x1f9   : > { %v4173_v61 = vmul.f32 %v9791_v5, %v1994_v12  ;;  %v4546_v14 = vrot.slane %v9826_v19, 4  ;;  %v4134_v8 = vmul.f32 %v7702_v23, %v1955_v25  ;;  %v4595_v51 = vadd.f32 %v4594_v40, %v4131_v58  ;;  %v7710_v58 = vpop.permute.xlu0 %7709 }
 0x1fa   : > { %v4554_v13 = vadd.f32 %v4553_v2, %v4132_v57  ;;  %v4575_v26 = vadd.f32 %v4574_v46, %v4133_v29  ;;  %7929 = vperm.xlu2 %7592, %v7928_v33   ;;  %v7073_v6 = vunpack.c.h.bf16 %v7370_v15  ;;  %v7068_v53 = vunpack.c.l.bf16 %v7369_v43  ;;  %v1654_v2 = vld [vmem:[%s8849_s14 + $0x294] sm:$0xff] }
 0x1fb   : > { %v4174_v52 = vmul.f32 %v9804_v48, %v1995_v50  ;;  %v4175_v18 = vmul.f32 %v9804_v48, %v1996_v28  ;;  %v9844_v7 = vadd.f32 %v4595_v51, %v4134_v8  ;;  %v7069_v36 = vunpack.c.h.bf16 %v7369_v43 }
 0x1fc   : > { %v4176_v57 = vmul.f32 %v9804_v48, %v1997_v0  ;;  %v4506_v5 = vrot.slane %v4505_v60, 2  ;;  %v9850_v12 = vadd.f32 %v4525_v41, %v9811_v11  ;;  %v7923_v23 = vpack.i.bf16 %v7073_v6, %v7072_v59 }
 0x1fd   : > { %v12409_v44 = vunpack.c.l.bf16 %v9683_v31  ;;  %v12410_v10 = vunpack.c.h.bf16 %v9683_v31  ;;  %v9859_v43 = vadd.f32 %v4546_v14, %v9826_v19  ;;  %v7918_v24 = vpack.i.bf16 %v7069_v36, %v7068_v53 }
 0x1fe   : > { %v12411_v48 = vunpack.c.l.bf16 %v9756_v4  ;;  %v12412_v11 = vunpack.c.l.bf16 %v9760_v9  ;;  %v12413_v35 = vunpack.c.h.bf16 %v9760_v9  ;;  %v12414_v47 = vunpack.c.l.bf16 %v9770_v21  ;;  %7924 = vperm.xlu1 %7581, %v7923_v23   ;;  %v1656_v4 = vld [vmem:[%s8849_s14 + $0x2a0] sm:$0xff] }
 0x1ff   : > { %v4138_v50 = vmul.f32 %v9716_v16, %v12409_v44  ;;  %v4139_v28 = vmul.f32 %v9716_v16, %v12410_v10  ;;  %v12415_v27 = vunpack.c.l.bf16 %v9779_v56  ;;  %v12416_v9 = vunpack.c.h.bf16 %v9779_v56  ;;  %7919 = vperm.xlu0 %7570, %v7918_v24   ;;  %v7374_v10 = vld [vmem:[%s8867_s17 + $0x50] sm:$0xff]   ;;  %v7373_v24 = vld [vmem:[%s8867_s17 + $0x48] sm:$0xff]  }
 0x200   : > { %v4140_v0 = vmul.f32 %v9716_v16, %v12411_v48  ;;  %v9867_v1 = vmul.f32 %v9776_v37, %v12412_v11  ;;  %v9872_v31 = vmul.f32 %v9776_v37, %v12413_v35  ;;  %v9877_v19 = vmul.f32 %v9776_v37, %v12414_v47  ;;  %v7715_v16 = vpop.permute.xlu1 %7714  ;;  %v7750_v48 = vpop.permute.xlu2 %7749 }
 0x201   : > { %v9883_v25 = vmul.f32 %v9774_v42, %v12415_v27  ;;  %v9888_v34 = vmul.f32 %v9774_v42, %v12416_v9  ;;  %v12417_v21 = vunpack.c.l.bf16 %v9784_v22  ;;  %v9896_v20 = vadd.f32 %v4174_v52, %v9818_v17  ;;  %v1652_v17 = vld [vmem:[%s8849_s14 + $0x288] sm:$0xff] }
 0x202   : > { %v9900_v45 = vadd.f32 %v4175_v18, %v9821_v49  ;;  %v9902_v56 = vadd.f32 %v4176_v57, %v4173_v61  ;;  %v9904_v15 = vadd.f32 %v4506_v5, %v4505_v60  ;;  %v4527_v22 = vrot.slane %v9850_v12, 2  ;;  %v1653_v49 = vld [vmem:[%s8849_s14 + $0x290] sm:$0xf]  ;;  %v1655_v61 = vld [vmem:[%s8849_s14 + $0x29c] sm:$0xf] }
 0x203   : > { %v9893_v37 = vmul.f32 %v9774_v42, %v12417_v21  ;;  %v9908_v42 = vld [vmem:[%s8849_s14 + $0x2ac] sm:$0xff]  ;;  %v4548_v63 = vrot.slane %v9859_v43, 2  ;;  %v9915_v41 = vunpack.i.h.bf16 %v7715_v16  ;;  %v7716_v29 = vunpack.i.l.bf16 %v7715_v16 }
 0x204   : > { %v1968_v40 = vunpack.c.l.bf16 %v1656_v4  ;;  %v1969_v46 = vunpack.c.h.bf16 %v1656_v4  ;;  %v1970_v33 = vunpack.c.l.bf16 %v1657_v39  ;;  %v7712_v60 = vunpack.i.h.bf16 %v7710_v58  ;;  %v7372_v4 = vld [vmem:[%s8867_s17 + $0x40] sm:$0xff]  }
 0x205   : > { %v7711_v59 = vunpack.i.l.bf16 %v7710_v58  ;;  %v1971_v14 = vunpack.c.l.bf16 %v9908_v42  ;;  %v1972_v8 = vunpack.c.h.bf16 %v9908_v42  ;;  %v1973_v51 = vunpack.c.l.bf16 %v9911_v55 }
 0x206   : > { %v1962_v6 = vunpack.c.l.bf16 %v1652_v17  ;;  %v1963_v53 = vunpack.c.h.bf16 %v1652_v17  ;;  %v1964_v52 = vunpack.c.l.bf16 %v1653_v49  ;;  %v1965_v18 = vunpack.c.l.bf16 %v1654_v2 }
 0x207   : > { %v1966_v36 = vunpack.c.h.bf16 %v1654_v2  ;;  %v4147_v57 = vmul.f32 %v7716_v29, %v1968_v40  ;;  %v1967_v5 = vunpack.c.l.bf16 %v1655_v61  ;;  %v4555_v23 = vadd.f32 %v4554_v13, %v9733_v3 }
 0x208   : > { %v4576_v44 = vadd.f32 %v4575_v26, %v9736_v62  ;;  %v4141_v11 = vmul.f32 %v7711_v59, %v1962_v6  ;;  %v4142_v35 = vmul.f32 %v7711_v59, %v1963_v53  ;;  %v4143_v47 = vmul.f32 %v7711_v59, %v1964_v52  ;;  %v9932_v52 = vld [vmem:[%s8849_s14 + $0x348] sm:$0xff] }
 0x209   : > { %v4144_v16 = vmul.f32 %v7712_v60, %v1965_v18  ;;  %v4145_v27 = vmul.f32 %v7712_v60, %v1966_v36  ;;  %v4556_v9 = vadd.f32 %v4555_v23, %v4138_v50  ;;  %v4597_v39 = vadd.f32 %v9844_v7, %v9766_v54  ;;  %v9938_v18 = vld [vmem:[%s8849_s14 + $0x354] sm:$0xff] }
 0x20a   : > { %v4577_v21 = vadd.f32 %v4576_v44, %v4139_v28  ;;  %v7088_v58 = vunpack.c.l.bf16 %v7374_v10  ;;  %v7089_v42 = vunpack.c.h.bf16 %v7374_v10  ;;  %v7084_v55 = vunpack.c.l.bf16 %v7373_v24  ;;  %v9956_v44 = vld [vmem:[%s8849_s14 + $0x35c] sm:$0xf] }
 0x20b   : > { %v7085_v3 = vunpack.c.h.bf16 %v7373_v24  ;;  %v4557_v13 = vadd.f32 %v4556_v9, %v4141_v11  ;;  %v4598_v26 = vadd.f32 %v4597_v39, %v4140_v0  ;;  %v7080_v17 = vunpack.c.l.bf16 %v7372_v4  ;;  %v9935_v0 = vld [vmem:[%s8849_s14 + $0x350] sm:$0xf]  ;;  %v9960_v24 = vld [vmem:[%s8849_s14 + $0x2e8] sm:$0xff]  ;;  %v9973_v9 = vld [vmem:[%s8849_s14 + $0x2f4] sm:$0xff] }
 0x20c   : > { %v4578_v62 = vadd.f32 %v4577_v21, %v4142_v35  ;;  %v4148_v40 = vmul.f32 %v7716_v29, %v1969_v46  ;;  %v7943_v49 = vpack.i.bf16 %v7089_v42, %v7088_v58  ;;  %v7081_v59 = vunpack.c.h.bf16 %v7372_v4  ;;  %v7765_v35 = vpop.permute.xlu2 %7764  ;;  %v1698_v21 = vld [vmem:[%s8849_s14 + $0x39c] sm:$0xff] }
 0x20d   : > { %v7938_v2 = vpack.i.bf16 %v7085_v3, %v7084_v55  ;;  %v4146_v50 = vmul.f32 %v7712_v60, %v1967_v5  ;;  %v4558_v28 = vadd.f32 %v4557_v13, %v4144_v16  ;;  %v4599_v6 = vadd.f32 %v4598_v26, %v4143_v47  ;;  %v1664_v55 = vld [vmem:[%s8849_s14 + $0x2d0] sm:$0xff]  ;;  %v1666_v3 = vld [vmem:[%s8849_s14 + $0x2dc] sm:$0xff] }
 0x20e   : > { %v4579_v61 = vadd.f32 %v4578_v62, %v4145_v27  ;;  %v4149_v54 = vmul.f32 %v7716_v29, %v1970_v33  ;;  %v4150_v7 = vmul.f32 %v9915_v41, %v1971_v14  ;;  %7944 = vperm.xlu2 %7592, %v7943_v49   ;;  %v7933_v53 = vpack.i.bf16 %v7081_v59, %v7080_v17  ;;  %v9970_v27 = vld [vmem:[%s8849_s14 + $0x2f0] sm:$0xf] }
 0x20f   : > { %7939 = vperm.xlu1 %7581, %v7938_v2   ;;  %v4151_v46 = vmul.f32 %v9915_v41, %v1972_v8  ;;  %v4559_v60 = vadd.f32 %v4558_v28, %v4147_v57  ;;  %v4600_v5 = vadd.f32 %v4599_v6, %v4146_v50  ;;  %v9944_v29 = vadd.f32 %v4527_v22, %v9850_v12  ;;  %v7730_v22 = vpop.permute.xlu1 %7729  ;;  %v1665_v50 = vld [vmem:[%s8849_s14 + $0x2d8] sm:$0xf]  ;;  %v1667_v28 = vld [vmem:[%s8849_s14 + $0x2e4] sm:$0xf] }
 0x210   : > { %v4580_v36 = vadd.f32 %v4579_v61, %v4148_v40  ;;  %v9949_v33 = vadd.f32 %v4548_v63, %v9859_v43  ;;  %v9951_v14 = vunpack.i.h.bf16 %v7750_v48  ;;  %v9953_v23 = vunpack.i.l.bf16 %v7750_v48  ;;  %7934 = vperm.xlu0 %7570, %v7933_v53  }
 0x211   : > { %v4152_v8 = vmul.f32 %v9915_v41, %v1973_v51  ;;  %v4560_v57 = vadd.f32 %v4559_v60, %v4150_v7  ;;  %v4601_v12 = vadd.f32 %v4600_v5, %v4149_v54  ;;  %v2010_v43 = vunpack.c.l.bf16 %v9932_v52  ;;  %v7725_v41 = vpop.permute.xlu0 %7724  ;;  %v7377_v5 = vld [vmem:[%s8867_s17 + $0x68] sm:$0xff]  }
 0x212   : > { %v4581_v10 = vadd.f32 %v4580_v36, %v4151_v46  ;;  %v2011_v63 = vunpack.c.h.bf16 %v9932_v52  ;;  %v2012_v48 = vunpack.c.l.bf16 %v9935_v0  ;;  %v2013_v11 = vunpack.c.l.bf16 %v9938_v18 }
 0x213   : > { %v4508_v51 = vrot.slane %v9904_v15, 1  ;;  %v4602_v4 = vadd.f32 %v4601_v12, %v4152_v8  ;;  %v9977_v58 = vunpack.i.l.bf16 %v7730_v22  ;;  %v1986_v42 = vunpack.c.l.bf16 %v9960_v24  ;;  %v7376_v8 = vld [vmem:[%s8867_s17 + $0x60] sm:$0xff]  }
 0x214   : > { %v9982_v13 = vunpack.i.h.bf16 %v7765_v35  ;;  %v9984_v62 = vunpack.i.l.bf16 %v7765_v35  ;;  %v9986_v26 = vunpack.i.h.bf16 %v7730_v22  ;;  %v7726_v17 = vunpack.i.l.bf16 %v7725_v41 }
 0x215   : > { %v1987_v40 = vunpack.c.h.bf16 %v9960_v24  ;;  %v1988_v49 = vunpack.c.l.bf16 %v9970_v27  ;;  %v1989_v2 = vunpack.c.l.bf16 %v9973_v9  ;;  %v7727_v59 = vunpack.i.h.bf16 %v7725_v41  ;;  %v7375_v41 = vld [vmem:[%s8867_s17 + $0x58] sm:$0xff]  }
 0x216   : > { %v1990_v61 = vunpack.c.h.bf16 %v9973_v9  ;;  %v1980_v6 = vunpack.c.l.bf16 %v1664_v55  ;;  %v1981_v54 = vunpack.c.h.bf16 %v1664_v55  ;;  %v1983_v7 = vunpack.c.l.bf16 %v1666_v3 }
 0x217   : > { %v4165_v53 = vmul.f32 %v9977_v58, %v1986_v42  ;;  %v1984_v46 = vunpack.c.h.bf16 %v1666_v3  ;;  %v4561_v60 = vadd.f32 %v4560_v57, %v9867_v1  ;;  %v4582_v36 = vadd.f32 %v4581_v10, %v9872_v31  ;;  %v1671_v10 = vld [vmem:[%s8849_s14 + $0x2fc] sm:$0xf] }
 0x218   : > { %v1982_v12 = vunpack.c.l.bf16 %v1665_v50  ;;  %v1985_v22 = vunpack.c.l.bf16 %v1667_v28  ;;  %v4159_v24 = vmul.f32 %v7726_v17, %v1980_v6  ;;  %v4160_v35 = vmul.f32 %v7726_v17, %v1981_v54 }
 0x219   : > { %v4162_v27 = vmul.f32 %v7727_v59, %v1983_v7  ;;  %v4163_v9 = vmul.f32 %v7727_v59, %v1984_v46  ;;  %v4562_v55 = vadd.f32 %v4561_v60, %v9883_v25  ;;  %v4583_v42 = vadd.f32 %v4582_v36, %v9888_v34  ;;  %v1696_v60 = vld [vmem:[%s8849_s14 + $0x390] sm:$0xff] }
 0x21a   : > { %v4603_v3 = vadd.f32 %v4602_v4, %v9877_v19  ;;  %v7100_v1 = vunpack.c.l.bf16 %v7377_v5  ;;  %v7101_v57 = vunpack.c.h.bf16 %v7377_v5  ;;  %v7096_v31 = vunpack.c.l.bf16 %v7376_v8  ;;  %v1697_v5 = vld [vmem:[%s8849_s14 + $0x398] sm:$0xf] }
 0x21b   : > { %v4563_v50 = vadd.f32 %v4562_v55, %v4159_v24  ;;  %v4584_v28 = vadd.f32 %v4583_v42, %v4160_v35  ;;  %v7097_v6 = vunpack.c.h.bf16 %v7376_v8  ;;  %v7092_v54 = vunpack.c.l.bf16 %v7375_v41  ;;  %v1699_v35 = vld [vmem:[%s8849_s14 + $0x3a4] sm:$0xf] }
 0x21c   : > { %v4161_v39 = vmul.f32 %v7726_v17, %v1982_v12  ;;  %v4604_v7 = vadd.f32 %v4603_v3, %v9893_v37  ;;  %v7958_v46 = vpack.i.bf16 %v7101_v57, %v7100_v1  ;;  %v7093_v25 = vunpack.c.h.bf16 %v7375_v41  ;;  %v7745_v57 = vpop.permute.xlu1 %7744 }
 0x21d   : > { %v4166_v34 = vmul.f32 %v9977_v58, %v1987_v40  ;;  %v4564_v19 = vadd.f32 %v4563_v50, %v4162_v27  ;;  %v4585_v4 = vadd.f32 %v4584_v28, %v4163_v9  ;;  %v7953_v36 = vpack.i.bf16 %v7097_v6, %v7096_v31  ;;  %v1680_v50 = vld [vmem:[%s8849_s14 + $0x330] sm:$0xff]  ;;  %v7740_v28 = vpop.permute.xlu0 %7739  ;;  %v1676_v6 = vld [vmem:[%s8849_s14 + $0x318] sm:$0xff] }
 0x21e   : > { %v1991_v16 = vunpack.c.l.bf16 %v1671_v10  ;;  %v4164_v47 = vmul.f32 %v7727_v59, %v1985_v22  ;;  %v4605_v24 = vadd.f32 %v4604_v7, %v4161_v39  ;;  %7959 = vperm.xlu2 %7592, %v7958_v46   ;;  %v7948_v8 = vpack.i.bf16 %v7093_v25, %v7092_v54  ;;  %v1677_v25 = vld [vmem:[%s8849_s14 + $0x320] sm:$0xf] }
 0x21f   : > { %v4168_v17 = vmul.f32 %v9986_v26, %v1989_v2  ;;  %v4169_v37 = vmul.f32 %v9986_v26, %v1990_v61  ;;  %v4565_v12 = vadd.f32 %v4564_v19, %v4165_v53  ;;  %v4586_v41 = vadd.f32 %v4585_v4, %v4166_v34  ;;  %7954 = vperm.xlu1 %7581, %v7953_v36   ;;  %v1681_v36 = vld [vmem:[%s8849_s14 + $0x338] sm:$0xf] }
 0x220   : > { %v2028_v55 = vunpack.c.l.bf16 %v1696_v60  ;;  %v2029_v40 = vunpack.c.h.bf16 %v1696_v60  ;;  %v4167_v27 = vmul.f32 %v9977_v58, %v1988_v49  ;;  %v4606_v9 = vadd.f32 %v4605_v24, %v4164_v47  ;;  %7949 = vperm.xlu0 %7570, %v7948_v8   ;;  %v10071_v49 = vld [vmem:[%s8849_s14 + $0x3e0] sm:$0xf]  ;;  %v1678_v60 = vld [vmem:[%s8849_s14 + $0x324] sm:$0xff] }
 0x221   : > { %v2030_v42 = vunpack.c.l.bf16 %v1697_v5  ;;  %v2031_v59 = vunpack.c.l.bf16 %v1698_v21  ;;  %v4566_v39 = vadd.f32 %v4565_v12, %v4168_v17  ;;  %v4587_v22 = vadd.f32 %v4586_v41, %v4169_v37  ;;  %v1679_v5 = vld [vmem:[%s8849_s14 + $0x32c] sm:$0xf]  ;;  %v10100_v37 = vld [vmem:[%s8849_s14 + $0x33c] sm:$0xff] }
 0x222   : > { %v2032_v3 = vunpack.c.h.bf16 %v1698_v21  ;;  %v2033_v1 = vunpack.c.l.bf16 %v1699_v35  ;;  %v4170_v2 = vmul.f32 %v9986_v26, %v1991_v16  ;;  %v4607_v61 = vadd.f32 %v4606_v9, %v4167_v27 }
 0x223   : > { %v10017_v53 = vmul.f32 %v9953_v23, %v2010_v43  ;;  %v10022_v47 = vmul.f32 %v9953_v23, %v2011_v63  ;;  %v10027_v58 = vmul.f32 %v9953_v23, %v2012_v48  ;;  %v10032_v16 = vmul.f32 %v9951_v14, %v2013_v11  ;;  %v10049_v48 = vpop.permute.xlu2 %7779  ;;  %v10052_v11 = vld [vmem:[%s8849_s14 + $0x3d8] sm:$0xff] }
 0x224   : > { %v10037_v43 = vadd.f32 %v4508_v51, %v9904_v15  ;;  %v12418_v52 = vunpack.c.h.bf16 %v9938_v18  ;;  %v12419_v0 = vunpack.c.l.bf16 %v9956_v44  ;;  %v4608_v21 = vadd.f32 %v4607_v61, %v4170_v2 }
 0x225   : > { %v12420_v15 = vrot.slane %v9944_v29, 1  ;;  %v12421_v18 = vrot.slane %v9949_v33, 1  ;;  %v10068_v44 = vmul.f32 %v9984_v62, %v2029_v40  ;;  %v10074_v31 = vmul.f32 %v9984_v62, %v2030_v42 }
 0x226   : > { %v10042_v63 = vmul.f32 %v9951_v14, %v12418_v52  ;;  %v10047_v23 = vmul.f32 %v9951_v14, %v12419_v0  ;;  %v10065_v14 = vmul.f32 %v9984_v62, %v2028_v55  ;;  %v10083_v10 = vmul.f32 %v9982_v13, %v2033_v1  ;;  %v7380_v52 = vld [vmem:[%s8867_s17 + $0x80] sm:$0xff]   ;;  %v7379_v0 = vld [vmem:[%s8867_s17 + $0x78] sm:$0xff]  }
 0x227   : > { %v10057_v51 = vadd.f32 %v12420_v15, %v9944_v29  ;;  %v10062_v26 = vadd.f32 %v12421_v18, %v9949_v33  ;;  %v10077_v29 = vmul.f32 %v9982_v13, %v2031_v59  ;;  %v10080_v33 = vmul.f32 %v9982_v13, %v2032_v3 }
 0x228   : > { %v10088_v54 = vunpack.i.l.bf16 %v10049_v48  ;;  %v2046_v62 = vunpack.c.l.bf16 %v10052_v11  ;;  %v2047_v7 = vunpack.c.h.bf16 %v10052_v11  ;;  %v4567_v46 = vrot.slane %v4566_v39, 4 }
 0x229   : > { %v4588_v19 = vrot.slane %v4587_v22, 4  ;;  %v10095_v4 = vunpack.i.h.bf16 %v7745_v57  ;;  %v7746_v13 = vunpack.i.l.bf16 %v7745_v57  ;;  %v2004_v24 = vunpack.c.l.bf16 %v1680_v50 }
 0x22a   : > { %v7742_v8 = vunpack.i.h.bf16 %v7740_v28  ;;  %v7741_v35 = vunpack.i.l.bf16 %v7740_v28  ;;  %v1998_v17 = vunpack.c.l.bf16 %v1676_v6  ;;  %v2005_v12 = vunpack.c.h.bf16 %v1680_v50 }
 0x22b   : > { %v1999_v41 = vunpack.c.h.bf16 %v1676_v6  ;;  %v2000_v55 = vunpack.c.l.bf16 %v1677_v25  ;;  %v2001_v40 = vunpack.c.l.bf16 %v1678_v60  ;;  %v4568_v27 = vadd.f32 %v4567_v46, %v4566_v39  ;;  %v7378_v25 = vld [vmem:[%s8867_s17 + $0x70] sm:$0xff]  }
 0x22c   : > { %v2006_v9 = vunpack.c.l.bf16 %v1681_v36  ;;  %v2002_v42 = vunpack.c.h.bf16 %v1678_v60  ;;  %v2003_v59 = vunpack.c.l.bf16 %v1679_v5  ;;  %v4609_v3 = vrot.slane %v4608_v21, 4  ;;  %v1683_v60 = vld [vmem:[%s8849_s14 + $0x344] sm:$0xf] }
 0x22d   : > { %v4177_v1 = vmul.f32 %v7741_v35, %v1998_v17  ;;  %v4178_v2 = vmul.f32 %v7741_v35, %v1999_v41  ;;  %v4179_v61 = vmul.f32 %v7741_v35, %v2000_v55  ;;  %v4589_v15 = vadd.f32 %v4588_v19, %v4587_v22  ;;  %v10112_v55 = vld [vmem:[%s8849_s14 + $0x3e4] sm:$0xff] }
 0x22e   : > { %v2007_v18 = vunpack.c.l.bf16 %v10100_v37  ;;  %v2008_v57 = vunpack.c.h.bf16 %v10100_v37  ;;  %v4180_v50 = vmul.f32 %v7742_v8, %v2001_v40  ;;  %v4181_v28 = vmul.f32 %v7742_v8, %v2002_v42 }
 0x22f   : > { %v4182_v39 = vmul.f32 %v7742_v8, %v2003_v59  ;;  %v4616_v6 = vadd.f32 %v9896_v20, %v4177_v1  ;;  %v4637_v46 = vadd.f32 %v9900_v45, %v4178_v2  ;;  %v4658_v36 = vadd.f32 %v9902_v56, %v4179_v61  ;;  %v10115_v59 = vld [vmem:[%s8849_s14 + $0x3ec] sm:$0xf] }
 0x230   : > { %v7112_v5 = vunpack.c.l.bf16 %v7380_v52  ;;  %v7113_v35 = vunpack.c.h.bf16 %v7380_v52  ;;  %v7108_v22 = vunpack.c.l.bf16 %v7379_v0  ;;  %v4610_v19 = vadd.f32 %v4609_v3, %v4608_v21 }
 0x231   : > { %v4617_v17 = vadd.f32 %v4616_v6, %v4180_v50  ;;  %v4638_v41 = vadd.f32 %v4637_v46, %v4181_v28  ;;  %v7109_v37 = vunpack.c.h.bf16 %v7379_v0  ;;  %v4659_v40 = vadd.f32 %v4658_v36, %v4182_v39  ;;  %v7755_v36 = vpop.permute.xlu0 %7754 }
 0x232   : > { %v7973_v8 = vpack.i.bf16 %v7113_v35, %v7112_v5  ;;  %v7104_v42 = vunpack.c.l.bf16 %v7378_v25  ;;  %v7105_v20 = vunpack.c.h.bf16 %v7378_v25  ;;  %v2009_v45 = vunpack.c.l.bf16 %v1683_v60 }
 0x233   : > { %v4183_v1 = vmul.f32 %v7746_v13, %v2004_v24  ;;  %v4184_v2 = vmul.f32 %v7746_v13, %v2005_v12  ;;  %v7968_v34 = vpack.i.bf16 %v7109_v37, %v7108_v22  ;;  %v4569_v56 = vrot.slane %v4568_v27, 2  ;;  %v10152_v22 = vld [vmem:[%s8849_s14 + $0x384] sm:$0xff] }
 0x234   : > { %v4590_v61 = vrot.slane %v4589_v15, 2  ;;  %v4185_v52 = vmul.f32 %v7746_v13, %v2006_v9  ;;  %7974 = vperm.xlu2 %7592, %v7973_v8   ;;  %v7963_v21 = vpack.i.bf16 %v7105_v20, %v7104_v42  ;;  %v10118_v3 = vunpack.i.h.bf16 %v10049_v48  ;;  %v7760_v13 = vpop.permute.xlu1 %7759  ;;  %v10124_v9 = vld [vmem:[%s8849_s14 + $0x378] sm:$0xff]  ;;  %v1690_v8 = vld [vmem:[%s8849_s14 + $0x36c] sm:$0xff] }
 0x235   : > { %v2049_v0 = vunpack.c.l.bf16 %v10112_v55  ;;  %v4611_v50 = vrot.slane %v4610_v19, 2  ;;  %v4618_v28 = vadd.f32 %v4617_v17, %v4183_v1  ;;  %7969 = vperm.xlu1 %7581, %v7968_v34   ;;  %v4639_v12 = vadd.f32 %v4638_v41, %v4184_v2  ;;  %v10157_v17 = vld [vmem:[%s8849_s14 + $0x38c] sm:$0xf]  ;;  %v1691_v1 = vld [vmem:[%s8849_s14 + $0x374] sm:$0xf] }
 0x236   : > { %v4660_v6 = vadd.f32 %v4659_v40, %v4185_v52  ;;  %7964 = vperm.xlu0 %7570, %v7963_v21   ;;  %v10129_v48 = vmul.f32 %v10088_v54, %v2046_v62  ;;  %v10134_v34 = vmul.f32 %v10088_v54, %v2047_v7  ;;  %v12422_v46 = vunpack.c.l.bf16 %v10071_v49  ;;  %v10149_v7 = vld [vmem:[%s8849_s14 + $0x380] sm:$0xf] }
 0x237   : > { %v4186_v60 = vmul.f32 %v10095_v4, %v2007_v18  ;;  %v10142_v5 = vadd.f32 %v4569_v56, %v4568_v27  ;;  %v10144_v35 = vadd.f32 %v4590_v61, %v4589_v15  ;;  %v4187_v11 = vmul.f32 %v10095_v4, %v2008_v57  ;;  %v1688_v15 = vld [vmem:[%s8849_s14 + $0x360] sm:$0xff] }
 0x238   : > { %v10139_v25 = vmul.f32 %v10088_v54, %v12422_v46  ;;  %v4188_v62 = vmul.f32 %v10095_v4, %v2009_v45  ;;  %v10154_v49 = vadd.f32 %v4611_v50, %v4610_v19  ;;  %v7761_v18 = vunpack.i.l.bf16 %v7760_v13  ;;  %v1689_v4 = vld [vmem:[%s8849_s14 + $0x368] sm:$0xf] }
 0x239   : > { %v4619_v54 = vadd.f32 %v4618_v28, %v4186_v60  ;;  %v2022_v27 = vunpack.c.l.bf16 %v10124_v9  ;;  %v4640_v41 = vadd.f32 %v4639_v12, %v4187_v11  ;;  %v10161_v40 = vunpack.i.h.bf16 %v7760_v13  ;;  %v7381_v11 = vld [vmem:[%s8867_s17 + $0x88] sm:$0xff]  }
 0x23a   : > { %v4661_v37 = vadd.f32 %v4660_v6, %v4188_v62  ;;  %v7756_v57 = vunpack.i.l.bf16 %v7755_v36  ;;  %v2023_v42 = vunpack.c.h.bf16 %v10124_v9  ;;  %v2024_v19 = vunpack.c.l.bf16 %v10149_v7  ;;  %v7383_v6 = vld [vmem:[%s8867_s17 + $0x98] sm:$0xff]  }
 0x23b   : > { %v2025_v20 = vunpack.c.l.bf16 %v10152_v22  ;;  %v7757_v45 = vunpack.i.h.bf16 %v7755_v36  ;;  %v2026_v2 = vunpack.c.h.bf16 %v10152_v22  ;;  %v2027_v56 = vunpack.c.l.bf16 %v10157_v17  ;;  %v7382_v36 = vld [vmem:[%s8867_s17 + $0x90] sm:$0xff]  }
 0x23c   : > { %v2016_v61 = vunpack.c.l.bf16 %v1688_v15  ;;  %v2017_v52 = vunpack.c.h.bf16 %v1688_v15  ;;  %v4201_v21 = vmul.f32 %v7761_v18, %v2022_v27  ;;  %v2018_v50 = vunpack.c.l.bf16 %v1689_v4 }
 0x23d   : > { %v2019_v28 = vunpack.c.l.bf16 %v1690_v8  ;;  %v2020_v12 = vunpack.c.h.bf16 %v1690_v8  ;;  %v2021_v13 = vunpack.c.l.bf16 %v1691_v1  ;;  %v4620_v46 = vadd.f32 %v4619_v54, %v10017_v53  ;;  %v7795_v54 = vpop.permute.xlu2 %7794 }
 0x23e   : > { %v4195_v9 = vmul.f32 %v7756_v57, %v2016_v61  ;;  %v4641_v60 = vadd.f32 %v4640_v41, %v10022_v47  ;;  %v4196_v62 = vmul.f32 %v7756_v57, %v2017_v52  ;;  %v4197_v7 = vmul.f32 %v7756_v57, %v2018_v50  ;;  %v1720_v47 = vld [vmem:[%s8849_s14 + $0x420] sm:$0xff] }
 0x23f   : > { %v4198_v22 = vmul.f32 %v7757_v45, %v2019_v28  ;;  %v4199_v17 = vmul.f32 %v7757_v45, %v2020_v12  ;;  %v4621_v15 = vadd.f32 %v4620_v46, %v10032_v16  ;;  %v4662_v4 = vadd.f32 %v4661_v37, %v10027_v58 }
 0x240   : > { %v4642_v27 = vadd.f32 %v4641_v60, %v10042_v63  ;;  %v7124_v8 = vunpack.c.l.bf16 %v7383_v6  ;;  %v7125_v1 = vunpack.c.h.bf16 %v7383_v6  ;;  %v7120_v61 = vunpack.c.l.bf16 %v7382_v36 }
 0x241   : > { %v7121_v24 = vunpack.c.h.bf16 %v7382_v36  ;;  %v7116_v53 = vunpack.c.l.bf16 %v7381_v11  ;;  %v4622_v41 = vadd.f32 %v4621_v15, %v4195_v9  ;;  %v4663_v52 = vadd.f32 %v4662_v4, %v10047_v23 }
 0x242   : > { %v4643_v39 = vadd.f32 %v4642_v27, %v4196_v62  ;;  %v7117_v57 = vunpack.c.h.bf16 %v7381_v11  ;;  %v4202_v50 = vmul.f32 %v7761_v18, %v2023_v42  ;;  %v4200_v28 = vmul.f32 %v7757_v45, %v2021_v13  ;;  %v10189_v62 = vld [vmem:[%s8849_s14 + $0x428] sm:$0xf] }
 0x243   : > { %v7988_v12 = vpack.i.bf16 %v7125_v1, %v7124_v8  ;;  %v7983_v16 = vpack.i.bf16 %v7121_v24, %v7120_v61  ;;  %v4623_v46 = vadd.f32 %v4622_v41, %v4198_v22  ;;  %v4664_v60 = vadd.f32 %v4663_v52, %v4197_v7  ;;  %v1704_v1 = vld [vmem:[%s8849_s14 + $0x3c0] sm:$0xff] }
 0x244   : > { %v4644_v63 = vadd.f32 %v4643_v39, %v4199_v17  ;;  %v7978_v58 = vpack.i.bf16 %v7117_v57, %v7116_v53  ;;  %v10181_v37 = vunpack.i.l.bf16 %v7795_v54  ;;  %v2064_v6 = vunpack.c.l.bf16 %v1720_v47  ;;  %v7770_v57 = vpop.permute.xlu0 %7769 }
 0x245   : > { %v4203_v36 = vmul.f32 %v7761_v18, %v2024_v19  ;;  %v4204_v9 = vmul.f32 %v10161_v40, %v2025_v20  ;;  %7989 = vperm.xlu2 %7592, %v7988_v12   ;;  %7984 = vperm.xlu1 %7581, %v7983_v16   ;;  %v4205_v23 = vmul.f32 %v10161_v40, %v2026_v2  ;;  %v4571_v39 = vrot.slane %v10142_v5, 1  ;;  %v10192_v18 = vld [vmem:[%s8849_s14 + $0x42c] sm:$0xff]  ;;  %v10195_v20 = vld [vmem:[%s8849_s14 + $0x434] sm:$0xf] }
 0x246   : > { %v4624_v42 = vadd.f32 %v4623_v46, %v4201_v21  ;;  %v4645_v45 = vadd.f32 %v4644_v63, %v4202_v50  ;;  %v4665_v24 = vadd.f32 %v4664_v60, %v4200_v28  ;;  %7979 = vperm.xlu0 %7570, %v7978_v58   ;;  %v4592_v13 = vrot.slane %v10144_v35, 1  ;;  %v1700_v50 = vld [vmem:[%s8849_s14 + $0x3a8] sm:$0xff]  ;;  %v10237_v46 = vld [vmem:[%s8849_s14 + $0x3d4] sm:$0xf]  ;;  %v1701_v63 = vld [vmem:[%s8849_s14 + $0x3b0] sm:$0xf] }
 0x247   : > { %v4613_v11 = vrot.slane %v10154_v49, 1  ;;  %v2065_v19 = vunpack.c.h.bf16 %v1720_v47  ;;  %v4206_v2 = vmul.f32 %v10161_v40, %v2027_v56  ;;  %v10201_v17 = vmul.f32 %v10118_v3, %v2049_v0  ;;  %v7775_v56 = vpop.permute.xlu1 %7774  ;;  %v10220_v47 = vld [vmem:[%s8849_s14 + $0x3c8] sm:$0xf] }
 0x248   : > { %v4625_v21 = vadd.f32 %v4624_v42, %v4204_v9  ;;  %v4646_v7 = vadd.f32 %v4645_v45, %v4205_v23  ;;  %v4666_v22 = vadd.f32 %v4665_v24, %v4203_v36  ;;  %v12423_v15 = vunpack.c.h.bf16 %v10112_v55  ;;  %v1702_v9 = vld [vmem:[%s8849_s14 + $0x3b4] sm:$0xff]  ;;  %v1703_v23 = vld [vmem:[%s8849_s14 + $0x3bc] sm:$0xf] }
 0x249   : > { %v12424_v4 = vunpack.c.l.bf16 %v10115_v59  ;;  %v10213_v40 = vunpack.i.h.bf16 %v7795_v54  ;;  %v2066_v61 = vunpack.c.l.bf16 %v10189_v62  ;;  %v2067_v0 = vunpack.c.l.bf16 %v10192_v18  ;;  %v10223_v59 = vld [vmem:[%s8849_s14 + $0x3cc] sm:$0xff] }
 0x24a   : > { %v10206_v27 = vmul.f32 %v10118_v3, %v12423_v15  ;;  %v2068_v55 = vunpack.c.h.bf16 %v10192_v18  ;;  %v4667_v53 = vadd.f32 %v4666_v22, %v4206_v2  ;;  %v2069_v54 = vunpack.c.l.bf16 %v10195_v20 }
 0x24b   : > { %v10211_v8 = vmul.f32 %v10118_v3, %v12424_v4  ;;  %v4572_v3 = vadd.f32 %v4571_v39, %v10142_v5  ;;  %v10228_v41 = vmul.f32 %v10181_v37, %v2064_v6  ;;  %v10231_v52 = vmul.f32 %v10181_v37, %v2065_v19 }
 0x24c   : > { %v4593_v28 = vadd.f32 %v4592_v13, %v10144_v35  ;;  %v4614_v12 = vadd.f32 %v4613_v11, %v10154_v49  ;;  %v7776_v16 = vunpack.i.l.bf16 %v7775_v56  ;;  %v2040_v5 = vunpack.c.l.bf16 %v1704_v1 }
 0x24d   : > { %v7777_v60 = vunpack.i.h.bf16 %v7775_v56  ;;  %v2041_v58 = vunpack.c.h.bf16 %v1704_v1  ;;  %v2042_v36 = vunpack.c.l.bf16 %v10220_v47  ;;  %v2043_v6 = vunpack.c.l.bf16 %v10223_v59  ;;  %v7386_v1 = vld [vmem:[%s8867_s17 + $0xb0] sm:$0xff]  }
 0x24e   : > { %v7772_v42 = vunpack.i.h.bf16 %v7770_v57  ;;  %v7771_v45 = vunpack.i.l.bf16 %v7770_v57  ;;  %v2034_v24 = vunpack.c.l.bf16 %v1700_v50  ;;  %v2035_v35 = vunpack.c.h.bf16 %v1700_v50 }
 0x24f   : > { %v2044_v49 = vunpack.c.h.bf16 %v10223_v59  ;;  %v2045_v39 = vunpack.c.l.bf16 %v10237_v46  ;;  %v2036_v13 = vunpack.c.l.bf16 %v1701_v63  ;;  %v10246_v11 = vmul.f32 %v7776_v16, %v2040_v5 }
 0x250   : > { %v2037_v19 = vunpack.c.l.bf16 %v1702_v9  ;;  %v2038_v2 = vunpack.c.h.bf16 %v1702_v9  ;;  %v2039_v22 = vunpack.c.l.bf16 %v1703_v23  ;;  %v10248_v15 = vmul.f32 %v7776_v16, %v2041_v58  ;;  %v7385_v9 = vld [vmem:[%s8867_s17 + $0xa8] sm:$0xff]  }
 0x251   : > { %v4213_v4 = vmul.f32 %v7771_v45, %v2034_v24  ;;  %v4214_v56 = vmul.f32 %v7771_v45, %v2035_v35  ;;  %v4215_v47 = vmul.f32 %v7771_v45, %v2036_v13  ;;  %v4626_v46 = vadd.f32 %v4625_v21, %v10065_v14 }
 0x252   : > { %v4216_v57 = vmul.f32 %v7772_v42, %v2037_v19  ;;  %v4217_v59 = vmul.f32 %v7772_v42, %v2038_v2  ;;  %v4218_v50 = vmul.f32 %v7772_v42, %v2039_v22  ;;  %v4647_v5 = vadd.f32 %v4646_v7, %v10068_v44  ;;  %v7384_v44 = vld [vmem:[%s8867_s17 + $0xa0] sm:$0xff]   ;;  %v7810_v19 = vpop.permute.xlu2 %7809 }
 0x253   : > { %v4668_v63 = vadd.f32 %v4667_v53, %v10074_v31  ;;  %v4894_v58 = vsel %vm4893_vm1, %v10037_v43, %v9647_v38  ;;  %v4906_v45 = vsel %vm4893_vm1, %v10057_v51, %v9650_v32  ;;  %v4913_v14 = vsel %vm4893_vm1, %v10062_v26, %v9653_v30 }
 0x254   : > { %v10259_v23 = vsel %vm4895_vm2, %v4572_v3, %v4894_v58  ;;  %v7136_v21 = vunpack.c.l.bf16 %v7386_v1  ;;  %v4627_v31 = vadd.f32 %v4626_v46, %v10077_v29  ;;  %v4648_v7 = vadd.f32 %v4647_v5, %v10080_v33 }
 0x255   : > { %v4669_v38 = vadd.f32 %v4668_v63, %v10083_v10  ;;  %v10272_v43 = vsel %vm4895_vm2, %v4593_v28, %v4906_v45  ;;  %v10275_v53 = vsel %vm4895_vm2, %v4614_v12, %v4913_v14  ;;  %v7137_v3 = vunpack.c.h.bf16 %v7386_v1  ;;  %v10278_v12 = vld [vmem:[%s8849_s14 + $0x468] sm:$0xff] }
 0x256   : > { %v7132_v32 = vunpack.c.l.bf16 %v7385_v9  ;;  %v7133_v51 = vunpack.c.h.bf16 %v7385_v9  ;;  %v4628_v42 = vadd.f32 %v4627_v31, %v4213_v4  ;;  %v4649_v30 = vadd.f32 %v4648_v7, %v4214_v56 }
 0x257   : > { %v4670_v26 = vadd.f32 %v4669_v38, %v4215_v47  ;;  %v7128_v24 = vunpack.c.l.bf16 %v7384_v44  ;;  %v4221_v35 = vmul.f32 %v7776_v16, %v2042_v36  ;;  %v8003_v29 = vpack.i.bf16 %v7137_v3, %v7136_v21  ;;  %v10325_v38 = vld [vmem:[%s8849_s14 + $0x408] sm:$0xff]  ;;  %v7785_v3 = vpop.permute.xlu0 %7784 }
 0x258   : > { %v7998_v13 = vpack.i.bf16 %v7133_v51, %v7132_v32  ;;  %v7129_v33 = vunpack.c.h.bf16 %v7384_v44  ;;  %v4222_v10 = vmul.f32 %v7777_v60, %v2043_v6  ;;  %v4629_v2 = vadd.f32 %v4628_v42, %v4216_v57  ;;  %v7790_v44 = vpop.permute.xlu1 %7789 }
 0x259   : > { %v4650_v28 = vadd.f32 %v4649_v30, %v4217_v59  ;;  %v4671_v22 = vadd.f32 %v4670_v26, %v4218_v50  ;;  %v4223_v1 = vmul.f32 %v7777_v60, %v2044_v49  ;;  %v4224_v46 = vmul.f32 %v7777_v60, %v2045_v39  ;;  %8004 = vperm.xlu2 %7592, %v8003_v29   ;;  %v10306_v49 = vld [vmem:[%s8849_s14 + $0x474] sm:$0xff]  ;;  %v10309_v39 = vld [vmem:[%s8849_s14 + $0x47c] sm:$0xf] }
 0x25a   : > { %7999 = vperm.xlu1 %7581, %v7998_v13   ;;  %v7993_v4 = vpack.i.bf16 %v7129_v33, %v7128_v24  ;;  %v10283_v16 = vmul.f32 %v10181_v37, %v2066_v61  ;;  %v4630_v36 = vrot.slane %v4629_v2, 4  ;;  %v10288_v47 = vmul.f32 %v10213_v40, %v2067_v0  ;;  %v10303_v61 = vld [vmem:[%s8849_s14 + $0x470] sm:$0xf]  ;;  %v1713_v13 = vld [vmem:[%s8849_s14 + $0x3f8] sm:$0xf]  ;;  %v1714_v33 = vld [vmem:[%s8849_s14 + $0x3fc] sm:$0xff] }
 0x25b   : > { %v4651_v6 = vrot.slane %v4650_v28, 4  ;;  %v4672_v56 = vrot.slane %v4671_v22, 4  ;;  %v10293_v60 = vmul.f32 %v10213_v40, %v2068_v55  ;;  %v10298_v62 = vmul.f32 %v10213_v40, %v2069_v54  ;;  %v1712_v30 = vld [vmem:[%s8849_s14 + $0x3f0] sm:$0xff] }
 0x25c   : > { %v10300_v37 = vunpack.i.l.bf16 %v7810_v19  ;;  %7994 = vperm.xlu0 %7570, %v7993_v4   ;;  %v2082_v0 = vunpack.c.l.bf16 %v10278_v12  ;;  %v4631_v18 = vadd.f32 %v4630_v36, %v4629_v2  ;;  %v10312_v59 = vunpack.i.h.bf16 %v7810_v19  ;;  %v1717_v19 = vld [vmem:[%s8849_s14 + $0x410] sm:$0xf] }
 0x25d   : > { %v4652_v57 = vadd.f32 %v4651_v6, %v4650_v28  ;;  %v4673_v55 = vadd.f32 %v4672_v56, %v4671_v22  ;;  %v4678_v20 = vadd.f32 %v4222_v10, %v10246_v11  ;;  %v4699_v40 = vadd.f32 %v4223_v1, %v10248_v15  ;;  %v1715_v1 = vld [vmem:[%s8849_s14 + $0x404] sm:$0xf] }
 0x25e   : > { %v4720_v54 = vadd.f32 %v4224_v46, %v4221_v35  ;;  %v2083_v50 = vunpack.c.h.bf16 %v10278_v12  ;;  %v4632_v5 = vrot.slane %v4631_v18, 2  ;;  %v2084_v9 = vunpack.c.l.bf16 %v10303_v61  ;;  %v10389_v61 = vld [vmem:[%s8849_s14 + $0x4bc] sm:$0xff] }
 0x25f   : > { %v4653_v63 = vrot.slane %v4652_v57, 2  ;;  %v4674_v58 = vrot.slane %v4673_v55, 2  ;;  %v2085_v45 = vunpack.c.l.bf16 %v10306_v49  ;;  %v2086_v14 = vunpack.c.h.bf16 %v10306_v49 }
 0x260   : > { %v2087_v21 = vunpack.c.l.bf16 %v10309_v39  ;;  %v10322_v11 = vmul.f32 %v10300_v37, %v2082_v0  ;;  %v4633_v15 = vadd.f32 %v4632_v5, %v4631_v18  ;;  %v4679_v32 = vadd.f32 %v4678_v20, %v10129_v48  ;;  %v7389_v20 = vld [vmem:[%s8867_s17 + $0xc8] sm:$0xff]   ;;  %v7805_v39 = vpop.permute.xlu1 %7804 }
 0x261   : > { %v4654_v31 = vadd.f32 %v4653_v63, %v4652_v57  ;;  %v4675_v7 = vadd.f32 %v4674_v58, %v4673_v55  ;;  %v4700_v51 = vadd.f32 %v4699_v40, %v10134_v34  ;;  %v4721_v42 = vadd.f32 %v4720_v54, %v10139_v25  ;;  %v7388_v40 = vld [vmem:[%s8867_s17 + $0xc0] sm:$0xff]  }
 0x262   : > { %v4634_v26 = vrot.slane %v4633_v15, 1  ;;  %v7791_v29 = vunpack.i.l.bf16 %v7790_v44  ;;  %v2058_v10 = vunpack.c.l.bf16 %v10325_v38  ;;  %v2059_v2 = vunpack.c.h.bf16 %v10325_v38 }
 0x263   : > { %v4655_v24 = vrot.slane %v4654_v31, 1  ;;  %v4676_v35 = vrot.slane %v4675_v7, 1  ;;  %v7787_v48 = vunpack.i.h.bf16 %v7785_v3  ;;  %v7786_v34 = vunpack.i.l.bf16 %v7785_v3 }
 0x264   : > { %v4635_v28 = vadd.f32 %v4634_v26, %v4633_v15  ;;  %v2052_v46 = vunpack.c.l.bf16 %v1712_v30  ;;  %v2053_v4 = vunpack.c.h.bf16 %v1712_v30  ;;  %v2054_v36 = vunpack.c.l.bf16 %v1713_v13  ;;  %v7387_v15 = vld [vmem:[%s8867_s17 + $0xb8] sm:$0xff]  }
 0x265   : > { %v4656_v25 = vadd.f32 %v4655_v24, %v4654_v31  ;;  %v4677_v22 = vadd.f32 %v4676_v35, %v4675_v7  ;;  %v2055_v6 = vunpack.c.l.bf16 %v1714_v33  ;;  %v2056_v56 = vunpack.c.h.bf16 %v1714_v33  ;;  %v1718_v26 = vld [vmem:[%s8849_s14 + $0x414] sm:$0xff] }
 0x266   : > { %v10339_v0 = vsel %vm4897_vm3, %v4635_v28, %v10259_v23  ;;  %v2060_v55 = vunpack.c.l.bf16 %v1717_v19  ;;  %v2057_v54 = vunpack.c.l.bf16 %v1715_v1  ;;  %v4231_v5 = vmul.f32 %v7786_v34, %v2052_v46  ;;  %v1719_v19 = vld [vmem:[%s8849_s14 + $0x41c] sm:$0xf] }
 0x267   : > { %v10343_v18 = vsel %vm4897_vm3, %v4656_v25, %v10272_v43  ;;  %v10347_v57 = vsel %vm4897_vm3, %v4677_v22, %v10275_v53  ;;  %v4232_v63 = vmul.f32 %v7786_v34, %v2053_v4  ;;  %v4233_v58 = vmul.f32 %v7786_v34, %v2054_v36  ;;  %v7825_v4 = vpop.permute.xlu2 %7824  ;;  %v10358_v36 = vld [vmem:[%s8849_s14 + $0x4b0] sm:$0xff] }
 0x268   : > { %v4234_v23 = vmul.f32 %v7787_v48, %v2055_v6  ;;  %v4235_v31 = vmul.f32 %v7787_v48, %v2056_v56  ;;  %v4680_v7 = vadd.f32 %v4679_v32, %v10201_v17  ;;  %v4701_v43 = vadd.f32 %v4700_v51, %v10206_v27 }
 0x269   : > { %v4722_v38 = vadd.f32 %v4721_v42, %v10211_v8  ;;  %v7148_v53 = vunpack.c.l.bf16 %v7389_v20  ;;  %v7149_v3 = vunpack.c.h.bf16 %v7389_v20  ;;  %v7144_v30 = vunpack.c.l.bf16 %v7388_v40 }
 0x26a   : > { %v4681_v24 = vadd.f32 %v4680_v7, %v4231_v5  ;;  %v4702_v35 = vadd.f32 %v4701_v43, %v4232_v63  ;;  %v7145_v13 = vunpack.c.h.bf16 %v7388_v40  ;;  %v7140_v33 = vunpack.c.l.bf16 %v7387_v15  ;;  %v1728_v5 = vld [vmem:[%s8849_s14 + $0x450] sm:$0xff] }
 0x26b   : > { %v4236_v34 = vmul.f32 %v7787_v48, %v2057_v54  ;;  %v4723_v28 = vadd.f32 %v4722_v38, %v4233_v58  ;;  %v8018_v25 = vpack.i.bf16 %v7149_v3, %v7148_v53  ;;  %v7141_v22 = vunpack.c.h.bf16 %v7387_v15  ;;  %v10376_v54 = vld [vmem:[%s8849_s14 + $0x4b8] sm:$0xf]  ;;  %v7800_v15 = vpop.permute.xlu0 %7799  ;;  %v10407_v53 = vld [vmem:[%s8849_s14 + $0x45c] sm:$0xff] }
 0x26c   : > { %v7792_v1 = vunpack.i.h.bf16 %v7790_v44  ;;  %v4682_v17 = vadd.f32 %v4681_v24, %v4234_v23  ;;  %v4703_v32 = vadd.f32 %v4702_v35, %v4235_v31  ;;  %v8013_v27 = vpack.i.bf16 %v7145_v13, %v7144_v30  ;;  %v1729_v38 = vld [vmem:[%s8849_s14 + $0x458] sm:$0xf]  ;;  %v1725_v13 = vld [vmem:[%s8849_s14 + $0x440] sm:$0xf] }
 0x26d   : > { %v2061_v8 = vunpack.c.l.bf16 %v1718_v26  ;;  %v4237_v51 = vmul.f32 %v7791_v29, %v2058_v10  ;;  %v4724_v42 = vadd.f32 %v4723_v28, %v4236_v34  ;;  %8019 = vperm.xlu2 %7592, %v8018_v25   ;;  %v8008_v46 = vpack.i.bf16 %v7141_v22, %v7140_v33  ;;  %v1724_v3 = vld [vmem:[%s8849_s14 + $0x438] sm:$0xff]  ;;  %v1726_v33 = vld [vmem:[%s8849_s14 + $0x444] sm:$0xff]  ;;  %v1727_v22 = vld [vmem:[%s8849_s14 + $0x44c] sm:$0xf] }
 0x26e   : > { %v2062_v6 = vunpack.c.h.bf16 %v1718_v26  ;;  %v2063_v48 = vunpack.c.l.bf16 %v1719_v19  ;;  %v4238_v56 = vmul.f32 %v7791_v29, %v2059_v2  ;;  %v4239_v20 = vmul.f32 %v7791_v29, %v2060_v55  ;;  %8014 = vperm.xlu1 %7581, %v8013_v27  }
 0x26f   : > { %v10363_v44 = vmul.f32 %v10300_v37, %v2083_v50  ;;  %v10368_v10 = vmul.f32 %v10300_v37, %v2084_v9  ;;  %v10373_v40 = vmul.f32 %v10312_v59, %v2085_v45  ;;  %v4683_v29 = vadd.f32 %v4682_v17, %v4237_v51  ;;  %8009 = vperm.xlu0 %7570, %v8008_v46   ;;  %v10392_v50 = vld [vmem:[%s8849_s14 + $0x4c4] sm:$0xf] }
 0x270   : > { %v10381_v12 = vmul.f32 %v10312_v59, %v2086_v14  ;;  %v10386_v37 = vmul.f32 %v10312_v59, %v2087_v21  ;;  %v4704_v9 = vadd.f32 %v4703_v32, %v4238_v56  ;;  %v4725_v45 = vadd.f32 %v4724_v42, %v4239_v20  ;;  %v7392_v20 = vld [vmem:[%s8867_s17 + $0xe0] sm:$0xff]  }
 0x271   : > { %v10394_v2 = vunpack.i.h.bf16 %v7825_v4  ;;  %v10396_v55 = vunpack.i.l.bf16 %v7825_v4  ;;  %v2100_v49 = vunpack.c.l.bf16 %v10358_v36  ;;  %v4240_v14 = vmul.f32 %v7792_v1, %v2061_v8 }
 0x272   : > { %v2101_v59 = vunpack.c.h.bf16 %v10358_v36  ;;  %v2102_v21 = vunpack.c.l.bf16 %v10376_v54  ;;  %v4241_v63 = vmul.f32 %v7792_v1, %v2062_v6  ;;  %v4242_v58 = vmul.f32 %v7792_v1, %v2063_v48  ;;  %v1768_v36 = vld [vmem:[%s8849_s14 + $0x540] sm:$0xff] }
 0x273   : > { %v2103_v23 = vunpack.c.l.bf16 %v10389_v61  ;;  %v2104_v31 = vunpack.c.h.bf16 %v10389_v61  ;;  %v2105_v7 = vunpack.c.l.bf16 %v10392_v50  ;;  %v4684_v43 = vadd.f32 %v4683_v29, %v4240_v14  ;;  %v7391_v29 = vld [vmem:[%s8867_s17 + $0xd8] sm:$0xff]  }
 0x274   : > { %v4705_v30 = vadd.f32 %v4704_v9, %v4241_v63  ;;  %v4726_v26 = vadd.f32 %v4725_v45, %v4242_v58  ;;  %v7806_v24 = vunpack.i.l.bf16 %v7805_v39  ;;  %v2076_v35 = vunpack.c.l.bf16 %v1728_v5  ;;  %v7840_v63 = vpop.permute.xlu2 %7839 }
 0x275   : > { %v10412_v19 = vunpack.i.h.bf16 %v7805_v39  ;;  %v2077_v34 = vunpack.c.h.bf16 %v1728_v5  ;;  %v7802_v28 = vunpack.i.h.bf16 %v7800_v15  ;;  %v7801_v25 = vunpack.i.l.bf16 %v7800_v15  ;;  %v7390_v5 = vld [vmem:[%s8867_s17 + $0xd0] sm:$0xff]  }
 0x276   : > { %v2078_v1 = vunpack.c.l.bf16 %v1729_v38  ;;  %v2079_v17 = vunpack.c.l.bf16 %v10407_v53  ;;  %v2080_v32 = vunpack.c.h.bf16 %v10407_v53  ;;  %v2070_v27 = vunpack.c.l.bf16 %v1724_v3 }
 0x277   : > { %v2071_v8 = vunpack.c.h.bf16 %v1724_v3  ;;  %v2072_v51 = vunpack.c.l.bf16 %v1725_v13  ;;  %v2073_v42 = vunpack.c.l.bf16 %v1726_v33  ;;  %v2074_v46 = vunpack.c.h.bf16 %v1726_v33 }
 0x278   : > { %v4255_v4 = vmul.f32 %v7806_v24, %v2076_v35  ;;  %v2075_v6 = vunpack.c.l.bf16 %v1727_v22  ;;  %v4685_v48 = vadd.f32 %v4684_v43, %v10228_v41  ;;  %v4706_v56 = vadd.f32 %v4705_v30, %v10231_v52  ;;  %v1731_v30 = vld [vmem:[%s8849_s14 + $0x464] sm:$0xf] }
 0x279   : > { %v4249_v9 = vmul.f32 %v7801_v25, %v2070_v27  ;;  %v4250_v45 = vmul.f32 %v7801_v25, %v2071_v8  ;;  %v4251_v14 = vmul.f32 %v7801_v25, %v2072_v51  ;;  %v4252_v39 = vmul.f32 %v7802_v28, %v2073_v42 }
 0x27a   : > { %v4253_v58 = vmul.f32 %v7802_v28, %v2074_v46  ;;  %v4686_v15 = vadd.f32 %v4685_v48, %v10288_v47  ;;  %v4707_v38 = vadd.f32 %v4706_v56, %v10293_v60  ;;  %v4727_v53 = vadd.f32 %v4726_v26, %v10283_v16  ;;  %v1756_v60 = vld [vmem:[%s8849_s14 + $0x4f8] sm:$0xff]  ;;  %v1757_v46 = vld [vmem:[%s8849_s14 + $0x500] sm:$0xf] }
 0x27b   : > { %v7160_v41 = vunpack.c.l.bf16 %v7392_v20  ;;  %v7161_v43 = vunpack.c.h.bf16 %v7392_v20  ;;  %v7156_v52 = vunpack.c.l.bf16 %v7391_v29  ;;  %v7157_v3 = vunpack.c.h.bf16 %v7391_v29  ;;  %v1758_v29 = vld [vmem:[%s8849_s14 + $0x504] sm:$0xff] }
 0x27c   : > { %v4687_v35 = vadd.f32 %v4686_v15, %v4249_v9  ;;  %v4708_v13 = vadd.f32 %v4707_v38, %v4250_v45  ;;  %v4728_v33 = vadd.f32 %v4727_v53, %v10298_v62  ;;  %v7152_v25 = vunpack.c.l.bf16 %v7390_v5 }
 0x27d   : > { %v4256_v22 = vmul.f32 %v7806_v24, %v2077_v34  ;;  %v8033_v27 = vpack.i.bf16 %v7161_v43, %v7160_v41  ;;  %v8028_v47 = vpack.i.bf16 %v7157_v3, %v7156_v52  ;;  %v7153_v8 = vunpack.c.h.bf16 %v7390_v5  ;;  %v1759_v34 = vld [vmem:[%s8849_s14 + $0x50c] sm:$0xf]  ;;  %v7855_v52 = vpop.permute.xlu2 %7854 }
 0x27e   : > { %v4254_v51 = vmul.f32 %v7802_v28, %v2075_v6  ;;  %v4688_v16 = vadd.f32 %v4687_v35, %v4252_v39  ;;  %v4709_v26 = vadd.f32 %v4708_v13, %v4253_v58  ;;  %v4729_v42 = vadd.f32 %v4728_v33, %v4251_v14 }
 0x27f   : > { %v2081_v48 = vunpack.c.l.bf16 %v1731_v30  ;;  %v4257_v56 = vmul.f32 %v7806_v24, %v2078_v1  ;;  %v4258_v20 = vmul.f32 %v10412_v19, %v2079_v17  ;;  %8034 = vperm.xlu2 %7592, %v8033_v27   ;;  %8029 = vperm.xlu1 %7581, %v8028_v47   ;;  %v8023_v62 = vpack.i.bf16 %v7153_v8, %v7152_v25  ;;  %v10477_v30 = vld [vmem:[%s8849_s14 + $0x54c] sm:$0xff]  ;;  %v1737_v27 = vld [vmem:[%s8849_s14 + $0x488] sm:$0xf]  ;;  %v10494_v8 = vld [vmem:[%s8849_s14 + $0x554] sm:$0xf] }
 0x280   : > { %v4259_v9 = vmul.f32 %v10412_v19, %v2080_v32  ;;  %v4689_v45 = vadd.f32 %v4688_v16, %v4255_v4  ;;  %v4710_v15 = vadd.f32 %v4709_v26, %v4256_v22  ;;  %v4730_v5 = vadd.f32 %v4729_v42, %v4254_v51  ;;  %v1738_v47 = vld [vmem:[%s8849_s14 + $0x48c] sm:$0xff]  ;;  %v1739_v42 = vld [vmem:[%s8849_s14 + $0x494] sm:$0xf] }
 0x281   : > { %v7842_v38 = vunpack.i.h.bf16 %v7840_v63  ;;  %v7841_v28 = vunpack.i.l.bf16 %v7840_v63  ;;  %v2118_v6 = vunpack.c.l.bf16 %v1756_v60  ;;  %v2119_v39 = vunpack.c.h.bf16 %v1756_v60  ;;  %8024 = vperm.xlu0 %7570, %v8023_v62  }
 0x282   : > { %v2120_v24 = vunpack.c.l.bf16 %v1757_v46  ;;  %v4690_v1 = vadd.f32 %v4689_v45, %v4258_v20  ;;  %v4711_v17 = vadd.f32 %v4710_v15, %v4259_v9  ;;  %v4731_v14 = vadd.f32 %v4730_v5, %v4257_v56  ;;  %v7395_v15 = vld [vmem:[%s8867_s17 + $0xf8] sm:$0xff]  }
 0x283   : > { %v2121_v58 = vunpack.c.l.bf16 %v1758_v29  ;;  %v2122_v53 = vunpack.c.h.bf16 %v1758_v29  ;;  %v2123_v41 = vunpack.c.l.bf16 %v1759_v34  ;;  %v4260_v43 = vmul.f32 %v10412_v19, %v2081_v48 }
 0x284   : > { %v10437_v32 = vmul.f32 %v10396_v55, %v2100_v49  ;;  %v10442_v4 = vmul.f32 %v10396_v55, %v2101_v59  ;;  %v10447_v63 = vmul.f32 %v10396_v55, %v2102_v21  ;;  %v10452_v19 = vmul.f32 %v10394_v2, %v2103_v23  ;;  %v10461_v59 = vld [vmem:[%s8849_s14 + $0x548] sm:$0xf] }
 0x285   : > { %v10457_v49 = vmul.f32 %v10394_v2, %v2104_v31  ;;  %v4691_v54 = vadd.f32 %v4690_v1, %v10322_v11  ;;  %v4712_v55 = vadd.f32 %v4711_v17, %v10363_v44  ;;  %v4732_v21 = vadd.f32 %v4731_v14, %v4260_v43  ;;  %v1741_v1 = vld [vmem:[%s8849_s14 + $0x4a0] sm:$0xf]  ;;  %v1742_v17 = vld [vmem:[%s8849_s14 + $0x4a4] sm:$0xff]  ;;  %v7394_v43 = vld [vmem:[%s8867_s17 + $0xf0] sm:$0xff]  }
 0x286   : > { %v10468_v23 = vmul.f32 %v10394_v2, %v2105_v7  ;;  %v10470_v61 = vmul.f32 %v7841_v28, %v2118_v6  ;;  %v10472_v31 = vmul.f32 %v7841_v28, %v2119_v39  ;;  %v10474_v3 = vmul.f32 %v7841_v28, %v2120_v24  ;;  %v7815_v2 = vpop.permute.xlu0 %7814  ;;  %v1736_v7 = vld [vmem:[%s8849_s14 + $0x480] sm:$0xff]  ;;  %v7820_v39 = vpop.permute.xlu1 %7819  ;;  %v1740_v24 = vld [vmem:[%s8849_s14 + $0x498] sm:$0xff] }
 0x287   : > { %v10479_v11 = vmul.f32 %v7842_v38, %v2121_v58  ;;  %v10481_v44 = vmul.f32 %v7842_v38, %v2122_v53  ;;  %v10483_v50 = vmul.f32 %v7842_v38, %v2123_v41  ;;  %v10485_v35 = vunpack.i.h.bf16 %v7855_v52 }
 0x288   : > { %v10488_v13 = vunpack.i.l.bf16 %v7855_v52  ;;  %v2136_v33 = vunpack.c.l.bf16 %v1768_v36  ;;  %v2137_v25 = vunpack.c.h.bf16 %v1768_v36  ;;  %v2138_v22 = vunpack.c.l.bf16 %v10461_v59 }
 0x289   : > { %v2139_v60 = vunpack.c.l.bf16 %v10477_v30  ;;  %v4692_v51 = vadd.f32 %v4691_v54, %v10373_v40  ;;  %v4713_v16 = vadd.f32 %v4712_v55, %v10381_v12  ;;  %v4733_v26 = vadd.f32 %v4732_v21, %v10368_v10 }
 0x28a   : > { %v2140_v46 = vunpack.c.h.bf16 %v10477_v30  ;;  %v7817_v48 = vunpack.i.h.bf16 %v7815_v2  ;;  %v7816_v56 = vunpack.i.l.bf16 %v7815_v2  ;;  %v2088_v20 = vunpack.c.l.bf16 %v1736_v7 }
 0x28b   : > { %v2089_v62 = vunpack.c.h.bf16 %v1736_v7  ;;  %v2090_v29 = vunpack.c.l.bf16 %v1737_v27  ;;  %v2091_v34 = vunpack.c.l.bf16 %v1738_v47  ;;  %v2092_v9 = vunpack.c.h.bf16 %v1738_v47 }
 0x28c   : > { %v2141_v40 = vunpack.c.l.bf16 %v10494_v8  ;;  %v4315_v45 = vmul.f32 %v10488_v13, %v2136_v33  ;;  %v10505_v10 = vmul.f32 %v10488_v13, %v2137_v25  ;;  %v2093_v12 = vunpack.c.l.bf16 %v1739_v42 }
 0x28d   : > { %v4318_v5 = vmul.f32 %v10485_v35, %v2139_v60  ;;  %v4693_v38 = vrot.slane %v4692_v51, 4  ;;  %v4714_v28 = vrot.slane %v4713_v16, 4  ;;  %v4734_v6 = vadd.f32 %v4733_v26, %v10386_v37  ;;  %v7393_v37 = vld [vmem:[%s8867_s17 + $0xe8] sm:$0xff]  }
 0x28e   : > { %v4267_v14 = vmul.f32 %v7816_v56, %v2088_v20  ;;  %v4268_v58 = vmul.f32 %v7816_v56, %v2089_v62  ;;  %v4270_v53 = vmul.f32 %v7817_v48, %v2091_v34  ;;  %v4271_v41 = vmul.f32 %v7817_v48, %v2092_v9  ;;  %v1743_v26 = vld [vmem:[%s8849_s14 + $0x4ac] sm:$0xf] }
 0x28f   : > { %v4269_v52 = vmul.f32 %v7816_v56, %v2090_v29  ;;  %v4272_v36 = vmul.f32 %v7817_v48, %v2093_v12  ;;  %v7172_v54 = vunpack.c.l.bf16 %v7395_v15  ;;  %v7173_v55 = vunpack.c.h.bf16 %v7395_v15 }
 0x290   : > { %v7822_v21 = vunpack.i.h.bf16 %v7820_v39  ;;  %v7821_v30 = vunpack.i.l.bf16 %v7820_v39  ;;  %v2094_v2 = vunpack.c.l.bf16 %v1740_v24  ;;  %v2095_v7 = vunpack.c.h.bf16 %v1740_v24 }
 0x291   : > { %v2096_v33 = vunpack.c.l.bf16 %v1741_v1  ;;  %v2097_v25 = vunpack.c.l.bf16 %v1742_v17  ;;  %v8048_v27 = vpack.i.bf16 %v7173_v55, %v7172_v54  ;;  %v7168_v47 = vunpack.c.l.bf16 %v7394_v43 }
 0x292   : > { %v4694_v8 = vadd.f32 %v4693_v38, %v4692_v51  ;;  %v4715_v60 = vadd.f32 %v4714_v28, %v4713_v16  ;;  %v4741_v42 = vadd.f32 %v4270_v53, %v4267_v14  ;;  %v4762_v20 = vadd.f32 %v4271_v41, %v4268_v58  ;;  %v7870_v16 = vpop.permute.xlu2 %7869  ;;  %v10525_v41 = vld [vmem:[%s8849_s14 + $0x588] sm:$0xff] }
 0x293   : > { %v4735_v62 = vrot.slane %v4734_v6, 4  ;;  %v4783_v34 = vadd.f32 %v4272_v36, %v4269_v52  ;;  %8049 = vperm.xlu2 %7592, %v8048_v27   ;;  %v7169_v48 = vunpack.c.h.bf16 %v7394_v43  ;;  %v7164_v56 = vunpack.c.l.bf16 %v7393_v37 }
 0x294   : > { %v2098_v29 = vunpack.c.h.bf16 %v1742_v17  ;;  %v4273_v9 = vmul.f32 %v7821_v30, %v2094_v2  ;;  %v4274_v12 = vmul.f32 %v7821_v30, %v2095_v7  ;;  %v7165_v15 = vunpack.c.h.bf16 %v7393_v37  ;;  %v7835_v2 = vpop.permute.xlu1 %7834  ;;  %v1748_v37 = vld [vmem:[%s8849_s14 + $0x4c8] sm:$0xff] }
 0x295   : > { %v4319_v39 = vmul.f32 %v10485_v35, %v2140_v46  ;;  %v2099_v24 = vunpack.c.l.bf16 %v1743_v26  ;;  %v4275_v1 = vmul.f32 %v7821_v30, %v2096_v33  ;;  %v8043_v54 = vpack.i.bf16 %v7169_v48, %v7168_v47  ;;  %v1750_v33 = vld [vmem:[%s8849_s14 + $0x4d4] sm:$0xff]  ;;  %v10551_v47 = vld [vmem:[%s8849_s14 + $0x4e8] sm:$0xf] }
 0x296   : > { %v4695_v51 = vrot.slane %v4694_v8, 2  ;;  %v4742_v38 = vadd.f32 %v4741_v42, %v4273_v9  ;;  %v4763_v28 = vadd.f32 %v4762_v20, %v4274_v12  ;;  %v8038_v14 = vpack.i.bf16 %v7165_v15, %v7164_v56 }
 0x297   : > { %v10520_v58 = vmul.f32 %v10488_v13, %v2138_v22  ;;  %v4716_v17 = vrot.slane %v4715_v60, 2  ;;  %v10522_v53 = vadd.f32 %v4735_v62, %v4734_v6  ;;  %v4784_v46 = vadd.f32 %v4783_v34, %v4275_v1  ;;  %8044 = vperm.xlu1 %7581, %v8043_v54   ;;  %v7830_v13 = vpop.permute.xlu0 %7829  ;;  %v1749_v62 = vld [vmem:[%s8849_s14 + $0x4d0] sm:$0xf]  ;;  %v1751_v34 = vld [vmem:[%s8849_s14 + $0x4dc] sm:$0xf]  ;;  %v7397_v1 = vld [vmem:[%s8867_s17 + $0x108] sm:$0xff]  }
 0x298   : > { %v10528_v43 = vmul.f32 %v10485_v35, %v2141_v40  ;;  %v10530_v52 = vadd.f32 %v4318_v5, %v4315_v45  ;;  %v4276_v36 = vmul.f32 %v7822_v21, %v2097_v25  ;;  %v4277_v59 = vmul.f32 %v7822_v21, %v2098_v29  ;;  %8039 = vperm.xlu0 %7570, %v8038_v14   ;;  %v10540_v35 = vld [vmem:[%s8849_s14 + $0x4e0] sm:$0xff] }
 0x299   : > { %v10533_v22 = vadd.f32 %v4319_v39, %v10505_v10  ;;  %v10535_v6 = vunpack.i.h.bf16 %v7870_v16  ;;  %v10537_v55 = vunpack.i.l.bf16 %v7870_v16  ;;  %v4278_v30 = vmul.f32 %v7822_v21, %v2099_v24  ;;  %v7398_v24 = vld [vmem:[%s8867_s17 + $0x110] sm:$0xff]  }
 0x29a   : > { %v10542_v40 = vadd.f32 %v4695_v51, %v4694_v8  ;;  %v2154_v45 = vunpack.c.l.bf16 %v10525_v41  ;;  %v4743_v5 = vadd.f32 %v4742_v38, %v4276_v36  ;;  %v4764_v7 = vadd.f32 %v4763_v28, %v4277_v59  ;;  %v7396_v28 = vld [vmem:[%s8867_s17 + $0x100] sm:$0xff]   ;;  %v1754_v59 = vld [vmem:[%s8849_s14 + $0x4ec] sm:$0xff] }
 0x29b   : > { %v10547_v10 = vadd.f32 %v4716_v17, %v4715_v60  ;;  %v4737_v25 = vrot.slane %v10522_v53, 2  ;;  %v4785_v27 = vadd.f32 %v4784_v46, %v4278_v30  ;;  %v7831_v21 = vunpack.i.l.bf16 %v7830_v13 }
 0x29c   : > { %v10553_v26 = vunpack.i.h.bf16 %v7835_v2  ;;  %v7836_v8 = vunpack.i.l.bf16 %v7835_v2  ;;  %v2112_v42 = vunpack.c.l.bf16 %v10540_v35  ;;  %v7832_v20 = vunpack.i.h.bf16 %v7830_v13 }
 0x29d   : > { %v2113_v60 = vunpack.c.h.bf16 %v10540_v35  ;;  %v2106_v48 = vunpack.c.l.bf16 %v1748_v37  ;;  %v2107_v56 = vunpack.c.h.bf16 %v1748_v37  ;;  %v2109_v29 = vunpack.c.l.bf16 %v1750_v33 }
 0x29e   : > { %v2114_v9 = vunpack.c.l.bf16 %v10551_v47  ;;  %v2110_v12 = vunpack.c.h.bf16 %v1750_v33  ;;  %v4744_v15 = vadd.f32 %v4743_v5, %v10437_v32  ;;  %v4765_v39 = vadd.f32 %v4764_v7, %v10442_v4 }
 0x29f   : > { %v2108_v54 = vunpack.c.l.bf16 %v1749_v62  ;;  %v2111_v51 = vunpack.c.l.bf16 %v1751_v34  ;;  %v4285_v16 = vmul.f32 %v7831_v21, %v2106_v48  ;;  %v4286_v38 = vmul.f32 %v7831_v21, %v2107_v56  ;;  %v1781_v62 = vld [vmem:[%s8849_s14 + $0x590] sm:$0xf]  ;;  %v1782_v34 = vld [vmem:[%s8849_s14 + $0x594] sm:$0xff] }
 0x2a0   : > { %v4288_v14 = vmul.f32 %v7832_v20, %v2109_v29  ;;  %v4289_v17 = vmul.f32 %v7832_v20, %v2110_v12  ;;  %v4745_v46 = vadd.f32 %v4744_v15, %v10452_v19  ;;  %v4766_v36 = vadd.f32 %v4765_v39, %v10457_v49 }
 0x2a1   : > { %v4786_v32 = vadd.f32 %v4785_v27, %v10447_v63  ;;  %v7184_v13 = vunpack.c.l.bf16 %v7398_v24  ;;  %v7185_v4 = vunpack.c.h.bf16 %v7398_v24  ;;  %v7180_v30 = vunpack.c.l.bf16 %v7397_v1  ;;  %v1755_v27 = vld [vmem:[%s8849_s14 + $0x4f4] sm:$0xf] }
 0x2a2   : > { %v4746_v2 = vadd.f32 %v4745_v46, %v4285_v16  ;;  %v4767_v35 = vadd.f32 %v4766_v36, %v4286_v38  ;;  %v7181_v5 = vunpack.c.h.bf16 %v7397_v1  ;;  %v7176_v7 = vunpack.c.l.bf16 %v7396_v28 }
 0x2a3   : > { %v4287_v37 = vmul.f32 %v7831_v21, %v2108_v54  ;;  %v4787_v33 = vadd.f32 %v4786_v32, %v10468_v23  ;;  %v8063_v47 = vpack.i.bf16 %v7185_v4, %v7184_v13  ;;  %v7177_v19 = vunpack.c.h.bf16 %v7396_v28  ;;  %v1783_v21 = vld [vmem:[%s8849_s14 + $0x59c] sm:$0xf]  ;;  %v7845_v4 = vpop.permute.xlu0 %7844 }
 0x2a4   : > { %v2115_v49 = vunpack.c.l.bf16 %v1754_v59  ;;  %v4747_v48 = vadd.f32 %v4746_v2, %v4288_v14  ;;  %v4768_v56 = vadd.f32 %v4767_v35, %v4289_v17  ;;  %v8058_v63 = vpack.i.bf16 %v7181_v5, %v7180_v30  ;;  %v7885_v5 = vpop.permute.xlu2 %7884 }
 0x2a5   : > { %v4291_v29 = vmul.f32 %v7836_v8, %v2112_v42  ;;  %v4290_v12 = vmul.f32 %v7832_v20, %v2111_v51  ;;  %v4788_v15 = vadd.f32 %v4787_v33, %v4287_v37  ;;  %8064 = vperm.xlu2 %7592, %v8063_v47   ;;  %v8053_v39 = vpack.i.bf16 %v7177_v19, %v7176_v7  ;;  %v1762_v19 = vld [vmem:[%s8849_s14 + $0x51c] sm:$0xff] }
 0x2a6   : > { %v4738_v24 = vadd.f32 %v4737_v25, %v10522_v53  ;;  %v2155_v23 = vunpack.c.h.bf16 %v10525_v41  ;;  %v2116_v1 = vunpack.c.h.bf16 %v1754_v59  ;;  %v4292_v54 = vmul.f32 %v7836_v8, %v2113_v60  ;;  %8059 = vperm.xlu1 %7581, %v8058_v63   ;;  %v10603_v41 = vld [vmem:[%s8849_s14 + $0x5d0] sm:$0xff] }
 0x2a7   : > { %v2156_v16 = vunpack.c.l.bf16 %v1781_v62  ;;  %v2157_v38 = vunpack.c.l.bf16 %v1782_v34  ;;  %v4748_v28 = vadd.f32 %v4747_v48, %v4291_v29  ;;  %v4789_v14 = vadd.f32 %v4788_v15, %v4290_v12  ;;  %8054 = vperm.xlu0 %7570, %v8053_v39   ;;  %v7400_v15 = vld [vmem:[%s8867_s17 + $0x120] sm:$0xff]   ;;  %v7399_v39 = vld [vmem:[%s8867_s17 + $0x118] sm:$0xff]  }
 0x2a8   : > { %v2158_v17 = vunpack.c.h.bf16 %v1782_v34  ;;  %v2117_v46 = vunpack.c.l.bf16 %v1755_v27  ;;  %v4293_v42 = vmul.f32 %v7836_v8, %v2114_v9  ;;  %v4769_v20 = vadd.f32 %v4768_v56, %v4292_v54  ;;  %v7401_v56 = vld [vmem:[%s8867_s17 + $0x128] sm:$0xff]  }
 0x2a9   : > { %v4697_v51 = vrot.slane %v10542_v40, 1  ;;  %v4718_v53 = vrot.slane %v10547_v10, 1  ;;  %v2159_v25 = vunpack.c.l.bf16 %v1783_v21  ;;  %v4294_v36 = vmul.f32 %v10553_v26, %v2115_v49  ;;  %v1764_v21 = vld [vmem:[%s8849_s14 + $0x528] sm:$0xff] }
 0x2aa   : > { %v10581_v60 = vadd.f32 %v10528_v43, %v10520_v58  ;;  %v4739_v59 = vrot.slane %v4738_v24, 1  ;;  %v4295_v32 = vmul.f32 %v10553_v26, %v2116_v1  ;;  %v4790_v13 = vadd.f32 %v4789_v14, %v4293_v42  ;;  %v1760_v58 = vld [vmem:[%s8849_s14 + $0x510] sm:$0xff] }
 0x2ab   : > { %v10587_v8 = vmul.f32 %v10537_v55, %v2154_v45  ;;  %v10590_v9 = vmul.f32 %v10537_v55, %v2155_v23  ;;  %v10593_v30 = vmul.f32 %v10537_v55, %v2156_v16  ;;  %v4749_v2 = vadd.f32 %v4748_v28, %v4294_v36  ;;  %v1761_v16 = vld [vmem:[%s8849_s14 + $0x518] sm:$0xf] }
 0x2ac   : > { %v10597_v43 = vmul.f32 %v10535_v6, %v2157_v38  ;;  %v10600_v35 = vmul.f32 %v10535_v6, %v2158_v17  ;;  %v4296_v45 = vmul.f32 %v10553_v26, %v2117_v46  ;;  %v4770_v7 = vadd.f32 %v4769_v20, %v4295_v32  ;;  %v1793_v17 = vld [vmem:[%s8849_s14 + $0x5d8] sm:$0xf]  ;;  %v1794_v46 = vld [vmem:[%s8849_s14 + $0x5dc] sm:$0xff]  ;;  %v1795_v32 = vld [vmem:[%s8849_s14 + $0x5e4] sm:$0xf] }
 0x2ad   : > { %v10607_v37 = vadd.f32 %v4697_v51, %v10542_v40  ;;  %v10610_v55 = vadd.f32 %v4718_v53, %v10547_v10  ;;  %v10613_v33 = vmul.f32 %v10535_v6, %v2159_v25  ;;  %v10615_v47 = vunpack.i.l.bf16 %v7845_v4 }
 0x2ae   : > { %v10618_v62 = vadd.f32 %v4739_v59, %v4738_v24  ;;  %v4791_v34 = vadd.f32 %v4790_v13, %v4296_v45  ;;  %v2124_v26 = vunpack.c.l.bf16 %v1760_v58  ;;  %v2125_v49 = vunpack.c.h.bf16 %v1760_v58  ;;  %v7850_v24 = vpop.permute.xlu1 %7849  ;;  %v1766_v13 = vld [vmem:[%s8849_s14 + $0x534] sm:$0xff]  ;;  %v1763_v45 = vld [vmem:[%s8849_s14 + $0x524] sm:$0xf] }
 0x2af   : > { %v10620_v48 = vunpack.i.h.bf16 %v7885_v5  ;;  %v7886_v40 = vunpack.i.l.bf16 %v7885_v5  ;;  %v2172_v10 = vunpack.c.l.bf16 %v10603_v41  ;;  %v4750_v6 = vadd.f32 %v4749_v2, %v10470_v61 }
 0x2b0   : > { %v2173_v63 = vunpack.c.h.bf16 %v10603_v41  ;;  %v10626_v27 = vunpack.i.h.bf16 %v7845_v4  ;;  %v2127_v29 = vunpack.c.l.bf16 %v1762_v19  ;;  %v4771_v12 = vadd.f32 %v4770_v7, %v10472_v31 }
 0x2b1   : > { %v2128_v23 = vunpack.c.h.bf16 %v1762_v19  ;;  %v4303_v1 = vmul.f32 %v10615_v47, %v2124_v26  ;;  %v4304_v54 = vmul.f32 %v10615_v47, %v2125_v49  ;;  %v4751_v61 = vadd.f32 %v4750_v6, %v10479_v11 }
 0x2b2   : > { %v4772_v38 = vadd.f32 %v4771_v12, %v10481_v44  ;;  %v4792_v28 = vadd.f32 %v4791_v34, %v10474_v3  ;;  %v7196_v14 = vunpack.c.l.bf16 %v7401_v56  ;;  %v7197_v31 = vunpack.c.h.bf16 %v7401_v56 }
 0x2b3   : > { %v4752_v42 = vadd.f32 %v4751_v61, %v4303_v1  ;;  %v7192_v20 = vunpack.c.l.bf16 %v7400_v15  ;;  %v7193_v51 = vunpack.c.h.bf16 %v7400_v15  ;;  %v7188_v53 = vunpack.c.l.bf16 %v7399_v39  ;;  %v7900_v15 = vpop.permute.xlu2 %7899  ;;  %v2189_v1 = vld [vmem:[%s8855_s13 + $0x20] sm:$0xf] }
 0x2b4   : > { %v10640_v25 = vunpack.i.l.bf16 %v7850_v24  ;;  %v2130_v36 = vunpack.c.l.bf16 %v1764_v21  ;;  %v8078_v11 = vpack.i.bf16 %v7197_v31, %v7196_v14  ;;  %v7189_v59 = vunpack.c.h.bf16 %v7399_v39  ;;  %v2188_v39 = vld [vmem:[%s8855_s13 + $0x18] sm:$0xff] }
 0x2b5   : > { %v2126_v4 = vunpack.c.l.bf16 %v1761_v16  ;;  %v4306_v44 = vmul.f32 %v10626_v27, %v2127_v29  ;;  %v4773_v3 = vadd.f32 %v4772_v38, %v4304_v54  ;;  %v8073_v2 = vpack.i.bf16 %v7193_v51, %v7192_v20  ;;  %v1765_v38 = vld [vmem:[%s8849_s14 + $0x530] sm:$0xf]  ;;  %v1767_v14 = vld [vmem:[%s8849_s14 + $0x53c] sm:$0xf]  ;;  %v10671_v51 = vld [vmem:[%s8855_s13 + $0x2c] sm:$0xf] }
 0x2b6   : > { %v2174_v58 = vunpack.c.l.bf16 %v1793_v17  ;;  %v2175_v5 = vunpack.c.l.bf16 %v1794_v46  ;;  %v2176_v41 = vunpack.c.h.bf16 %v1794_v46  ;;  %8079 = vperm.xlu2 %7592, %v8078_v11   ;;  %v8068_v7 = vpack.i.bf16 %v7189_v59, %v7188_v53 }
 0x2b7   : > { %v2131_v19 = vunpack.c.h.bf16 %v1764_v21  ;;  %v4307_v34 = vmul.f32 %v10626_v27, %v2128_v23  ;;  %v4753_v26 = vadd.f32 %v4752_v42, %v4306_v44  ;;  %v4793_v49 = vadd.f32 %v4792_v28, %v10483_v50  ;;  %8074 = vperm.xlu1 %7581, %v8073_v2   ;;  %v10666_v28 = vld [vmem:[%s8855_s13 + $0x24] sm:$0xff]  ;;  %v1772_v2 = vld [vmem:[%s8849_s14 + $0x558] sm:$0xff] }
 0x2b8   : > { %v2177_v6 = vunpack.c.l.bf16 %v1795_v32  ;;  %v10648_v56 = vmul.f32 %v7886_v40, %v2172_v10  ;;  %v7852_v29 = vunpack.i.h.bf16 %v7850_v24  ;;  %v2133_v12 = vunpack.c.l.bf16 %v1766_v13  ;;  %8069 = vperm.xlu0 %7570, %v8068_v7  }
 0x2b9   : > { %v4309_v21 = vmul.f32 %v10640_v25, %v2130_v36  ;;  %v2129_v54 = vunpack.c.l.bf16 %v1763_v45  ;;  %v4305_v23 = vmul.f32 %v10615_v47, %v2126_v4  ;;  %v4774_v61 = vadd.f32 %v4773_v3, %v4307_v34  ;;  %v7860_v3 = vpop.permute.xlu0 %7859  ;;  %v1773_v45 = vld [vmem:[%s8849_s14 + $0x560] sm:$0xf] }
 0x2ba   : > { %v10654_v50 = vmul.f32 %v7886_v40, %v2173_v63  ;;  %v10656_v16 = vmul.f32 %v7886_v40, %v2174_v58  ;;  %v10659_v10 = vmul.f32 %v10620_v48, %v2175_v5  ;;  %v10662_v24 = vmul.f32 %v10620_v48, %v2176_v41 }
 0x2bb   : > { %v2134_v31 = vunpack.c.h.bf16 %v1766_v13  ;;  %v4310_v17 = vmul.f32 %v10640_v25, %v2131_v19  ;;  %v4754_v47 = vadd.f32 %v4753_v26, %v4309_v21  ;;  %v4794_v46 = vadd.f32 %v4793_v49, %v4305_v23  ;;  %v1774_v26 = vld [vmem:[%s8849_s14 + $0x564] sm:$0xff] }
 0x2bc   : > { %v7901_v63 = vunpack.i.l.bf16 %v7900_v15  ;;  %v2446_v42 = vunpack.c.l.bf16 %v2188_v39  ;;  %v2447_v40 = vunpack.c.h.bf16 %v2188_v39  ;;  %v2448_v20 = vunpack.c.l.bf16 %v2189_v1  ;;  %v1775_v39 = vld [vmem:[%s8849_s14 + $0x56c] sm:$0xf] }
 0x2bd   : > { %v2132_v53 = vunpack.c.l.bf16 %v1765_v38  ;;  %v4312_v36 = vmul.f32 %v7852_v29, %v2133_v12  ;;  %v4308_v11 = vmul.f32 %v10626_v27, %v2129_v54  ;;  %v4775_v59 = vadd.f32 %v4774_v61, %v4310_v17  ;;  %v7865_v12 = vpop.permute.xlu1 %7864  ;;  %v1776_v54 = vld [vmem:[%s8849_s14 + $0x570] sm:$0xff] }
 0x2be   : > { %v10675_v32 = vmul.f32 %v10620_v48, %v2177_v6  ;;  %v10677_v13 = vunpack.i.h.bf16 %v7900_v15  ;;  %v2135_v44 = vunpack.c.l.bf16 %v1767_v14  ;;  %v4313_v5 = vmul.f32 %v7852_v29, %v2134_v31 }
 0x2bf   : > { %v10682_v41 = vadd.f32 %v4754_v47, %v4312_v36  ;;  %v4795_v27 = vadd.f32 %v4794_v46, %v4308_v11  ;;  %v2451_v7 = vunpack.c.l.bf16 %v10671_v51  ;;  %v10686_v48 = vmul.f32 %v7901_v63, %v2446_v42  ;;  %v1777_v51 = vld [vmem:[%s8849_s14 + $0x578] sm:$0xf] }
 0x2c0   : > { %v10688_v19 = vmul.f32 %v7901_v63, %v2447_v40  ;;  %v10690_v34 = vmul.f32 %v7901_v63, %v2448_v20  ;;  %v4311_v49 = vmul.f32 %v10640_v25, %v2132_v53  ;;  %v10694_v6 = vadd.f32 %v4775_v59, %v4313_v5  ;;  %v7404_v40 = vld [vmem:[%s8867_s17 + $0x140] sm:$0xff]   ;;  %v7403_v11 = vld [vmem:[%s8867_s17 + $0x138] sm:$0xff]   ;;  %v7402_v5 = vld [vmem:[%s8867_s17 + $0x130] sm:$0xff]  }
 0x2c1   : > { %v7861_v15 = vunpack.i.l.bf16 %v7860_v3  ;;  %v2142_v1 = vunpack.c.l.bf16 %v1772_v2  ;;  %v4314_v21 = vmul.f32 %v7852_v29, %v2135_v44  ;;  %v7862_v23 = vunpack.i.h.bf16 %v7860_v3 }
 0x2c2   : > { %v2143_v61 = vunpack.c.h.bf16 %v1772_v2  ;;  %v2144_v38 = vunpack.c.l.bf16 %v1773_v45  ;;  %v4756_v14 = vrot.slane %v10682_v41, 4  ;;  %v4796_v31 = vadd.f32 %v4795_v27, %v4311_v49  ;;  %v1778_v27 = vld [vmem:[%s8849_s14 + $0x57c] sm:$0xff] }
 0x2c3   : > { %v2145_v17 = vunpack.c.l.bf16 %v1774_v26  ;;  %v2146_v47 = vunpack.c.h.bf16 %v1774_v26  ;;  %v10699_v25 = vunpack.i.h.bf16 %v7865_v12  ;;  %v2147_v46 = vunpack.c.l.bf16 %v1775_v39 }
 0x2c4   : > { %v4321_v63 = vmul.f32 %v7861_v15, %v2142_v1  ;;  %v4322_v42 = vmul.f32 %v7861_v15, %v2143_v61  ;;  %v4777_v29 = vrot.slane %v10694_v6, 4  ;;  %v7866_v20 = vunpack.i.l.bf16 %v7865_v12 }
 0x2c5   : > { %v2148_v53 = vunpack.c.l.bf16 %v1776_v54  ;;  %v4323_v36 = vmul.f32 %v7861_v15, %v2144_v38  ;;  %v2149_v59 = vunpack.c.h.bf16 %v1776_v54  ;;  %v4324_v44 = vmul.f32 %v7862_v23, %v2145_v17 }
 0x2c6   : > { %v4325_v3 = vmul.f32 %v7862_v23, %v2146_v47  ;;  %v4805_v2 = vadd.f32 %v10530_v52, %v4321_v63  ;;  %v4826_v45 = vadd.f32 %v10533_v22, %v4322_v42  ;;  %v7208_v49 = vunpack.c.l.bf16 %v7404_v40  ;;  %v1779_v52 = vld [vmem:[%s8849_s14 + $0x584] sm:$0xf]  ;;  %v7915_v42 = vpop.permute.xlu2 %7914 }
 0x2c7   : > { %v4847_v26 = vadd.f32 %v10581_v60, %v4323_v36  ;;  %v7209_v39 = vunpack.c.h.bf16 %v7404_v40  ;;  %v2150_v1 = vunpack.c.l.bf16 %v1777_v51  ;;  %v4326_v12 = vmul.f32 %v7862_v23, %v2147_v46 }
 0x2c8   : > { %v7204_v61 = vunpack.c.l.bf16 %v7403_v11  ;;  %v7205_v58 = vunpack.c.h.bf16 %v7403_v11  ;;  %v4806_v15 = vadd.f32 %v4805_v2, %v4324_v44  ;;  %v4827_v38 = vadd.f32 %v4826_v45, %v4325_v3  ;;  %v10725_v44 = vld [vmem:[%s8855_s13 + $0x60] sm:$0xff] }
 0x2c9   : > { %v8093_v54 = vpack.i.bf16 %v7209_v39, %v7208_v49  ;;  %v7200_v17 = vunpack.c.l.bf16 %v7402_v5  ;;  %v4797_v47 = vadd.f32 %v4796_v31, %v4314_v21  ;;  %v2151_v63 = vunpack.c.l.bf16 %v1778_v27  ;;  %v7875_v39 = vpop.permute.xlu0 %7874 }
 0x2ca   : > { %v8088_v4 = vpack.i.bf16 %v7205_v58, %v7204_v61  ;;  %v7201_v22 = vunpack.c.h.bf16 %v7402_v5  ;;  %v2152_v60 = vunpack.c.h.bf16 %v1778_v27  ;;  %v4327_v36 = vmul.f32 %v7866_v20, %v2148_v53  ;;  %v10728_v53 = vld [vmem:[%s8855_s13 + $0x68] sm:$0xf] }
 0x2cb   : > { %v4328_v40 = vmul.f32 %v7866_v20, %v2149_v59  ;;  %v4848_v51 = vadd.f32 %v4847_v26, %v4326_v12  ;;  %8094 = vperm.xlu2 %7592, %v8093_v54   ;;  %v12425_v23 = vunpack.c.l.bf16 %v10666_v28  ;;  %v12426_v21 = vunpack.c.h.bf16 %v10666_v28  ;;  %v10731_v59 = vld [vmem:[%s8855_s13 + $0x6c] sm:$0xff]  ;;  %v1784_v12 = vld [vmem:[%s8849_s14 + $0x5a0] sm:$0xff] }
 0x2cc   : > { %v10722_v11 = vmul.f32 %v10677_v13, %v2451_v7  ;;  %8089 = vperm.xlu1 %7581, %v8088_v4   ;;  %v8083_v58 = vpack.i.bf16 %v7201_v22, %v7200_v17  ;;  %12428 = vst [vmem:[#allocation44_spill] sm:$0xff] %v10731_v59  ;;  %v2153_v3 = vunpack.c.l.bf16 %v1779_v52  ;;  %v4329_v2 = vmul.f32 %v7866_v20, %v2150_v1  ;;  %v7880_v1 = vpop.permute.xlu1 %7879  ;;  %v10753_v17 = vld [vmem:[%s8849_s14 + $0x5b8] sm:$0xff]  ;;  %v1785_v52 = vld [vmem:[%s8849_s14 + $0x5a8] sm:$0xf] }
 0x2cd   : > { %v10714_v46 = vmul.f32 %v10677_v13, %v12425_v23  ;;  %v10719_v31 = vmul.f32 %v10677_v13, %v12426_v21  ;;  %v4807_v5 = vadd.f32 %v4806_v15, %v4327_v36  ;;  %v4828_v27 = vadd.f32 %v4827_v38, %v4328_v40 }
 0x2ce   : > { %12427 = vst [vmem:[#allocation43_spill] sm:$0xff] %v10722_v11  ;;  %v10734_v28 = vadd.f32 %v4756_v14, %v10682_v41  ;;  %v10737_v45 = vadd.f32 %v4777_v29, %v10694_v6  ;;  %v4798_v13 = vrot.slane %v4797_v47, 4  ;;  %v10739_v4 = vunpack.i.h.bf16 %v7915_v42  ;;  %8084 = vperm.xlu0 %7570, %v8083_v58   ;;  %v7405_v14 = vld [vmem:[%s8867_s17 + $0x148] sm:$0xff]  }
 0x2cf   : > { %v10741_v7 = vunpack.i.l.bf16 %v7915_v42  ;;  %v4330_v26 = vmul.f32 %v10699_v25, %v2151_v63  ;;  %v4331_v20 = vmul.f32 %v10699_v25, %v2152_v60  ;;  %v4849_v49 = vadd.f32 %v4848_v51, %v4329_v2  ;;  %v1786_v63 = vld [vmem:[%s8849_s14 + $0x5ac] sm:$0xff]  ;;  %v1790_v41 = vld [vmem:[%s8849_s14 + $0x5c4] sm:$0xff] }
 0x2d0   : > { %12429 = vst [vmem:[#allocation45_spill] sm:$0xff] %v10739_v4  ;;  %v4332_v15 = vmul.f32 %v10699_v25, %v2153_v3  ;;  %v4758_v22 = vrot.slane %v10734_v28, 2  ;;  %v4779_v42 = vrot.slane %v10737_v45, 2  ;;  %v10759_v60 = vadd.f32 %v4798_v13, %v4797_v47  ;;  %v1787_v25 = vld [vmem:[%s8849_s14 + $0x5b4] sm:$0xf] }
 0x2d1   : > { %v4808_v38 = vadd.f32 %v4807_v5, %v4330_v26  ;;  %v4829_v54 = vadd.f32 %v4828_v27, %v4331_v20  ;;  %v7876_v36 = vunpack.i.l.bf16 %v7875_v39  ;;  %v10761_v51 = vunpack.i.l.bf16 %v7880_v1  ;;  %v7407_v20 = vld [vmem:[%s8867_s17 + $0x158] sm:$0xff]  }
 0x2d2   : > { %v4850_v40 = vadd.f32 %v4849_v49, %v4332_v15  ;;  %v7877_v23 = vunpack.i.h.bf16 %v7875_v39  ;;  %v2160_v21 = vunpack.c.l.bf16 %v1784_v12  ;;  %v2166_v58 = vunpack.c.l.bf16 %v10753_v17  ;;  %v7406_v49 = vld [vmem:[%s8867_s17 + $0x150] sm:$0xff]  }
 0x2d3   : > { %v2161_v3 = vunpack.c.h.bf16 %v1784_v12  ;;  %v2162_v2 = vunpack.c.l.bf16 %v1785_v52  ;;  %v2163_v5 = vunpack.c.l.bf16 %v1786_v63  ;;  %v2167_v27 = vunpack.c.h.bf16 %v10753_v17 }
 0x2d4   : > { %v2164_v26 = vunpack.c.h.bf16 %v1786_v63  ;;  %v4809_v47 = vadd.f32 %v4808_v38, %v10587_v8  ;;  %v4830_v13 = vadd.f32 %v4829_v54, %v10590_v9  ;;  %v2165_v39 = vunpack.c.l.bf16 %v1787_v25  ;;  %v1789_v63 = vld [vmem:[%s8849_s14 + $0x5c0] sm:$0xf] }
 0x2d5   : > { %v4339_v15 = vmul.f32 %v7876_v36, %v2160_v21  ;;  %v4340_v61 = vmul.f32 %v7876_v36, %v2161_v3  ;;  %v4341_v29 = vmul.f32 %v7876_v36, %v2162_v2  ;;  %v4342_v12 = vmul.f32 %v7877_v23, %v2163_v5  ;;  %v10778_v2 = vld [vmem:[%s8855_s13 + $0x74] sm:$0xf] }
 0x2d6   : > { %v4810_v52 = vadd.f32 %v4809_v47, %v10597_v43  ;;  %v4831_v6 = vadd.f32 %v4830_v13, %v10600_v35  ;;  %v4851_v17 = vadd.f32 %v4850_v40, %v10593_v30  ;;  %v7220_v8 = vunpack.c.l.bf16 %v7407_v20 }
 0x2d7   : > { %v7221_v38 = vunpack.c.h.bf16 %v7407_v20  ;;  %v7216_v9 = vunpack.c.l.bf16 %v7406_v49  ;;  %v7217_v54 = vunpack.c.h.bf16 %v7406_v49  ;;  %v7212_v3 = vunpack.c.l.bf16 %v7405_v14  ;;  %v1791_v20 = vld [vmem:[%s8849_s14 + $0x5cc] sm:$0xf] }
 0x2d8   : > { %v4811_v25 = vadd.f32 %v4810_v52, %v4339_v15  ;;  %v4832_v21 = vadd.f32 %v4831_v6, %v4340_v61  ;;  %v4852_v36 = vadd.f32 %v4851_v17, %v10613_v33  ;;  %v4343_v5 = vmul.f32 %v7877_v23, %v2164_v26  ;;  %v7895_v26 = vpop.permute.xlu1 %7894  ;;  %v2184_v17 = vld [vmem:[%s8855_s13] sm:$0xff] }
 0x2d9   : > { %v8108_v43 = vpack.i.bf16 %v7221_v38, %v7220_v8  ;;  %v8103_v47 = vpack.i.bf16 %v7217_v54, %v7216_v9  ;;  %v7213_v35 = vunpack.c.h.bf16 %v7405_v14  ;;  %v7882_v13 = vunpack.i.h.bf16 %v7880_v1  ;;  %v2186_v9 = vld [vmem:[%s8855_s13 + $0xc] sm:$0xff]  ;;  %v2187_v54 = vld [vmem:[%s8855_s13 + $0x14] sm:$0xf] }
 0x2da   : > { %v2168_v30 = vunpack.c.l.bf16 %v1789_v63  ;;  %v4344_v40 = vmul.f32 %v7877_v23, %v2165_v39  ;;  %v4853_v4 = vadd.f32 %v4852_v36, %v4341_v29  ;;  %v2169_v59 = vunpack.c.l.bf16 %v1790_v41 }
 0x2db   : > { %v4812_v49 = vadd.f32 %v4811_v25, %v4342_v12  ;;  %v4833_v11 = vadd.f32 %v4832_v21, %v4343_v5  ;;  %8109 = vperm.xlu2 %7592, %v8108_v43   ;;  %8104 = vperm.xlu1 %7581, %v8103_v47   ;;  %v8098_v6 = vpack.i.bf16 %v7213_v35, %v7212_v3  ;;  %v2469_v33 = vunpack.c.l.bf16 %v10778_v2 }
 0x2dc   : > { %v12430_v61 = vunpack.c.l.bf16 %v10725_v44  ;;  %v12431_v1 = vunpack.c.h.bf16 %v10725_v44  ;;  %v4854_v23 = vadd.f32 %v4853_v4, %v4344_v40  ;;  %v10793_v39 = vadd.f32 %v4758_v22, %v10734_v28  ;;  %v2185_v4 = vld [vmem:[%s8855_s13 + $0x8] sm:$0xf] }
 0x2dd   : > { %v10796_v15 = vadd.f32 %v4779_v42, %v10737_v45  ;;  %v4345_v12 = vmul.f32 %v10761_v51, %v2166_v58  ;;  %v4346_v52 = vmul.f32 %v10761_v51, %v2167_v27  ;;  %8099 = vperm.xlu0 %7570, %v8098_v6   ;;  %v4800_v44 = vrot.slane %v10759_v60, 2  ;;  %v1797_v6 = vld [vmem:[%s8849_s14 + $0x5f0] sm:$0xf] }
 0x2de   : > { %v10785_v14 = vmul.f32 %v10741_v7, %v12430_v61  ;;  %v10790_v29 = vmul.f32 %v10741_v7, %v12431_v1  ;;  %v2170_v63 = vunpack.c.h.bf16 %v1790_v41  ;;  %v2171_v8 = vunpack.c.l.bf16 %v1791_v20 }
 0x2df   : > { %v4347_v38 = vmul.f32 %v10761_v51, %v2168_v30  ;;  %v4348_v28 = vmul.f32 %v7882_v13, %v2169_v59  ;;  %v4813_v22 = vadd.f32 %v4812_v49, %v4345_v12  ;;  %v4834_v25 = vadd.f32 %v4833_v11, %v4346_v52  ;;  %v7890_v30 = vpop.permute.xlu0 %7889  ;;  %v1796_v49 = vld [vmem:[%s8849_s14 + $0x5e8] sm:$0xff]  ;;  %v1798_v12 = vld [vmem:[%s8849_s14 + $0x5f4] sm:$0xff] }
 0x2e0   : > { %v7897_v45 = vunpack.i.h.bf16 %v7895_v26  ;;  %v7896_v21 = vunpack.i.l.bf16 %v7895_v26  ;;  %v2440_v58 = vunpack.c.l.bf16 %v2184_v17  ;;  %v2441_v27 = vunpack.c.h.bf16 %v2184_v17 }
 0x2e1   : > { %v4855_v42 = vadd.f32 %v4854_v23, %v4347_v38  ;;  %v2442_v36 = vunpack.c.l.bf16 %v2185_v4  ;;  %v2443_v3 = vunpack.c.l.bf16 %v2186_v9  ;;  %v2444_v5 = vunpack.c.h.bf16 %v2186_v9 }
 0x2e2   : > { %v2445_v41 = vunpack.c.l.bf16 %v2187_v54  ;;  %v4349_v43 = vmul.f32 %v7882_v13, %v2170_v63  ;;  %v4350_v51 = vmul.f32 %v7882_v13, %v2171_v8  ;;  %v5571_v47 = vmul.f32 %v7896_v21, %v2440_v58  ;;  %v1799_v8 = vld [vmem:[%s8849_s14 + $0x5fc] sm:$0xf] }
 0x2e3   : > { %v5572_v35 = vmul.f32 %v7896_v21, %v2441_v27  ;;  %v5573_v59 = vmul.f32 %v7896_v21, %v2442_v36  ;;  %v5574_v11 = vmul.f32 %v7897_v45, %v2443_v3  ;;  %v5575_v40 = vmul.f32 %v7897_v45, %v2444_v5  ;;  %v7409_v3 = vld [vmem:[%s8867_s17 + $0x168] sm:$0xff]  }
 0x2e4   : > { %v5576_v20 = vmul.f32 %v7897_v45, %v2445_v41  ;;  %v4801_v61 = vadd.f32 %v4800_v44, %v10759_v60  ;;  %v4814_v1 = vadd.f32 %v4813_v22, %v4348_v28  ;;  %v4835_v23 = vadd.f32 %v4834_v25, %v4349_v43  ;;  %v7410_v22 = vld [vmem:[%s8867_s17 + $0x170] sm:$0xff]  }
 0x2e5   : > { %v4856_v26 = vadd.f32 %v4855_v42, %v4350_v51  ;;  %v5955_v52 = vadd.f32 %v5574_v11, %v5571_v47  ;;  %v5976_v17 = vadd.f32 %v5575_v40, %v5572_v35  ;;  %v7892_v63 = vunpack.i.h.bf16 %v7890_v30 }
 0x2e6   : > { %v5997_v13 = vadd.f32 %v5576_v20, %v5573_v59  ;;  %v7891_v38 = vunpack.i.l.bf16 %v7890_v30  ;;  %v2178_v4 = vunpack.c.l.bf16 %v1796_v49  ;;  %v2179_v9 = vunpack.c.h.bf16 %v1796_v49  ;;  %v7408_v59 = vld [vmem:[%s8867_s17 + $0x160] sm:$0xff]  }
 0x2e7   : > { %v2180_v54 = vunpack.c.l.bf16 %v1797_v6  ;;  %v10812_v45 = vadd.f32 %v5955_v52, %v10686_v48  ;;  %v10815_v60 = vadd.f32 %v5976_v17, %v10688_v19  ;;  %v2181_v28 = vunpack.c.l.bf16 %v1798_v12 }
 0x2e8   : > { %v10818_v44 = vadd.f32 %v5997_v13, %v10690_v34  ;;  %v4760_v25 = vrot.slane %v10793_v39, 1  ;;  %v4781_v42 = vrot.slane %v10796_v15, 1  ;;  %v2182_v21 = vunpack.c.h.bf16 %v1798_v12  ;;  %v10837_v12 = vld [vmem:[%s8855_s13 + $0xa8] sm:$0xff] }
 0x2e9   : > { %v2183_v58 = vunpack.c.l.bf16 %v1799_v8  ;;  %v4802_v27 = vrot.slane %v4801_v61, 1  ;;  %v4815_v36 = vadd.f32 %v4814_v1, %v10648_v56  ;;  %v4836_v48 = vadd.f32 %v4835_v23, %v10654_v50 }
 0x2ea   : > { %v4857_v19 = vadd.f32 %v4856_v26, %v10656_v16  ;;  %v4357_v5 = vmul.f32 %v7891_v38, %v2178_v4  ;;  %v4358_v34 = vmul.f32 %v7891_v38, %v2179_v9  ;;  %v4359_v41 = vmul.f32 %v7891_v38, %v2180_v54  ;;  %v10845_v9 = vld [vmem:[%s8855_s13 + $0xb4] sm:$0xff] }
 0x2eb   : > { %v7232_v43 = vunpack.c.l.bf16 %v7410_v22  ;;  %v4360_v51 = vmul.f32 %v7892_v63, %v2181_v28  ;;  %v4816_v47 = vadd.f32 %v4815_v36, %v10659_v10  ;;  %v4837_v35 = vadd.f32 %v4836_v48, %v10662_v24 }
 0x2ec   : > { %v4858_v30 = vadd.f32 %v4857_v19, %v10675_v32  ;;  %v4361_v11 = vmul.f32 %v7892_v63, %v2182_v21  ;;  %v4362_v56 = vmul.f32 %v7892_v63, %v2183_v58  ;;  %v7233_v40 = vunpack.c.h.bf16 %v7410_v22  ;;  %v7930_v32 = vpop.permute.xlu2 %7929 }
 0x2ed   : > { %v7228_v50 = vunpack.c.l.bf16 %v7409_v3  ;;  %v4817_v20 = vadd.f32 %v4816_v47, %v4357_v5  ;;  %v4838_v16 = vadd.f32 %v4837_v35, %v4358_v34  ;;  %v7229_v6 = vunpack.c.h.bf16 %v7409_v3 }
 0x2ee   : > { %v4859_v49 = vadd.f32 %v4858_v30, %v4359_v41  ;;  %v12432_v1 = vunpack.c.l.bf16 %v10728_v53  ;;  %v8123_v10 = vpack.i.bf16 %v7233_v40, %v7232_v43  ;;  %v7224_v24 = vunpack.c.l.bf16 %v7408_v59  ;;  %v10842_v53 = vld [vmem:[%s8855_s13 + $0xb0] sm:$0xf]  ;;  %v7910_v43 = vpop.permute.xlu1 %7909  ;;  %v7905_v40 = vpop.permute.xlu0 %7904 }
 0x2ef   : > { %v7225_v26 = vunpack.c.h.bf16 %v7408_v59  ;;  %v4818_v52 = vadd.f32 %v4817_v20, %v4360_v51  ;;  %v4839_v17 = vadd.f32 %v4838_v16, %v4361_v11  ;;  %v8118_v63 = vpack.i.bf16 %v7229_v6, %v7228_v50  ;;  %v10863_v51 = vld [vmem:[%s8855_s13 + $0x48] sm:$0xff]  ;;  %v10875_v11 = vld [vmem:[%s8855_s13 + $0x54] sm:$0xff] }
 0x2f0   : > { %v10834_v23 = vmul.f32 %v10741_v7, %v12432_v1  ;;  %v4860_v13 = vadd.f32 %v4859_v49, %v4362_v56  ;;  %v4761_v8 = vadd.f32 %v4760_v25, %v10793_v39  ;;  %v4782_v38 = vadd.f32 %v4781_v42, %v10796_v15  ;;  %8124 = vperm.xlu2 %7592, %v8123_v10   ;;  %v10878_v56 = vld [vmem:[%s8855_s13 + $0x5c] sm:$0xf]  ;;  %v2192_v16 = vld [vmem:[%s8855_s13 + $0x30] sm:$0xff] }
 0x2f1   : > { %v4803_v4 = vadd.f32 %v4802_v27, %v4801_v61  ;;  %v8113_v7 = vpack.i.bf16 %v7225_v26, %v7224_v24  ;;  %v4819_v54 = vrot.slane %v4818_v52, 4  ;;  %v4840_v28 = vrot.slane %v4839_v17, 4  ;;  %8119 = vperm.xlu1 %7581, %v8118_v63   ;;  %v2193_v24 = vld [vmem:[%s8855_s13 + $0x38] sm:$0xf]  ;;  %v2194_v26 = vld [vmem:[%s8855_s13 + $0x3c] sm:$0xff] }
 0x2f2   : > { %v4861_v22 = vrot.slane %v4860_v13, 4  ;;  %v10847_v21 = vunpack.i.h.bf16 %v7930_v32  ;;  %v10849_v58 = vunpack.i.l.bf16 %v7930_v32  ;;  %v2482_v39 = vunpack.c.l.bf16 %v10837_v12  ;;  %v3336_v63 = vld [vmem:[#allocation2 + $0x10] sm:$0xff] }
 0x2f3   : > { %v2483_v15 = vunpack.c.h.bf16 %v10837_v12  ;;  %8114 = vperm.xlu0 %7570, %v8113_v7   ;;  %v4820_v61 = vadd.f32 %v4819_v54, %v4818_v52  ;;  %v4841_v25 = vadd.f32 %v4840_v28, %v4839_v17  ;;  %v2484_v27 = vunpack.c.l.bf16 %v10842_v53 }
 0x2f4   : > { %v4862_v42 = vadd.f32 %v4861_v22, %v4860_v13  ;;  %v2485_v36 = vunpack.c.l.bf16 %v10845_v9  ;;  %v2486_v48 = vunpack.c.h.bf16 %v10845_v9  ;;  %v4900_v19 = vsel %vm4899_vm4, %v10607_v37, %v10339_v0  ;;  %v10871_v37 = vld [vmem:[%s8855_s13 + $0x50] sm:$0xf]  ;;  %v2195_v22 = vld [vmem:[%s8855_s13 + $0x44] sm:$0xf] }
 0x2f5   : > { %v4821_v3 = vrot.slane %v4820_v61, 2  ;;  %v4842_v5 = vrot.slane %v4841_v25, 2  ;;  %v4909_v41 = vsel %vm4899_vm4, %v10610_v55, %v10343_v18  ;;  %v4902_v47 = vsel %vm4901_vm5, %v4761_v8, %v4900_v19  ;;  %v3337_v8 = vld [vmem:[#allocation2] sm:$0xff] }
 0x2f6   : > { %v4863_v34 = vrot.slane %v4862_v42, 2  ;;  %v4910_v35 = vsel %vm4901_vm5, %v4782_v38, %v4909_v41  ;;  %v4916_v0 = vsel %vm4899_vm4, %v10618_v62, %v10347_v57  ;;  %v10880_v50 = vunpack.i.h.bf16 %v7910_v43  ;;  %v3338_v38 = vld [vmem:[#allocation2 + $0x8] sm:$0xff] }
 0x2f7   : > { %v4822_v30 = vadd.f32 %v4821_v3, %v4820_v61  ;;  %v4843_v59 = vadd.f32 %v4842_v5, %v4841_v25  ;;  %v4917_v55 = vsel %vm4901_vm5, %v4803_v4, %v4916_v0  ;;  %v10882_v20 = vunpack.i.l.bf16 %v7910_v43 }
 0x2f8   : > { %v4864_v18 = vadd.f32 %v4863_v34, %v4862_v42  ;;  %v2458_v57 = vunpack.c.l.bf16 %v10863_v51  ;;  %v2459_v62 = vunpack.c.h.bf16 %v10863_v51  ;;  %v2460_v10 = vunpack.c.l.bf16 %v10871_v37 }
 0x2f9   : > { %v4823_v49 = vrot.slane %v4822_v30, 1  ;;  %v4844_v6 = vrot.slane %v4843_v59, 1  ;;  %v2461_v32 = vunpack.c.l.bf16 %v10875_v11  ;;  %v2462_v52 = vunpack.c.h.bf16 %v10875_v11 }
 0x2fa   : > { %v4865_v1 = vrot.slane %v4864_v18, 1  ;;  %v2463_v17 = vunpack.c.l.bf16 %v10878_v56  ;;  %v7907_v13 = vunpack.i.h.bf16 %v7905_v40  ;;  %v7906_v28 = vunpack.i.l.bf16 %v7905_v40  ;;  %v10942_v56 = vld [vmem:[%s8855_s13 + $0xfc] sm:$0xff] }
 0x2fb   : > { %v4824_v4 = vadd.f32 %v4823_v49, %v4822_v30  ;;  %v4845_v7 = vadd.f32 %v4844_v6, %v4843_v59  ;;  %v2452_v61 = vunpack.c.l.bf16 %v2192_v16  ;;  %v2453_v25 = vunpack.c.h.bf16 %v2192_v16  ;;  %v7413_v30 = vld [vmem:[%s8867_s17 + $0x188] sm:$0xff]   ;;  %v7412_v59 = vld [vmem:[%s8867_s17 + $0x180] sm:$0xff]   ;;  %v7411_v49 = vld [vmem:[%s8867_s17 + $0x178] sm:$0xff]  }
 0x2fc   : > { %v4866_v54 = vadd.f32 %v4865_v1, %v4864_v18  ;;  %v2454_v42 = vunpack.c.l.bf16 %v2193_v24  ;;  %v2455_v19 = vunpack.c.l.bf16 %v2194_v26  ;;  %v2456_v41 = vunpack.c.h.bf16 %v2194_v26  ;;  %v12433_v1 = vld [vmem:[#allocation43_spill] sm:$0xff] }
 0x2fd   : > { %v4904_v3 = vsel %vm4903_vm6, %v4824_v4, %v4902_v47  ;;  %v4911_v5 = vsel %vm4903_vm6, %v4845_v7, %v4910_v35  ;;  %v5589_v37 = vmul.f32 %v10882_v20, %v2458_v57  ;;  %v2457_v18 = vunpack.c.l.bf16 %v2195_v22 }
 0x2fe   : > { %v4918_v34 = vsel %vm4903_vm6, %v4866_v54, %v4917_v55  ;;  %v4922_v43 = vadd.f32 %v4904_v3, %v3336_v63  ;;  %v4923_v51 = vadd.f32 %v4911_v5, %v3337_v8  ;;  %v5583_v11 = vmul.f32 %v7906_v28, %v2452_v61  ;;  %v2215_v8 = vld [vmem:[%s8855_s13 + $0xbc] sm:$0xf] }
 0x2ff   : > { %v4924_v0 = vadd.f32 %v4918_v34, %v3338_v38  ;;  %v5584_v40 = vmul.f32 %v7906_v28, %v2453_v25  ;;  %v5585_v16 = vmul.f32 %v7906_v28, %v2454_v42  ;;  %v5586_v47 = vmul.f32 %v7907_v13, %v2455_v19 }
 0x300   : > { %4925 = vst [vmem:[#allocation2 + $0x10] sm:$0xff] %v4922_v43  ;;  %v5587_v6 = vmul.f32 %v7907_v13, %v2456_v41  ;;  %v5957_v35 = vadd.f32 %v10812_v45, %v10714_v46  ;;  %v5978_v55 = vadd.f32 %v10815_v60, %v10719_v31  ;;  %v5999_v57 = vadd.f32 %v10818_v44, %v12433_v1 }
 0x301   : > { %4926 = vst [vmem:[#allocation2] sm:$0xff] %v4923_v51  ;;  %v7244_v24 = vunpack.c.l.bf16 %v7413_v30  ;;  %v7245_v26 = vunpack.c.h.bf16 %v7413_v30  ;;  %v7240_v63 = vunpack.c.l.bf16 %v7412_v59  ;;  %v7241_v7 = vunpack.c.h.bf16 %v7412_v59  ;;  %v12436_v51 = vld [vmem:[#allocation45_spill] sm:$0xff]  ;;  %v7945_v30 = vpop.permute.xlu2 %7944 }
 0x302   : > { %4927 = vst [vmem:[#allocation2 + $0x8] sm:$0xff] %v4924_v0  ;;  %v5958_v38 = vadd.f32 %v5957_v35, %v5583_v11  ;;  %v5979_v4 = vadd.f32 %v5978_v55, %v5584_v40  ;;  %v7236_v54 = vunpack.c.l.bf16 %v7411_v49  ;;  %v5588_v28 = vmul.f32 %v7907_v13, %v2457_v18  ;;  %v10936_v18 = vld [vmem:[%s8855_s13 + $0xf0] sm:$0xff]  ;;  %v10939_v11 = vld [vmem:[%s8855_s13 + $0xf8] sm:$0xf]  ;;  %v10981_v35 = vld [vmem:[%s8855_s13 + $0xa4] sm:$0xf] }
 0x303   : > { %v6000_v22 = vadd.f32 %v5999_v57, %v5585_v16  ;;  %v8138_v61 = vpack.i.bf16 %v7245_v26, %v7244_v24  ;;  %v7237_v46 = vunpack.c.h.bf16 %v7411_v49  ;;  %v5590_v45 = vmul.f32 %v10882_v20, %v2459_v62  ;;  %v12434_v62 = vld [vmem:[#allocation44_spill] sm:$0xff]  ;;  %v7925_v16 = vpop.permute.xlu1 %7924  ;;  %v2208_v49 = vld [vmem:[%s8855_s13 + $0x90] sm:$0xff]  ;;  %v2204_v55 = vld [vmem:[%s8855_s13 + $0x78] sm:$0xff] }
 0x304   : > { %v5959_v31 = vadd.f32 %v5958_v38, %v5586_v47  ;;  %v5980_v60 = vadd.f32 %v5979_v4, %v5587_v6  ;;  %v8133_v25 = vpack.i.bf16 %v7241_v7, %v7240_v63  ;;  %v2487_v42 = vunpack.c.l.bf16 %v2215_v8  ;;  %v2205_v63 = vld [vmem:[%s8855_s13 + $0x80] sm:$0xf]  ;;  %v2206_v8 = vld [vmem:[%s8855_s13 + $0x84] sm:$0xff] }
 0x305   : > { %v5591_v44 = vmul.f32 %v10882_v20, %v2460_v10  ;;  %v6001_v19 = vadd.f32 %v6000_v22, %v5588_v28  ;;  %8139 = vperm.xlu2 %7592, %v8138_v61   ;;  %v8128_v3 = vpack.i.bf16 %v7237_v46, %v7236_v54  ;;  %v5592_v5 = vmul.f32 %v10880_v50, %v2461_v32  ;;  %v2207_v28 = vld [vmem:[%s8855_s13 + $0x8c] sm:$0xf] }
 0x306   : > { %v5593_v13 = vmul.f32 %v10880_v50, %v2462_v52  ;;  %v5960_v34 = vadd.f32 %v5959_v31, %v5589_v37  ;;  %v5981_v41 = vadd.f32 %v5980_v60, %v5590_v45  ;;  %8134 = vperm.xlu1 %7581, %v8133_v25   ;;  %v12435_v43 = vunpack.c.l.bf16 %v12434_v62 }
 0x307   : > { %v12437_v20 = vunpack.c.h.bf16 %v12434_v62  ;;  %v5594_v32 = vmul.f32 %v10880_v50, %v2463_v17  ;;  %v6002_v52 = vadd.f32 %v6001_v19, %v5591_v44  ;;  %8129 = vperm.xlu0 %7570, %v8128_v3   ;;  %v10928_v37 = vmul.f32 %v12436_v51, %v2469_v33 }
 0x308   : > { %v10915_v0 = vmul.f32 %v12436_v51, %v12435_v43  ;;  %v10933_v59 = vmul.f32 %v10849_v58, %v2482_v39  ;;  %v5961_v50 = vadd.f32 %v5960_v34, %v5592_v5  ;;  %v5982_v17 = vadd.f32 %v5981_v41, %v5593_v13  ;;  %v7416_v13 = vld [vmem:[%s8867_s17 + $0x1a0] sm:$0xff]   ;;  %v7415_v34 = vld [vmem:[%s8867_s17 + $0x198] sm:$0xff]  }
 0x309   : > { %v10920_v10 = vmul.f32 %v12436_v51, %v12437_v20  ;;  %v10947_v2 = vmul.f32 %v10849_v58, %v2483_v15  ;;  %v10952_v33 = vmul.f32 %v10849_v58, %v2484_v27  ;;  %v10957_v39 = vmul.f32 %v10847_v21, %v2485_v36  ;;  %v10973_v27 = vld [vmem:[%s8855_s13 + $0x98] sm:$0xf]  ;;  %v7920_v36 = vpop.permute.xlu0 %7919  ;;  %v7414_v20 = vld [vmem:[%s8867_s17 + $0x190] sm:$0xff]  }
 0x30a   : > { %v6003_v40 = vadd.f32 %v6002_v52, %v5594_v32  ;;  %v10963_v12 = vmul.f32 %v10847_v21, %v2486_v48  ;;  %v10966_v53 = vmul.f32 %v10847_v21, %v2487_v42  ;;  %v10968_v58 = vunpack.i.h.bf16 %v7945_v30  ;;  %v2210_v21 = vld [vmem:[%s8855_s13 + $0x9c] sm:$0xff] }
 0x30b   : > { %v10970_v15 = vunpack.i.l.bf16 %v7945_v30  ;;  %v2500_v47 = vunpack.c.l.bf16 %v10936_v18  ;;  %v2501_v6 = vunpack.c.h.bf16 %v10936_v18  ;;  %v2502_v9 = vunpack.c.l.bf16 %v10939_v11  ;;  %v7960_v30 = vpop.permute.xlu2 %7959  ;;  %v11031_v18 = vld [vmem:[%s8855_s13 + $0x144] sm:$0xff] }
 0x30c   : > { %v2503_v48 = vunpack.c.l.bf16 %v10942_v56  ;;  %v2504_v1 = vunpack.c.h.bf16 %v10942_v56  ;;  %v10985_v57 = vunpack.i.h.bf16 %v7925_v16  ;;  %v7926_v24 = vunpack.i.l.bf16 %v7925_v16 }
 0x30d   : > { %v2476_v26 = vunpack.c.l.bf16 %v2208_v49  ;;  %v2477_v38 = vunpack.c.h.bf16 %v2208_v49  ;;  %v2478_v4 = vunpack.c.l.bf16 %v10973_v27  ;;  %v7922_v7 = vunpack.i.h.bf16 %v7920_v36 }
 0x30e   : > { %v7921_v54 = vunpack.i.l.bf16 %v7920_v36  ;;  %v2479_v22 = vunpack.c.l.bf16 %v2210_v21  ;;  %v2480_v61 = vunpack.c.h.bf16 %v2210_v21  ;;  %v2481_v46 = vunpack.c.l.bf16 %v10981_v35 }
 0x30f   : > { %v2470_v45 = vunpack.c.l.bf16 %v2204_v55  ;;  %v2471_v31 = vunpack.c.h.bf16 %v2204_v55  ;;  %v2472_v60 = vunpack.c.l.bf16 %v2205_v63  ;;  %v2473_v25 = vunpack.c.l.bf16 %v2206_v8 }
 0x310   : > { %v2474_v42 = vunpack.c.h.bf16 %v2206_v8  ;;  %v5607_v44 = vmul.f32 %v7926_v24, %v2476_v26  ;;  %v2475_v19 = vunpack.c.l.bf16 %v2207_v28  ;;  %v5962_v3 = vadd.f32 %v5961_v50, %v10785_v14 }
 0x311   : > { %v5983_v5 = vadd.f32 %v5982_v17, %v10790_v29  ;;  %v5601_v41 = vmul.f32 %v7921_v54, %v2470_v45  ;;  %v5602_v62 = vmul.f32 %v7921_v54, %v2471_v31  ;;  %v5603_v43 = vmul.f32 %v7921_v54, %v2472_v60  ;;  %v2227_v17 = vld [vmem:[%s8855_s13 + $0x104] sm:$0xf] }
 0x312   : > { %v5604_v51 = vmul.f32 %v7922_v7, %v2473_v25  ;;  %v5605_v32 = vmul.f32 %v7922_v7, %v2474_v42  ;;  %v5963_v52 = vadd.f32 %v5962_v3, %v10915_v0  ;;  %v6004_v49 = vadd.f32 %v6003_v40, %v10834_v23 }
 0x313   : > { %v5984_v16 = vadd.f32 %v5983_v5, %v10920_v10  ;;  %v7256_v27 = vunpack.c.l.bf16 %v7416_v13  ;;  %v7257_v14 = vunpack.c.h.bf16 %v7416_v13  ;;  %v7252_v50 = vunpack.c.l.bf16 %v7415_v34  ;;  %v11047_v5 = vld [vmem:[%s8855_s13 + $0x14c] sm:$0xf]  ;;  %v11051_v13 = vld [vmem:[%s8855_s13 + $0x180] sm:$0xff] }
 0x314   : > { %v7253_v29 = vunpack.c.h.bf16 %v7415_v34  ;;  %v5964_v36 = vadd.f32 %v5963_v52, %v5601_v41  ;;  %v6005_v35 = vadd.f32 %v6004_v49, %v10928_v37  ;;  %v7248_v55 = vunpack.c.l.bf16 %v7414_v20  ;;  %v7935_v49 = vpop.permute.xlu0 %7934 }
 0x315   : > { %v5985_v21 = vadd.f32 %v5984_v16, %v5602_v62  ;;  %v5608_v26 = vmul.f32 %v7926_v24, %v2477_v38  ;;  %v8153_v63 = vpack.i.bf16 %v7257_v14, %v7256_v27  ;;  %v7249_v54 = vunpack.c.h.bf16 %v7414_v20  ;;  %v11063_v20 = vld [vmem:[%s8855_s13 + $0x18c] sm:$0xff]  ;;  %v7940_v16 = vpop.permute.xlu1 %7939 }
 0x316   : > { %v8148_v8 = vpack.i.bf16 %v7253_v29, %v7252_v50  ;;  %v5606_v28 = vmul.f32 %v7922_v7, %v2475_v19  ;;  %v5965_v0 = vadd.f32 %v5964_v36, %v5604_v51  ;;  %v6006_v10 = vadd.f32 %v6005_v35, %v5603_v43  ;;  %v11060_v51 = vld [vmem:[%s8855_s13 + $0x188] sm:$0xf]  ;;  %v2220_v29 = vld [vmem:[%s8855_s13 + $0xd8] sm:$0xff] }
 0x317   : > { %v5986_v45 = vadd.f32 %v5985_v21, %v5605_v32  ;;  %v2505_v23 = vunpack.c.l.bf16 %v2227_v17  ;;  %v5609_v40 = vmul.f32 %v7926_v24, %v2478_v4  ;;  %v5610_v31 = vmul.f32 %v10985_v57, %v2479_v22  ;;  %8154 = vperm.xlu2 %7592, %v8153_v63   ;;  %v2216_v17 = vld [vmem:[%s8855_s13 + $0xc0] sm:$0xff]  ;;  %v2217_v35 = vld [vmem:[%s8855_s13 + $0xc8] sm:$0xf] }
 0x318   : > { %8149 = vperm.xlu1 %7581, %v8148_v8   ;;  %v8143_v60 = vpack.i.bf16 %v7249_v54, %v7248_v55  ;;  %v5611_v37 = vmul.f32 %v10985_v57, %v2480_v61  ;;  %v5966_v38 = vadd.f32 %v5965_v0, %v5607_v44  ;;  %v6007_v42 = vadd.f32 %v6006_v10, %v5606_v28  ;;  %v11025_v61 = vld [vmem:[%s8855_s13 + $0x138] sm:$0xff]  ;;  %v2218_v55 = vld [vmem:[%s8855_s13 + $0xcc] sm:$0xff]  ;;  %v2221_v8 = vld [vmem:[%s8855_s13 + $0xe0] sm:$0xf] }
 0x319   : > { %v5987_v25 = vadd.f32 %v5986_v45, %v5608_v26  ;;  %v11007_v7 = vmul.f32 %v10970_v15, %v2500_v47  ;;  %v11012_v24 = vmul.f32 %v10970_v15, %v2501_v6  ;;  %v11017_v4 = vmul.f32 %v10970_v15, %v2502_v9  ;;  %v11028_v47 = vld [vmem:[%s8855_s13 + $0x140] sm:$0xf]  ;;  %v2222_v54 = vld [vmem:[%s8855_s13 + $0xe4] sm:$0xff]  ;;  %v2219_v45 = vld [vmem:[%s8855_s13 + $0xd4] sm:$0xf] }
 0x31a   : > { %v11022_v22 = vmul.f32 %v10968_v58, %v2503_v48  ;;  %8144 = vperm.xlu0 %7570, %v8143_v60   ;;  %v5612_v6 = vmul.f32 %v10985_v57, %v2481_v46  ;;  %v5967_v44 = vadd.f32 %v5966_v38, %v5610_v31  ;;  %v6008_v19 = vadd.f32 %v6007_v42, %v5609_v40  ;;  %v7975_v46 = vpop.permute.xlu2 %7974  ;;  %v2223_v60 = vld [vmem:[%s8855_s13 + $0xec] sm:$0xf] }
 0x31b   : > { %v5988_v11 = vadd.f32 %v5987_v25, %v5611_v37  ;;  %v11037_v15 = vmul.f32 %v10968_v58, %v2504_v1  ;;  %v11040_v9 = vmul.f32 %v10968_v58, %v2505_v23  ;;  %v11042_v48 = vunpack.i.h.bf16 %v7960_v30 }
 0x31c   : > { %v11044_v3 = vunpack.i.l.bf16 %v7960_v30  ;;  %v2518_v57 = vunpack.c.l.bf16 %v11025_v61  ;;  %v5968_v56 = vadd.f32 %v5967_v44, %v10933_v59  ;;  %v6009_v34 = vadd.f32 %v6008_v19, %v5612_v6  ;;  %v11067_v59 = vld [vmem:[%s8855_s13 + $0x194] sm:$0xf]  ;;  %v7419_v19 = vld [vmem:[%s8867_s17 + $0x1b8] sm:$0xff]  }
 0x31d   : > { %v5989_v1 = vadd.f32 %v5988_v11, %v10947_v2  ;;  %v2519_v58 = vunpack.c.h.bf16 %v11025_v61  ;;  %v2520_v41 = vunpack.c.l.bf16 %v11028_v47  ;;  %v2521_v62 = vunpack.c.l.bf16 %v11031_v18 }
 0x31e   : > { %v2522_v43 = vunpack.c.h.bf16 %v11031_v18  ;;  %v11070_v2 = vadd.f32 %v5968_v56, %v10957_v39  ;;  %v6010_v52 = vadd.f32 %v6009_v34, %v10952_v33  ;;  %v11076_v27 = vunpack.i.h.bf16 %v7975_v46  ;;  %v7950_v18 = vpop.permute.xlu0 %7949 }
 0x31f   : > { %v11073_v32 = vadd.f32 %v5989_v1, %v10963_v12  ;;  %v11078_v14 = vunpack.i.l.bf16 %v7975_v46  ;;  %v2536_v50 = vunpack.c.l.bf16 %v11051_v13  ;;  %v2537_v39 = vunpack.c.h.bf16 %v11051_v13  ;;  %v7417_v12 = vld [vmem:[%s8867_s17 + $0x1a8] sm:$0xff]  }
 0x320   : > { %v2539_v36 = vunpack.c.l.bf16 %v11063_v20  ;;  %v2540_v33 = vunpack.c.h.bf16 %v11063_v20  ;;  %v11088_v21 = vadd.f32 %v6010_v52, %v10966_v53  ;;  %v7942_v63 = vunpack.i.h.bf16 %v7940_v16 }
 0x321   : > { %v7937_v28 = vunpack.i.h.bf16 %v7935_v49  ;;  %v7936_v0 = vunpack.i.l.bf16 %v7935_v49  ;;  %v7941_v10 = vunpack.i.l.bf16 %v7940_v16  ;;  %v2494_v23 = vunpack.c.l.bf16 %v2220_v29  ;;  %v7418_v49 = vld [vmem:[%s8867_s17 + $0x1b0] sm:$0xff]  }
 0x322   : > { %v2495_v40 = vunpack.c.h.bf16 %v2220_v29  ;;  %v2488_v31 = vunpack.c.l.bf16 %v2216_v17  ;;  %v2489_v37 = vunpack.c.h.bf16 %v2216_v17  ;;  %v2490_v38 = vunpack.c.l.bf16 %v2217_v35 }
 0x323   : > { %v2491_v53 = vunpack.c.l.bf16 %v2218_v55  ;;  %v2492_v25 = vunpack.c.h.bf16 %v2218_v55  ;;  %v2496_v42 = vunpack.c.l.bf16 %v2221_v8  ;;  %v2497_v6 = vunpack.c.l.bf16 %v2222_v54 }
 0x324   : > { %v2498_v44 = vunpack.c.h.bf16 %v2222_v54  ;;  %v2493_v11 = vunpack.c.l.bf16 %v2219_v45  ;;  %v5619_v46 = vmul.f32 %v7936_v0, %v2488_v31  ;;  %v5620_v13 = vmul.f32 %v7936_v0, %v2489_v37 }
 0x325   : > { %v5621_v56 = vmul.f32 %v7936_v0, %v2490_v38  ;;  %v5622_v1 = vmul.f32 %v7937_v28, %v2491_v53  ;;  %v2499_v34 = vunpack.c.l.bf16 %v2223_v60  ;;  %v5625_v20 = vmul.f32 %v7941_v10, %v2494_v23 }
 0x326   : > { %v5626_v52 = vmul.f32 %v7941_v10, %v2495_v40  ;;  %v5623_v16 = vmul.f32 %v7937_v28, %v2492_v25  ;;  %v5624_v29 = vmul.f32 %v7937_v28, %v2493_v11  ;;  %v7268_v35 = vunpack.c.l.bf16 %v7419_v19 }
 0x327   : > { %v6018_v17 = vadd.f32 %v5622_v1, %v5619_v46  ;;  %v7269_v26 = vunpack.c.h.bf16 %v7419_v19  ;;  %v5970_v55 = vrot.slane %v11070_v2, 4  ;;  %v5627_v8 = vmul.f32 %v7941_v10, %v2496_v42 }
 0x328   : > { %v5628_v54 = vmul.f32 %v7942_v63, %v2497_v6  ;;  %v6039_v45 = vadd.f32 %v5623_v16, %v5620_v13  ;;  %v6060_v37 = vadd.f32 %v5624_v29, %v5621_v56  ;;  %v7264_v0 = vunpack.c.l.bf16 %v7418_v49  ;;  %v2232_v56 = vld [vmem:[%s8855_s13 + $0x120] sm:$0xff]  ;;  %v2230_v29 = vld [vmem:[%s8855_s13 + $0x114] sm:$0xff] }
 0x329   : > { %v6019_v31 = vadd.f32 %v6018_v17, %v5625_v20  ;;  %v8168_v30 = vpack.i.bf16 %v7269_v26, %v7268_v35  ;;  %v5991_v60 = vrot.slane %v11073_v32, 4  ;;  %v5629_v23 = vmul.f32 %v7942_v63, %v2498_v44  ;;  %v11168_v20 = vld [vmem:[%s8855_s13 + $0x128] sm:$0xf] }
 0x32a   : > { %v5630_v40 = vmul.f32 %v7942_v63, %v2499_v34  ;;  %v6040_v38 = vadd.f32 %v6039_v45, %v5626_v52  ;;  %v6061_v28 = vadd.f32 %v6060_v37, %v5627_v8  ;;  %v7265_v25 = vunpack.c.h.bf16 %v7418_v49  ;;  %v2228_v49 = vld [vmem:[%s8855_s13 + $0x108] sm:$0xff] }
 0x32b   : > { %v6020_v53 = vadd.f32 %v6019_v31, %v5628_v54  ;;  %8169 = vperm.xlu2 %7592, %v8168_v30   ;;  %v7260_v11 = vunpack.c.l.bf16 %v7417_v12  ;;  %v5667_v10 = vmul.f32 %v11078_v14, %v2536_v50  ;;  %v5668_v42 = vmul.f32 %v11078_v14, %v2537_v39  ;;  %v11119_v39 = vpop.permute.xlu2 %7989 }
 0x32c   : > { %v6041_v6 = vadd.f32 %v6040_v38, %v5629_v23  ;;  %v7261_v19 = vunpack.c.h.bf16 %v7417_v12  ;;  %v5670_v26 = vmul.f32 %v11076_v27, %v2539_v36  ;;  %v5671_v46 = vmul.f32 %v11076_v27, %v2540_v33  ;;  %v11122_v12 = vld [vmem:[%s8855_s13 + $0x1c8] sm:$0xff] }
 0x32d   : > { %v6062_v44 = vadd.f32 %v6061_v28, %v5630_v40  ;;  %v8163_v63 = vpack.i.bf16 %v7265_v25, %v7264_v0  ;;  %v11109_v13 = vmul.f32 %v11044_v3, %v2518_v57  ;;  %v11114_v30 = vmul.f32 %v11044_v3, %v2519_v58  ;;  %v2229_v0 = vld [vmem:[%s8855_s13 + $0x110] sm:$0xf] }
 0x32e   : > { %v11117_v50 = vadd.f32 %v5970_v55, %v11070_v2  ;;  %v8158_v36 = vpack.i.bf16 %v7261_v19, %v7260_v11  ;;  %v11127_v33 = vmul.f32 %v11044_v3, %v2520_v41  ;;  %v11132_v61 = vmul.f32 %v11042_v48, %v2521_v62  ;;  %v7955_v2 = vpop.permute.xlu1 %7954  ;;  %v7421_v19 = vld [vmem:[%s8867_s17 + $0x1c8] sm:$0xff]  }
 0x32f   : > { %v11135_v57 = vadd.f32 %v5991_v60, %v11073_v32  ;;  %v6012_v58 = vrot.slane %v11088_v21, 4  ;;  %8164 = vperm.xlu1 %7581, %v8163_v63   ;;  %v11142_v47 = vmul.f32 %v11042_v48, %v2522_v43  ;;  %v12438_v3 = vunpack.c.l.bf16 %v11047_v5  ;;  %v2231_v60 = vld [vmem:[%s8855_s13 + $0x11c] sm:$0xf] }
 0x330   : > { %v12439_v62 = vunpack.c.l.bf16 %v11060_v51  ;;  %v12440_v1 = vunpack.c.l.bf16 %v11067_v59  ;;  %8159 = vperm.xlu0 %7570, %v8158_v36   ;;  %v11159_v43 = vadd.f32 %v5670_v26, %v5667_v10  ;;  %v11161_v5 = vadd.f32 %v5671_v46, %v5668_v42  ;;  %v7422_v42 = vld [vmem:[%s8867_s17 + $0x1d0] sm:$0xff]  }
 0x331   : > { %v11147_v41 = vmul.f32 %v11042_v48, %v12438_v3  ;;  %v11164_v48 = vunpack.i.l.bf16 %v11119_v39  ;;  %v2554_v51 = vunpack.c.l.bf16 %v11122_v12  ;;  %v5972_v59 = vrot.slane %v11117_v50, 2 }
 0x332   : > { %v11152_v32 = vmul.f32 %v11078_v14, %v12439_v62  ;;  %v11157_v34 = vmul.f32 %v11076_v27, %v12440_v1  ;;  %v2234_v14 = vld [vmem:[%s8855_s13 + $0x12c] sm:$0xff]  ;;  %v2555_v27 = vunpack.c.h.bf16 %v11122_v12  ;;  %v11173_v52 = vunpack.i.l.bf16 %v7955_v2 }
 0x333   : > { %v2512_v16 = vunpack.c.l.bf16 %v2232_v56  ;;  %v5993_v17 = vrot.slane %v11135_v57, 2  ;;  %v11179_v35 = vadd.f32 %v6012_v58, %v11088_v21  ;;  %v11181_v55 = vunpack.i.h.bf16 %v7955_v2  ;;  %v7420_v58 = vld [vmem:[%s8867_s17 + $0x1c0] sm:$0xff]  }
 0x334   : > { %v7951_v8 = vunpack.i.l.bf16 %v7950_v18  ;;  %v2513_v54 = vunpack.c.h.bf16 %v2232_v56  ;;  %v2514_v45 = vunpack.c.l.bf16 %v11168_v20  ;;  %v2515_v31 = vunpack.c.l.bf16 %v2234_v14 }
 0x335   : > { %v7952_v37 = vunpack.i.h.bf16 %v7950_v18  ;;  %v2516_v23 = vunpack.c.h.bf16 %v2234_v14  ;;  %v2506_v40 = vunpack.c.l.bf16 %v2228_v49  ;;  %v2507_v38 = vunpack.c.h.bf16 %v2228_v49 }
 0x336   : > { %v2509_v28 = vunpack.c.l.bf16 %v2230_v29  ;;  %v5643_v21 = vmul.f32 %v11173_v52, %v2512_v16  ;;  %v2510_v25 = vunpack.c.h.bf16 %v2230_v29  ;;  %v6021_v11 = vadd.f32 %v6020_v53, %v11007_v7 }
 0x337   : > { %v6042_v10 = vadd.f32 %v6041_v6, %v11012_v24  ;;  %v2508_v26 = vunpack.c.l.bf16 %v2229_v0  ;;  %v2511_v46 = vunpack.c.l.bf16 %v2231_v60  ;;  %v5637_v63 = vmul.f32 %v7951_v8, %v2506_v40  ;;  %v2235_v24 = vld [vmem:[%s8855_s13 + $0x134] sm:$0xf] }
 0x338   : > { %v5638_v36 = vmul.f32 %v7951_v8, %v2507_v38  ;;  %v5640_v2 = vmul.f32 %v7952_v37, %v2509_v28  ;;  %v5641_v56 = vmul.f32 %v7952_v37, %v2510_v25  ;;  %v6022_v3 = vadd.f32 %v6021_v11, %v11022_v22  ;;  %v11199_v11 = vld [vmem:[%s8855_s13 + $0x1d0] sm:$0xf] }
 0x339   : > { %v6043_v62 = vadd.f32 %v6042_v10, %v11037_v15  ;;  %v6063_v1 = vadd.f32 %v6062_v44, %v11017_v4  ;;  %v7280_v18 = vunpack.c.l.bf16 %v7422_v42  ;;  %v7281_v7 = vunpack.c.h.bf16 %v7422_v42  ;;  %v11202_v10 = vld [vmem:[%s8855_s13 + $0x1d4] sm:$0xff] }
 0x33a   : > { %v7276_v53 = vunpack.c.l.bf16 %v7421_v19  ;;  %v6023_v6 = vadd.f32 %v6022_v3, %v5637_v63  ;;  %v7277_v14 = vunpack.c.h.bf16 %v7421_v19  ;;  %v7272_v16 = vunpack.c.l.bf16 %v7420_v58  ;;  %v11243_v3 = vld [vmem:[%s8855_s13 + $0x174] sm:$0xff] }
 0x33b   : > { %v6044_v20 = vadd.f32 %v6043_v62, %v5638_v36  ;;  %v5639_v49 = vmul.f32 %v7951_v8, %v2508_v26  ;;  %v6064_v29 = vadd.f32 %v6063_v1, %v11040_v9  ;;  %v8183_v0 = vpack.i.bf16 %v7281_v7, %v7280_v18  ;;  %v11213_v26 = vld [vmem:[%s8855_s13 + $0x1dc] sm:$0xf]  ;;  %v7965_v62 = vpop.permute.xlu0 %7964  ;;  %v2240_v7 = vld [vmem:[%s8855_s13 + $0x150] sm:$0xff] }
 0x33c   : > { %v7273_v60 = vunpack.c.h.bf16 %v7420_v58  ;;  %v5644_v22 = vmul.f32 %v11173_v52, %v2513_v54  ;;  %v6024_v15 = vadd.f32 %v6023_v6, %v5640_v2  ;;  %v8178_v4 = vpack.i.bf16 %v7277_v14, %v7276_v53  ;;  %v7970_v58 = vpop.permute.xlu1 %7969  ;;  %v2244_v2 = vld [vmem:[%s8855_s13 + $0x168] sm:$0xff]  ;;  %v11259_v6 = vld [vmem:[%s8855_s13 + $0x17c] sm:$0xf] }
 0x33d   : > { %v6045_v40 = vadd.f32 %v6044_v20, %v5641_v56  ;;  %v2517_v44 = vunpack.c.l.bf16 %v2235_v24  ;;  %v5642_v38 = vmul.f32 %v7952_v37, %v2511_v46  ;;  %v6065_v28 = vadd.f32 %v6064_v29, %v5639_v49  ;;  %8184 = vperm.xlu2 %7592, %v8183_v0   ;;  %v2243_v29 = vld [vmem:[%s8855_s13 + $0x164] sm:$0xf] }
 0x33e   : > { %v8173_v25 = vpack.i.bf16 %v7273_v60, %v7272_v16  ;;  %v5646_v8 = vmul.f32 %v11181_v55, %v2515_v31  ;;  %v5647_v9 = vmul.f32 %v11181_v55, %v2516_v23  ;;  %v6025_v42 = vadd.f32 %v6024_v15, %v5643_v21  ;;  %8179 = vperm.xlu1 %7581, %v8178_v4   ;;  %v2242_v16 = vld [vmem:[%s8855_s13 + $0x15c] sm:$0xff] }
 0x33f   : > { %v6046_v19 = vadd.f32 %v6045_v40, %v5644_v22  ;;  %v11209_v54 = vadd.f32 %v5972_v59, %v11117_v50  ;;  %v6014_v37 = vrot.slane %v11179_v35, 2  ;;  %v5645_v46 = vmul.f32 %v11173_v52, %v2514_v45 }
 0x340   : > { %v6066_v63 = vadd.f32 %v6065_v28, %v5642_v38  ;;  %8174 = vperm.xlu0 %7570, %v8173_v25   ;;  %v11218_v31 = vadd.f32 %v11157_v34, %v11152_v32  ;;  %v11221_v23 = vunpack.i.h.bf16 %v11119_v39  ;;  %v6026_v21 = vadd.f32 %v6025_v42, %v5646_v8  ;;  %v7425_v28 = vld [vmem:[%s8867_s17 + $0x1e8] sm:$0xff]  }
 0x341   : > { %v6047_v50 = vadd.f32 %v6046_v19, %v5647_v9  ;;  %v2556_v59 = vunpack.c.l.bf16 %v11199_v11  ;;  %v2557_v36 = vunpack.c.l.bf16 %v11202_v10  ;;  %v5648_v52 = vmul.f32 %v11181_v55, %v2517_v44  ;;  %v11240_v55 = vld [vmem:[%s8855_s13 + $0x170] sm:$0xf]  ;;  %v7424_v19 = vld [vmem:[%s8867_s17 + $0x1e0] sm:$0xff]  }
 0x342   : > { %v6067_v45 = vadd.f32 %v6066_v63, %v5645_v46  ;;  %v2558_v32 = vunpack.c.h.bf16 %v11202_v10  ;;  %v2559_v34 = vunpack.c.l.bf16 %v11213_v26  ;;  %v11232_v39 = vmul.f32 %v11164_v48, %v2554_v51  ;;  %v8005_v46 = vpop.permute.xlu2 %8004  ;;  %v11325_v10 = vld [vmem:[%s8855_s13 + $0x258] sm:$0xff] }
 0x343   : > { %v11237_v56 = vmul.f32 %v11164_v48, %v2555_v27  ;;  %v5974_v1 = vrot.slane %v11209_v54, 1  ;;  %v11249_v18 = vadd.f32 %v5993_v17, %v11135_v57  ;;  %v11252_v51 = vadd.f32 %v6014_v37, %v11179_v35  ;;  %v2241_v27 = vld [vmem:[%s8855_s13 + $0x158] sm:$0xf] }
 0x344   : > { %v6068_v12 = vadd.f32 %v6067_v45, %v5648_v52  ;;  %v11256_v53 = vunpack.i.h.bf16 %v7970_v58  ;;  %v7971_v24 = vunpack.i.l.bf16 %v7970_v58  ;;  %v2530_v20 = vunpack.c.l.bf16 %v2244_v2  ;;  %v7423_v37 = vld [vmem:[%s8867_s17 + $0x1d8] sm:$0xff]   ;;  %v7985_v26 = vpop.permute.xlu1 %7984 }
 0x345   : > { %v2531_v14 = vunpack.c.h.bf16 %v2244_v2  ;;  %v2532_v49 = vunpack.c.l.bf16 %v11240_v55  ;;  %v2533_v57 = vunpack.c.l.bf16 %v11243_v3  ;;  %v7967_v17 = vunpack.i.h.bf16 %v7965_v62 }
 0x346   : > { %v7966_v35 = vunpack.i.l.bf16 %v7965_v62  ;;  %v2534_v0 = vunpack.c.h.bf16 %v11243_v3  ;;  %v2524_v60 = vunpack.c.l.bf16 %v2240_v7  ;;  %v2525_v22 = vunpack.c.h.bf16 %v2240_v7 }
 0x347   : > { %v2526_v15 = vunpack.c.l.bf16 %v2241_v27  ;;  %v2535_v40 = vunpack.c.l.bf16 %v11259_v6  ;;  %v2527_v4 = vunpack.c.l.bf16 %v2242_v16  ;;  %v2528_v44 = vunpack.c.h.bf16 %v2242_v16 }
 0x348   : > { %v6027_v38 = vadd.f32 %v6026_v21, %v11109_v13  ;;  %v2529_v25 = vunpack.c.l.bf16 %v2243_v29  ;;  %v5655_v8 = vmul.f32 %v7966_v35, %v2524_v60  ;;  %v5656_v9 = vmul.f32 %v7966_v35, %v2525_v22  ;;  %v2272_v22 = vld [vmem:[%s8855_s13 + $0x210] sm:$0xff] }
 0x349   : > { %v6048_v42 = vadd.f32 %v6047_v50, %v11114_v30  ;;  %v5657_v63 = vmul.f32 %v7966_v35, %v2526_v15  ;;  %v5658_v52 = vmul.f32 %v7967_v17, %v2527_v4  ;;  %v5659_v45 = vmul.f32 %v7967_v17, %v2528_v44 }
 0x34a   : > { %v6028_v58 = vadd.f32 %v6027_v38, %v11132_v61  ;;  %v6069_v55 = vadd.f32 %v6068_v12, %v11127_v33  ;;  %v7292_v13 = vunpack.c.l.bf16 %v7425_v28  ;;  %v7293_v21 = vunpack.c.h.bf16 %v7425_v28 }
 0x34b   : > { %v6049_v2 = vadd.f32 %v6048_v42, %v11142_v47  ;;  %v7288_v62 = vunpack.c.l.bf16 %v7424_v19  ;;  %v7289_v7 = vunpack.c.h.bf16 %v7424_v19  ;;  %v7284_v27 = vunpack.c.l.bf16 %v7423_v37  ;;  %v11292_v19 = vld [vmem:[%s8855_s13 + $0x21c] sm:$0xff] }
 0x34c   : > { %v6029_v3 = vadd.f32 %v6028_v58, %v5655_v8  ;;  %v6070_v50 = vadd.f32 %v6069_v55, %v11147_v41  ;;  %v8198_v6 = vpack.i.bf16 %v7293_v21, %v7292_v13  ;;  %v7285_v16 = vunpack.c.h.bf16 %v7423_v37  ;;  %v2257_v55 = vld [vmem:[%s8855_s13 + $0x1b8] sm:$0xf]  ;;  %v2258_v13 = vld [vmem:[%s8855_s13 + $0x1bc] sm:$0xff]  ;;  %v7980_v21 = vpop.permute.xlu0 %7979 }
 0x34d   : > { %v6050_v30 = vadd.f32 %v6049_v2, %v5656_v9  ;;  %v5661_v35 = vmul.f32 %v7971_v24, %v2530_v20  ;;  %v5662_v29 = vmul.f32 %v7971_v24, %v2531_v14  ;;  %v8193_v61 = vpack.i.bf16 %v7289_v7, %v7288_v62  ;;  %v11362_v7 = vld [vmem:[%s8855_s13 + $0x264] sm:$0xff] }
 0x34e   : > { %v6030_v60 = vadd.f32 %v6029_v3, %v5658_v52  ;;  %v5660_v47 = vmul.f32 %v7967_v17, %v2529_v25  ;;  %v6071_v4 = vadd.f32 %v6070_v50, %v5657_v63  ;;  %8199 = vperm.xlu2 %7592, %v8198_v6   ;;  %v8188_v33 = vpack.i.bf16 %v7285_v16, %v7284_v27  ;;  %v2252_v3 = vld [vmem:[%s8855_s13 + $0x198] sm:$0xff]  ;;  %v2253_v50 = vld [vmem:[%s8855_s13 + $0x1a0] sm:$0xf] }
 0x34f   : > { %v6051_v15 = vadd.f32 %v6050_v30, %v5659_v45  ;;  %v5995_v12 = vrot.slane %v11249_v18, 1  ;;  %v6016_v44 = vrot.slane %v11252_v51, 1  ;;  %v5664_v41 = vmul.f32 %v11256_v53, %v2533_v57  ;;  %8194 = vperm.xlu1 %7581, %v8193_v61   ;;  %v11289_v57 = vld [vmem:[%s8855_s13 + $0x218] sm:$0xf]  ;;  %v2256_v45 = vld [vmem:[%s8855_s13 + $0x1b0] sm:$0xff] }
 0x350   : > { %v6031_v38 = vadd.f32 %v6030_v60, %v5661_v35  ;;  %v5663_v20 = vmul.f32 %v7971_v24, %v2532_v49  ;;  %v5665_v14 = vmul.f32 %v11256_v53, %v2534_v0  ;;  %v6072_v8 = vadd.f32 %v6071_v4, %v5660_v47  ;;  %8189 = vperm.xlu0 %7570, %v8188_v33   ;;  %v2254_v60 = vld [vmem:[%s8855_s13 + $0x1a4] sm:$0xff]  ;;  %v2255_v61 = vld [vmem:[%s8855_s13 + $0x1ac] sm:$0xf] }
 0x351   : > { %v6052_v28 = vadd.f32 %v6051_v15, %v5662_v29  ;;  %v11284_v17 = vmul.f32 %v11164_v48, %v2556_v59  ;;  %v11286_v25 = vunpack.i.l.bf16 %v8005_v46  ;;  %v2572_v9 = vunpack.c.l.bf16 %v2272_v22 }
 0x352   : > { %v6032_v42 = vadd.f32 %v6031_v38, %v5664_v41  ;;  %v2573_v24 = vunpack.c.h.bf16 %v2272_v22  ;;  %v5666_v49 = vmul.f32 %v11256_v53, %v2535_v40  ;;  %v6073_v37 = vadd.f32 %v6072_v8, %v5663_v20  ;;  %v11316_v40 = vld [vmem:[%s8855_s13 + $0x224] sm:$0xf] }
 0x353   : > { %v6053_v0 = vadd.f32 %v6052_v28, %v5665_v14  ;;  %v11298_v11 = vadd.f32 %v5974_v1, %v11209_v54  ;;  %v11303_v48 = vmul.f32 %v11221_v23, %v2557_v36  ;;  %v11308_v59 = vmul.f32 %v11221_v23, %v2558_v32  ;;  %v8020_v54 = vpop.permute.xlu2 %8019  ;;  %v2259_v22 = vld [vmem:[%s8855_s13 + $0x1c4] sm:$0xf] }
 0x354   : > { %v11313_v53 = vmul.f32 %v11221_v23, %v2559_v34  ;;  %v11319_v1 = vadd.f32 %v5995_v12, %v11249_v18  ;;  %v11322_v36 = vadd.f32 %v6016_v44, %v11252_v51  ;;  %v6033_v32 = vrot.slane %v6032_v42, 4 }
 0x355   : > { %v11327_v63 = vadd.f32 %v6073_v37, %v5666_v49  ;;  %v11329_v23 = vunpack.i.h.bf16 %v8005_v46  ;;  %v2574_v34 = vunpack.c.l.bf16 %v11289_v57  ;;  %v2575_v52 = vunpack.c.l.bf16 %v11292_v19  ;;  %v7427_v37 = vld [vmem:[%s8867_s17 + $0x1f8] sm:$0xff]  }
 0x356   : > { %v2576_v18 = vunpack.c.h.bf16 %v11292_v19  ;;  %v2577_v51 = vunpack.c.l.bf16 %v11316_v40  ;;  %v11337_v58 = vmul.f32 %v11286_v25, %v2572_v9  ;;  %v11340_v2 = vmul.f32 %v11286_v25, %v2573_v24 }
 0x357   : > { %v11342_v46 = vunpack.i.h.bf16 %v8020_v54  ;;  %v11347_v62 = vunpack.i.l.bf16 %v8020_v54  ;;  %v6054_v27 = vrot.slane %v6053_v0, 4  ;;  %v7987_v30 = vunpack.i.h.bf16 %v7985_v26 }
 0x358   : > { %v6034_v6 = vadd.f32 %v6033_v32, %v6032_v42  ;;  %v7986_v16 = vunpack.i.l.bf16 %v7985_v26  ;;  %v2548_v35 = vunpack.c.l.bf16 %v2256_v45  ;;  %v2549_v29 = vunpack.c.h.bf16 %v2256_v45 }
 0x359   : > { %v2550_v47 = vunpack.c.l.bf16 %v2257_v55  ;;  %v2551_v15 = vunpack.c.l.bf16 %v2258_v13  ;;  %v7981_v4 = vunpack.i.l.bf16 %v7980_v21  ;;  %v2542_v33 = vunpack.c.l.bf16 %v2252_v3  ;;  %v7426_v55 = vld [vmem:[%s8867_s17 + $0x1f0] sm:$0xff]  }
 0x35a   : > { %v2552_v12 = vunpack.c.h.bf16 %v2258_v13  ;;  %v7982_v44 = vunpack.i.h.bf16 %v7980_v21  ;;  %v2543_v41 = vunpack.c.h.bf16 %v2252_v3  ;;  %v2544_v38 = vunpack.c.l.bf16 %v2253_v50 }
 0x35b   : > { %v6055_v20 = vadd.f32 %v6054_v27, %v6053_v0  ;;  %v2545_v14 = vunpack.c.l.bf16 %v2254_v60  ;;  %v2546_v28 = vunpack.c.h.bf16 %v2254_v60  ;;  %v2547_v8 = vunpack.c.l.bf16 %v2255_v61 }
 0x35c   : > { %v6075_v9 = vrot.slane %v11327_v63, 4  ;;  %v2553_v42 = vunpack.c.l.bf16 %v2259_v22  ;;  %v5673_v24 = vmul.f32 %v7981_v4, %v2542_v33  ;;  %v5674_v49 = vmul.f32 %v7981_v4, %v2543_v41 }
 0x35d   : > { %v6035_v54 = vrot.slane %v6034_v6, 2  ;;  %v5679_v32 = vmul.f32 %v7986_v16, %v2548_v35  ;;  %v5680_v26 = vmul.f32 %v7986_v16, %v2549_v29  ;;  %v5675_v45 = vmul.f32 %v7981_v4, %v2544_v38  ;;  %v2285_v29 = vld [vmem:[%s8855_s13 + $0x260] sm:$0xf] }
 0x35e   : > { %v5676_v13 = vmul.f32 %v7982_v44, %v2545_v14  ;;  %v5677_v21 = vmul.f32 %v7982_v44, %v2546_v28  ;;  %v5678_v3 = vmul.f32 %v7982_v44, %v2547_v8  ;;  %v6082_v0 = vadd.f32 %v11159_v43, %v5673_v24 }
 0x35f   : > { %v6103_v27 = vadd.f32 %v11161_v5, %v5674_v49  ;;  %v6124_v50 = vadd.f32 %v11218_v31, %v5675_v45  ;;  %v7300_v60 = vunpack.c.l.bf16 %v7427_v37  ;;  %v7301_v61 = vunpack.c.h.bf16 %v7427_v37 }
 0x360   : > { %v5681_v22 = vmul.f32 %v7986_v16, %v2550_v47  ;;  %v6083_v33 = vadd.f32 %v6082_v0, %v5676_v13  ;;  %v7296_v41 = vunpack.c.l.bf16 %v7426_v55  ;;  %v7297_v35 = vunpack.c.h.bf16 %v7426_v55  ;;  %v11366_v47 = vld [vmem:[%s8855_s13 + $0x26c] sm:$0xf] }
 0x361   : > { %v6056_v4 = vrot.slane %v6055_v20, 2  ;;  %v6104_v38 = vadd.f32 %v6103_v27, %v5677_v21  ;;  %v6125_v14 = vadd.f32 %v6124_v50, %v5678_v3  ;;  %v8208_v44 = vpack.i.bf16 %v7301_v61, %v7300_v60  ;;  %v2264_v3 = vld [vmem:[%s8855_s13 + $0x1e0] sm:$0xff] }
 0x362   : > { %v6076_v43 = vadd.f32 %v6075_v9, %v11327_v63  ;;  %v5682_v28 = vmul.f32 %v7987_v30, %v2551_v15  ;;  %v6084_v5 = vadd.f32 %v6083_v33, %v5679_v32  ;;  %v8203_v8 = vpack.i.bf16 %v7297_v35, %v7296_v41  ;;  %v8035_v15 = vpop.permute.xlu2 %8034  ;;  %v7995_v32 = vpop.permute.xlu0 %7994  ;;  %v2269_v41 = vld [vmem:[%s8855_s13 + $0x200] sm:$0xf]  ;;  %v2270_v35 = vld [vmem:[%s8855_s13 + $0x204] sm:$0xff] }
 0x363   : > { %v5683_v31 = vmul.f32 %v7987_v30, %v2552_v12  ;;  %v5684_v24 = vmul.f32 %v7987_v30, %v2553_v42  ;;  %v6105_v49 = vadd.f32 %v6104_v38, %v5680_v26  ;;  %v6126_v16 = vadd.f32 %v6125_v14, %v5681_v22  ;;  %8209 = vperm.xlu1 %7581, %v8208_v44  }
 0x364   : > { %v2591_v37 = vunpack.c.h.bf16 %v11325_v10  ;;  %v2592_v45 = vunpack.c.l.bf16 %v2285_v29  ;;  %v2593_v55 = vunpack.c.l.bf16 %v11362_v7  ;;  %v6085_v13 = vadd.f32 %v6084_v5, %v5682_v28  ;;  %8204 = vperm.xlu0 %7570, %v8203_v8   ;;  %v2271_v5 = vld [vmem:[%s8855_s13 + $0x20c] sm:$0xf]  ;;  %v2267_v8 = vld [vmem:[%s8855_s13 + $0x1f4] sm:$0xf] }
 0x365   : > { %v11370_v21 = vadd.f32 %v6035_v54, %v6034_v6  ;;  %v11372_v63 = vadd.f32 %v6056_v4, %v6055_v20  ;;  %v6106_v12 = vadd.f32 %v6105_v49, %v5683_v31  ;;  %v6127_v30 = vadd.f32 %v6126_v16, %v5684_v24  ;;  %v11390_v54 = vld [vmem:[%s8855_s13 + $0x2a0] sm:$0xff]  ;;  %v2265_v4 = vld [vmem:[%s8855_s13 + $0x1e8] sm:$0xf] }
 0x366   : > { %v11377_v9 = vmul.f32 %v11286_v25, %v2574_v34  ;;  %v11382_v42 = vmul.f32 %v11329_v23, %v2575_v52  ;;  %v11387_v6 = vmul.f32 %v11329_v23, %v2576_v18  ;;  %v6077_v20 = vrot.slane %v6076_v43, 2  ;;  %v8000_v18 = vpop.permute.xlu1 %7999 }
 0x367   : > { %v11395_v57 = vmul.f32 %v11329_v23, %v2577_v51  ;;  %v2594_v25 = vunpack.c.h.bf16 %v11362_v7  ;;  %v12441_v52 = vunpack.c.l.bf16 %v11325_v10  ;;  %v11405_v26 = vmul.f32 %v11347_v62, %v2591_v37  ;;  %v2268_v10 = vld [vmem:[%s8855_s13 + $0x1f8] sm:$0xff]  ;;  %v11509_v7 = vld [vmem:[%s8855_s13 + $0x2e8] sm:$0xff] }
 0x368   : > { %v11408_v40 = vmul.f32 %v11347_v62, %v2592_v45  ;;  %v11411_v23 = vmul.f32 %v11342_v46, %v2593_v55  ;;  %v11413_v51 = vunpack.i.h.bf16 %v8035_v15  ;;  %v6037_v0 = vrot.slane %v11370_v21, 1 }
 0x369   : > { %v11402_v19 = vmul.f32 %v11347_v62, %v12441_v52  ;;  %v6058_v27 = vrot.slane %v11372_v63, 1  ;;  %v11419_v50 = vunpack.i.l.bf16 %v8035_v15  ;;  %v2266_v62 = vld [vmem:[%s8855_s13 + $0x1ec] sm:$0xff]  ;;  %v11423_v61 = vadd.f32 %v6077_v20, %v6076_v43 }
 0x36a   : > { %v8002_v22 = vunpack.i.h.bf16 %v8000_v18  ;;  %v8001_v33 = vunpack.i.l.bf16 %v8000_v18  ;;  %v7996_v29 = vunpack.i.l.bf16 %v7995_v32  ;;  %v2566_v38 = vunpack.c.l.bf16 %v2268_v10 }
 0x36b   : > { %v7997_v14 = vunpack.i.h.bf16 %v7995_v32  ;;  %v2560_v44 = vunpack.c.l.bf16 %v2264_v3  ;;  %v2561_v28 = vunpack.c.h.bf16 %v2264_v3  ;;  %v2563_v31 = vunpack.c.l.bf16 %v2266_v62 }
 0x36c   : > { %v2564_v24 = vunpack.c.h.bf16 %v2266_v62  ;;  %v6086_v49 = vadd.f32 %v6085_v13, %v11232_v39  ;;  %v6107_v16 = vadd.f32 %v6106_v12, %v11237_v56  ;;  %v2567_v43 = vunpack.c.h.bf16 %v2268_v10 }
 0x36d   : > { %v2568_v37 = vunpack.c.l.bf16 %v2269_v41  ;;  %v2569_v45 = vunpack.c.l.bf16 %v2270_v35  ;;  %v2562_v55 = vunpack.c.l.bf16 %v2265_v4  ;;  %v5691_v15 = vmul.f32 %v7996_v29, %v2560_v44 }
 0x36e   : > { %v5692_v20 = vmul.f32 %v7996_v29, %v2561_v28  ;;  %v6087_v52 = vadd.f32 %v6086_v49, %v11303_v48  ;;  %v6108_v18 = vadd.f32 %v6107_v16, %v11308_v59  ;;  %v2570_v32 = vunpack.c.h.bf16 %v2270_v35  ;;  %v8015_v4 = vpop.permute.xlu1 %8014  ;;  %v2282_v49 = vld [vmem:[%s8855_s13 + $0x24c] sm:$0xff] }
 0x36f   : > { %v2571_v3 = vunpack.c.l.bf16 %v2271_v5  ;;  %v2565_v60 = vunpack.c.l.bf16 %v2267_v8  ;;  %v6128_v62 = vadd.f32 %v6127_v30, %v11284_v17  ;;  %v5694_v34 = vmul.f32 %v7997_v14, %v2563_v31  ;;  %v2280_v5 = vld [vmem:[%s8855_s13 + $0x240] sm:$0xff] }
 0x370   : > { %v5695_v39 = vmul.f32 %v7997_v14, %v2564_v24  ;;  %v6088_v13 = vadd.f32 %v6087_v52, %v5691_v15  ;;  %v6109_v56 = vadd.f32 %v6108_v18, %v5692_v20  ;;  %v6079_v12 = vrot.slane %v11423_v61, 1  ;;  %v2281_v24 = vld [vmem:[%s8855_s13 + $0x248] sm:$0xf] }
 0x371   : > { %v5697_v10 = vmul.f32 %v8001_v33, %v2566_v38  ;;  %v5693_v41 = vmul.f32 %v7996_v29, %v2562_v55  ;;  %v6129_v48 = vadd.f32 %v6128_v62, %v11313_v53  ;;  %v5698_v59 = vmul.f32 %v8001_v33, %v2567_v43  ;;  %v2283_v53 = vld [vmem:[%s8855_s13 + $0x254] sm:$0xf] }
 0x372   : > { %v5699_v35 = vmul.f32 %v8001_v33, %v2568_v37  ;;  %v6089_v44 = vadd.f32 %v6088_v13, %v5694_v34  ;;  %v6110_v28 = vadd.f32 %v6109_v56, %v5695_v39  ;;  %v5700_v17 = vmul.f32 %v8002_v22, %v2569_v45  ;;  %v11442_v34 = vld [vmem:[%s8855_s13 + $0x2a8] sm:$0xf] }
 0x373   : > { %v5701_v30 = vmul.f32 %v8002_v22, %v2570_v32  ;;  %v5696_v8 = vmul.f32 %v7997_v14, %v2565_v60  ;;  %v6130_v31 = vadd.f32 %v6129_v48, %v5693_v41  ;;  %v5702_v16 = vmul.f32 %v8002_v22, %v2571_v3  ;;  %v11445_v14 = vld [vmem:[%s8855_s13 + $0x2ac] sm:$0xff] }
 0x374   : > { %v6090_v38 = vadd.f32 %v6089_v44, %v5697_v10  ;;  %v6111_v29 = vadd.f32 %v6110_v28, %v5698_v59  ;;  %v8017_v55 = vunpack.i.h.bf16 %v8015_v4  ;;  %v8016_v20 = vunpack.i.l.bf16 %v8015_v4  ;;  %v8010_v10 = vpop.permute.xlu0 %8009  ;;  %v2276_v44 = vld [vmem:[%s8855_s13 + $0x228] sm:$0xff] }
 0x375   : > { %v6131_v15 = vadd.f32 %v6130_v31, %v5696_v8  ;;  %v2584_v43 = vunpack.c.l.bf16 %v2280_v5  ;;  %v2585_v33 = vunpack.c.h.bf16 %v2280_v5  ;;  %v2586_v45 = vunpack.c.l.bf16 %v2281_v24  ;;  %v2278_v8 = vld [vmem:[%s8855_s13 + $0x234] sm:$0xff] }
 0x376   : > { %v6091_v37 = vadd.f32 %v6090_v38, %v5700_v17  ;;  %v6112_v52 = vadd.f32 %v6111_v29, %v5701_v30  ;;  %v2587_v60 = vunpack.c.l.bf16 %v2282_v49  ;;  %v2588_v32 = vunpack.c.h.bf16 %v2282_v49  ;;  %v2277_v30 = vld [vmem:[%s8855_s13 + $0x230] sm:$0xf]  ;;  %v2279_v38 = vld [vmem:[%s8855_s13 + $0x23c] sm:$0xf] }
 0x377   : > { %v6132_v18 = vadd.f32 %v6131_v15, %v5699_v35  ;;  %v2589_v22 = vunpack.c.l.bf16 %v2283_v53  ;;  %v5715_v3 = vmul.f32 %v8016_v20, %v2584_v43  ;;  %v2609_v62 = vunpack.c.h.bf16 %v11390_v54 }
 0x378   : > { %v5716_v39 = vmul.f32 %v8016_v20, %v2585_v33  ;;  %v5717_v13 = vmul.f32 %v8016_v20, %v2586_v45  ;;  %v5718_v56 = vmul.f32 %v8017_v55, %v2587_v60  ;;  %v2610_v41 = vunpack.c.l.bf16 %v11442_v34  ;;  %v2299_v20 = vld [vmem:[%s8855_s13 + $0x2b4] sm:$0xf] }
 0x379   : > { %v6133_v48 = vadd.f32 %v6132_v18, %v5702_v16  ;;  %v5719_v4 = vmul.f32 %v8017_v55, %v2588_v32  ;;  %v5720_v59 = vmul.f32 %v8017_v55, %v2589_v22  ;;  %v6038_v35 = vadd.f32 %v6037_v0, %v11370_v21 }
 0x37a   : > { %v6059_v28 = vadd.f32 %v6058_v27, %v11372_v63  ;;  %v2611_v5 = vunpack.c.l.bf16 %v11445_v14  ;;  %v6144_v17 = vadd.f32 %v5718_v56, %v5715_v3  ;;  %v6080_v31 = vadd.f32 %v6079_v12, %v11423_v61 }
 0x37b   : > { %v6165_v24 = vadd.f32 %v5719_v4, %v5716_v39  ;;  %v6186_v49 = vadd.f32 %v5720_v59, %v5717_v13  ;;  %v8012_v16 = vunpack.i.h.bf16 %v8010_v10  ;;  %v8011_v21 = vunpack.i.l.bf16 %v8010_v10  ;;  %v11524_v4 = vld [vmem:[%s8855_s13 + $0x2f4] sm:$0xff] }
 0x37c   : > { %v11462_v29 = vadd.f32 %v6144_v17, %v11402_v19  ;;  %v2578_v0 = vunpack.c.l.bf16 %v2276_v44  ;;  %v2579_v55 = vunpack.c.h.bf16 %v2276_v44  ;;  %v2580_v53 = vunpack.c.l.bf16 %v2277_v30 }
 0x37d   : > { %v11465_v63 = vadd.f32 %v6165_v24, %v11405_v26  ;;  %v11468_v27 = vadd.f32 %v6186_v49, %v11408_v40  ;;  %v2581_v15 = vunpack.c.l.bf16 %v2278_v8  ;;  %v2582_v61 = vunpack.c.h.bf16 %v2278_v8 }
 0x37e   : > { %v2583_v12 = vunpack.c.l.bf16 %v2279_v38  ;;  %v6092_v43 = vadd.f32 %v6091_v37, %v11337_v58  ;;  %v6113_v33 = vadd.f32 %v6112_v52, %v11340_v2  ;;  %v6134_v19 = vadd.f32 %v6133_v48, %v11377_v9  ;;  %v11521_v48 = vld [vmem:[%s8855_s13 + $0x2f0] sm:$0xf]  ;;  %v11544_v38 = vld [vmem:[%s8855_s13 + $0x294] sm:$0xff] }
 0x37f   : > { %v11476_v34 = vsel %vm4891_vm0, %v6038_v35, %v11298_v11  ;;  %v11480_v26 = vsel %vm4891_vm0, %v6059_v28, %v11319_v1  ;;  %v11484_v40 = vsel %vm4891_vm0, %v6080_v31, %v11322_v36  ;;  %v5709_v45 = vmul.f32 %v8011_v21, %v2578_v0  ;;  %v8030_v35 = vpop.permute.xlu1 %8029  ;;  %v11532_v28 = vld [vmem:[%s8855_s13 + $0x288] sm:$0xff]  ;;  %v11539_v31 = vld [vmem:[%s8855_s13 + $0x290] sm:$0xf] }
 0x380   : > { %v5710_v60 = vmul.f32 %v8011_v21, %v2579_v55  ;;  %v6093_v58 = vadd.f32 %v6092_v43, %v11382_v42  ;;  %v6114_v2 = vadd.f32 %v6113_v33, %v11387_v6  ;;  %v2612_v9 = vunpack.c.h.bf16 %v11445_v14  ;;  %v8050_v14 = vpop.permute.xlu2 %8049 }
 0x381   : > { %v2613_v37 = vunpack.c.l.bf16 %v2299_v20  ;;  %v5711_v11 = vmul.f32 %v8011_v21, %v2580_v53  ;;  %v6135_v52 = vadd.f32 %v6134_v19, %v11395_v57  ;;  %v5712_v18 = vmul.f32 %v8012_v16, %v2581_v15  ;;  %v8025_v21 = vpop.permute.xlu0 %8024  ;;  %v2288_v20 = vld [vmem:[%s8855_s13 + $0x270] sm:$0xff]  ;;  %v2289_v19 = vld [vmem:[%s8855_s13 + $0x278] sm:$0xf] }
 0x382   : > { %v5713_v1 = vmul.f32 %v8012_v16, %v2582_v61  ;;  %v6094_v32 = vadd.f32 %v6093_v58, %v5709_v45  ;;  %v6115_v36 = vadd.f32 %v6114_v2, %v5710_v60  ;;  %v11493_v22 = vmul.f32 %v11342_v46, %v2594_v25  ;;  %v2290_v45 = vld [vmem:[%s8855_s13 + $0x27c] sm:$0xff] }
 0x383   : > { %v12442_v42 = vunpack.c.l.bf16 %v11366_v47  ;;  %v5714_v3 = vmul.f32 %v8012_v16, %v2583_v12  ;;  %v6136_v39 = vadd.f32 %v6135_v52, %v5711_v11  ;;  %v12443_v57 = vunpack.c.l.bf16 %v11390_v54 }
 0x384   : > { %v11506_v56 = vmul.f32 %v11419_v50, %v2609_v62  ;;  %v6095_v25 = vadd.f32 %v6094_v32, %v5712_v18  ;;  %v6116_v10 = vadd.f32 %v6115_v36, %v5713_v1  ;;  %v11512_v47 = vmul.f32 %v11419_v50, %v2610_v41  ;;  %v2295_v36 = vld [vmem:[%s8855_s13 + $0x29c] sm:$0xf] }
 0x385   : > { %v11498_v6 = vmul.f32 %v11342_v46, %v12442_v42  ;;  %v11503_v13 = vmul.f32 %v11419_v50, %v12443_v57  ;;  %v11515_v46 = vmul.f32 %v11413_v51, %v2611_v5  ;;  %v11518_v54 = vmul.f32 %v11413_v51, %v2612_v9 }
 0x386   : > { %v6137_v62 = vadd.f32 %v6136_v39, %v5714_v3  ;;  %v11527_v59 = vmul.f32 %v11413_v51, %v2613_v37  ;;  %v11529_v44 = vunpack.i.h.bf16 %v8050_v14  ;;  %v6096_v50 = vrot.slane %v6095_v25, 4  ;;  %v2291_v37 = vld [vmem:[%s8855_s13 + $0x284] sm:$0xf] }
 0x387   : > { %v6117_v41 = vrot.slane %v6116_v10, 4  ;;  %v11534_v5 = vunpack.i.l.bf16 %v8050_v14  ;;  %v2626_v17 = vunpack.c.l.bf16 %v11509_v7  ;;  %v2627_v30 = vunpack.c.h.bf16 %v11509_v7 }
 0x388   : > { %v6138_v8 = vrot.slane %v6137_v62, 4  ;;  %v2628_v51 = vunpack.c.l.bf16 %v11521_v48  ;;  %v2629_v24 = vunpack.c.l.bf16 %v11524_v4  ;;  %v6097_v49 = vadd.f32 %v6096_v50, %v6095_v25 }
 0x389   : > { %v6118_v16 = vadd.f32 %v6117_v41, %v6116_v10  ;;  %v11546_v55 = vunpack.i.h.bf16 %v8030_v35  ;;  %v8031_v53 = vunpack.i.l.bf16 %v8030_v35  ;;  %v2602_v15 = vunpack.c.l.bf16 %v11532_v28  ;;  %v8040_v7 = vpop.permute.xlu0 %8039 }
 0x38a   : > { %v6139_v0 = vadd.f32 %v6138_v8, %v6137_v62  ;;  %v6098_v61 = vrot.slane %v6097_v49, 2  ;;  %v2603_v43 = vunpack.c.h.bf16 %v11532_v28  ;;  %v2604_v33 = vunpack.c.l.bf16 %v11539_v31  ;;  %v8065_v62 = vpop.permute.xlu2 %8064 }
 0x38b   : > { %v6119_v12 = vrot.slane %v6118_v16, 2  ;;  %v2605_v58 = vunpack.c.l.bf16 %v11544_v38  ;;  %v8027_v2 = vunpack.i.h.bf16 %v8025_v21  ;;  %v8026_v9 = vunpack.i.l.bf16 %v8025_v21  ;;  %v2311_v21 = vld [vmem:[%s8855_s13 + $0x2fc] sm:$0xf] }
 0x38c   : > { %v6140_v60 = vrot.slane %v6139_v0, 2  ;;  %v6099_v11 = vadd.f32 %v6098_v61, %v6097_v49  ;;  %v2596_v18 = vunpack.c.l.bf16 %v2288_v20  ;;  %v2597_v1 = vunpack.c.h.bf16 %v2288_v20 }
 0x38d   : > { %v6120_v52 = vadd.f32 %v6119_v12, %v6118_v16  ;;  %v2606_v42 = vunpack.c.h.bf16 %v11544_v38  ;;  %v2598_v14 = vunpack.c.l.bf16 %v2289_v19  ;;  %v2599_v3 = vunpack.c.l.bf16 %v2290_v45 }
 0x38e   : > { %v6141_v32 = vadd.f32 %v6140_v60, %v6139_v0  ;;  %v6100_v39 = vrot.slane %v6099_v11, 1  ;;  %v2600_v25 = vunpack.c.h.bf16 %v2290_v45  ;;  %v2601_v10 = vunpack.c.l.bf16 %v2291_v37 }
 0x38f   : > { %v6121_v57 = vrot.slane %v6120_v52, 1  ;;  %v5727_v41 = vmul.f32 %v8026_v9, %v2596_v18  ;;  %v5728_v35 = vmul.f32 %v8026_v9, %v2597_v1  ;;  %v5729_v28 = vmul.f32 %v8026_v9, %v2598_v14  ;;  %v2320_v9 = vld [vmem:[%s8855_s13 + $0x330] sm:$0xff] }
 0x390   : > { %v6142_v50 = vrot.slane %v6141_v32, 1  ;;  %v6101_v8 = vadd.f32 %v6100_v39, %v6099_v11  ;;  %v2607_v49 = vunpack.c.l.bf16 %v2295_v36  ;;  %v5730_v16 = vmul.f32 %v8027_v2, %v2599_v3  ;;  %v2321_v11 = vld [vmem:[%s8855_s13 + $0x338] sm:$0xf] }
 0x391   : > { %v6122_v31 = vadd.f32 %v6121_v57, %v6120_v52  ;;  %v6146_v38 = vadd.f32 %v11462_v29, %v11411_v23  ;;  %v6167_v20 = vadd.f32 %v11465_v63, %v11493_v22  ;;  %v6188_v61 = vadd.f32 %v11468_v27, %v11498_v6  ;;  %v11581_v52 = vld [vmem:[%s8855_s13 + $0x33c] sm:$0xff] }
 0x392   : > { %v6143_v0 = vadd.f32 %v6142_v50, %v6141_v32  ;;  %v11567_v12 = vsel %vm4893_vm1, %v6101_v8, %v11476_v34  ;;  %v5731_v45 = vmul.f32 %v8027_v2, %v2600_v25  ;;  %v5732_v60 = vmul.f32 %v8027_v2, %v2601_v10  ;;  %v11589_v25 = vld [vmem:[%s8855_s13 + $0x344] sm:$0xf]  ;;  %v11616_v8 = vld [vmem:[%s8855_s13 + $0x378] sm:$0xff] }
 0x393   : > { %v11571_v19 = vsel %vm4893_vm1, %v6122_v31, %v11480_v26  ;;  %v6147_v29 = vadd.f32 %v6146_v38, %v5727_v41  ;;  %v6168_v63 = vadd.f32 %v6167_v20, %v5728_v35  ;;  %v6189_v22 = vadd.f32 %v6188_v61, %v5729_v28  ;;  %v2304_v61 = vld [vmem:[%s8855_s13 + $0x2d0] sm:$0xff] }
 0x394   : > { %v11576_v23 = vsel %vm4893_vm1, %v6143_v0, %v11484_v40  ;;  %v2630_v27 = vunpack.c.h.bf16 %v11524_v4  ;;  %v2631_v6 = vunpack.c.l.bf16 %v2311_v21  ;;  %v5733_v37 = vmul.f32 %v8031_v53, %v2602_v15  ;;  %v8045_v4 = vpop.permute.xlu1 %8044  ;;  %v2302_v21 = vld [vmem:[%s8855_s13 + $0x2c4] sm:$0xff] }
 0x395   : > { %v5734_v34 = vmul.f32 %v8031_v53, %v2603_v43  ;;  %v5735_v26 = vmul.f32 %v8031_v53, %v2604_v33  ;;  %v6148_v18 = vadd.f32 %v6147_v29, %v5730_v16  ;;  %v6169_v2 = vadd.f32 %v6168_v63, %v5731_v45 }
 0x396   : > { %v6190_v1 = vadd.f32 %v6189_v22, %v5732_v60  ;;  %v8066_v32 = vunpack.i.l.bf16 %v8065_v62  ;;  %v2644_v36 = vunpack.c.l.bf16 %v2320_v9  ;;  %v5736_v40 = vmul.f32 %v11546_v55, %v2605_v58  ;;  %v2301_v60 = vld [vmem:[%s8855_s13 + $0x2c0] sm:$0xf] }
 0x397   : > { %v5737_v14 = vmul.f32 %v11546_v55, %v2606_v42  ;;  %v5738_v3 = vmul.f32 %v11546_v55, %v2607_v49  ;;  %v6149_v39 = vadd.f32 %v6148_v18, %v5733_v37  ;;  %v6170_v57 = vadd.f32 %v6169_v2, %v5734_v34  ;;  %v8080_v42 = vpop.permute.xlu2 %8079 }
 0x398   : > { %v6191_v15 = vadd.f32 %v6190_v1, %v5735_v26  ;;  %v11586_v43 = vunpack.i.h.bf16 %v8065_v62  ;;  %v2645_v53 = vunpack.c.h.bf16 %v2320_v9  ;;  %v2646_v33 = vunpack.c.l.bf16 %v2321_v11 }
 0x399   : > { %v2647_v10 = vunpack.c.l.bf16 %v11581_v52  ;;  %v11595_v58 = vmul.f32 %v11534_v5, %v2626_v17  ;;  %v6150_v55 = vadd.f32 %v6149_v39, %v5736_v40  ;;  %v6171_v50 = vadd.f32 %v6170_v57, %v5737_v14  ;;  %v2305_v40 = vld [vmem:[%s8855_s13 + $0x2d8] sm:$0xf] }
 0x39a   : > { %v6192_v41 = vadd.f32 %v6191_v15, %v5738_v3  ;;  %v11600_v62 = vmul.f32 %v11534_v5, %v2627_v30  ;;  %v11605_v35 = vmul.f32 %v11534_v5, %v2628_v51  ;;  %v11610_v17 = vmul.f32 %v11529_v44, %v2629_v24  ;;  %v2300_v24 = vld [vmem:[%s8855_s13 + $0x2b8] sm:$0xff] }
 0x39b   : > { %v11613_v28 = vmul.f32 %v11529_v44, %v2630_v27  ;;  %v11619_v30 = vmul.f32 %v11529_v44, %v2631_v6  ;;  %v2648_v48 = vunpack.c.h.bf16 %v11581_v52  ;;  %v2649_v5 = vunpack.c.l.bf16 %v11589_v25  ;;  %v2306_v27 = vld [vmem:[%s8855_s13 + $0x2dc] sm:$0xff]  ;;  %v2303_v6 = vld [vmem:[%s8855_s13 + $0x2cc] sm:$0xf]  ;;  %v8055_v25 = vpop.permute.xlu0 %8054 }
 0x39c   : > { %v11623_v51 = vmul.f32 %v8066_v32, %v2644_v36  ;;  %v11626_v31 = vmul.f32 %v8066_v32, %v2645_v53  ;;  %v11628_v49 = vmul.f32 %v8066_v32, %v2646_v33  ;;  %v11631_v16 = vmul.f32 %v11586_v43, %v2647_v10  ;;  %v2333_v36 = vld [vmem:[%s8855_s13 + $0x380] sm:$0xf]  ;;  %v2307_v10 = vld [vmem:[%s8855_s13 + $0x2e4] sm:$0xf] }
 0x39d   : > { %v11633_v44 = vunpack.i.h.bf16 %v8080_v42  ;;  %v11636_v0 = vunpack.i.l.bf16 %v8080_v42  ;;  %v2662_v38 = vunpack.c.l.bf16 %v11616_v8  ;;  %v2663_v20 = vunpack.c.h.bf16 %v11616_v8 }
 0x39e   : > { %v8041_v45 = vunpack.i.l.bf16 %v8040_v7  ;;  %v8047_v9 = vunpack.i.h.bf16 %v8045_v4  ;;  %v8042_v29 = vunpack.i.h.bf16 %v8040_v7  ;;  %v2614_v63 = vunpack.c.l.bf16 %v2300_v24 }
 0x39f   : > { %v2615_v22 = vunpack.c.h.bf16 %v2300_v24  ;;  %v2617_v37 = vunpack.c.l.bf16 %v2302_v21  ;;  %v2618_v34 = vunpack.c.h.bf16 %v2302_v21  ;;  %v6151_v11 = vadd.f32 %v6150_v55, %v11503_v13 }
 0x3a0   : > { %v6172_v26 = vadd.f32 %v6171_v50, %v11506_v56  ;;  %v8046_v18 = vunpack.i.l.bf16 %v8045_v4  ;;  %v2620_v2 = vunpack.c.l.bf16 %v2304_v61  ;;  %v2621_v1 = vunpack.c.h.bf16 %v2304_v61  ;;  %v2334_v56 = vld [vmem:[%s8855_s13 + $0x384] sm:$0xff] }
 0x3a1   : > { %v2616_v32 = vunpack.c.l.bf16 %v2301_v60  ;;  %v5745_v14 = vmul.f32 %v8041_v45, %v2614_v63  ;;  %v5746_v3 = vmul.f32 %v8041_v45, %v2615_v22  ;;  %v6152_v39 = vadd.f32 %v6151_v11, %v11515_v46  ;;  %v2335_v63 = vld [vmem:[%s8855_s13 + $0x38c] sm:$0xf] }
 0x3a2   : > { %v6173_v57 = vadd.f32 %v6172_v26, %v11518_v54  ;;  %v2623_v15 = vunpack.c.l.bf16 %v2306_v27  ;;  %v2624_v53 = vunpack.c.h.bf16 %v2306_v27  ;;  %v2619_v33 = vunpack.c.l.bf16 %v2303_v6 }
 0x3a3   : > { %v6193_v13 = vadd.f32 %v6192_v41, %v11512_v47  ;;  %v5748_v42 = vmul.f32 %v8042_v29, %v2617_v37  ;;  %v5749_v55 = vmul.f32 %v8042_v29, %v2618_v34  ;;  %v6153_v50 = vadd.f32 %v6152_v39, %v5745_v14 }
 0x3a4   : > { %v6174_v8 = vadd.f32 %v6173_v57, %v5746_v3  ;;  %v2664_v7 = vunpack.c.l.bf16 %v2333_v36  ;;  %v2622_v4 = vunpack.c.l.bf16 %v2305_v40  ;;  %v5747_v24 = vmul.f32 %v8041_v45, %v2616_v32  ;;  %v8095_v32 = vpop.permute.xlu2 %8094  ;;  %v2312_v57 = vld [vmem:[%s8855_s13 + $0x300] sm:$0xff] }
 0x3a5   : > { %v6194_v21 = vadd.f32 %v6193_v13, %v11527_v59  ;;  %v5751_v46 = vmul.f32 %v8046_v18, %v2620_v2  ;;  %v5752_v61 = vmul.f32 %v8046_v18, %v2621_v1  ;;  %v6154_v54 = vadd.f32 %v6153_v50, %v5748_v42  ;;  %v2346_v13 = vld [vmem:[%s8855_s13 + $0x3cc] sm:$0xff] }
 0x3a6   : > { %v6175_v60 = vadd.f32 %v6174_v8, %v5749_v55  ;;  %v2665_v22 = vunpack.c.l.bf16 %v2334_v56  ;;  %v2625_v27 = vunpack.c.l.bf16 %v2307_v10  ;;  %v5750_v6 = vmul.f32 %v8042_v29, %v2619_v33  ;;  %v2314_v33 = vld [vmem:[%s8855_s13 + $0x30c] sm:$0xff]  ;;  %v2345_v55 = vld [vmem:[%s8855_s13 + $0x3c8] sm:$0xf] }
 0x3a7   : > { %v6195_v47 = vadd.f32 %v6194_v21, %v5747_v24  ;;  %v5754_v41 = vmul.f32 %v8047_v9, %v2623_v15  ;;  %v5755_v11 = vmul.f32 %v8047_v9, %v2624_v53  ;;  %v6155_v37 = vadd.f32 %v6154_v54, %v5751_v46  ;;  %v2347_v24 = vld [vmem:[%s8855_s13 + $0x3d4] sm:$0xf]  ;;  %v8060_v46 = vpop.permute.xlu1 %8059 }
 0x3a8   : > { %v6176_v34 = vadd.f32 %v6175_v60, %v5752_v61  ;;  %v11658_v26 = vmul.f32 %v11586_v43, %v2648_v48  ;;  %v2666_v59 = vunpack.c.h.bf16 %v2334_v56  ;;  %v5753_v45 = vmul.f32 %v8046_v18, %v2622_v4 }
 0x3a9   : > { %v6196_v2 = vadd.f32 %v6195_v47, %v5750_v6  ;;  %v11663_v1 = vmul.f32 %v11586_v43, %v2649_v5  ;;  %v2667_v29 = vunpack.c.l.bf16 %v2335_v63  ;;  %v6156_v36 = vadd.f32 %v6155_v37, %v5754_v41  ;;  %v2344_v5 = vld [vmem:[%s8855_s13 + $0x3c0] sm:$0xff] }
 0x3aa   : > { %v6177_v40 = vadd.f32 %v6176_v34, %v5755_v11  ;;  %v11666_v52 = vmul.f32 %v11636_v0, %v2662_v38  ;;  %v11669_v48 = vmul.f32 %v11636_v0, %v2663_v20  ;;  %v5756_v18 = vmul.f32 %v8047_v9, %v2625_v27 }
 0x3ab   : > { %v6197_v14 = vadd.f32 %v6196_v2, %v5753_v45  ;;  %v11672_v3 = vmul.f32 %v11636_v0, %v2664_v7  ;;  %v11675_v43 = vmul.f32 %v11633_v44, %v2665_v22  ;;  %v6157_v38 = vadd.f32 %v6156_v36, %v11595_v58  ;;  %v2313_v0 = vld [vmem:[%s8855_s13 + $0x308] sm:$0xf]  ;;  %v2316_v22 = vld [vmem:[%s8855_s13 + $0x318] sm:$0xff] }
 0x3ac   : > { %v6178_v39 = vadd.f32 %v6177_v40, %v11600_v62  ;;  %v11682_v20 = vmul.f32 %v11633_v44, %v2666_v59  ;;  %v8097_v9 = vunpack.i.h.bf16 %v8095_v32  ;;  %v8096_v15 = vunpack.i.l.bf16 %v8095_v32  ;;  %v2315_v62 = vld [vmem:[%s8855_s13 + $0x314] sm:$0xf]  ;;  %v2317_v59 = vld [vmem:[%s8855_s13 + $0x320] sm:$0xf]  ;;  %v2318_v2 = vld [vmem:[%s8855_s13 + $0x324] sm:$0xff] }
 0x3ad   : > { %v6198_v53 = vadd.f32 %v6197_v14, %v5756_v18  ;;  %v11688_v56 = vadd.f32 %v6157_v38, %v11610_v17  ;;  %v8057_v58 = vunpack.i.h.bf16 %v8055_v25  ;;  %v8056_v42 = vunpack.i.l.bf16 %v8055_v25 }
 0x3ae   : > { %v11691_v10 = vadd.f32 %v6178_v39, %v11613_v28  ;;  %v2680_v50 = vunpack.c.l.bf16 %v2344_v5  ;;  %v2632_v7 = vunpack.c.l.bf16 %v2312_v57  ;;  %v2633_v4 = vunpack.c.h.bf16 %v2312_v57  ;;  %v8110_v39 = vpop.permute.xlu2 %8109  ;;  %v11707_v57 = vld [vmem:[%s8855_s13 + $0x408] sm:$0xff] }
 0x3af   : > { %v6199_v8 = vadd.f32 %v6198_v53, %v11605_v35  ;;  %v2681_v21 = vunpack.c.h.bf16 %v2344_v5  ;;  %v2634_v61 = vunpack.c.l.bf16 %v2313_v0  ;;  %v2635_v17 = vunpack.c.l.bf16 %v2314_v33 }
 0x3b0   : > { %v2636_v54 = vunpack.c.h.bf16 %v2314_v33  ;;  %v2683_v28 = vunpack.c.l.bf16 %v2346_v13  ;;  %v2684_v60 = vunpack.c.h.bf16 %v2346_v13  ;;  %v2637_v27 = vunpack.c.l.bf16 %v2315_v62 }
 0x3b1   : > { %v11698_v63 = vadd.f32 %v6199_v8, %v11619_v30  ;;  %v2682_v6 = vunpack.c.l.bf16 %v2345_v55  ;;  %v5763_v47 = vmul.f32 %v8056_v42, %v2632_v7  ;;  %v5764_v35 = vmul.f32 %v8056_v42, %v2633_v4 }
 0x3b2   : > { %v5766_v41 = vmul.f32 %v8057_v58, %v2635_v17  ;;  %v11702_v11 = vmul.f32 %v11633_v44, %v2667_v29  ;;  %v2685_v37 = vunpack.c.l.bf16 %v2347_v24  ;;  %v8061_v34 = vunpack.i.l.bf16 %v8060_v46 }
 0x3b3   : > { %v5767_v45 = vmul.f32 %v8057_v58, %v2636_v54  ;;  %v2638_v32 = vunpack.c.l.bf16 %v2316_v22  ;;  %v2639_v36 = vunpack.c.h.bf16 %v2316_v22  ;;  %v5765_v30 = vmul.f32 %v8056_v42, %v2634_v61  ;;  %v2319_v42 = vld [vmem:[%s8855_s13 + $0x32c] sm:$0xf]  ;;  %v11725_v61 = vld [vmem:[%s8855_s13 + $0x41c] sm:$0xf] }
 0x3b4   : > { %v5768_v40 = vmul.f32 %v8057_v58, %v2637_v27  ;;  %v5811_v18 = vmul.f32 %v8096_v15, %v2680_v50  ;;  %v5812_v14 = vmul.f32 %v8096_v15, %v2681_v21  ;;  %v5814_v25 = vmul.f32 %v8097_v9, %v2683_v28  ;;  %v11719_v21 = vld [vmem:[%s8855_s13 + $0x410] sm:$0xf] }
 0x3b5   : > { %v5815_v5 = vmul.f32 %v8097_v9, %v2684_v60  ;;  %v5813_v38 = vmul.f32 %v8096_v15, %v2682_v6  ;;  %v2640_v44 = vunpack.c.l.bf16 %v2317_v59  ;;  %v6207_v29 = vadd.f32 %v5766_v41, %v5763_v47 }
 0x3b6   : > { %v6228_v53 = vadd.f32 %v5767_v45, %v5764_v35  ;;  %v5816_v0 = vmul.f32 %v8097_v9, %v2685_v37  ;;  %v6159_v33 = vrot.slane %v11688_v56, 4  ;;  %v8062_v13 = vunpack.i.h.bf16 %v8060_v46  ;;  %v11722_v9 = vld [vmem:[%s8855_s13 + $0x414] sm:$0xff] }
 0x3b7   : > { %v2641_v58 = vunpack.c.l.bf16 %v2318_v2  ;;  %v2642_v62 = vunpack.c.h.bf16 %v2318_v2  ;;  %v5769_v55 = vmul.f32 %v8061_v34, %v2638_v32  ;;  %v5770_v50 = vmul.f32 %v8061_v34, %v2639_v36  ;;  %v8075_v32 = vpop.permute.xlu1 %8074  ;;  %v2324_v36 = vld [vmem:[%s8855_s13 + $0x348] sm:$0xff] }
 0x3b8   : > { %v6249_v8 = vadd.f32 %v5768_v40, %v5765_v30  ;;  %v11711_v15 = vadd.f32 %v5814_v25, %v5811_v18  ;;  %v11713_v7 = vadd.f32 %v5815_v5, %v5812_v14  ;;  %v11715_v4 = vunpack.i.l.bf16 %v8110_v39  ;;  %v2325_v25 = vld [vmem:[%s8855_s13 + $0x350] sm:$0xf]  ;;  %v2326_v5 = vld [vmem:[%s8855_s13 + $0x354] sm:$0xff] }
 0x3b9   : > { %v2698_v24 = vunpack.c.l.bf16 %v11707_v57  ;;  %v2643_v46 = vunpack.c.l.bf16 %v2319_v42  ;;  %v5771_v17 = vmul.f32 %v8061_v34, %v2640_v44  ;;  %v6208_v54 = vadd.f32 %v6207_v29, %v5769_v55  ;;  %v8070_v34 = vpop.permute.xlu0 %8069  ;;  %v2328_v29 = vld [vmem:[%s8855_s13 + $0x360] sm:$0xff] }
 0x3ba   : > { %v6229_v28 = vadd.f32 %v6228_v53, %v5770_v50  ;;  %v11727_v60 = vadd.f32 %v5816_v0, %v5813_v38  ;;  %v11730_v22 = vadd.f32 %v6159_v33, %v11688_v56  ;;  %v6180_v27 = vrot.slane %v11691_v10, 4 }
 0x3bb   : > { %v11733_v6 = vunpack.i.h.bf16 %v8110_v39  ;;  %v2699_v47 = vunpack.c.h.bf16 %v11707_v57  ;;  %v5772_v35 = vmul.f32 %v8062_v13, %v2641_v58  ;;  %v5773_v41 = vmul.f32 %v8062_v13, %v2642_v62  ;;  %v2329_v58 = vld [vmem:[%s8855_s13 + $0x368] sm:$0xf] }
 0x3bc   : > { %v6250_v37 = vadd.f32 %v6249_v8, %v5771_v17  ;;  %v11742_v30 = vmul.f32 %v11715_v4, %v2698_v24  ;;  %v5774_v40 = vmul.f32 %v8062_v13, %v2643_v46  ;;  %v6161_v38 = vrot.slane %v11730_v22, 2  ;;  %v2327_v13 = vld [vmem:[%s8855_s13 + $0x35c] sm:$0xf]  ;;  %v2330_v46 = vld [vmem:[%s8855_s13 + $0x36c] sm:$0xff] }
 0x3bd   : > { %v6209_v18 = vadd.f32 %v6208_v54, %v5772_v35  ;;  %v6230_v14 = vadd.f32 %v6229_v28, %v5773_v41  ;;  %v11748_v39 = vadd.f32 %v6180_v27, %v11691_v10  ;;  %v6201_v44 = vrot.slane %v11698_v63, 4 }
 0x3be   : > { %v8071_v53 = vunpack.i.l.bf16 %v8070_v34  ;;  %v6251_v0 = vadd.f32 %v6250_v37, %v5774_v40  ;;  %v8077_v33 = vunpack.i.h.bf16 %v8075_v32  ;;  %v8076_v42 = vunpack.i.l.bf16 %v8075_v32  ;;  %v2331_v32 = vld [vmem:[%s8855_s13 + $0x374] sm:$0xf] }
 0x3bf   : > { %v2650_v62 = vunpack.c.l.bf16 %v2324_v36  ;;  %v8072_v55 = vunpack.i.h.bf16 %v8070_v34  ;;  %v2651_v50 = vunpack.c.h.bf16 %v2324_v36  ;;  %v2652_v8 = vunpack.c.l.bf16 %v2325_v25 }
 0x3c0   : > { %v2653_v24 = vunpack.c.l.bf16 %v2326_v5  ;;  %v2656_v17 = vunpack.c.l.bf16 %v2328_v29  ;;  %v2654_v54 = vunpack.c.h.bf16 %v2326_v5  ;;  %v6210_v10 = vadd.f32 %v6209_v18, %v11623_v51 }
 0x3c1   : > { %v6231_v28 = vadd.f32 %v6230_v14, %v11626_v31  ;;  %v2657_v27 = vunpack.c.h.bf16 %v2328_v29  ;;  %v2658_v35 = vunpack.c.l.bf16 %v2329_v58  ;;  %v2655_v41 = vunpack.c.l.bf16 %v2327_v13 }
 0x3c2   : > { %v5781_v37 = vmul.f32 %v8071_v53, %v2650_v62  ;;  %v5782_v40 = vmul.f32 %v8071_v53, %v2651_v50  ;;  %v6211_v2 = vadd.f32 %v6210_v10, %v11631_v16  ;;  %v6252_v36 = vadd.f32 %v6251_v0, %v11628_v49  ;;  %v8125_v16 = vpop.permute.xlu2 %8124  ;;  %v8085_v10 = vpop.permute.xlu0 %8084 }
 0x3c3   : > { %v6232_v34 = vadd.f32 %v6231_v28, %v11658_v26  ;;  %v2659_v25 = vunpack.c.l.bf16 %v2330_v46  ;;  %v2660_v56 = vunpack.c.h.bf16 %v2330_v46  ;;  %v5783_v45 = vmul.f32 %v8071_v53, %v2652_v8 }
 0x3c4   : > { %v5784_v5 = vmul.f32 %v8072_v55, %v2653_v24  ;;  %v5785_v59 = vmul.f32 %v8072_v55, %v2654_v54  ;;  %v6212_v51 = vadd.f32 %v6211_v2, %v5781_v37  ;;  %v6253_v18 = vadd.f32 %v6252_v36, %v11663_v1  ;;  %v11770_v1 = vld [vmem:[%s8855_s13 + $0x450] sm:$0xff]  ;;  %v2337_v37 = vld [vmem:[%s8855_s13 + $0x398] sm:$0xf] }
 0x3c5   : > { %v6233_v31 = vadd.f32 %v6232_v34, %v5782_v40  ;;  %v6182_v14 = vrot.slane %v11748_v39, 2  ;;  %v2661_v29 = vunpack.c.l.bf16 %v2331_v32  ;;  %v5787_v58 = vmul.f32 %v8076_v42, %v2656_v17 }
 0x3c6   : > { %v5788_v13 = vmul.f32 %v8076_v42, %v2657_v27  ;;  %v5786_v62 = vmul.f32 %v8072_v55, %v2655_v41  ;;  %v6213_v26 = vadd.f32 %v6212_v51, %v5784_v5  ;;  %v6254_v0 = vadd.f32 %v6253_v18, %v5783_v45  ;;  %v2341_v51 = vld [vmem:[%s8855_s13 + $0x3b0] sm:$0xf]  ;;  %v2339_v18 = vld [vmem:[%s8855_s13 + $0x3a4] sm:$0xf] }
 0x3c7   : > { %v6234_v49 = vadd.f32 %v6233_v31, %v5785_v59  ;;  %v11764_v53 = vadd.f32 %v6161_v38, %v11730_v22  ;;  %v11767_v2 = vadd.f32 %v6201_v44, %v11698_v63  ;;  %v5789_v50 = vmul.f32 %v8076_v42, %v2658_v35  ;;  %v11790_v44 = vld [vmem:[%s8855_s13 + $0x458] sm:$0xf] }
 0x3c8   : > { %v5790_v8 = vmul.f32 %v8077_v33, %v2659_v25  ;;  %v5791_v24 = vmul.f32 %v8077_v33, %v2660_v56  ;;  %v6214_v46 = vadd.f32 %v6213_v26, %v5787_v58  ;;  %v6255_v54 = vadd.f32 %v6254_v0, %v5786_v62  ;;  %v2340_v25 = vld [vmem:[%s8855_s13 + $0x3a8] sm:$0xff]  ;;  %v2342_v62 = vld [vmem:[%s8855_s13 + $0x3b4] sm:$0xff] }
 0x3c9   : > { %v6235_v17 = vadd.f32 %v6234_v49, %v5788_v13  ;;  %v11775_v59 = vmul.f32 %v11715_v4, %v2699_v47  ;;  %v12444_v22 = vunpack.c.l.bf16 %v11719_v21  ;;  %v12445_v45 = vunpack.c.l.bf16 %v11722_v9  ;;  %v8090_v21 = vpop.permute.xlu1 %8089 }
 0x3ca   : > { %v11787_v56 = vunpack.i.h.bf16 %v8125_v16  ;;  %v5792_v57 = vmul.f32 %v8077_v33, %v2661_v29  ;;  %v6215_v42 = vadd.f32 %v6214_v46, %v5790_v8  ;;  %v6256_v55 = vadd.f32 %v6255_v54, %v5789_v50  ;;  %v2338_v33 = vld [vmem:[%s8855_s13 + $0x39c] sm:$0xff] }
 0x3cb   : > { %v11780_v63 = vmul.f32 %v11715_v4, %v12444_v22  ;;  %v11785_v38 = vmul.f32 %v11733_v6, %v12445_v45  ;;  %v6236_v47 = vadd.f32 %v6235_v17, %v5791_v24  ;;  %v2336_v4 = vld [vmem:[%s8855_s13 + $0x390] sm:$0xff]  ;;  %v11794_v28 = vadd.f32 %v6182_v14, %v11748_v39  ;;  %v2343_v54 = vld [vmem:[%s8855_s13 + $0x3bc] sm:$0xf] }
 0x3cc   : > { %v11796_v27 = vunpack.i.l.bf16 %v8125_v16  ;;  %v2716_v35 = vunpack.c.l.bf16 %v11770_v1  ;;  %v2717_v41 = vunpack.c.h.bf16 %v11770_v1  ;;  %v6163_v32 = vrot.slane %v11764_v53, 1 }
 0x3cd   : > { %v6203_v40 = vrot.slane %v11767_v2, 2  ;;  %v2718_v34 = vunpack.c.l.bf16 %v11790_v44  ;;  %v6257_v36 = vadd.f32 %v6256_v55, %v5792_v57  ;;  %v8092_v5 = vunpack.i.h.bf16 %v8090_v21 }
 0x3ce   : > { %v8091_v39 = vunpack.i.l.bf16 %v8090_v21  ;;  %v8086_v31 = vunpack.i.l.bf16 %v8085_v10  ;;  %v2668_v14 = vunpack.c.l.bf16 %v2336_v4  ;;  %v8087_v29 = vunpack.i.h.bf16 %v8085_v10 }
 0x3cf   : > { %v2669_v58 = vunpack.c.h.bf16 %v2336_v4  ;;  %v2670_v13 = vunpack.c.l.bf16 %v2337_v37  ;;  %v2671_v16 = vunpack.c.l.bf16 %v2338_v33  ;;  %v2674_v26 = vunpack.c.l.bf16 %v2340_v25 }
 0x3d0   : > { %v2672_v49 = vunpack.c.h.bf16 %v2338_v33  ;;  %v6216_v0 = vadd.f32 %v6215_v42, %v11666_v52  ;;  %v6237_v50 = vadd.f32 %v6236_v47, %v11669_v48  ;;  %v2675_v8 = vunpack.c.h.bf16 %v2340_v25  ;;  %v2370_v52 = vld [vmem:[%s8855_s13 + $0x45c] sm:$0xff] }
 0x3d1   : > { %v2676_v24 = vunpack.c.l.bf16 %v2341_v51  ;;  %v2673_v46 = vunpack.c.l.bf16 %v2339_v18  ;;  %v5799_v17 = vmul.f32 %v8086_v31, %v2668_v14  ;;  %v5800_v22 = vmul.f32 %v8086_v31, %v2669_v58  ;;  %v2371_v14 = vld [vmem:[%s8855_s13 + $0x464] sm:$0xf] }
 0x3d2   : > { %v6217_v45 = vadd.f32 %v6216_v0, %v11675_v43  ;;  %v6238_v57 = vadd.f32 %v6237_v50, %v11682_v20  ;;  %v6258_v55 = vadd.f32 %v6257_v36, %v11672_v3  ;;  %v2677_v21 = vunpack.c.l.bf16 %v2342_v62 }
 0x3d3   : > { %v2678_v10 = vunpack.c.h.bf16 %v2342_v62  ;;  %v5801_v4 = vmul.f32 %v8086_v31, %v2670_v13  ;;  %v5802_v37 = vmul.f32 %v8087_v29, %v2671_v16  ;;  %v5803_v42 = vmul.f32 %v8087_v29, %v2672_v49 }
 0x3d4   : > { %v6218_v48 = vadd.f32 %v6217_v45, %v5799_v17  ;;  %v6239_v47 = vadd.f32 %v6238_v57, %v5800_v22  ;;  %v6259_v33 = vadd.f32 %v6258_v55, %v11702_v11  ;;  %v6204_v25 = vadd.f32 %v6203_v40, %v11767_v2  ;;  %v11844_v55 = vld [vmem:[%s8855_s13 + $0x498] sm:$0xff] }
 0x3d5   : > { %v2679_v51 = vunpack.c.l.bf16 %v2343_v54  ;;  %v5805_v18 = vmul.f32 %v8091_v39, %v2674_v26  ;;  %v5806_v43 = vmul.f32 %v8091_v39, %v2675_v8  ;;  %v5804_v58 = vmul.f32 %v8087_v29, %v2673_v46  ;;  %v8140_v8 = vpop.permute.xlu2 %8139 }
 0x3d6   : > { %v6219_v20 = vadd.f32 %v6218_v48, %v5802_v37  ;;  %v6240_v0 = vadd.f32 %v6239_v47, %v5803_v42  ;;  %v6260_v3 = vadd.f32 %v6259_v33, %v5801_v4  ;;  %v6184_v36 = vrot.slane %v11794_v28, 1  ;;  %v2351_v42 = vld [vmem:[%s8855_s13 + $0x3ec] sm:$0xf]  ;;  %v8105_v48 = vpop.permute.xlu1 %8104  ;;  %v2352_v47 = vld [vmem:[%s8855_s13 + $0x3f0] sm:$0xff] }
 0x3d7   : > { %v2719_v31 = vunpack.c.l.bf16 %v2370_v52  ;;  %v5807_v13 = vmul.f32 %v8091_v39, %v2676_v24  ;;  %v5808_v16 = vmul.f32 %v8092_v5, %v2677_v21  ;;  %v5809_v62 = vmul.f32 %v8092_v5, %v2678_v10  ;;  %v8100_v21 = vpop.permute.xlu0 %8099  ;;  %v2350_v10 = vld [vmem:[%s8855_s13 + $0x3e4] sm:$0xff] }
 0x3d8   : > { %v6220_v49 = vadd.f32 %v6219_v20, %v5805_v18  ;;  %v6241_v50 = vadd.f32 %v6240_v0, %v5806_v43  ;;  %v6261_v11 = vadd.f32 %v6260_v3, %v5804_v58  ;;  %v6205_v17 = vrot.slane %v6204_v25, 1  ;;  %v11879_v20 = vld [vmem:[%s8855_s13 + $0x4a0] sm:$0xf] }
 0x3d9   : > { %v12446_v2 = vunpack.c.h.bf16 %v11722_v9  ;;  %v2720_v29 = vunpack.c.h.bf16 %v2370_v52  ;;  %v2721_v26 = vunpack.c.l.bf16 %v2371_v14  ;;  %v5810_v46 = vmul.f32 %v8092_v5, %v2679_v51 }
 0x3da   : > { %v6221_v39 = vadd.f32 %v6220_v49, %v5808_v16  ;;  %v6242_v24 = vadd.f32 %v6241_v50, %v5809_v62  ;;  %v6262_v54 = vadd.f32 %v6261_v11, %v5807_v13  ;;  %v11828_v22 = vadd.f32 %v6163_v32, %v11764_v53  ;;  %v2349_v32 = vld [vmem:[%s8855_s13 + $0x3e0] sm:$0xf]  ;;  %v2353_v62 = vld [vmem:[%s8855_s13 + $0x3f8] sm:$0xf]  ;;  %v2382_v11 = vld [vmem:[%s8855_s13 + $0x4a4] sm:$0xff] }
 0x3db   : > { %v11823_v40 = vmul.f32 %v11733_v6, %v12446_v2  ;;  %v11831_v9 = vadd.f32 %v6184_v36, %v11794_v28  ;;  %v12447_v45 = vunpack.c.l.bf16 %v11725_v61  ;;  %v11841_v5 = vmul.f32 %v11796_v27, %v2716_v35  ;;  %v2348_v35 = vld [vmem:[%s8855_s13 + $0x3d8] sm:$0xff] }
 0x3dc   : > { %v11849_v53 = vmul.f32 %v11796_v27, %v2717_v41  ;;  %v11854_v61 = vmul.f32 %v11796_v27, %v2718_v34  ;;  %v6263_v28 = vadd.f32 %v6262_v54, %v5810_v46  ;;  %v11862_v4 = vadd.f32 %v6205_v17, %v6204_v25  ;;  %v2354_v17 = vld [vmem:[%s8855_s13 + $0x3fc] sm:$0xff] }
 0x3dd   : > { %v11836_v57 = vmul.f32 %v11733_v6, %v12447_v45  ;;  %v11857_v6 = vmul.f32 %v11787_v56, %v2719_v31  ;;  %v11865_v1 = vmul.f32 %v11787_v56, %v2720_v29  ;;  %v11868_v41 = vmul.f32 %v11787_v56, %v2721_v26 }
 0x3de   : > { %v11870_v44 = vunpack.i.h.bf16 %v8140_v8  ;;  %v11872_v27 = vunpack.i.l.bf16 %v8140_v8  ;;  %v2734_v34 = vunpack.c.l.bf16 %v11844_v55  ;;  %v8102_v37 = vunpack.i.h.bf16 %v8100_v21 }
 0x3df   : > { %v8101_v52 = vunpack.i.l.bf16 %v8100_v21  ;;  %v2686_v33 = vunpack.c.l.bf16 %v2348_v35  ;;  %v2687_v25 = vunpack.c.h.bf16 %v2348_v35  ;;  %v2688_v51 = vunpack.c.l.bf16 %v2349_v32  ;;  %v2383_v21 = vld [vmem:[%s8855_s13 + $0x4ac] sm:$0xf] }
 0x3e0   : > { %v2689_v18 = vunpack.c.l.bf16 %v2350_v10  ;;  %v2735_v56 = vunpack.c.h.bf16 %v11844_v55  ;;  %v6222_v43 = vrot.slane %v6221_v39, 4  ;;  %v6243_v14 = vrot.slane %v6242_v24, 4 }
 0x3e1   : > { %v2690_v58 = vunpack.c.h.bf16 %v2350_v10  ;;  %v2691_v0 = vunpack.c.l.bf16 %v2351_v42  ;;  %v5817_v3 = vmul.f32 %v8101_v52, %v2686_v33  ;;  %v5818_v36 = vmul.f32 %v8101_v52, %v2687_v25  ;;  %v2355_v25 = vld [vmem:[%s8855_s13 + $0x404] sm:$0xf] }
 0x3e2   : > { %v5819_v31 = vmul.f32 %v8101_v52, %v2688_v51  ;;  %v6264_v13 = vrot.slane %v6263_v28, 4  ;;  %v8106_v16 = vunpack.i.l.bf16 %v8105_v48  ;;  %v2692_v49 = vunpack.c.l.bf16 %v2352_v47 }
 0x3e3   : > { %v2693_v50 = vunpack.c.h.bf16 %v2352_v47  ;;  %v5820_v2 = vmul.f32 %v8102_v37, %v2689_v18  ;;  %v5821_v29 = vmul.f32 %v8102_v37, %v2690_v58  ;;  %v6271_v26 = vadd.f32 %v11711_v15, %v5817_v3  ;;  %v8155_v15 = vpop.permute.xlu2 %8154 }
 0x3e4   : > { %v6292_v8 = vadd.f32 %v11713_v7, %v5818_v36  ;;  %v2736_v46 = vunpack.c.l.bf16 %v11879_v20  ;;  %v6223_v54 = vadd.f32 %v6222_v43, %v6221_v39  ;;  %v6244_v45 = vadd.f32 %v6243_v14, %v6242_v24  ;;  %v2392_v14 = vld [vmem:[%s8855_s13 + $0x4e0] sm:$0xff] }
 0x3e5   : > { %v6313_v55 = vadd.f32 %v11727_v60, %v5819_v31  ;;  %v2694_v35 = vunpack.c.l.bf16 %v2353_v62  ;;  %v5822_v32 = vmul.f32 %v8102_v37, %v2691_v0  ;;  %v6272_v10 = vadd.f32 %v6271_v26, %v5820_v2  ;;  %v2393_v62 = vld [vmem:[%s8855_s13 + $0x4e8] sm:$0xf] }
 0x3e6   : > { %v6293_v52 = vadd.f32 %v6292_v8, %v5821_v29  ;;  %v2737_v42 = vunpack.c.l.bf16 %v2382_v11  ;;  %v6265_v47 = vadd.f32 %v6264_v13, %v6263_v28  ;;  %v8107_v33 = vunpack.i.h.bf16 %v8105_v48 }
 0x3e7   : > { %v2695_v51 = vunpack.c.l.bf16 %v2354_v17  ;;  %v2696_v18 = vunpack.c.h.bf16 %v2354_v17  ;;  %v5823_v7 = vmul.f32 %v8106_v16, %v2692_v49  ;;  %v5824_v58 = vmul.f32 %v8106_v16, %v2693_v50  ;;  %v2394_v50 = vld [vmem:[%s8855_s13 + $0x4ec] sm:$0xff] }
 0x3e8   : > { %v6314_v39 = vadd.f32 %v6313_v55, %v5822_v32  ;;  %v2738_v24 = vunpack.c.h.bf16 %v2382_v11  ;;  %v2739_v60 = vunpack.c.l.bf16 %v2383_v21  ;;  %v6224_v43 = vrot.slane %v6223_v54, 2  ;;  %v2395_v11 = vld [vmem:[%s8855_s13 + $0x4f4] sm:$0xf] }
 0x3e9   : > { %v6245_v37 = vrot.slane %v6244_v45, 2  ;;  %v2697_v20 = vunpack.c.l.bf16 %v2355_v25  ;;  %v5825_v0 = vmul.f32 %v8106_v16, %v2694_v35  ;;  %v6273_v3 = vadd.f32 %v6272_v10, %v5823_v7 }
 0x3ea   : > { %v6294_v28 = vadd.f32 %v6293_v52, %v5824_v58  ;;  %v11892_v48 = vmul.f32 %v11872_v27, %v2734_v34  ;;  %v11895_v36 = vmul.f32 %v11872_v27, %v2735_v56  ;;  %v6266_v31 = vrot.slane %v6265_v47, 2  ;;  %v8115_v58 = vpop.permute.xlu0 %8114 }
 0x3eb   : > { %v8157_v13 = vunpack.i.h.bf16 %v8155_v15  ;;  %v8156_v49 = vunpack.i.l.bf16 %v8155_v15  ;;  %v5826_v17 = vmul.f32 %v8107_v33, %v2695_v51  ;;  %v5827_v2 = vmul.f32 %v8107_v33, %v2696_v18 }
 0x3ec   : > { %v6315_v29 = vadd.f32 %v6314_v39, %v5825_v0  ;;  %v6225_v26 = vadd.f32 %v6224_v43, %v6223_v54  ;;  %v6246_v8 = vadd.f32 %v6245_v37, %v6244_v45  ;;  %v2752_v16 = vunpack.c.l.bf16 %v2392_v14  ;;  %v8170_v39 = vpop.permute.xlu2 %8169  ;;  %v2361_v0 = vld [vmem:[%s8855_s13 + $0x428] sm:$0xf] }
 0x3ed   : > { %v2753_v55 = vunpack.c.h.bf16 %v2392_v14  ;;  %v2754_v21 = vunpack.c.l.bf16 %v2393_v62  ;;  %v5828_v35 = vmul.f32 %v8107_v33, %v2697_v20  ;;  %v6274_v34 = vadd.f32 %v6273_v3, %v5826_v17  ;;  %v2404_v20 = vld [vmem:[%s8855_s13 + $0x528] sm:$0xff]  ;;  %v2405_v17 = vld [vmem:[%s8855_s13 + $0x530] sm:$0xf] }
 0x3ee   : > { %v6295_v32 = vadd.f32 %v6294_v28, %v5827_v2  ;;  %v6267_v56 = vadd.f32 %v6266_v31, %v6265_v47  ;;  %v2755_v10 = vunpack.c.l.bf16 %v2394_v50  ;;  %v2756_v52 = vunpack.c.h.bf16 %v2394_v50  ;;  %v2362_v28 = vld [vmem:[%s8855_s13 + $0x42c] sm:$0xff]  ;;  %v2406_v2 = vld [vmem:[%s8855_s13 + $0x534] sm:$0xff] }
 0x3ef   : > { %v2757_v25 = vunpack.c.l.bf16 %v2395_v11  ;;  %v11901_v15 = vmul.f32 %v11872_v27, %v2736_v46  ;;  %v11904_v51 = vmul.f32 %v11870_v44, %v2737_v42  ;;  %v11907_v54 = vmul.f32 %v11870_v44, %v2738_v24  ;;  %v2360_v27 = vld [vmem:[%s8855_s13 + $0x420] sm:$0xff] }
 0x3f0   : > { %v6316_v45 = vadd.f32 %v6315_v29, %v5828_v35  ;;  %v11910_v33 = vmul.f32 %v11870_v44, %v2739_v60  ;;  %v6226_v18 = vrot.slane %v6225_v26, 1  ;;  %v6247_v47 = vrot.slane %v6246_v8, 1 }
 0x3f1   : > { %v11912_v7 = vmul.f32 %v8156_v49, %v2752_v16  ;;  %v11915_v46 = vmul.f32 %v8156_v49, %v2753_v55  ;;  %v11917_v42 = vmul.f32 %v8156_v49, %v2754_v21  ;;  %v6275_v24 = vadd.f32 %v6274_v34, %v11742_v30  ;;  %v8120_v16 = vpop.permute.xlu1 %8119  ;;  %v2363_v34 = vld [vmem:[%s8855_s13 + $0x434] sm:$0xf] }
 0x3f2   : > { %v6296_v43 = vadd.f32 %v6295_v32, %v11775_v59  ;;  %v6268_v44 = vrot.slane %v6267_v56, 1  ;;  %v11921_v60 = vmul.f32 %v8157_v13, %v2755_v10  ;;  %v11923_v37 = vmul.f32 %v8157_v13, %v2756_v52  ;;  %v2364_v10 = vld [vmem:[%s8855_s13 + $0x438] sm:$0xff] }
 0x3f3   : > { %12448 = vst [vmem:[#allocation46_spill] sm:$0xff] %v11917_v42  ;;  %v11925_v14 = vmul.f32 %v8157_v13, %v2757_v25  ;;  %v8116_v3 = vunpack.i.l.bf16 %v8115_v58  ;;  %v2704_v31 = vunpack.c.l.bf16 %v2360_v27  ;;  %v2705_v62 = vunpack.c.h.bf16 %v2360_v27  ;;  %v2407_v13 = vld [vmem:[%s8855_s13 + $0x53c] sm:$0xf] }
 0x3f4   : > { %12449 = vst [vmem:[#allocation40_spill] sm:$0xff] %v11921_v60  ;;  %v6317_v30 = vadd.f32 %v6316_v45, %v11780_v63  ;;  %v11931_v59 = vadd.f32 %v6226_v18, %v6225_v26  ;;  %v11933_v49 = vadd.f32 %v6247_v47, %v6246_v8  ;;  %v8172_v50 = vunpack.i.h.bf16 %v8170_v39 }
 0x3f5   : > { %12450 = vst [vmem:[#allocation32_spill] sm:$0xff] %v11923_v37  ;;  %v8171_v11 = vunpack.i.l.bf16 %v8170_v39  ;;  %v2770_v29 = vunpack.c.l.bf16 %v2404_v20  ;;  %v2706_v55 = vunpack.c.l.bf16 %v2361_v0  ;;  %v6276_v21 = vadd.f32 %v6275_v24, %v11785_v38  ;;  %v2365_v24 = vld [vmem:[%s8855_s13 + $0x440] sm:$0xf] }
 0x3f6   : > { %12451 = vst [vmem:[#allocation33_spill] sm:$0xff] %v11925_v14  ;;  %v6297_v35 = vadd.f32 %v6296_v43, %v11823_v40  ;;  %v11940_v63 = vadd.f32 %v6268_v44, %v6267_v56  ;;  %v2771_v26 = vunpack.c.h.bf16 %v2404_v20  ;;  %v8117_v8 = vunpack.i.h.bf16 %v8115_v58  ;;  %v2366_v40 = vld [vmem:[%s8855_s13 + $0x444] sm:$0xff]  ;;  %v2367_v43 = vld [vmem:[%s8855_s13 + $0x44c] sm:$0xf] }
 0x3f7   : > { %v2707_v32 = vunpack.c.l.bf16 %v2362_v28  ;;  %v2708_v52 = vunpack.c.h.bf16 %v2362_v28  ;;  %v5835_v25 = vmul.f32 %v8116_v3, %v2704_v31  ;;  %v5836_v45 = vmul.f32 %v8116_v3, %v2705_v62 }
 0x3f8   : > { %v6318_v18 = vadd.f32 %v6317_v30, %v11836_v57  ;;  %v2772_v47 = vunpack.c.l.bf16 %v2405_v17  ;;  %v2773_v27 = vunpack.c.l.bf16 %v2406_v2  ;;  %v2774_v38 = vunpack.c.h.bf16 %v2406_v2 }
 0x3f9   : > { %v2775_v39 = vunpack.c.l.bf16 %v2407_v13  ;;  %v2709_v56 = vunpack.c.l.bf16 %v2363_v34  ;;  %v5837_v44 = vmul.f32 %v8116_v3, %v2706_v55  ;;  %v6277_v0 = vadd.f32 %v6276_v21, %v5835_v25  ;;  %v8185_v21 = vpop.permute.xlu2 %8184 }
 0x3fa   : > { %v6298_v20 = vadd.f32 %v6297_v35, %v5836_v45  ;;  %v11948_v58 = vmul.f32 %v8171_v11, %v2770_v29  ;;  %v8121_v14 = vunpack.i.l.bf16 %v8120_v16  ;;  %v2710_v37 = vunpack.c.l.bf16 %v2364_v10  ;;  %v8135_v45 = vpop.permute.xlu1 %8134 }
 0x3fb   : > { %v2711_v28 = vunpack.c.h.bf16 %v2364_v10  ;;  %v2712_v31 = vunpack.c.l.bf16 %v2365_v24  ;;  %v5838_v62 = vmul.f32 %v8117_v8, %v2707_v32  ;;  %v5839_v57 = vmul.f32 %v8117_v8, %v2708_v52  ;;  %v2378_v24 = vld [vmem:[%s8855_s13 + $0x48c] sm:$0xff] }
 0x3fc   : > { %v6319_v30 = vadd.f32 %v6318_v18, %v5837_v44  ;;  %v8122_v17 = vunpack.i.h.bf16 %v8120_v16  ;;  %v2713_v2 = vunpack.c.l.bf16 %v2366_v40  ;;  %v2714_v13 = vunpack.c.h.bf16 %v2366_v40  ;;  %v2416_v16 = vld [vmem:[%s8855_s13 + $0x570] sm:$0xff]  ;;  %v2376_v18 = vld [vmem:[%s8855_s13 + $0x480] sm:$0xff]  ;;  %v2417_v44 = vld [vmem:[%s8855_s13 + $0x578] sm:$0xf] }
 0x3fd   : > { %v2715_v60 = vunpack.c.l.bf16 %v2367_v43  ;;  %v11950_v42 = vmul.f32 %v8171_v11, %v2771_v26  ;;  %v5840_v3 = vmul.f32 %v8117_v8, %v2709_v56  ;;  %v6278_v55 = vadd.f32 %v6277_v0, %v5838_v62  ;;  %v2418_v0 = vld [vmem:[%s8855_s13 + $0x57c] sm:$0xff] }
 0x3fe   : > { %v6299_v29 = vadd.f32 %v6298_v20, %v5839_v57  ;;  %v11952_v35 = vmul.f32 %v8171_v11, %v2772_v47  ;;  %v11954_v34 = vmul.f32 %v8172_v50, %v2773_v27  ;;  %v11956_v32 = vmul.f32 %v8172_v50, %v2774_v38  ;;  %v2377_v38 = vld [vmem:[%s8855_s13 + $0x488] sm:$0xf] }
 0x3ff   : > { %v11958_v10 = vmul.f32 %v8172_v50, %v2775_v39  ;;  %v5841_v52 = vmul.f32 %v8121_v14, %v2710_v37  ;;  %v5842_v25 = vmul.f32 %v8121_v14, %v2711_v28  ;;  %v5843_v26 = vmul.f32 %v8121_v14, %v2712_v31  ;;  %v2379_v37 = vld [vmem:[%s8855_s13 + $0x494] sm:$0xf] }
 0x400   : > { %v6320_v8 = vadd.f32 %v6319_v30, %v5840_v3  ;;  %v5844_v11 = vmul.f32 %v8122_v17, %v2713_v2  ;;  %v5845_v47 = vmul.f32 %v8122_v17, %v2714_v13  ;;  %v5846_v40 = vmul.f32 %v8122_v17, %v2715_v60 }
 0x401   : > { %v11963_v27 = vunpack.i.h.bf16 %v8185_v21  ;;  %v6279_v43 = vadd.f32 %v6278_v55, %v5841_v52  ;;  %v6300_v50 = vadd.f32 %v6299_v29, %v5842_v25  ;;  %v8186_v39 = vunpack.i.l.bf16 %v8185_v21  ;;  %v8130_v52 = vpop.permute.xlu0 %8129 }
 0x402   : > { %v2788_v56 = vunpack.c.l.bf16 %v2416_v16  ;;  %v8137_v20 = vunpack.i.h.bf16 %v8135_v45  ;;  %v8136_v14 = vunpack.i.l.bf16 %v8135_v45  ;;  %v2728_v28 = vunpack.c.l.bf16 %v2376_v18  ;;  %v2372_v45 = vld [vmem:[%s8855_s13 + $0x468] sm:$0xff] }
 0x403   : > { %v2731_v31 = vunpack.c.l.bf16 %v2378_v24  ;;  %v6321_v62 = vadd.f32 %v6320_v8, %v5843_v26  ;;  %v2729_v57 = vunpack.c.h.bf16 %v2376_v18  ;;  %v2730_v30 = vunpack.c.l.bf16 %v2377_v38  ;;  %v2419_v26 = vld [vmem:[%s8855_s13 + $0x584] sm:$0xf] }
 0x404   : > { %v2732_v2 = vunpack.c.h.bf16 %v2378_v24  ;;  %v2733_v60 = vunpack.c.l.bf16 %v2379_v37  ;;  %v6485_v17 = vsel %vm4895_vm2, %v11828_v22, %v11567_v12  ;;  %v6492_v13 = vsel %vm4895_vm2, %v11831_v9, %v11571_v19  ;;  %v2373_v37 = vld [vmem:[%s8855_s13 + $0x470] sm:$0xf] }
 0x405   : > { %v6499_v3 = vsel %vm4895_vm2, %v11862_v4, %v11576_v23  ;;  %v2789_v55 = vunpack.c.h.bf16 %v2416_v16  ;;  %v2790_v29 = vunpack.c.l.bf16 %v2417_v44  ;;  %v2791_v21 = vunpack.c.l.bf16 %v2418_v0 }
 0x406   : > { %v11980_v25 = vsel %vm4897_vm3, %v11931_v59, %v6485_v17  ;;  %v5859_v12 = vmul.f32 %v8136_v14, %v2728_v28  ;;  %v5862_v22 = vmul.f32 %v8137_v20, %v2731_v31  ;;  %v11985_v19 = vsel %vm4897_vm3, %v11933_v49, %v6492_v13  ;;  %v2374_v17 = vld [vmem:[%s8855_s13 + $0x474] sm:$0xff] }
 0x407   : > { %v11989_v23 = vsel %vm4897_vm3, %v11940_v63, %v6499_v3  ;;  %v6280_v9 = vadd.f32 %v6279_v43, %v5844_v11  ;;  %v6301_v4 = vadd.f32 %v6300_v50, %v5845_v47  ;;  %v6322_v16 = vadd.f32 %v6321_v62, %v5846_v40  ;;  %v2375_v11 = vld [vmem:[%s8855_s13 + $0x47c] sm:$0xf] }
 0x408   : > { %v2792_v8 = vunpack.c.h.bf16 %v2418_v0  ;;  %v5860_v59 = vmul.f32 %v8136_v14, %v2729_v57  ;;  %v5861_v18 = vmul.f32 %v8136_v14, %v2730_v30  ;;  %v5863_v24 = vmul.f32 %v8137_v20, %v2732_v2 }
 0x409   : > { %v5864_v38 = vmul.f32 %v8137_v20, %v2733_v60  ;;  %v2793_v44 = vunpack.c.l.bf16 %v2419_v26  ;;  %v11993_v28 = vmul.f32 %v8186_v39, %v2788_v56  ;;  %v11995_v49 = vmul.f32 %v8186_v39, %v2789_v55  ;;  %v12015_v26 = vld [vmem:[%s8855_s13 + $0x5b8] sm:$0xff] }
 0x40a   : > { %v8132_v31 = vunpack.i.h.bf16 %v8130_v52  ;;  %v6333_v63 = vadd.f32 %v5862_v22, %v5859_v12  ;;  %v8131_v13 = vunpack.i.l.bf16 %v8130_v52  ;;  %v2722_v47 = vunpack.c.l.bf16 %v2372_v45  ;;  %v8200_v52 = vpop.permute.xlu2 %8199  ;;  %v8145_v22 = vpop.permute.xlu0 %8144 }
 0x40b   : > { %v2723_v43 = vunpack.c.h.bf16 %v2372_v45  ;;  %v2724_v40 = vunpack.c.l.bf16 %v2373_v37  ;;  %v6281_v50 = vadd.f32 %v6280_v9, %v11841_v5  ;;  %v6302_v0 = vadd.f32 %v6301_v4, %v11849_v53  ;;  %v2385_v9 = vld [vmem:[%s8855_s13 + $0x4b8] sm:$0xf] }
 0x40c   : > { %v6323_v20 = vadd.f32 %v6322_v16, %v11854_v61  ;;  %v6354_v14 = vadd.f32 %v5863_v24, %v5860_v59  ;;  %v6375_v56 = vadd.f32 %v5864_v38, %v5861_v18  ;;  %v2725_v62 = vunpack.c.l.bf16 %v2374_v17  ;;  %v2386_v18 = vld [vmem:[%s8855_s13 + $0x4bc] sm:$0xff]  ;;  %v12036_v24 = vld [vmem:[%s8855_s13 + $0x5c4] sm:$0xff] }
 0x40d   : > { %v2726_v57 = vunpack.c.h.bf16 %v2374_v17  ;;  %v12002_v30 = vmul.f32 %v8186_v39, %v2790_v29  ;;  %v12005_v2 = vmul.f32 %v11963_v27, %v2791_v21  ;;  %v12008_v60 = vmul.f32 %v11963_v27, %v2792_v8 }
 0x40e   : > { %v2727_v5 = vunpack.c.l.bf16 %v2375_v11  ;;  %v12011_v3 = vmul.f32 %v11963_v27, %v2793_v44  ;;  %v6334_v53 = vadd.f32 %v6333_v63, %v11892_v48  ;;  %v5853_v61 = vmul.f32 %v8131_v13, %v2722_v47  ;;  %v2384_v27 = vld [vmem:[%s8855_s13 + $0x4b0] sm:$0xff]  ;;  %v2388_v11 = vld [vmem:[%s8855_s13 + $0x4c8] sm:$0xff]  ;;  %v2387_v47 = vld [vmem:[%s8855_s13 + $0x4c4] sm:$0xf] }
 0x40f   : > { %v5854_v55 = vmul.f32 %v8131_v13, %v2723_v43  ;;  %v5855_v39 = vmul.f32 %v8131_v13, %v2724_v40  ;;  %v6282_v29 = vadd.f32 %v6281_v50, %v11857_v6  ;;  %v6303_v21 = vadd.f32 %v6302_v0, %v11865_v1  ;;  %v12031_v1 = vld [vmem:[%s8855_s13 + $0x5c0] sm:$0xf]  ;;  %v2389_v40 = vld [vmem:[%s8855_s13 + $0x4d0] sm:$0xf] }
 0x410   : > { %v6324_v12 = vadd.f32 %v6323_v20, %v11868_v41  ;;  %v6355_v48 = vadd.f32 %v6354_v14, %v11895_v36  ;;  %v6376_v4 = vadd.f32 %v6375_v56, %v11901_v15  ;;  %v5856_v16 = vmul.f32 %v8132_v31, %v2725_v62  ;;  %v8150_v36 = vpop.permute.xlu1 %8149  ;;  %v2390_v62 = vld [vmem:[%s8855_s13 + $0x4d4] sm:$0xff] }
 0x411   : > { %v5857_v8 = vmul.f32 %v8132_v31, %v2726_v57  ;;  %v12024_v45 = vmul.f32 %v8132_v31, %v2727_v5  ;;  %v12026_v59 = vunpack.i.h.bf16 %v8200_v52  ;;  %v12028_v6 = vunpack.i.l.bf16 %v8200_v52 }
 0x412   : > { %v8146_v15 = vunpack.i.l.bf16 %v8145_v22  ;;  %v2740_v38 = vunpack.c.l.bf16 %v2384_v27  ;;  %v2741_v37 = vunpack.c.h.bf16 %v2384_v27  ;;  %v2742_v44 = vunpack.c.l.bf16 %v2385_v9  ;;  %v12049_v9 = vld [vmem:[%s8855_s13 + $0x5cc] sm:$0xf] }
 0x413   : > { %v6283_v31 = vadd.f32 %v6282_v29, %v5853_v61  ;;  %v6304_v17 = vadd.f32 %v6303_v21, %v5854_v55  ;;  %v6325_v63 = vadd.f32 %v6324_v12, %v5855_v39  ;;  %v8147_v50 = vunpack.i.h.bf16 %v8145_v22  ;;  %v2391_v61 = vld [vmem:[%s8855_s13 + $0x4dc] sm:$0xf] }
 0x414   : > { %v2743_v0 = vunpack.c.l.bf16 %v2386_v18  ;;  %v5871_v20 = vmul.f32 %v8146_v15, %v2740_v38  ;;  %v8151_v56 = vunpack.i.l.bf16 %v8150_v36  ;;  %v2744_v57 = vunpack.c.h.bf16 %v2386_v18 }
 0x415   : > { %v5872_v5 = vmul.f32 %v8146_v15, %v2741_v37  ;;  %v2746_v55 = vunpack.c.l.bf16 %v2388_v11  ;;  %v2745_v52 = vunpack.c.l.bf16 %v2387_v47  ;;  %v5873_v39 = vmul.f32 %v8146_v15, %v2742_v44 }
 0x416   : > { %v6335_v29 = vadd.f32 %v6334_v53, %v11904_v51  ;;  %v8152_v21 = vunpack.i.h.bf16 %v8150_v36  ;;  %v2747_v12 = vunpack.c.h.bf16 %v2388_v11  ;;  %v2748_v27 = vunpack.c.l.bf16 %v2389_v40 }
 0x417   : > { %v6356_v22 = vadd.f32 %v6355_v48, %v11907_v54  ;;  %v2749_v38 = vunpack.c.l.bf16 %v2390_v62  ;;  %v5874_v43 = vmul.f32 %v8147_v50, %v2743_v0  ;;  %v6377_v13 = vadd.f32 %v6376_v4, %v11910_v33 }
 0x418   : > { %v6336_v14 = vadd.f32 %v6335_v29, %v5871_v20  ;;  %v2750_v18 = vunpack.c.h.bf16 %v2390_v62  ;;  %v2751_v37 = vunpack.c.l.bf16 %v2391_v61  ;;  %v5875_v41 = vmul.f32 %v8147_v50, %v2744_v57  ;;  %v8160_v20 = vpop.permute.xlu0 %8159  ;;  %v2396_v62 = vld [vmem:[%s8855_s13 + $0x4f8] sm:$0xff] }
 0x419   : > { %v6357_v47 = vadd.f32 %v6356_v22, %v5872_v5  ;;  %v5877_v15 = vmul.f32 %v8151_v56, %v2746_v55  ;;  %v5876_v44 = vmul.f32 %v8147_v50, %v2745_v52  ;;  %v6378_v53 = vadd.f32 %v6377_v13, %v5873_v39  ;;  %v2397_v5 = vld [vmem:[%s8855_s13 + $0x500] sm:$0xf]  ;;  %v2400_v52 = vld [vmem:[%s8855_s13 + $0x510] sm:$0xff]  ;;  %v2398_v39 = vld [vmem:[%s8855_s13 + $0x504] sm:$0xff] }
 0x41a   : > { %v6337_v51 = vadd.f32 %v6336_v14, %v5874_v43  ;;  %v2810_v36 = vunpack.c.h.bf16 %v12036_v24  ;;  %v2811_v54 = vunpack.c.l.bf16 %v12049_v9  ;;  %v5878_v48 = vmul.f32 %v8151_v56, %v2747_v12  ;;  %v8165_v14 = vpop.permute.xlu1 %8164 }
 0x41b   : > { %v6358_v11 = vadd.f32 %v6357_v47, %v5875_v41  ;;  %v5879_v40 = vmul.f32 %v8151_v56, %v2748_v27  ;;  %v5880_v0 = vmul.f32 %v8152_v21, %v2749_v38  ;;  %v6379_v4 = vadd.f32 %v6378_v53, %v5876_v44  ;;  %v2401_v38 = vld [vmem:[%s8855_s13 + $0x518] sm:$0xf] }
 0x41c   : > { %v6338_v33 = vadd.f32 %v6337_v51, %v5877_v15  ;;  %v12055_v57 = vadd.f32 %v6283_v31, %v5856_v16  ;;  %v12057_v43 = vadd.f32 %v6304_v17, %v5857_v8  ;;  %v5881_v13 = vmul.f32 %v8152_v21, %v2750_v18  ;;  %v2399_v17 = vld [vmem:[%s8855_s13 + $0x50c] sm:$0xf]  ;;  %v2402_v15 = vld [vmem:[%s8855_s13 + $0x51c] sm:$0xff] }
 0x41d   : > { %v6359_v50 = vadd.f32 %v6358_v11, %v5878_v48  ;;  %v12061_v41 = vadd.f32 %v6325_v63, %v12024_v45  ;;  %v5882_v56 = vmul.f32 %v8152_v21, %v2751_v37  ;;  %v6380_v55 = vadd.f32 %v6379_v4, %v5879_v40  ;;  %v12453_v48 = vld [vmem:[#allocation46_spill] sm:$0xff]  ;;  %v12454_v4 = vld [vmem:[#allocation40_spill] sm:$0xff] }
 0x41e   : > { %v6339_v61 = vadd.f32 %v6338_v33, %v5880_v0  ;;  %v12452_v29 = vunpack.c.l.bf16 %v12015_v26  ;;  %v8161_v31 = vunpack.i.l.bf16 %v8160_v20  ;;  %v2758_v12 = vunpack.c.l.bf16 %v2396_v62 }
 0x41f   : > { %v6360_v8 = vadd.f32 %v6359_v50, %v5881_v13  ;;  %v6381_v27 = vadd.f32 %v6380_v55, %v5882_v56  ;;  %v8166_v22 = vunpack.i.l.bf16 %v8165_v14  ;;  %v2759_v45 = vunpack.c.h.bf16 %v2396_v62  ;;  %v2403_v62 = vld [vmem:[%s8855_s13 + $0x524] sm:$0xf]  ;;  %v12456_v55 = vld [vmem:[#allocation33_spill] sm:$0xff] }
 0x420   : > { %v12068_v16 = vmul.f32 %v12028_v6, %v12452_v29  ;;  %v2760_v63 = vunpack.c.l.bf16 %v2397_v5  ;;  %v2764_v21 = vunpack.c.l.bf16 %v2400_v52  ;;  %v8162_v18 = vunpack.i.h.bf16 %v8160_v20  ;;  %v12455_v20 = vld [vmem:[#allocation32_spill] sm:$0xff] }
 0x421   : > { %v2761_v37 = vunpack.c.l.bf16 %v2398_v39  ;;  %v6340_v47 = vadd.f32 %v6339_v61, %v11912_v7  ;;  %v2762_v44 = vunpack.c.h.bf16 %v2398_v39  ;;  %v2763_v51 = vunpack.c.l.bf16 %v2399_v17 }
 0x422   : > { %v6361_v53 = vadd.f32 %v6360_v8, %v11915_v46  ;;  %v6382_v11 = vadd.f32 %v6381_v27, %v12453_v48  ;;  %v2765_v40 = vunpack.c.h.bf16 %v2400_v52  ;;  %v2766_v0 = vunpack.c.l.bf16 %v2401_v38  ;;  %v8175_v27 = vpop.permute.xlu0 %8174  ;;  %v2408_v38 = vld [vmem:[%s8855_s13 + $0x540] sm:$0xff]  ;;  %v2410_v48 = vld [vmem:[%s8855_s13 + $0x54c] sm:$0xff] }
 0x423   : > { %v5889_v33 = vmul.f32 %v8161_v31, %v2758_v12  ;;  %v6341_v13 = vadd.f32 %v6340_v47, %v12454_v4  ;;  %v5890_v50 = vmul.f32 %v8161_v31, %v2759_v45  ;;  %v5891_v5 = vmul.f32 %v8161_v31, %v2760_v63 }
 0x424   : > { %v6362_v56 = vadd.f32 %v6361_v53, %v12455_v20  ;;  %v6383_v7 = vadd.f32 %v6382_v11, %v12456_v55  ;;  %v8167_v61 = vunpack.i.h.bf16 %v8165_v14  ;;  %v2767_v39 = vunpack.c.l.bf16 %v2402_v15  ;;  %v2409_v53 = vld [vmem:[%s8855_s13 + $0x548] sm:$0xf]  ;;  %v2412_v55 = vld [vmem:[%s8855_s13 + $0x558] sm:$0xff] }
 0x425   : > { %v5892_v46 = vmul.f32 %v8162_v18, %v2761_v37  ;;  %v6342_v29 = vadd.f32 %v6341_v13, %v5889_v33  ;;  %v5893_v8 = vmul.f32 %v8162_v18, %v2762_v44  ;;  %v5894_v52 = vmul.f32 %v8162_v18, %v2763_v51  ;;  %v2411_v37 = vld [vmem:[%s8855_s13 + $0x554] sm:$0xf] }
 0x426   : > { %v6363_v17 = vadd.f32 %v6362_v56, %v5890_v50  ;;  %v6384_v12 = vadd.f32 %v6383_v7, %v5891_v5  ;;  %v2768_v47 = vunpack.c.h.bf16 %v2402_v15  ;;  %v2769_v45 = vunpack.c.l.bf16 %v2403_v62  ;;  %v8180_v56 = vpop.permute.xlu1 %8179 }
 0x427   : > { %v5895_v31 = vmul.f32 %v8166_v22, %v2764_v21  ;;  %v6343_v63 = vadd.f32 %v6342_v29, %v5892_v46  ;;  %v5896_v4 = vmul.f32 %v8166_v22, %v2765_v40  ;;  %v5897_v11 = vmul.f32 %v8166_v22, %v2766_v0  ;;  %v2413_v46 = vld [vmem:[%s8855_s13 + $0x560] sm:$0xf] }
 0x428   : > { %v6364_v14 = vadd.f32 %v6363_v17, %v5893_v8  ;;  %v6385_v20 = vadd.f32 %v6384_v12, %v5894_v52  ;;  %v8177_v33 = vunpack.i.h.bf16 %v8175_v27  ;;  %v8176_v44 = vunpack.i.l.bf16 %v8175_v27 }
 0x429   : > { %v2776_v18 = vunpack.c.l.bf16 %v2408_v38  ;;  %v2777_v51 = vunpack.c.h.bf16 %v2408_v38  ;;  %v5898_v13 = vmul.f32 %v8167_v61, %v2767_v39  ;;  %v6344_v50 = vadd.f32 %v6343_v63, %v5895_v31 }
 0x42a   : > { %v2778_v5 = vunpack.c.l.bf16 %v2409_v53  ;;  %v2779_v15 = vunpack.c.l.bf16 %v2410_v48  ;;  %v6365_v62 = vadd.f32 %v6364_v14, %v5896_v4  ;;  %v6386_v21 = vadd.f32 %v6385_v20, %v5897_v11  ;;  %v2414_v53 = vld [vmem:[%s8855_s13 + $0x564] sm:$0xff]  ;;  %v2415_v11 = vld [vmem:[%s8855_s13 + $0x56c] sm:$0xf] }
 0x42b   : > { %v2780_v40 = vunpack.c.h.bf16 %v2410_v48  ;;  %v2781_v7 = vunpack.c.l.bf16 %v2411_v37  ;;  %v5899_v22 = vmul.f32 %v8167_v61, %v2768_v47  ;;  %v5900_v0 = vmul.f32 %v8167_v61, %v2769_v45 }
 0x42c   : > { %v5907_v29 = vmul.f32 %v8176_v44, %v2776_v18  ;;  %v5908_v8 = vmul.f32 %v8176_v44, %v2777_v51  ;;  %v5909_v52 = vmul.f32 %v8176_v44, %v2778_v5  ;;  %v5910_v17 = vmul.f32 %v8177_v33, %v2779_v15 }
 0x42d   : > { %v5911_v12 = vmul.f32 %v8177_v33, %v2780_v40  ;;  %v5912_v39 = vmul.f32 %v8177_v33, %v2781_v7  ;;  %v12457_v27 = vunpack.c.h.bf16 %v12015_v26  ;;  %v6345_v31 = vadd.f32 %v6344_v50, %v5898_v13 }
 0x42e   : > { %v8181_v63 = vunpack.i.l.bf16 %v8180_v56  ;;  %v2782_v48 = vunpack.c.l.bf16 %v2412_v55  ;;  %v6366_v4 = vadd.f32 %v6365_v62, %v5899_v22  ;;  %v6387_v47 = vadd.f32 %v6386_v21, %v5900_v0 }
 0x42f   : > { %v12089_v38 = vmul.f32 %v12028_v6, %v12457_v27  ;;  %v2783_v61 = vunpack.c.h.bf16 %v2412_v55  ;;  %v2784_v45 = vunpack.c.l.bf16 %v2413_v46  ;;  %v6285_v14 = vrot.slane %v12055_v57, 4  ;;  %v2420_v27 = vld [vmem:[%s8855_s13 + $0x588] sm:$0xff] }
 0x430   : > { %v6306_v20 = vrot.slane %v12057_v43, 4  ;;  %v6327_v37 = vrot.slane %v12061_v41, 4  ;;  %v8182_v33 = vunpack.i.h.bf16 %v8180_v56  ;;  %v2785_v26 = vunpack.c.l.bf16 %v2414_v53 }
 0x431   : > { %v6396_v44 = vadd.f32 %v5910_v17, %v5907_v29  ;;  %v6417_v18 = vadd.f32 %v5911_v12, %v5908_v8  ;;  %v6438_v51 = vadd.f32 %v5912_v39, %v5909_v52  ;;  %v6346_v13 = vadd.f32 %v6345_v31, %v11948_v58  ;;  %v8195_v29 = vpop.permute.xlu1 %8194  ;;  %v2424_v52 = vld [vmem:[%s8855_s13 + $0x5a0] sm:$0xff]  ;;  %v2421_v31 = vld [vmem:[%s8855_s13 + $0x590] sm:$0xf] }
 0x432   : > { %v2786_v50 = vunpack.c.h.bf16 %v2414_v53  ;;  %v2787_v5 = vunpack.c.l.bf16 %v2415_v11  ;;  %v5913_v15 = vmul.f32 %v8181_v63, %v2782_v48  ;;  %v6367_v62 = vadd.f32 %v6366_v4, %v11950_v42 }
 0x433   : > { %v6388_v21 = vadd.f32 %v6387_v47, %v11952_v35  ;;  %v5914_v55 = vmul.f32 %v8181_v63, %v2783_v61  ;;  %v5915_v40 = vmul.f32 %v8181_v63, %v2784_v45  ;;  %v12100_v7 = vadd.f32 %v6285_v14, %v12055_v57  ;;  %v2423_v61 = vld [vmem:[%s8855_s13 + $0x59c] sm:$0xf] }
 0x434   : > { %v12103_v56 = vadd.f32 %v6306_v20, %v12057_v43  ;;  %v12458_v22 = vunpack.c.l.bf16 %v12031_v1  ;;  %v12459_v0 = vunpack.c.l.bf16 %v12036_v24  ;;  %v12118_v35 = vmul.f32 %v12026_v59, %v2810_v36 }
 0x435   : > { %v6397_v57 = vadd.f32 %v6396_v44, %v5913_v15  ;;  %v6418_v46 = vadd.f32 %v6417_v18, %v5914_v55  ;;  %v6439_v43 = vadd.f32 %v6438_v51, %v5915_v40  ;;  %v12121_v1 = vadd.f32 %v6327_v37, %v12061_v41  ;;  %v8190_v41 = vpop.permute.xlu0 %8189 }
 0x436   : > { %v12108_v58 = vmul.f32 %v12028_v6, %v12458_v22  ;;  %v12113_v42 = vmul.f32 %v12026_v59, %v12459_v0  ;;  %v12126_v6 = vmul.f32 %v12026_v59, %v2811_v54  ;;  %v6347_v8 = vadd.f32 %v6346_v13, %v11954_v34 }
 0x437   : > { %v5916_v24 = vmul.f32 %v8182_v33, %v2785_v26  ;;  %v6368_v36 = vadd.f32 %v6367_v62, %v11956_v32  ;;  %v6389_v17 = vadd.f32 %v6388_v21, %v11958_v10  ;;  %v5917_v12 = vmul.f32 %v8182_v33, %v2786_v50  ;;  %v2425_v32 = vld [vmem:[%s8855_s13 + $0x5a8] sm:$0xf]  ;;  %v2422_v10 = vld [vmem:[%s8855_s13 + $0x594] sm:$0xff] }
 0x438   : > { %v5918_v39 = vmul.f32 %v8182_v33, %v2787_v5  ;;  %v6287_v9 = vrot.slane %v12100_v7, 2  ;;  %v6308_v59 = vrot.slane %v12103_v56, 2  ;;  %v8197_v54 = vunpack.i.h.bf16 %v8195_v29  ;;  %v2426_v33 = vld [vmem:[%s8855_s13 + $0x5ac] sm:$0xff]  ;;  %v2427_v5 = vld [vmem:[%s8855_s13 + $0x5b4] sm:$0xf] }
 0x439   : > { %v8196_v34 = vunpack.i.l.bf16 %v8195_v29  ;;  %v6398_v63 = vadd.f32 %v6397_v57, %v5916_v24  ;;  %v6419_v53 = vadd.f32 %v6418_v46, %v5917_v12  ;;  %v2800_v4 = vunpack.c.l.bf16 %v2424_v52 }
 0x43a   : > { %v6440_v48 = vadd.f32 %v6439_v43, %v5918_v39  ;;  %v6348_v47 = vrot.slane %v6347_v8, 4  ;;  %v8191_v11 = vunpack.i.l.bf16 %v8190_v41  ;;  %v2794_v45 = vunpack.c.l.bf16 %v2420_v27 }
 0x43b   : > { %v2795_v14 = vunpack.c.h.bf16 %v2420_v27  ;;  %v6369_v20 = vrot.slane %v6368_v36, 4  ;;  %v6390_v37 = vrot.slane %v6389_v17, 4  ;;  %v2801_v26 = vunpack.c.h.bf16 %v2424_v52  ;;  %v8210_v27 = vpop.permute.xlu1 %8209 }
 0x43c   : > { %v2796_v44 = vunpack.c.l.bf16 %v2421_v31  ;;  %v2802_v18 = vunpack.c.l.bf16 %v2425_v32  ;;  %v8192_v51 = vunpack.i.h.bf16 %v8190_v41  ;;  %v2797_v13 = vunpack.c.l.bf16 %v2422_v10 }
 0x43d   : > { %v2798_v50 = vunpack.c.h.bf16 %v2422_v10  ;;  %v2799_v15 = vunpack.c.l.bf16 %v2423_v61  ;;  %v6399_v62 = vadd.f32 %v6398_v63, %v11993_v28  ;;  %v6420_v21 = vadd.f32 %v6419_v53, %v11995_v49  ;;  %v2436_v10 = vld [vmem:[%s8855_s13 + $0x5e8] sm:$0xff] }
 0x43e   : > { %v6441_v55 = vadd.f32 %v6440_v48, %v12002_v30  ;;  %v12144_v40 = vadd.f32 %v6348_v47, %v6347_v8  ;;  %v2803_v22 = vunpack.c.l.bf16 %v2426_v33  ;;  %v5925_v0 = vmul.f32 %v8191_v11, %v2794_v45  ;;  %v8205_v47 = vpop.permute.xlu0 %8204 }
 0x43f   : > { %v5926_v57 = vmul.f32 %v8191_v11, %v2795_v14  ;;  %v5927_v46 = vmul.f32 %v8191_v11, %v2796_v44  ;;  %v6400_v43 = vadd.f32 %v6399_v62, %v12005_v2  ;;  %v6421_v29 = vadd.f32 %v6420_v21, %v12008_v60  ;;  %v2432_v11 = vld [vmem:[%s8855_s13 + $0x5d0] sm:$0xff] }
 0x440   : > { %v6442_v24 = vadd.f32 %v6441_v55, %v12011_v3  ;;  %v2804_v52 = vunpack.c.h.bf16 %v2426_v33  ;;  %v2805_v12 = vunpack.c.l.bf16 %v2427_v5  ;;  %v5928_v28 = vmul.f32 %v8192_v51, %v2797_v13  ;;  %v2437_v62 = vld [vmem:[%s8855_s13 + $0x5f0] sm:$0xf] }
 0x441   : > { %v5929_v39 = vmul.f32 %v8192_v51, %v2798_v50  ;;  %v5930_v49 = vmul.f32 %v8192_v51, %v2799_v15  ;;  %v6401_v30 = vadd.f32 %v6400_v43, %v5925_v0  ;;  %v6422_v8 = vadd.f32 %v6421_v29, %v5926_v57 }
 0x442   : > { %v6443_v41 = vadd.f32 %v6442_v24, %v5927_v46  ;;  %v12149_v31 = vadd.f32 %v6369_v20, %v6368_v36  ;;  %v12151_v63 = vadd.f32 %v6390_v37, %v6389_v17  ;;  %v5931_v2 = vmul.f32 %v8196_v34, %v2800_v4  ;;  %v2433_v36 = vld [vmem:[%s8855_s13 + $0x5d8] sm:$0xf]  ;;  %v2439_v46 = vld [vmem:[%s8855_s13 + $0x5fc] sm:$0xf] }
 0x443   : > { %v5932_v60 = vmul.f32 %v8196_v34, %v2801_v26  ;;  %v5933_v53 = vmul.f32 %v8196_v34, %v2802_v18  ;;  %v6402_v3 = vadd.f32 %v6401_v30, %v5928_v28  ;;  %v6423_v48 = vadd.f32 %v6422_v8, %v5929_v39  ;;  %v2434_v34 = vld [vmem:[%s8855_s13 + $0x5dc] sm:$0xff]  ;;  %v2435_v18 = vld [vmem:[%s8855_s13 + $0x5e4] sm:$0xf] }
 0x444   : > { %v6444_v32 = vadd.f32 %v6443_v41, %v5930_v49  ;;  %v5934_v61 = vmul.f32 %v8197_v54, %v2803_v22  ;;  %v5935_v45 = vmul.f32 %v8197_v54, %v2804_v52  ;;  %v5936_v14 = vmul.f32 %v8197_v54, %v2805_v12  ;;  %v2438_v54 = vld [vmem:[%s8855_s13 + $0x5f4] sm:$0xff] }
 0x445   : > { %v8212_v33 = vunpack.i.h.bf16 %v8210_v27  ;;  %v6403_v17 = vadd.f32 %v6402_v3, %v5931_v2  ;;  %v6424_v20 = vadd.f32 %v6423_v48, %v5932_v60  ;;  %v8211_v37 = vunpack.i.l.bf16 %v8210_v27 }
 0x446   : > { %v6445_v4 = vadd.f32 %v6444_v32, %v5933_v53  ;;  %v2818_v26 = vunpack.c.l.bf16 %v2436_v10  ;;  %v8206_v44 = vunpack.i.l.bf16 %v8205_v47  ;;  %v2812_v51 = vunpack.c.l.bf16 %v2432_v11 }
 0x447   : > { %v2813_v13 = vunpack.c.h.bf16 %v2432_v11  ;;  %v6404_v50 = vadd.f32 %v6403_v17, %v5934_v61  ;;  %v6425_v5 = vadd.f32 %v6424_v20, %v5935_v45  ;;  %v2814_v21 = vunpack.c.l.bf16 %v2433_v36 }
 0x448   : > { %v6446_v15 = vadd.f32 %v6445_v4, %v5936_v14  ;;  %v2819_v55 = vunpack.c.h.bf16 %v2436_v10  ;;  %v8207_v22 = vunpack.i.h.bf16 %v8205_v47  ;;  %v2815_v0 = vunpack.c.l.bf16 %v2434_v34 }
 0x449   : > { %v2816_v57 = vunpack.c.h.bf16 %v2434_v34  ;;  %v2817_v43 = vunpack.c.l.bf16 %v2435_v18  ;;  %v6405_v29 = vadd.f32 %v6404_v50, %v12068_v16  ;;  %v6426_v24 = vadd.f32 %v6425_v5, %v12089_v38 }
 0x44a   : > { %v6447_v52 = vadd.f32 %v6446_v15, %v12108_v58  ;;  %v2820_v12 = vunpack.c.l.bf16 %v2437_v62  ;;  %v2821_v28 = vunpack.c.l.bf16 %v2438_v54  ;;  %v5943_v39 = vmul.f32 %v8206_v44, %v2812_v51 }
 0x44b   : > { %v5944_v49 = vmul.f32 %v8206_v44, %v2813_v13  ;;  %v5945_v30 = vmul.f32 %v8206_v44, %v2814_v21  ;;  %v6406_v8 = vadd.f32 %v6405_v29, %v12113_v42  ;;  %v6427_v41 = vadd.f32 %v6426_v24, %v12118_v35 }
 0x44c   : > { %v6448_v27 = vadd.f32 %v6447_v52, %v12126_v6  ;;  %v2822_v2 = vunpack.c.h.bf16 %v2438_v54  ;;  %v2823_v60 = vunpack.c.l.bf16 %v2439_v46  ;;  %v5946_v53 = vmul.f32 %v8207_v22, %v2815_v0 }
 0x44d   : > { %v5947_v3 = vmul.f32 %v8207_v22, %v2816_v57  ;;  %v5948_v16 = vmul.f32 %v8207_v22, %v2817_v43  ;;  %v6407_v48 = vadd.f32 %v6406_v8, %v5943_v39  ;;  %v6428_v38 = vadd.f32 %v6427_v41, %v5944_v49 }
 0x44e   : > { %v6449_v32 = vadd.f32 %v6448_v27, %v5945_v30  ;;  %v6329_v58 = vrot.slane %v12121_v1, 2  ;;  %v6350_v10 = vrot.slane %v12144_v40, 2  ;;  %v5949_v47 = vmul.f32 %v8211_v37, %v2818_v26 }
 0x44f   : > { %v5950_v11 = vmul.f32 %v8211_v37, %v2819_v55  ;;  %v5951_v61 = vmul.f32 %v8211_v37, %v2820_v12  ;;  %v6408_v42 = vadd.f32 %v6407_v48, %v5946_v53  ;;  %v6429_v45 = vadd.f32 %v6428_v38, %v5947_v3  ;;  %v4928_v53 = vld [vmem:[#allocation3 + $0x8] sm:$0xff]  ;;  %v4929_v3 = vld [vmem:[#allocation3] sm:$0xff] }
 0x450   : > { %v6450_v35 = vadd.f32 %v6449_v32, %v5948_v16  ;;  %v6371_v6 = vrot.slane %v12149_v31, 2  ;;  %v6392_v14 = vrot.slane %v12151_v63, 2  ;;  %v5952_v36 = vmul.f32 %v8212_v33, %v2821_v28  ;;  %v4930_v16 = vld [vmem:[#allocation3 + $0x10] sm:$0xff] }
 0x451   : > { %v5953_v17 = vmul.f32 %v8212_v33, %v2822_v2  ;;  %v5954_v20 = vmul.f32 %v8212_v33, %v2823_v60  ;;  %v6409_v4 = vadd.f32 %v6408_v42, %v5949_v47  ;;  %v6430_v34 = vadd.f32 %v6429_v45, %v5950_v11 }
 0x452   : > { %v6451_v44 = vadd.f32 %v6450_v35, %v5951_v61  ;;  %v6288_v18 = vadd.f32 %v6287_v9, %v12100_v7  ;;  %v6309_v37 = vadd.f32 %v6308_v59, %v12103_v56  ;;  %v6330_v26 = vadd.f32 %v6329_v58, %v12121_v1 }
 0x453   : > { %v6410_v51 = vadd.f32 %v6409_v4, %v5952_v36  ;;  %v6431_v13 = vadd.f32 %v6430_v34, %v5953_v17  ;;  %v6351_v5 = vadd.f32 %v6350_v10, %v12144_v40  ;;  %v6372_v33 = vadd.f32 %v6371_v6, %v12149_v31 }
 0x454   : > { %v6452_v50 = vadd.f32 %v6451_v44, %v5954_v20  ;;  %v6393_v15 = vadd.f32 %v6392_v14, %v12151_v63  ;;  %v6289_v55 = vrot.slane %v6288_v18, 1  ;;  %v6310_v7 = vrot.slane %v6309_v37, 1 }
 0x455   : > { %v6411_v62 = vrot.slane %v6410_v51, 4  ;;  %v6432_v54 = vrot.slane %v6431_v13, 4  ;;  %v6331_v9 = vrot.slane %v6330_v26, 1  ;;  %v6352_v59 = vrot.slane %v6351_v5, 1 }
 0x456   : > { %v6453_v21 = vrot.slane %v6452_v50, 4  ;;  %v6373_v1 = vrot.slane %v6372_v33, 1  ;;  %v6394_v57 = vrot.slane %v6393_v15, 1  ;;  %v6290_v40 = vadd.f32 %v6289_v55, %v6288_v18 }
 0x457   : > { %v6412_v22 = vadd.f32 %v6411_v62, %v6410_v51  ;;  %v6433_v0 = vadd.f32 %v6432_v54, %v6431_v13  ;;  %v6311_v24 = vadd.f32 %v6310_v7, %v6309_v37  ;;  %v6332_v31 = vadd.f32 %v6331_v9, %v6330_v26 }
 0x458   : > { %v6454_v56 = vadd.f32 %v6453_v21, %v6452_v50  ;;  %v6353_v28 = vadd.f32 %v6352_v59, %v6351_v5  ;;  %v6374_v39 = vadd.f32 %v6373_v1, %v6372_v33  ;;  %v6395_v49 = vadd.f32 %v6394_v57, %v6393_v15 }
 0x459   : > { %v6413_v46 = vrot.slane %v6412_v22, 2  ;;  %v6434_v43 = vrot.slane %v6433_v0, 2  ;;  %v6487_v27 = vsel %vm4899_vm4, %v6290_v40, %v11980_v25  ;;  %v6494_v2 = vsel %vm4899_vm4, %v6311_v24, %v11985_v19 }
 0x45a   : > { %v6455_v29 = vrot.slane %v6454_v56, 2  ;;  %v6501_v60 = vsel %vm4899_vm4, %v6332_v31, %v11989_v23  ;;  %v6488_v58 = vsel %vm4901_vm5, %v6353_v28, %v6487_v27  ;;  %v6495_v10 = vsel %vm4901_vm5, %v6374_v39, %v6494_v2 }
 0x45b   : > { %v6414_v52 = vadd.f32 %v6413_v46, %v6412_v22  ;;  %v6435_v63 = vadd.f32 %v6434_v43, %v6433_v0  ;;  %v6502_v47 = vsel %vm4901_vm5, %v6395_v49, %v6501_v60 }
 0x45c   : > { %v6456_v12 = vadd.f32 %v6455_v29, %v6454_v56 }
 0x45d   : > { %v6415_v30 = vrot.slane %v6414_v52, 1  ;;  %v6436_v8 = vrot.slane %v6435_v63, 1 }
 0x45e   : > { %v6457_v41 = vrot.slane %v6456_v12, 1 }
 0x45f   : > { %v6416_v48 = vadd.f32 %v6415_v30, %v6414_v52  ;;  %v6437_v38 = vadd.f32 %v6436_v8, %v6435_v63 }
 0x460   : > { %v6458_v32 = vadd.f32 %v6457_v41, %v6456_v12 }
 0x461   : > { %v6489_v25 = vsel %vm4903_vm6, %v6416_v48, %v6488_v58  ;;  %v6496_v11 = vsel %vm4903_vm6, %v6437_v38, %v6495_v10 }
 0x462   : > { %v6503_v19 = vsel %vm4903_vm6, %v6458_v32, %v6502_v47  ;;  %v6507_v61 = vadd.f32 %v6489_v25, %v4928_v53  ;;  %v6508_v23 = vadd.f32 %v6496_v11, %v4929_v3  ;;  %6516 = sbr.rel (%p6783_p7) target bundleno = 1135 (0x46f), region = 134 }
 0x463   : > { %v6509_v42 = vadd.f32 %v6503_v19, %v4930_v16 }
 0x464   : > { %6510 = vst [vmem:[#allocation3 + $0x8] sm:$0xff] %v6507_v61 }
 0x465   : > { %6511 = vst [vmem:[#allocation3] sm:$0xff] %v6508_v23 }
 0x466   : > { %6512 = vst [vmem:[#allocation3 + $0x10] sm:$0xff] %v6509_v42 }
 0x467   : > { %v6517_v45 = vld [vmem:[#allocation2 + $0x10] sm:$0xff]  ;;  %v6518_v35 = vld [vmem:[#allocation2] sm:$0xff]  ;;  %v6519_v6 = vld [vmem:[#allocation2 + $0x8] sm:$0xff] }
 0x468   : > { %6520 = vst [vmem:[%s8869_s8] sm:$0xff] %v6517_v45 }
 0x469   : > { %6521 = vst [vmem:[%s8869_s8 + $0x8] sm:$0xff] %v6518_v35 }
 0x46a   : > { %6522 = vst [vmem:[%s8869_s8 + $0x10] sm:$0xff] %v6519_v6 }
 0x46b   : > { %v6523_v14 = vld [vmem:[#allocation3 + $0x8] sm:$0xff] }
 0x46c   : > { %v6524_v36 = vld [vmem:[#allocation3] sm:$0xff]  ;;  %6526 = vst [vmem:[%s8871_s9] sm:$0xff] %v6523_v14 }
 0x46d   : > { %v6525_v17 = vld [vmem:[#allocation3 + $0x10] sm:$0xff]  ;;  %6527 = vst [vmem:[%s8871_s9 + $0x8] sm:$0xff] %v6524_v36 }
 0x46e   : > { %6528 = vst [vmem:[%s8871_s9 + $0x10] sm:$0xff] %v6525_v17 }
 0x46f PF: > { %s7436_s24 = smul.u32 24, %s8359_s25  ;;  %s6548_s12 = sshll.u32 %s8869_s8, 4  ;;  %s6549_s12 = int_to_ptr.vmem [resolvable:$true] %s6548_s12 }
 0x470   : > { %s6563_s30 = sshll.u32 %s8871_s9, 4  ;;  %s6530_s13 = scalar_lea.sflag [#allocation6], %s8862_s7  ;;  %s6564_s30 = int_to_ptr.vmem [resolvable:$true] %s6563_s30 }
 0x471   : > { %s6546_s10 = scalar_lea.hbm %s12272_s4, %s7436_s24  ;;  %s6561_s14 = scalar_lea.hbm %s12273_s5, %s7436_s24 }
 0x472   : > { %s6550_s29 = sshll.u32 %s6546_s10, 4  ;;  %s8233_s17 = scalar_lea.hbm %s12272_s4, 48  ;;  %s6551_s29 = int_to_ptr.hbm [resolvable:$true] %s6550_s29 }
 0x473   : > { %s8227_s6 = sshra.s32 %s6551_s29, 4  ;;  %s8228_s6 = int_to_ptr.hbm [resolvable:$true] %s8227_s6 }
 0x474   : > { %s8229_s21 = scalar_lea.hbm %s8228_s6, 24  ;;  %p8234_p11 = scmp.lt.s32.totalorder %s8228_s6, %s12272_s4 }
 0x475   : > { %p8230_p8 = scmp.ne.s32.totalorder %s8228_s6, %s8229_s21  ;;  %p8235_p13 = scmp.lt.s32.totalorder %s8233_s17, %s8229_s21 }
 0x477   : > { %p8231_p9 = pnand %p8230_p8, %p8499_p12  ;;  %p8236_p0 = por %p8235_p13, %p8234_p11 }
 0x479   : > { %p8232_p10 = pneg %p8231_p9 }
 0x47b   : > { %p8237_p2 = pnand %p8236_p0, %p8232_p10 }
 0x47d   : > { %8240 = shalt.err (!%p8237_p2)
}
 0x47e   : > { %7456 = dma.vmem_to_hbm [thread:$0]  (%p8499_p12), %s6549_s12, 384, %s6551_s29, %s6530_s13  }
 0x47f   : > { %s6565_s9 = sshll.u32 %s6561_s14, 4  ;;  %s6535_s24 = scalar_lea.sflag [#allocation13], %s8862_s7  ;;  %s6566_s9 = int_to_ptr.hbm [resolvable:$true] %s6565_s9 }
 0x480   : > { %s8255_s11 = sshra.s32 %s6566_s9, 4  ;;  %s8261_s6 = scalar_lea.hbm %s12273_s5, 48  ;;  %s8256_s11 = int_to_ptr.hbm [resolvable:$true] %s8255_s11 }
 0x481   : > { %s8257_s10 = scalar_lea.hbm %s8256_s11, 24  ;;  %p8262_p6 = scmp.lt.s32.totalorder %s8256_s11, %s12273_s5 }
 0x482   : > { %p8258_p3 = scmp.ne.s32.totalorder %s8256_s11, %s8257_s10  ;;  %p8263_p7 = scmp.lt.s32.totalorder %s8261_s6, %s8257_s10 }
 0x484   : > { %p8259_p4 = pnand %p8258_p3, %p8499_p12  ;;  %p8264_p8 = por %p8263_p7, %p8262_p6 }
 0x486   : > { %p8260_p5 = pneg %p8259_p4 }
 0x488   : > { %p8265_p9 = pnand %p8264_p8, %p8260_p5 }
 0x48a   : > { %8268 = shalt.err (!%p8265_p9)
}
 0x48b   : > { %7457 = dma.vmem_to_hbm [thread:$0]  (%p8499_p12), %s6564_s30, 384, %s6566_s9, %s6535_s24  }
 0x48c PF: > { %s12460_s7 = sld [smem:[#allocation24_spill]]  ;;  %p7467_p10 = scmp.ge.s32.totalorder %s8371_s28, 2 }
 0x48e   : > { %p7461_p11 = pnand %p7467_p10, %p8511_p1 }
 0x490   : > { %p7462_p13 = pneg %p7461_p11 }
 0x492   : > { %s6577_s29 = sand.u32 1, %s12460_s7  }
 0x493   : > { %s6578_s14 = scalar_lea.sflag [#allocation6], %s6577_s29 }
 0x494   : > { %8322 = dma.done.wait (%p7462_p13), %s6578_s14, 384  }
 0x495   : > { %8324 = vsyncadd (%p7462_p13), %s6578_s14, 4294966912  ;;  %s6588_s13 = scalar_lea.sflag [#allocation13], %s6577_s29 }
 0x496   : > { %8326 = dma.done.wait (%p7462_p13), %s6588_s13, 384  }
 0x497   : > { %8328 = vsyncadd (%p7462_p13), %s6588_s13, 4294966912  ;;  %s28_s28 = sadd.s32 1, %s8371_s28   ;;  %s12462_s15 = sld [smem:[#allocation25_spill]] }
 0x498   : > { %p25_p0 = scmp.ge.s32.totalorder %s28_s28, 10   ;;  %s12463_s20 = sld [smem:[#allocation29_spill]] }
 0x499   : > { %s12464_s30 = sld [smem:[#allocation26_spill]]  ;;  %s12468_s18 = smov %s8335_s19 }
 0x49a   : > { %s12465_s23 = sld [smem:[#allocation30_spill]]  ;;  %s12470_s21 = smov %s8347_s22 }
 0x49b   : > { %s12466_s17 = sld [smem:[#allocation27_spill]]  ;;  %s12472_s24 = smov %s8363_s26 }
 0x49c   : > { %s12467_s8 = sld [smem:[#allocation28_spill]]  ;;  %s12473_s25 = smov %s8367_s27 }
 0x49d   : > { %s12469_s19 = smov %s12462_s15 }
 0x49e   :  { %27 = sbr.rel (!%p25_p0) target bundleno = 13 (0xd), region = 227 }
 0x49f   : > { %s12471_s22 = smov %s12464_s30 }
 0x4a1   : > { %s12474_s26 = smov %s12466_s17 }
 0x4a2   : > { %s12475_s27 = smov %s12467_s8 }
 0x4a3   :  { %6594 = vsyncpa [#allocation5], 1 }
 0x4a4   :  { %6596 = vsyncpa [#allocation5 + $0x1], 1 }
 0x4a5   :  { %6597 = vsyncpa [#allocation8], 1 }
 0x4a6   :  { %6599 = vsyncpa [#allocation8 + $0x1], 1 }
 0x4a7   :  { %6600 = vsyncpa [#allocation6], 1 }
 0x4a8   :  { %6602 = vsyncpa [#allocation6 + $0x1], 1 }
 0x4a9   :  { %6603 = vsyncpa [#allocation13], 1 }
 0x4aa   :  { %6605 = vsyncpa [#allocation13 + $0x1], 1 }

</bundles_post_ra>
